<compile_context>
chip_gen: v6e
topology: v6e:2x2x1
jax: 0.10.0
libtpu: 0.0.40
codegen_flags: <defaults>
</compile_context>

<pallas_src>
import numpy as np
import jax
import jax.numpy as jnp
from jax.experimental import pallas as pl
from jax.experimental.pallas import tpu as pltpu

_SQUARINGS = 8       # A -> A * 2^-8, Taylor on the scaled matrix, then 8 squarings
_TAYLOR_TERMS = 6    # order-6 Taylor; truncation error far below f32 eps after scaling
_LANES = 128
_SUBLANES = 8
_TB = _SUBLANES * _LANES   # 1024 batch elements per grid step


def _mm4(a, b, scale=None):
    """4x4 matmul on entry planes: a, b are length-16 lists of (8, 128) tiles.

    c[i*4+k] = sum_j a[i*4+j] * b[j*4+k]  (64 unrolled dense FMAs, VALU only).
    Optional scalar `scale` is fused into the result (used for the 1/k! terms).
    """
    c = []
    for i in range(4):
        for k in range(4):
            acc = a[4 * i] * b[k]                       # j = 0 initializes (no zeros init)
            for j in range(1, 4):
                acc = acc + a[4 * i + j] * b[4 * j + k]
            if scale is not None:
                acc = acc * scale
            c.append(acc)
    return c


def lie_expm_kernel(basis_ref, lie_ref, out_ref):
    # basis_ref: SMEM (7, 16)     -- elements * weights, flattened 4x4 per generator
    # lie_ref:   VMEM (7, 8, 128) -- batch tile of lie coordinates
    # out_ref:   VMEM (16, 8, 128)-- batch tile of output matrix entries
    scale = jnp.float32(2.0 ** (-_SQUARINGS))
    lie = [lie_ref[c] for c in range(7)]                # seven (8, 128) planes

    # A_s[e] = 2^-8 * sum_c lie[c] * basis[c, e]   (scalar coefficients from SMEM)
    a_s = []
    for e in range(16):
        acc = lie[0] * (basis_ref[0, e] * scale)
        for c in range(1, 7):
            acc = acc + lie[c] * (basis_ref[c, e] * scale)
        a_s.append(acc)

    # expm = I + A_s + sum_{k=2..K} A_s^k / k!
    term = list(a_s)
    expm = list(a_s)
    for e in (0, 5, 10, 15):                            # identity: +1 on the diagonal planes
        expm[e] = expm[e] + 1.0
    for k in range(2, _TAYLOR_TERMS + 1):
        term = _mm4(term, a_s, scale=jnp.float32(1.0 / k))
        expm = [expm[e] + term[e] for e in range(16)]

    # repeated squaring
    for _ in range(_SQUARINGS):
        expm = _mm4(expm, expm)

    # projective normalization by the (3, 3) entry (plane 15); reciprocal on the EUP
    inv = pl.reciprocal(expm[15], approx=False)
    for e in range(16):
        out_ref[e] = (expm[e] * inv).astype(out_ref.dtype)


def _make_basis(x_w=1.0, y_w=1.0, z_w=1.0, xy_rot_w=1.0, xz_rot_w=1.0,
                yz_rot_w=1.0, xy_stretch_w=1.0):
    """The 7 sim(3)+stretch generators, pre-multiplied by the per-generator weights."""
    elements = np.zeros((7, 4, 4), np.float32)
    elements[0, 0, 3] = 1.0
    elements[1, 1, 3] = 1.0
    elements[2, 2, 3] = 1.0
    elements[3, 1, 2] = -1.0
    elements[3, 2, 1] = 1.0
    elements[4, 0, 2] = 1.0
    elements[4, 2, 0] = -1.0
    elements[5, 0, 1] = -1.0
    elements[5, 1, 0] = 1.0
    elements[6, 0, 0] = 1.0
    elements[6, 1, 1] = -1.0
    weights = np.array([x_w, y_w, z_w, xy_rot_w, xz_rot_w, yz_rot_w, xy_stretch_w],
                       np.float32)
    return jnp.asarray(elements * weights[:, None, None])


def lie_algebra_positioned_rectangles(lie_vectors, basis):
    """Forward pass: (B, 7) lie vectors, (7, 4, 4) basis -> (B, 4, 4) float32."""
    B = lie_vectors.shape[0]
    bp = ((B + _TB - 1) // _TB) * _TB                   # pad batch to a full tile
    nb = bp // _TB

    # Wrapper-side layout plumbing: batch-dense, entry-major planes.
    lie_t = jnp.zeros((7, bp), jnp.float32).at[:, :B].set(
        lie_vectors.astype(jnp.float32).T)
    lie_planes = lie_t.reshape(7, bp // _LANES, _LANES)
    basis_flat = basis.reshape(7, 16).astype(jnp.float32)

    out_planes = pl.pallas_call(
        lie_expm_kernel,
        out_shape=jax.ShapeDtypeStruct((16, bp // _LANES, _LANES), jnp.float32),
        grid=(nb,),
        in_specs=[
            pl.BlockSpec(memory_space=pltpu.MemorySpace.SMEM),            # basis (7, 16)
            pl.BlockSpec((7, _SUBLANES, _LANES), lambda i: (0, i, 0)),     # lie planes
        ],
        out_specs=pl.BlockSpec((16, _SUBLANES, _LANES), lambda i: (0, i, 0)),
        compiler_params=pltpu.CompilerParams(
            dimension_semantics=("parallel",)),
        cost_estimate=pl.CostEstimate(
            flops=2000 * bp, transcendentals=bp, bytes_accessed=(7 + 16) * 4 * bp),
    )(basis_flat, lie_planes)

    out = out_planes.reshape(16, bp)[:, :B]             # (16, B) entry-major
    return jnp.transpose(out).reshape(B, 4, 4)


if __name__ == "__main__":
    B = 8
    key = jax.random.PRNGKey(0)
    lie_vectors = 0.3 * jax.random.normal(key, (B, 7), dtype=jnp.float32)

    basis = _make_basis()  # module defaults: all weights = 1.0

    out = jax.block_until_ready(lie_algebra_positioned_rectangles(lie_vectors, basis))

    # reference in plain JAX (same math path as torch.linalg.matrix_exp, f32)
    a_ref = jnp.einsum("bc,cij->bij", lie_vectors, basis)
    t_ref = jax.vmap(jax.scipy.linalg.expm)(a_ref)
    t_ref = t_ref / t_ref[:, 3:4, 3:4]

    np.testing.assert_allclose(np.asarray(out), np.asarray(t_ref), rtol=1e-3, atol=1e-4)
    print("KERNEL_OK")
</pallas_src>

<mosaic_0001>
module attributes {stable_mosaic.version = 11 : i64} {
  func.func @lie_expm_kernel(%arg0: i32, %arg1: memref<7x16xf32, #tpu.memory_space<smem>>, %arg2: memref<7x8x128xf32, #tpu.memory_space<vmem>>, %arg3: memref<16x8x128xf32, #tpu.memory_space<vmem>>) attributes {dimension_semantics = [#tpu.dimension_semantics<parallel>], iteration_bounds = array<i64: 1>, scalar_prefetch = 0 : i64, scratch_operands = 0 : i64, tpu.core_type = #tpu.core_type<tc>, window_params = [{transform_indices = @transform_0, window_bounds = array<i64: 7, 16>}, {transform_indices = @transform_1, window_bounds = array<i64: 7, 8, 128>}, {transform_indices = @transform_2, window_bounds = array<i64: 16, 8, 128>}]} {
    %c0 = arith.constant 0 : index
    %c0_0 = arith.constant 0 : index
    %c0_1 = arith.constant 0 : index
    %0 = vector.load %arg2[%c0, %c0_0, %c0_1] : memref<7x8x128xf32, #tpu.memory_space<vmem>>, vector<1x8x128xf32>
    %1 = vector.shape_cast %0 : vector<1x8x128xf32> to vector<8x128xf32>
    %c1 = arith.constant 1 : index
    %c0_2 = arith.constant 0 : index
    %c0_3 = arith.constant 0 : index
    %2 = vector.load %arg2[%c1, %c0_2, %c0_3] : memref<7x8x128xf32, #tpu.memory_space<vmem>>, vector<1x8x128xf32>
    %3 = vector.shape_cast %2 : vector<1x8x128xf32> to vector<8x128xf32>
    %c2 = arith.constant 2 : index
    %c0_4 = arith.constant 0 : index
    %c0_5 = arith.constant 0 : index
    %4 = vector.load %arg2[%c2, %c0_4, %c0_5] : memref<7x8x128xf32, #tpu.memory_space<vmem>>, vector<1x8x128xf32>
    %5 = vector.shape_cast %4 : vector<1x8x128xf32> to vector<8x128xf32>
    %c3 = arith.constant 3 : index
    %c0_6 = arith.constant 0 : index
    %c0_7 = arith.constant 0 : index
    %6 = vector.load %arg2[%c3, %c0_6, %c0_7] : memref<7x8x128xf32, #tpu.memory_space<vmem>>, vector<1x8x128xf32>
    %7 = vector.shape_cast %6 : vector<1x8x128xf32> to vector<8x128xf32>
    %c4 = arith.constant 4 : index
    %c0_8 = arith.constant 0 : index
    %c0_9 = arith.constant 0 : index
    %8 = vector.load %arg2[%c4, %c0_8, %c0_9] : memref<7x8x128xf32, #tpu.memory_space<vmem>>, vector<1x8x128xf32>
    %9 = vector.shape_cast %8 : vector<1x8x128xf32> to vector<8x128xf32>
    %c5 = arith.constant 5 : index
    %c0_10 = arith.constant 0 : index
    %c0_11 = arith.constant 0 : index
    %10 = vector.load %arg2[%c5, %c0_10, %c0_11] : memref<7x8x128xf32, #tpu.memory_space<vmem>>, vector<1x8x128xf32>
    %11 = vector.shape_cast %10 : vector<1x8x128xf32> to vector<8x128xf32>
    %c6 = arith.constant 6 : index
    %c0_12 = arith.constant 0 : index
    %c0_13 = arith.constant 0 : index
    %12 = vector.load %arg2[%c6, %c0_12, %c0_13] : memref<7x8x128xf32, #tpu.memory_space<vmem>>, vector<1x8x128xf32>
    %13 = vector.shape_cast %12 : vector<1x8x128xf32> to vector<8x128xf32>
    %c0_14 = arith.constant 0 : index
    %c0_15 = arith.constant 0 : index
    %14 = memref.load %arg1[%c0_14, %c0_15] : memref<7x16xf32, #tpu.memory_space<smem>>
    %cst = arith.constant 3.906250e-03 : f32
    %15 = arith.mulf %14, %cst : f32
    %16 = vector.broadcast %15 : f32 to vector<8x128xf32>
    %17 = arith.mulf %1, %16 : vector<8x128xf32>
    %c1_16 = arith.constant 1 : index
    %c0_17 = arith.constant 0 : index
    %18 = memref.load %arg1[%c1_16, %c0_17] : memref<7x16xf32, #tpu.memory_space<smem>>
    %cst_18 = arith.constant 3.906250e-03 : f32
    %19 = arith.mulf %18, %cst_18 : f32
    %20 = vector.broadcast %19 : f32 to vector<8x128xf32>
    %21 = arith.mulf %3, %20 : vector<8x128xf32>
    %22 = arith.addf %17, %21 : vector<8x128xf32>
    %c2_19 = arith.constant 2 : index
    %c0_20 = arith.constant 0 : index
    %23 = memref.load %arg1[%c2_19, %c0_20] : memref<7x16xf32, #tpu.memory_space<smem>>
    %cst_21 = arith.constant 3.906250e-03 : f32
    %24 = arith.mulf %23, %cst_21 : f32
    %25 = vector.broadcast %24 : f32 to vector<8x128xf32>
    %26 = arith.mulf %5, %25 : vector<8x128xf32>
    %27 = arith.addf %22, %26 : vector<8x128xf32>
    %c3_22 = arith.constant 3 : index
    %c0_23 = arith.constant 0 : index
    %28 = memref.load %arg1[%c3_22, %c0_23] : memref<7x16xf32, #tpu.memory_space<smem>>
    %cst_24 = arith.constant 3.906250e-03 : f32
    %29 = arith.mulf %28, %cst_24 : f32
    %30 = vector.broadcast %29 : f32 to vector<8x128xf32>
    %31 = arith.mulf %7, %30 : vector<8x128xf32>
    %32 = arith.addf %27, %31 : vector<8x128xf32>
    %c4_25 = arith.constant 4 : index
    %c0_26 = arith.constant 0 : index
    %33 = memref.load %arg1[%c4_25, %c0_26] : memref<7x16xf32, #tpu.memory_space<smem>>
    %cst_27 = arith.constant 3.906250e-03 : f32
    %34 = arith.mulf %33, %cst_27 : f32
    %35 = vector.broadcast %34 : f32 to vector<8x128xf32>
    %36 = arith.mulf %9, %35 : vector<8x128xf32>
    %37 = arith.addf %32, %36 : vector<8x128xf32>
    %c5_28 = arith.constant 5 : index
    %c0_29 = arith.constant 0 : index
    %38 = memref.load %arg1[%c5_28, %c0_29] : memref<7x16xf32, #tpu.memory_space<smem>>
    %cst_30 = arith.constant 3.906250e-03 : f32
    %39 = arith.mulf %38, %cst_30 : f32
    %40 = vector.broadcast %39 : f32 to vector<8x128xf32>
    %41 = arith.mulf %11, %40 : vector<8x128xf32>
    %42 = arith.addf %37, %41 : vector<8x128xf32>
    %c6_31 = arith.constant 6 : index
    %c0_32 = arith.constant 0 : index
    %43 = memref.load %arg1[%c6_31, %c0_32] : memref<7x16xf32, #tpu.memory_space<smem>>
    %cst_33 = arith.constant 3.906250e-03 : f32
    %44 = arith.mulf %43, %cst_33 : f32
    %45 = vector.broadcast %44 : f32 to vector<8x128xf32>
    %46 = arith.mulf %13, %45 : vector<8x128xf32>
    %47 = arith.addf %42, %46 : vector<8x128xf32>
    %c0_34 = arith.constant 0 : index
    %c1_35 = arith.constant 1 : index
    %48 = memref.load %arg1[%c0_34, %c1_35] : memref<7x16xf32, #tpu.memory_space<smem>>
    %cst_36 = arith.constant 3.906250e-03 : f32
    %49 = arith.mulf %48, %cst_36 : f32
    %50 = vector.broadcast %49 : f32 to vector<8x128xf32>
    %51 = arith.mulf %1, %50 : vector<8x128xf32>
    %c1_37 = arith.constant 1 : index
    %c1_38 = arith.constant 1 : index
    %52 = memref.load %arg1[%c1_37, %c1_38] : memref<7x16xf32, #tpu.memory_space<smem>>
    %cst_39 = arith.constant 3.906250e-03 : f32
    %53 = arith.mulf %52, %cst_39 : f32
    %54 = vector.broadcast %53 : f32 to vector<8x128xf32>
    %55 = arith.mulf %3, %54 : vector<8x128xf32>
    %56 = arith.addf %51, %55 : vector<8x128xf32>
    %c2_40 = arith.constant 2 : index
    %c1_41 = arith.constant 1 : index
    %57 = memref.load %arg1[%c2_40, %c1_41] : memref<7x16xf32, #tpu.memory_space<smem>>
    %cst_42 = arith.constant 3.906250e-03 : f32
    %58 = arith.mulf %57, %cst_42 : f32
    %59 = vector.broadcast %58 : f32 to vector<8x128xf32>
    %60 = arith.mulf %5, %59 : vector<8x128xf32>
    %61 = arith.addf %56, %60 : vector<8x128xf32>
    %c3_43 = arith.constant 3 : index
    %c1_44 = arith.constant 1 : index
    %62 = memref.load %arg1[%c3_43, %c1_44] : memref<7x16xf32, #tpu.memory_space<smem>>
    %cst_45 = arith.constant 3.906250e-03 : f32
    %63 = arith.mulf %62, %cst_45 : f32
    %64 = vector.broadcast %63 : f32 to vector<8x128xf32>
    %65 = arith.mulf %7, %64 : vector<8x128xf32>
    %66 = arith.addf %61, %65 : vector<8x128xf32>
    %c4_46 = arith.constant 4 : index
    %c1_47 = arith.constant 1 : index
    %67 = memref.load %arg1[%c4_46, %c1_47] : memref<7x16xf32, #tpu.memory_space<smem>>
    %cst_48 = arith.constant 3.906250e-03 : f32
    %68 = arith.mulf %67, %cst_48 : f32
    %69 = vector.broadcast %68 : f32 to vector<8x128xf32>
    %70 = arith.mulf %9, %69 : vector<8x128xf32>
    %71 = arith.addf %66, %70 : vector<8x128xf32>
    %c5_49 = arith.constant 5 : index
    %c1_50 = arith.constant 1 : index
    %72 = memref.load %arg1[%c5_49, %c1_50] : memref<7x16xf32, #tpu.memory_space<smem>>
    %cst_51 = arith.constant 3.906250e-03 : f32
    %73 = arith.mulf %72, %cst_51 : f32
    %74 = vector.broadcast %73 : f32 to vector<8x128xf32>
    %75 = arith.mulf %11, %74 : vector<8x128xf32>
    %76 = arith.addf %71, %75 : vector<8x128xf32>
    %c6_52 = arith.constant 6 : index
    %c1_53 = arith.constant 1 : index
    %77 = memref.load %arg1[%c6_52, %c1_53] : memref<7x16xf32, #tpu.memory_space<smem>>
    %cst_54 = arith.constant 3.906250e-03 : f32
    %78 = arith.mulf %77, %cst_54 : f32
    %79 = vector.broadcast %78 : f32 to vector<8x128xf32>
    %80 = arith.mulf %13, %79 : vector<8x128xf32>
    %81 = arith.addf %76, %80 : vector<8x128xf32>
    %c0_55 = arith.constant 0 : index
    %c2_56 = arith.constant 2 : index
    %82 = memref.load %arg1[%c0_55, %c2_56] : memref<7x16xf32, #tpu.memory_space<smem>>
    %cst_57 = arith.constant 3.906250e-03 : f32
    %83 = arith.mulf %82, %cst_57 : f32
    %84 = vector.broadcast %83 : f32 to vector<8x128xf32>
    %85 = arith.mulf %1, %84 : vector<8x128xf32>
    %c1_58 = arith.constant 1 : index
    %c2_59 = arith.constant 2 : index
    %86 = memref.load %arg1[%c1_58, %c2_59] : memref<7x16xf32, #tpu.memory_space<smem>>
    %cst_60 = arith.constant 3.906250e-03 : f32
    %87 = arith.mulf %86, %cst_60 : f32
    %88 = vector.broadcast %87 : f32 to vector<8x128xf32>
    %89 = arith.mulf %3, %88 : vector<8x128xf32>
    %90 = arith.addf %85, %89 : vector<8x128xf32>
    %c2_61 = arith.constant 2 : index
    %c2_62 = arith.constant 2 : index
    %91 = memref.load %arg1[%c2_61, %c2_62] : memref<7x16xf32, #tpu.memory_space<smem>>
    %cst_63 = arith.constant 3.906250e-03 : f32
    %92 = arith.mulf %91, %cst_63 : f32
    %93 = vector.broadcast %92 : f32 to vector<8x128xf32>
    %94 = arith.mulf %5, %93 : vector<8x128xf32>
    %95 = arith.addf %90, %94 : vector<8x128xf32>
    %c3_64 = arith.constant 3 : index
    %c2_65 = arith.constant 2 : index
    %96 = memref.load %arg1[%c3_64, %c2_65] : memref<7x16xf32, #tpu.memory_space<smem>>
    %cst_66 = arith.constant 3.906250e-03 : f32
    %97 = arith.mulf %96, %cst_66 : f32
    %98 = vector.broadcast %97 : f32 to vector<8x128xf32>
    %99 = arith.mulf %7, %98 : vector<8x128xf32>
    %100 = arith.addf %95, %99 : vector<8x128xf32>
    %c4_67 = arith.constant 4 : index
    %c2_68 = arith.constant 2 : index
    %101 = memref.load %arg1[%c4_67, %c2_68] : memref<7x16xf32, #tpu.memory_space<smem>>
    %cst_69 = arith.constant 3.906250e-03 : f32
    %102 = arith.mulf %101, %cst_69 : f32
    %103 = vector.broadcast %102 : f32 to vector<8x128xf32>
    %104 = arith.mulf %9, %103 : vector<8x128xf32>
    %105 = arith.addf %100, %104 : vector<8x128xf32>
    %c5_70 = arith.constant 5 : index
    %c2_71 = arith.constant 2 : index
    %106 = memref.load %arg1[%c5_70, %c2_71] : memref<7x16xf32, #tpu.memory_space<smem>>
    %cst_72 = arith.constant 3.906250e-03 : f32
    %107 = arith.mulf %106, %cst_72 : f32
    %108 = vector.broadcast %107 : f32 to vector<8x128xf32>
    %109 = arith.mulf %11, %108 : vector<8x128xf32>
    %110 = arith.addf %105, %109 : vector<8x128xf32>
    %c6_73 = arith.constant 6 : index
    %c2_74 = arith.constant 2 : index
    %111 = memref.load %arg1[%c6_73, %c2_74] : memref<7x16xf32, #tpu.memory_space<smem>>
    %cst_75 = arith.constant 3.906250e-03 : f32
    %112 = arith.mulf %111, %cst_75 : f32
    %113 = vector.broadcast %112 : f32 to vector<8x128xf32>
    %114 = arith.mulf %13, %113 : vector<8x128xf32>
    %115 = arith.addf %110, %114 : vector<8x128xf32>
    %c0_76 = arith.constant 0 : index
    %c3_77 = arith.constant 3 : index
    %116 = memref.load %arg1[%c0_76, %c3_77] : memref<7x16xf32, #tpu.memory_space<smem>>
    %cst_78 = arith.constant 3.906250e-03 : f32
    %117 = arith.mulf %116, %cst_78 : f32
    %118 = vector.broadcast %117 : f32 to vector<8x128xf32>
    %119 = arith.mulf %1, %118 : vector<8x128xf32>
    %c1_79 = arith.constant 1 : index
    %c3_80 = arith.constant 3 : index
    %120 = memref.load %arg1[%c1_79, %c3_80] : memref<7x16xf32, #tpu.memory_space<smem>>
    %cst_81 = arith.constant 3.906250e-03 : f32
    %121 = arith.mulf %120, %cst_81 : f32
    %122 = vector.broadcast %121 : f32 to vector<8x128xf32>
    %123 = arith.mulf %3, %122 : vector<8x128xf32>
    %124 = arith.addf %119, %123 : vector<8x128xf32>
    %c2_82 = arith.constant 2 : index
    %c3_83 = arith.constant 3 : index
    %125 = memref.load %arg1[%c2_82, %c3_83] : memref<7x16xf32, #tpu.memory_space<smem>>
    %cst_84 = arith.constant 3.906250e-03 : f32
    %126 = arith.mulf %125, %cst_84 : f32
    %127 = vector.broadcast %126 : f32 to vector<8x128xf32>
    %128 = arith.mulf %5, %127 : vector<8x128xf32>
    %129 = arith.addf %124, %128 : vector<8x128xf32>
    %c3_85 = arith.constant 3 : index
    %c3_86 = arith.constant 3 : index
    %130 = memref.load %arg1[%c3_85, %c3_86] : memref<7x16xf32, #tpu.memory_space<smem>>
    %cst_87 = arith.constant 3.906250e-03 : f32
    %131 = arith.mulf %130, %cst_87 : f32
    %132 = vector.broadcast %131 : f32 to vector<8x128xf32>
    %133 = arith.mulf %7, %132 : vector<8x128xf32>
    %134 = arith.addf %129, %133 : vector<8x128xf32>
    %c4_88 = arith.constant 4 : index
    %c3_89 = arith.constant 3 : index
    %135 = memref.load %arg1[%c4_88, %c3_89] : memref<7x16xf32, #tpu.memory_space<smem>>
    %cst_90 = arith.constant 3.906250e-03 : f32
    %136 = arith.mulf %135, %cst_90 : f32
    %137 = vector.broadcast %136 : f32 to vector<8x128xf32>
    %138 = arith.mulf %9, %137 : vector<8x128xf32>
    %139 = arith.addf %134, %138 : vector<8x128xf32>
    %c5_91 = arith.constant 5 : index
    %c3_92 = arith.constant 3 : index
    %140 = memref.load %arg1[%c5_91, %c3_92] : memref<7x16xf32, #tpu.memory_space<smem>>
    %cst_93 = arith.constant 3.906250e-03 : f32
    %141 = arith.mulf %140, %cst_93 : f32
    %142 = vector.broadcast %141 : f32 to vector<8x128xf32>
    %143 = arith.mulf %11, %142 : vector<8x128xf32>
    %144 = arith.addf %139, %143 : vector<8x128xf32>
    %c6_94 = arith.constant 6 : index
    %c3_95 = arith.constant 3 : index
    %145 = memref.load %arg1[%c6_94, %c3_95] : memref<7x16xf32, #tpu.memory_space<smem>>
    %cst_96 = arith.constant 3.906250e-03 : f32
    %146 = arith.mulf %145, %cst_96 : f32
    %147 = vector.broadcast %146 : f32 to vector<8x128xf32>
    %148 = arith.mulf %13, %147 : vector<8x128xf32>
    %149 = arith.addf %144, %148 : vector<8x128xf32>
    %c0_97 = arith.constant 0 : index
    %c4_98 = arith.constant 4 : index
    %150 = memref.load %arg1[%c0_97, %c4_98] : memref<7x16xf32, #tpu.memory_space<smem>>
    %cst_99 = arith.constant 3.906250e-03 : f32
    %151 = arith.mulf %150, %cst_99 : f32
    %152 = vector.broadcast %151 : f32 to vector<8x128xf32>
    %153 = arith.mulf %1, %152 : vector<8x128xf32>
    %c1_100 = arith.constant 1 : index
    %c4_101 = arith.constant 4 : index
    %154 = memref.load %arg1[%c1_100, %c4_101] : memref<7x16xf32, #tpu.memory_space<smem>>
    %cst_102 = arith.constant 3.906250e-03 : f32
    %155 = arith.mulf %154, %cst_102 : f32
    %156 = vector.broadcast %155 : f32 to vector<8x128xf32>
    %157 = arith.mulf %3, %156 : vector<8x128xf32>
    %158 = arith.addf %153, %157 : vector<8x128xf32>
    %c2_103 = arith.constant 2 : index
    %c4_104 = arith.constant 4 : index
    %159 = memref.load %arg1[%c2_103, %c4_104] : memref<7x16xf32, #tpu.memory_space<smem>>
    %cst_105 = arith.constant 3.906250e-03 : f32
    %160 = arith.mulf %159, %cst_105 : f32
    %161 = vector.broadcast %160 : f32 to vector<8x128xf32>
    %162 = arith.mulf %5, %161 : vector<8x128xf32>
    %163 = arith.addf %158, %162 : vector<8x128xf32>
    %c3_106 = arith.constant 3 : index
    %c4_107 = arith.constant 4 : index
    %164 = memref.load %arg1[%c3_106, %c4_107] : memref<7x16xf32, #tpu.memory_space<smem>>
    %cst_108 = arith.constant 3.906250e-03 : f32
    %165 = arith.mulf %164, %cst_108 : f32
    %166 = vector.broadcast %165 : f32 to vector<8x128xf32>
    %167 = arith.mulf %7, %166 : vector<8x128xf32>
    %168 = arith.addf %163, %167 : vector<8x128xf32>
    %c4_109 = arith.constant 4 : index
    %c4_110 = arith.constant 4 : index
    %169 = memref.load %arg1[%c4_109, %c4_110] : memref<7x16xf32, #tpu.memory_space<smem>>
    %cst_111 = arith.constant 3.906250e-03 : f32
    %170 = arith.mulf %169, %cst_111 : f32
    %171 = vector.broadcast %170 : f32 to vector<8x128xf32>
    %172 = arith.mulf %9, %171 : vector<8x128xf32>
    %173 = arith.addf %168, %172 : vector<8x128xf32>
    %c5_112 = arith.constant 5 : index
    %c4_113 = arith.constant 4 : index
    %174 = memref.load %arg1[%c5_112, %c4_113] : memref<7x16xf32, #tpu.memory_space<smem>>
    %cst_114 = arith.constant 3.906250e-03 : f32
    %175 = arith.mulf %174, %cst_114 : f32
    %176 = vector.broadcast %175 : f32 to vector<8x128xf32>
    %177 = arith.mulf %11, %176 : vector<8x128xf32>
    %178 = arith.addf %173, %177 : vector<8x128xf32>
    %c6_115 = arith.constant 6 : index
    %c4_116 = arith.constant 4 : index
    %179 = memref.load %arg1[%c6_115, %c4_116] : memref<7x16xf32, #tpu.memory_space<smem>>
    %cst_117 = arith.constant 3.906250e-03 : f32
    %180 = arith.mulf %179, %cst_117 : f32
    %181 = vector.broadcast %180 : f32 to vector<8x128xf32>
    %182 = arith.mulf %13, %181 : vector<8x128xf32>
    %183 = arith.addf %178, %182 : vector<8x128xf32>
    %c0_118 = arith.constant 0 : index
    %c5_119 = arith.constant 5 : index
    %184 = memref.load %arg1[%c0_118, %c5_119] : memref<7x16xf32, #tpu.memory_space<smem>>
    %cst_120 = arith.constant 3.906250e-03 : f32
    %185 = arith.mulf %184, %cst_120 : f32
    %186 = vector.broadcast %185 : f32 to vector<8x128xf32>
    %187 = arith.mulf %1, %186 : vector<8x128xf32>
    %c1_121 = arith.constant 1 : index
    %c5_122 = arith.constant 5 : index
    %188 = memref.load %arg1[%c1_121, %c5_122] : memref<7x16xf32, #tpu.memory_space<smem>>
    %cst_123 = arith.constant 3.906250e-03 : f32
    %189 = arith.mulf %188, %cst_123 : f32
    %190 = vector.broadcast %189 : f32 to vector<8x128xf32>
    %191 = arith.mulf %3, %190 : vector<8x128xf32>
    %192 = arith.addf %187, %191 : vector<8x128xf32>
    %c2_124 = arith.constant 2 : index
    %c5_125 = arith.constant 5 : index
    %193 = memref.load %arg1[%c2_124, %c5_125] : memref<7x16xf32, #tpu.memory_space<smem>>
    %cst_126 = arith.constant 3.906250e-03 : f32
    %194 = arith.mulf %193, %cst_126 : f32
    %195 = vector.broadcast %194 : f32 to vector<8x128xf32>
    %196 = arith.mulf %5, %195 : vector<8x128xf32>
    %197 = arith.addf %192, %196 : vector<8x128xf32>
    %c3_127 = arith.constant 3 : index
    %c5_128 = arith.constant 5 : index
    %198 = memref.load %arg1[%c3_127, %c5_128] : memref<7x16xf32, #tpu.memory_space<smem>>
    %cst_129 = arith.constant 3.906250e-03 : f32
    %199 = arith.mulf %198, %cst_129 : f32
    %200 = vector.broadcast %199 : f32 to vector<8x128xf32>
    %201 = arith.mulf %7, %200 : vector<8x128xf32>
    %202 = arith.addf %197, %201 : vector<8x128xf32>
    %c4_130 = arith.constant 4 : index
    %c5_131 = arith.constant 5 : index
    %203 = memref.load %arg1[%c4_130, %c5_131] : memref<7x16xf32, #tpu.memory_space<smem>>
    %cst_132 = arith.constant 3.906250e-03 : f32
    %204 = arith.mulf %203, %cst_132 : f32
    %205 = vector.broadcast %204 : f32 to vector<8x128xf32>
    %206 = arith.mulf %9, %205 : vector<8x128xf32>
    %207 = arith.addf %202, %206 : vector<8x128xf32>
    %c5_133 = arith.constant 5 : index
    %c5_134 = arith.constant 5 : index
    %208 = memref.load %arg1[%c5_133, %c5_134] : memref<7x16xf32, #tpu.memory_space<smem>>
    %cst_135 = arith.constant 3.906250e-03 : f32
    %209 = arith.mulf %208, %cst_135 : f32
    %210 = vector.broadcast %209 : f32 to vector<8x128xf32>
    %211 = arith.mulf %11, %210 : vector<8x128xf32>
    %212 = arith.addf %207, %211 : vector<8x128xf32>
    %c6_136 = arith.constant 6 : index
    %c5_137 = arith.constant 5 : index
    %213 = memref.load %arg1[%c6_136, %c5_137] : memref<7x16xf32, #tpu.memory_space<smem>>
    %cst_138 = arith.constant 3.906250e-03 : f32
    %214 = arith.mulf %213, %cst_138 : f32
    %215 = vector.broadcast %214 : f32 to vector<8x128xf32>
    %216 = arith.mulf %13, %215 : vector<8x128xf32>
    %217 = arith.addf %212, %216 : vector<8x128xf32>
    %c0_139 = arith.constant 0 : index
    %c6_140 = arith.constant 6 : index
    %218 = memref.load %arg1[%c0_139, %c6_140] : memref<7x16xf32, #tpu.memory_space<smem>>
    %cst_141 = arith.constant 3.906250e-03 : f32
    %219 = arith.mulf %218, %cst_141 : f32
    %220 = vector.broadcast %219 : f32 to vector<8x128xf32>
    %221 = arith.mulf %1, %220 : vector<8x128xf32>
    %c1_142 = arith.constant 1 : index
    %c6_143 = arith.constant 6 : index
    %222 = memref.load %arg1[%c1_142, %c6_143] : memref<7x16xf32, #tpu.memory_space<smem>>
    %cst_144 = arith.constant 3.906250e-03 : f32
    %223 = arith.mulf %222, %cst_144 : f32
    %224 = vector.broadcast %223 : f32 to vector<8x128xf32>
    %225 = arith.mulf %3, %224 : vector<8x128xf32>
    %226 = arith.addf %221, %225 : vector<8x128xf32>
    %c2_145 = arith.constant 2 : index
    %c6_146 = arith.constant 6 : index
    %227 = memref.load %arg1[%c2_145, %c6_146] : memref<7x16xf32, #tpu.memory_space<smem>>
    %cst_147 = arith.constant 3.906250e-03 : f32
    %228 = arith.mulf %227, %cst_147 : f32
    %229 = vector.broadcast %228 : f32 to vector<8x128xf32>
    %230 = arith.mulf %5, %229 : vector<8x128xf32>
    %231 = arith.addf %226, %230 : vector<8x128xf32>
    %c3_148 = arith.constant 3 : index
    %c6_149 = arith.constant 6 : index
    %232 = memref.load %arg1[%c3_148, %c6_149] : memref<7x16xf32, #tpu.memory_space<smem>>
    %cst_150 = arith.constant 3.906250e-03 : f32
    %233 = arith.mulf %232, %cst_150 : f32
    %234 = vector.broadcast %233 : f32 to vector<8x128xf32>
    %235 = arith.mulf %7, %234 : vector<8x128xf32>
    %236 = arith.addf %231, %235 : vector<8x128xf32>
    %c4_151 = arith.constant 4 : index
    %c6_152 = arith.constant 6 : index
    %237 = memref.load %arg1[%c4_151, %c6_152] : memref<7x16xf32, #tpu.memory_space<smem>>
    %cst_153 = arith.constant 3.906250e-03 : f32
    %238 = arith.mulf %237, %cst_153 : f32
    %239 = vector.broadcast %238 : f32 to vector<8x128xf32>
    %240 = arith.mulf %9, %239 : vector<8x128xf32>
    %241 = arith.addf %236, %240 : vector<8x128xf32>
    %c5_154 = arith.constant 5 : index
    %c6_155 = arith.constant 6 : index
    %242 = memref.load %arg1[%c5_154, %c6_155] : memref<7x16xf32, #tpu.memory_space<smem>>
    %cst_156 = arith.constant 3.906250e-03 : f32
    %243 = arith.mulf %242, %cst_156 : f32
    %244 = vector.broadcast %243 : f32 to vector<8x128xf32>
    %245 = arith.mulf %11, %244 : vector<8x128xf32>
    %246 = arith.addf %241, %245 : vector<8x128xf32>
    %c6_157 = arith.constant 6 : index
    %c6_158 = arith.constant 6 : index
    %247 = memref.load %arg1[%c6_157, %c6_158] : memref<7x16xf32, #tpu.memory_space<smem>>
    %cst_159 = arith.constant 3.906250e-03 : f32
    %248 = arith.mulf %247, %cst_159 : f32
    %249 = vector.broadcast %248 : f32 to vector<8x128xf32>
    %250 = arith.mulf %13, %249 : vector<8x128xf32>
    %251 = arith.addf %246, %250 : vector<8x128xf32>
    %c0_160 = arith.constant 0 : index
    %c7 = arith.constant 7 : index
    %252 = memref.load %arg1[%c0_160, %c7] : memref<7x16xf32, #tpu.memory_space<smem>>
    %cst_161 = arith.constant 3.906250e-03 : f32
    %253 = arith.mulf %252, %cst_161 : f32
    %254 = vector.broadcast %253 : f32 to vector<8x128xf32>
    %255 = arith.mulf %1, %254 : vector<8x128xf32>
    %c1_162 = arith.constant 1 : index
    %c7_163 = arith.constant 7 : index
    %256 = memref.load %arg1[%c1_162, %c7_163] : memref<7x16xf32, #tpu.memory_space<smem>>
    %cst_164 = arith.constant 3.906250e-03 : f32
    %257 = arith.mulf %256, %cst_164 : f32
    %258 = vector.broadcast %257 : f32 to vector<8x128xf32>
    %259 = arith.mulf %3, %258 : vector<8x128xf32>
    %260 = arith.addf %255, %259 : vector<8x128xf32>
    %c2_165 = arith.constant 2 : index
    %c7_166 = arith.constant 7 : index
    %261 = memref.load %arg1[%c2_165, %c7_166] : memref<7x16xf32, #tpu.memory_space<smem>>
    %cst_167 = arith.constant 3.906250e-03 : f32
    %262 = arith.mulf %261, %cst_167 : f32
    %263 = vector.broadcast %262 : f32 to vector<8x128xf32>
    %264 = arith.mulf %5, %263 : vector<8x128xf32>
    %265 = arith.addf %260, %264 : vector<8x128xf32>
    %c3_168 = arith.constant 3 : index
    %c7_169 = arith.constant 7 : index
    %266 = memref.load %arg1[%c3_168, %c7_169] : memref<7x16xf32, #tpu.memory_space<smem>>
    %cst_170 = arith.constant 3.906250e-03 : f32
    %267 = arith.mulf %266, %cst_170 : f32
    %268 = vector.broadcast %267 : f32 to vector<8x128xf32>
    %269 = arith.mulf %7, %268 : vector<8x128xf32>
    %270 = arith.addf %265, %269 : vector<8x128xf32>
    %c4_171 = arith.constant 4 : index
    %c7_172 = arith.constant 7 : index
    %271 = memref.load %arg1[%c4_171, %c7_172] : memref<7x16xf32, #tpu.memory_space<smem>>
    %cst_173 = arith.constant 3.906250e-03 : f32
    %272 = arith.mulf %271, %cst_173 : f32
    %273 = vector.broadcast %272 : f32 to vector<8x128xf32>
    %274 = arith.mulf %9, %273 : vector<8x128xf32>
    %275 = arith.addf %270, %274 : vector<8x128xf32>
    %c5_174 = arith.constant 5 : index
    %c7_175 = arith.constant 7 : index
    %276 = memref.load %arg1[%c5_174, %c7_175] : memref<7x16xf32, #tpu.memory_space<smem>>
    %cst_176 = arith.constant 3.906250e-03 : f32
    %277 = arith.mulf %276, %cst_176 : f32
    %278 = vector.broadcast %277 : f32 to vector<8x128xf32>
    %279 = arith.mulf %11, %278 : vector<8x128xf32>
    %280 = arith.addf %275, %279 : vector<8x128xf32>
    %c6_177 = arith.constant 6 : index
    %c7_178 = arith.constant 7 : index
    %281 = memref.load %arg1[%c6_177, %c7_178] : memref<7x16xf32, #tpu.memory_space<smem>>
    %cst_179 = arith.constant 3.906250e-03 : f32
    %282 = arith.mulf %281, %cst_179 : f32
    %283 = vector.broadcast %282 : f32 to vector<8x128xf32>
    %284 = arith.mulf %13, %283 : vector<8x128xf32>
    %285 = arith.addf %280, %284 : vector<8x128xf32>
    %c0_180 = arith.constant 0 : index
    %c8 = arith.constant 8 : index
    %286 = memref.load %arg1[%c0_180, %c8] : memref<7x16xf32, #tpu.memory_space<smem>>
    %cst_181 = arith.constant 3.906250e-03 : f32
    %287 = arith.mulf %286, %cst_181 : f32
    %288 = vector.broadcast %287 : f32 to vector<8x128xf32>
    %289 = arith.mulf %1, %288 : vector<8x128xf32>
    %c1_182 = arith.constant 1 : index
    %c8_183 = arith.constant 8 : index
    %290 = memref.load %arg1[%c1_182, %c8_183] : memref<7x16xf32, #tpu.memory_space<smem>>
    %cst_184 = arith.constant 3.906250e-03 : f32
    %291 = arith.mulf %290, %cst_184 : f32
    %292 = vector.broadcast %291 : f32 to vector<8x128xf32>
    %293 = arith.mulf %3, %292 : vector<8x128xf32>
    %294 = arith.addf %289, %293 : vector<8x128xf32>
    %c2_185 = arith.constant 2 : index
    %c8_186 = arith.constant 8 : index
    %295 = memref.load %arg1[%c2_185, %c8_186] : memref<7x16xf32, #tpu.memory_space<smem>>
    %cst_187 = arith.constant 3.906250e-03 : f32
    %296 = arith.mulf %295, %cst_187 : f32
    %297 = vector.broadcast %296 : f32 to vector<8x128xf32>
    %298 = arith.mulf %5, %297 : vector<8x128xf32>
    %299 = arith.addf %294, %298 : vector<8x128xf32>
    %c3_188 = arith.constant 3 : index
    %c8_189 = arith.constant 8 : index
    %300 = memref.load %arg1[%c3_188, %c8_189] : memref<7x16xf32, #tpu.memory_space<smem>>
    %cst_190 = arith.constant 3.906250e-03 : f32
    %301 = arith.mulf %300, %cst_190 : f32
    %302 = vector.broadcast %301 : f32 to vector<8x128xf32>
    %303 = arith.mulf %7, %302 : vector<8x128xf32>
    %304 = arith.addf %299, %303 : vector<8x128xf32>
    %c4_191 = arith.constant 4 : index
    %c8_192 = arith.constant 8 : index
    %305 = memref.load %arg1[%c4_191, %c8_192] : memref<7x16xf32, #tpu.memory_space<smem>>
    %cst_193 = arith.constant 3.906250e-03 : f32
    %306 = arith.mulf %305, %cst_193 : f32
    %307 = vector.broadcast %306 : f32 to vector<8x128xf32>
    %308 = arith.mulf %9, %307 : vector<8x128xf32>
    %309 = arith.addf %304, %308 : vector<8x128xf32>
    %c5_194 = arith.constant 5 : index
    %c8_195 = arith.constant 8 : index
    %310 = memref.load %arg1[%c5_194, %c8_195] : memref<7x16xf32, #tpu.memory_space<smem>>
    %cst_196 = arith.constant 3.906250e-03 : f32
    %311 = arith.mulf %310, %cst_196 : f32
    %312 = vector.broadcast %311 : f32 to vector<8x128xf32>
    %313 = arith.mulf %11, %312 : vector<8x128xf32>
    %314 = arith.addf %309, %313 : vector<8x128xf32>
    %c6_197 = arith.constant 6 : index
    %c8_198 = arith.constant 8 : index
    %315 = memref.load %arg1[%c6_197, %c8_198] : memref<7x16xf32, #tpu.memory_space<smem>>
    %cst_199 = arith.constant 3.906250e-03 : f32
    %316 = arith.mulf %315, %cst_199 : f32
    %317 = vector.broadcast %316 : f32 to vector<8x128xf32>
    %318 = arith.mulf %13, %317 : vector<8x128xf32>
    %319 = arith.addf %314, %318 : vector<8x128xf32>
    %c0_200 = arith.constant 0 : index
    %c9 = arith.constant 9 : index
    %320 = memref.load %arg1[%c0_200, %c9] : memref<7x16xf32, #tpu.memory_space<smem>>
    %cst_201 = arith.constant 3.906250e-03 : f32
    %321 = arith.mulf %320, %cst_201 : f32
    %322 = vector.broadcast %321 : f32 to vector<8x128xf32>
    %323 = arith.mulf %1, %322 : vector<8x128xf32>
    %c1_202 = arith.constant 1 : index
    %c9_203 = arith.constant 9 : index
    %324 = memref.load %arg1[%c1_202, %c9_203] : memref<7x16xf32, #tpu.memory_space<smem>>
    %cst_204 = arith.constant 3.906250e-03 : f32
    %325 = arith.mulf %324, %cst_204 : f32
    %326 = vector.broadcast %325 : f32 to vector<8x128xf32>
    %327 = arith.mulf %3, %326 : vector<8x128xf32>
    %328 = arith.addf %323, %327 : vector<8x128xf32>
    %c2_205 = arith.constant 2 : index
    %c9_206 = arith.constant 9 : index
    %329 = memref.load %arg1[%c2_205, %c9_206] : memref<7x16xf32, #tpu.memory_space<smem>>
    %cst_207 = arith.constant 3.906250e-03 : f32
    %330 = arith.mulf %329, %cst_207 : f32
    %331 = vector.broadcast %330 : f32 to vector<8x128xf32>
    %332 = arith.mulf %5, %331 : vector<8x128xf32>
    %333 = arith.addf %328, %332 : vector<8x128xf32>
    %c3_208 = arith.constant 3 : index
    %c9_209 = arith.constant 9 : index
    %334 = memref.load %arg1[%c3_208, %c9_209] : memref<7x16xf32, #tpu.memory_space<smem>>
    %cst_210 = arith.constant 3.906250e-03 : f32
    %335 = arith.mulf %334, %cst_210 : f32
    %336 = vector.broadcast %335 : f32 to vector<8x128xf32>
    %337 = arith.mulf %7, %336 : vector<8x128xf32>
    %338 = arith.addf %333, %337 : vector<8x128xf32>
    %c4_211 = arith.constant 4 : index
    %c9_212 = arith.constant 9 : index
    %339 = memref.load %arg1[%c4_211, %c9_212] : memref<7x16xf32, #tpu.memory_space<smem>>
    %cst_213 = arith.constant 3.906250e-03 : f32
    %340 = arith.mulf %339, %cst_213 : f32
    %341 = vector.broadcast %340 : f32 to vector<8x128xf32>
    %342 = arith.mulf %9, %341 : vector<8x128xf32>
    %343 = arith.addf %338, %342 : vector<8x128xf32>
    %c5_214 = arith.constant 5 : index
    %c9_215 = arith.constant 9 : index
    %344 = memref.load %arg1[%c5_214, %c9_215] : memref<7x16xf32, #tpu.memory_space<smem>>
    %cst_216 = arith.constant 3.906250e-03 : f32
    %345 = arith.mulf %344, %cst_216 : f32
    %346 = vector.broadcast %345 : f32 to vector<8x128xf32>
    %347 = arith.mulf %11, %346 : vector<8x128xf32>
    %348 = arith.addf %343, %347 : vector<8x128xf32>
    %c6_217 = arith.constant 6 : index
    %c9_218 = arith.constant 9 : index
    %349 = memref.load %arg1[%c6_217, %c9_218] : memref<7x16xf32, #tpu.memory_space<smem>>
    %cst_219 = arith.constant 3.906250e-03 : f32
    %350 = arith.mulf %349, %cst_219 : f32
    %351 = vector.broadcast %350 : f32 to vector<8x128xf32>
    %352 = arith.mulf %13, %351 : vector<8x128xf32>
    %353 = arith.addf %348, %352 : vector<8x128xf32>
    %c0_220 = arith.constant 0 : index
    %c10 = arith.constant 10 : index
    %354 = memref.load %arg1[%c0_220, %c10] : memref<7x16xf32, #tpu.memory_space<smem>>
    %cst_221 = arith.constant 3.906250e-03 : f32
    %355 = arith.mulf %354, %cst_221 : f32
    %356 = vector.broadcast %355 : f32 to vector<8x128xf32>
    %357 = arith.mulf %1, %356 : vector<8x128xf32>
    %c1_222 = arith.constant 1 : index
    %c10_223 = arith.constant 10 : index
    %358 = memref.load %arg1[%c1_222, %c10_223] : memref<7x16xf32, #tpu.memory_space<smem>>
    %cst_224 = arith.constant 3.906250e-03 : f32
    %359 = arith.mulf %358, %cst_224 : f32
    %360 = vector.broadcast %359 : f32 to vector<8x128xf32>
    %361 = arith.mulf %3, %360 : vector<8x128xf32>
    %362 = arith.addf %357, %361 : vector<8x128xf32>
    %c2_225 = arith.constant 2 : index
    %c10_226 = arith.constant 10 : index
    %363 = memref.load %arg1[%c2_225, %c10_226] : memref<7x16xf32, #tpu.memory_space<smem>>
    %cst_227 = arith.constant 3.906250e-03 : f32
    %364 = arith.mulf %363, %cst_227 : f32
    %365 = vector.broadcast %364 : f32 to vector<8x128xf32>
    %366 = arith.mulf %5, %365 : vector<8x128xf32>
    %367 = arith.addf %362, %366 : vector<8x128xf32>
    %c3_228 = arith.constant 3 : index
    %c10_229 = arith.constant 10 : index
    %368 = memref.load %arg1[%c3_228, %c10_229] : memref<7x16xf32, #tpu.memory_space<smem>>
    %cst_230 = arith.constant 3.906250e-03 : f32
    %369 = arith.mulf %368, %cst_230 : f32
    %370 = vector.broadcast %369 : f32 to vector<8x128xf32>
    %371 = arith.mulf %7, %370 : vector<8x128xf32>
    %372 = arith.addf %367, %371 : vector<8x128xf32>
    %c4_231 = arith.constant 4 : index
    %c10_232 = arith.constant 10 : index
    %373 = memref.load %arg1[%c4_231, %c10_232] : memref<7x16xf32, #tpu.memory_space<smem>>
    %cst_233 = arith.constant 3.906250e-03 : f32
    %374 = arith.mulf %373, %cst_233 : f32
    %375 = vector.broadcast %374 : f32 to vector<8x128xf32>
    %376 = arith.mulf %9, %375 : vector<8x128xf32>
    %377 = arith.addf %372, %376 : vector<8x128xf32>
    %c5_234 = arith.constant 5 : index
    %c10_235 = arith.constant 10 : index
    %378 = memref.load %arg1[%c5_234, %c10_235] : memref<7x16xf32, #tpu.memory_space<smem>>
    %cst_236 = arith.constant 3.906250e-03 : f32
    %379 = arith.mulf %378, %cst_236 : f32
    %380 = vector.broadcast %379 : f32 to vector<8x128xf32>
    %381 = arith.mulf %11, %380 : vector<8x128xf32>
    %382 = arith.addf %377, %381 : vector<8x128xf32>
    %c6_237 = arith.constant 6 : index
    %c10_238 = arith.constant 10 : index
    %383 = memref.load %arg1[%c6_237, %c10_238] : memref<7x16xf32, #tpu.memory_space<smem>>
    %cst_239 = arith.constant 3.906250e-03 : f32
    %384 = arith.mulf %383, %cst_239 : f32
    %385 = vector.broadcast %384 : f32 to vector<8x128xf32>
    %386 = arith.mulf %13, %385 : vector<8x128xf32>
    %387 = arith.addf %382, %386 : vector<8x128xf32>
    %c0_240 = arith.constant 0 : index
    %c11 = arith.constant 11 : index
    %388 = memref.load %arg1[%c0_240, %c11] : memref<7x16xf32, #tpu.memory_space<smem>>
    %cst_241 = arith.constant 3.906250e-03 : f32
    %389 = arith.mulf %388, %cst_241 : f32
    %390 = vector.broadcast %389 : f32 to vector<8x128xf32>
    %391 = arith.mulf %1, %390 : vector<8x128xf32>
    %c1_242 = arith.constant 1 : index
    %c11_243 = arith.constant 11 : index
    %392 = memref.load %arg1[%c1_242, %c11_243] : memref<7x16xf32, #tpu.memory_space<smem>>
    %cst_244 = arith.constant 3.906250e-03 : f32
    %393 = arith.mulf %392, %cst_244 : f32
    %394 = vector.broadcast %393 : f32 to vector<8x128xf32>
    %395 = arith.mulf %3, %394 : vector<8x128xf32>
    %396 = arith.addf %391, %395 : vector<8x128xf32>
    %c2_245 = arith.constant 2 : index
    %c11_246 = arith.constant 11 : index
    %397 = memref.load %arg1[%c2_245, %c11_246] : memref<7x16xf32, #tpu.memory_space<smem>>
    %cst_247 = arith.constant 3.906250e-03 : f32
    %398 = arith.mulf %397, %cst_247 : f32
    %399 = vector.broadcast %398 : f32 to vector<8x128xf32>
    %400 = arith.mulf %5, %399 : vector<8x128xf32>
    %401 = arith.addf %396, %400 : vector<8x128xf32>
    %c3_248 = arith.constant 3 : index
    %c11_249 = arith.constant 11 : index
    %402 = memref.load %arg1[%c3_248, %c11_249] : memref<7x16xf32, #tpu.memory_space<smem>>
    %cst_250 = arith.constant 3.906250e-03 : f32
    %403 = arith.mulf %402, %cst_250 : f32
    %404 = vector.broadcast %403 : f32 to vector<8x128xf32>
    %405 = arith.mulf %7, %404 : vector<8x128xf32>
    %406 = arith.addf %401, %405 : vector<8x128xf32>
    %c4_251 = arith.constant 4 : index
    %c11_252 = arith.constant 11 : index
    %407 = memref.load %arg1[%c4_251, %c11_252] : memref<7x16xf32, #tpu.memory_space<smem>>
    %cst_253 = arith.constant 3.906250e-03 : f32
    %408 = arith.mulf %407, %cst_253 : f32
    %409 = vector.broadcast %408 : f32 to vector<8x128xf32>
    %410 = arith.mulf %9, %409 : vector<8x128xf32>
    %411 = arith.addf %406, %410 : vector<8x128xf32>
    %c5_254 = arith.constant 5 : index
    %c11_255 = arith.constant 11 : index
    %412 = memref.load %arg1[%c5_254, %c11_255] : memref<7x16xf32, #tpu.memory_space<smem>>
    %cst_256 = arith.constant 3.906250e-03 : f32
    %413 = arith.mulf %412, %cst_256 : f32
    %414 = vector.broadcast %413 : f32 to vector<8x128xf32>
    %415 = arith.mulf %11, %414 : vector<8x128xf32>
    %416 = arith.addf %411, %415 : vector<8x128xf32>
    %c6_257 = arith.constant 6 : index
    %c11_258 = arith.constant 11 : index
    %417 = memref.load %arg1[%c6_257, %c11_258] : memref<7x16xf32, #tpu.memory_space<smem>>
    %cst_259 = arith.constant 3.906250e-03 : f32
    %418 = arith.mulf %417, %cst_259 : f32
    %419 = vector.broadcast %418 : f32 to vector<8x128xf32>
    %420 = arith.mulf %13, %419 : vector<8x128xf32>
    %421 = arith.addf %416, %420 : vector<8x128xf32>
    %c0_260 = arith.constant 0 : index
    %c12 = arith.constant 12 : index
    %422 = memref.load %arg1[%c0_260, %c12] : memref<7x16xf32, #tpu.memory_space<smem>>
    %cst_261 = arith.constant 3.906250e-03 : f32
    %423 = arith.mulf %422, %cst_261 : f32
    %424 = vector.broadcast %423 : f32 to vector<8x128xf32>
    %425 = arith.mulf %1, %424 : vector<8x128xf32>
    %c1_262 = arith.constant 1 : index
    %c12_263 = arith.constant 12 : index
    %426 = memref.load %arg1[%c1_262, %c12_263] : memref<7x16xf32, #tpu.memory_space<smem>>
    %cst_264 = arith.constant 3.906250e-03 : f32
    %427 = arith.mulf %426, %cst_264 : f32
    %428 = vector.broadcast %427 : f32 to vector<8x128xf32>
    %429 = arith.mulf %3, %428 : vector<8x128xf32>
    %430 = arith.addf %425, %429 : vector<8x128xf32>
    %c2_265 = arith.constant 2 : index
    %c12_266 = arith.constant 12 : index
    %431 = memref.load %arg1[%c2_265, %c12_266] : memref<7x16xf32, #tpu.memory_space<smem>>
    %cst_267 = arith.constant 3.906250e-03 : f32
    %432 = arith.mulf %431, %cst_267 : f32
    %433 = vector.broadcast %432 : f32 to vector<8x128xf32>
    %434 = arith.mulf %5, %433 : vector<8x128xf32>
    %435 = arith.addf %430, %434 : vector<8x128xf32>
    %c3_268 = arith.constant 3 : index
    %c12_269 = arith.constant 12 : index
    %436 = memref.load %arg1[%c3_268, %c12_269] : memref<7x16xf32, #tpu.memory_space<smem>>
    %cst_270 = arith.constant 3.906250e-03 : f32
    %437 = arith.mulf %436, %cst_270 : f32
    %438 = vector.broadcast %437 : f32 to vector<8x128xf32>
    %439 = arith.mulf %7, %438 : vector<8x128xf32>
    %440 = arith.addf %435, %439 : vector<8x128xf32>
    %c4_271 = arith.constant 4 : index
    %c12_272 = arith.constant 12 : index
    %441 = memref.load %arg1[%c4_271, %c12_272] : memref<7x16xf32, #tpu.memory_space<smem>>
    %cst_273 = arith.constant 3.906250e-03 : f32
    %442 = arith.mulf %441, %cst_273 : f32
    %443 = vector.broadcast %442 : f32 to vector<8x128xf32>
    %444 = arith.mulf %9, %443 : vector<8x128xf32>
    %445 = arith.addf %440, %444 : vector<8x128xf32>
    %c5_274 = arith.constant 5 : index
    %c12_275 = arith.constant 12 : index
    %446 = memref.load %arg1[%c5_274, %c12_275] : memref<7x16xf32, #tpu.memory_space<smem>>
    %cst_276 = arith.constant 3.906250e-03 : f32
    %447 = arith.mulf %446, %cst_276 : f32
    %448 = vector.broadcast %447 : f32 to vector<8x128xf32>
    %449 = arith.mulf %11, %448 : vector<8x128xf32>
    %450 = arith.addf %445, %449 : vector<8x128xf32>
    %c6_277 = arith.constant 6 : index
    %c12_278 = arith.constant 12 : index
    %451 = memref.load %arg1[%c6_277, %c12_278] : memref<7x16xf32, #tpu.memory_space<smem>>
    %cst_279 = arith.constant 3.906250e-03 : f32
    %452 = arith.mulf %451, %cst_279 : f32
    %453 = vector.broadcast %452 : f32 to vector<8x128xf32>
    %454 = arith.mulf %13, %453 : vector<8x128xf32>
    %455 = arith.addf %450, %454 : vector<8x128xf32>
    %c0_280 = arith.constant 0 : index
    %c13 = arith.constant 13 : index
    %456 = memref.load %arg1[%c0_280, %c13] : memref<7x16xf32, #tpu.memory_space<smem>>
    %cst_281 = arith.constant 3.906250e-03 : f32
    %457 = arith.mulf %456, %cst_281 : f32
    %458 = vector.broadcast %457 : f32 to vector<8x128xf32>
    %459 = arith.mulf %1, %458 : vector<8x128xf32>
    %c1_282 = arith.constant 1 : index
    %c13_283 = arith.constant 13 : index
    %460 = memref.load %arg1[%c1_282, %c13_283] : memref<7x16xf32, #tpu.memory_space<smem>>
    %cst_284 = arith.constant 3.906250e-03 : f32
    %461 = arith.mulf %460, %cst_284 : f32
    %462 = vector.broadcast %461 : f32 to vector<8x128xf32>
    %463 = arith.mulf %3, %462 : vector<8x128xf32>
    %464 = arith.addf %459, %463 : vector<8x128xf32>
    %c2_285 = arith.constant 2 : index
    %c13_286 = arith.constant 13 : index
    %465 = memref.load %arg1[%c2_285, %c13_286] : memref<7x16xf32, #tpu.memory_space<smem>>
    %cst_287 = arith.constant 3.906250e-03 : f32
    %466 = arith.mulf %465, %cst_287 : f32
    %467 = vector.broadcast %466 : f32 to vector<8x128xf32>
    %468 = arith.mulf %5, %467 : vector<8x128xf32>
    %469 = arith.addf %464, %468 : vector<8x128xf32>
    %c3_288 = arith.constant 3 : index
    %c13_289 = arith.constant 13 : index
    %470 = memref.load %arg1[%c3_288, %c13_289] : memref<7x16xf32, #tpu.memory_space<smem>>
    %cst_290 = arith.constant 3.906250e-03 : f32
    %471 = arith.mulf %470, %cst_290 : f32
    %472 = vector.broadcast %471 : f32 to vector<8x128xf32>
    %473 = arith.mulf %7, %472 : vector<8x128xf32>
    %474 = arith.addf %469, %473 : vector<8x128xf32>
    %c4_291 = arith.constant 4 : index
    %c13_292 = arith.constant 13 : index
    %475 = memref.load %arg1[%c4_291, %c13_292] : memref<7x16xf32, #tpu.memory_space<smem>>
    %cst_293 = arith.constant 3.906250e-03 : f32
    %476 = arith.mulf %475, %cst_293 : f32
    %477 = vector.broadcast %476 : f32 to vector<8x128xf32>
    %478 = arith.mulf %9, %477 : vector<8x128xf32>
    %479 = arith.addf %474, %478 : vector<8x128xf32>
    %c5_294 = arith.constant 5 : index
    %c13_295 = arith.constant 13 : index
    %480 = memref.load %arg1[%c5_294, %c13_295] : memref<7x16xf32, #tpu.memory_space<smem>>
    %cst_296 = arith.constant 3.906250e-03 : f32
    %481 = arith.mulf %480, %cst_296 : f32
    %482 = vector.broadcast %481 : f32 to vector<8x128xf32>
    %483 = arith.mulf %11, %482 : vector<8x128xf32>
    %484 = arith.addf %479, %483 : vector<8x128xf32>
    %c6_297 = arith.constant 6 : index
    %c13_298 = arith.constant 13 : index
    %485 = memref.load %arg1[%c6_297, %c13_298] : memref<7x16xf32, #tpu.memory_space<smem>>
    %cst_299 = arith.constant 3.906250e-03 : f32
    %486 = arith.mulf %485, %cst_299 : f32
    %487 = vector.broadcast %486 : f32 to vector<8x128xf32>
    %488 = arith.mulf %13, %487 : vector<8x128xf32>
    %489 = arith.addf %484, %488 : vector<8x128xf32>
    %c0_300 = arith.constant 0 : index
    %c14 = arith.constant 14 : index
    %490 = memref.load %arg1[%c0_300, %c14] : memref<7x16xf32, #tpu.memory_space<smem>>
    %cst_301 = arith.constant 3.906250e-03 : f32
    %491 = arith.mulf %490, %cst_301 : f32
    %492 = vector.broadcast %491 : f32 to vector<8x128xf32>
    %493 = arith.mulf %1, %492 : vector<8x128xf32>
    %c1_302 = arith.constant 1 : index
    %c14_303 = arith.constant 14 : index
    %494 = memref.load %arg1[%c1_302, %c14_303] : memref<7x16xf32, #tpu.memory_space<smem>>
    %cst_304 = arith.constant 3.906250e-03 : f32
    %495 = arith.mulf %494, %cst_304 : f32
    %496 = vector.broadcast %495 : f32 to vector<8x128xf32>
    %497 = arith.mulf %3, %496 : vector<8x128xf32>
    %498 = arith.addf %493, %497 : vector<8x128xf32>
    %c2_305 = arith.constant 2 : index
    %c14_306 = arith.constant 14 : index
    %499 = memref.load %arg1[%c2_305, %c14_306] : memref<7x16xf32, #tpu.memory_space<smem>>
    %cst_307 = arith.constant 3.906250e-03 : f32
    %500 = arith.mulf %499, %cst_307 : f32
    %501 = vector.broadcast %500 : f32 to vector<8x128xf32>
    %502 = arith.mulf %5, %501 : vector<8x128xf32>
    %503 = arith.addf %498, %502 : vector<8x128xf32>
    %c3_308 = arith.constant 3 : index
    %c14_309 = arith.constant 14 : index
    %504 = memref.load %arg1[%c3_308, %c14_309] : memref<7x16xf32, #tpu.memory_space<smem>>
    %cst_310 = arith.constant 3.906250e-03 : f32
    %505 = arith.mulf %504, %cst_310 : f32
    %506 = vector.broadcast %505 : f32 to vector<8x128xf32>
    %507 = arith.mulf %7, %506 : vector<8x128xf32>
    %508 = arith.addf %503, %507 : vector<8x128xf32>
    %c4_311 = arith.constant 4 : index
    %c14_312 = arith.constant 14 : index
    %509 = memref.load %arg1[%c4_311, %c14_312] : memref<7x16xf32, #tpu.memory_space<smem>>
    %cst_313 = arith.constant 3.906250e-03 : f32
    %510 = arith.mulf %509, %cst_313 : f32
    %511 = vector.broadcast %510 : f32 to vector<8x128xf32>
    %512 = arith.mulf %9, %511 : vector<8x128xf32>
    %513 = arith.addf %508, %512 : vector<8x128xf32>
    %c5_314 = arith.constant 5 : index
    %c14_315 = arith.constant 14 : index
    %514 = memref.load %arg1[%c5_314, %c14_315] : memref<7x16xf32, #tpu.memory_space<smem>>
    %cst_316 = arith.constant 3.906250e-03 : f32
    %515 = arith.mulf %514, %cst_316 : f32
    %516 = vector.broadcast %515 : f32 to vector<8x128xf32>
    %517 = arith.mulf %11, %516 : vector<8x128xf32>
    %518 = arith.addf %513, %517 : vector<8x128xf32>
    %c6_317 = arith.constant 6 : index
    %c14_318 = arith.constant 14 : index
    %519 = memref.load %arg1[%c6_317, %c14_318] : memref<7x16xf32, #tpu.memory_space<smem>>
    %cst_319 = arith.constant 3.906250e-03 : f32
    %520 = arith.mulf %519, %cst_319 : f32
    %521 = vector.broadcast %520 : f32 to vector<8x128xf32>
    %522 = arith.mulf %13, %521 : vector<8x128xf32>
    %523 = arith.addf %518, %522 : vector<8x128xf32>
    %c0_320 = arith.constant 0 : index
    %c15 = arith.constant 15 : index
    %524 = memref.load %arg1[%c0_320, %c15] : memref<7x16xf32, #tpu.memory_space<smem>>
    %cst_321 = arith.constant 3.906250e-03 : f32
    %525 = arith.mulf %524, %cst_321 : f32
    %526 = vector.broadcast %525 : f32 to vector<8x128xf32>
    %527 = arith.mulf %1, %526 : vector<8x128xf32>
    %c1_322 = arith.constant 1 : index
    %c15_323 = arith.constant 15 : index
    %528 = memref.load %arg1[%c1_322, %c15_323] : memref<7x16xf32, #tpu.memory_space<smem>>
    %cst_324 = arith.constant 3.906250e-03 : f32
    %529 = arith.mulf %528, %cst_324 : f32
    %530 = vector.broadcast %529 : f32 to vector<8x128xf32>
    %531 = arith.mulf %3, %530 : vector<8x128xf32>
    %532 = arith.addf %527, %531 : vector<8x128xf32>
    %c2_325 = arith.constant 2 : index
    %c15_326 = arith.constant 15 : index
    %533 = memref.load %arg1[%c2_325, %c15_326] : memref<7x16xf32, #tpu.memory_space<smem>>
    %cst_327 = arith.constant 3.906250e-03 : f32
    %534 = arith.mulf %533, %cst_327 : f32
    %535 = vector.broadcast %534 : f32 to vector<8x128xf32>
    %536 = arith.mulf %5, %535 : vector<8x128xf32>
    %537 = arith.addf %532, %536 : vector<8x128xf32>
    %c3_328 = arith.constant 3 : index
    %c15_329 = arith.constant 15 : index
    %538 = memref.load %arg1[%c3_328, %c15_329] : memref<7x16xf32, #tpu.memory_space<smem>>
    %cst_330 = arith.constant 3.906250e-03 : f32
    %539 = arith.mulf %538, %cst_330 : f32
    %540 = vector.broadcast %539 : f32 to vector<8x128xf32>
    %541 = arith.mulf %7, %540 : vector<8x128xf32>
    %542 = arith.addf %537, %541 : vector<8x128xf32>
    %c4_331 = arith.constant 4 : index
    %c15_332 = arith.constant 15 : index
    %543 = memref.load %arg1[%c4_331, %c15_332] : memref<7x16xf32, #tpu.memory_space<smem>>
    %cst_333 = arith.constant 3.906250e-03 : f32
    %544 = arith.mulf %543, %cst_333 : f32
    %545 = vector.broadcast %544 : f32 to vector<8x128xf32>
    %546 = arith.mulf %9, %545 : vector<8x128xf32>
    %547 = arith.addf %542, %546 : vector<8x128xf32>
    %c5_334 = arith.constant 5 : index
    %c15_335 = arith.constant 15 : index
    %548 = memref.load %arg1[%c5_334, %c15_335] : memref<7x16xf32, #tpu.memory_space<smem>>
    %cst_336 = arith.constant 3.906250e-03 : f32
    %549 = arith.mulf %548, %cst_336 : f32
    %550 = vector.broadcast %549 : f32 to vector<8x128xf32>
    %551 = arith.mulf %11, %550 : vector<8x128xf32>
    %552 = arith.addf %547, %551 : vector<8x128xf32>
    %c6_337 = arith.constant 6 : index
    %c15_338 = arith.constant 15 : index
    %553 = memref.load %arg1[%c6_337, %c15_338] : memref<7x16xf32, #tpu.memory_space<smem>>
    %cst_339 = arith.constant 3.906250e-03 : f32
    %554 = arith.mulf %553, %cst_339 : f32
    %555 = vector.broadcast %554 : f32 to vector<8x128xf32>
    %556 = arith.mulf %13, %555 : vector<8x128xf32>
    %557 = arith.addf %552, %556 : vector<8x128xf32>
    %cst_340 = arith.constant 1.000000e+00 : f32
    %558 = vector.broadcast %cst_340 : f32 to vector<8x128xf32>
    %559 = arith.addf %47, %558 : vector<8x128xf32>
    %cst_341 = arith.constant 1.000000e+00 : f32
    %560 = vector.broadcast %cst_341 : f32 to vector<8x128xf32>
    %561 = arith.addf %217, %560 : vector<8x128xf32>
    %cst_342 = arith.constant 1.000000e+00 : f32
    %562 = vector.broadcast %cst_342 : f32 to vector<8x128xf32>
    %563 = arith.addf %387, %562 : vector<8x128xf32>
    %cst_343 = arith.constant 1.000000e+00 : f32
    %564 = vector.broadcast %cst_343 : f32 to vector<8x128xf32>
    %565 = arith.addf %557, %564 : vector<8x128xf32>
    %566 = arith.mulf %47, %47 : vector<8x128xf32>
    %567 = arith.mulf %81, %183 : vector<8x128xf32>
    %568 = arith.addf %566, %567 : vector<8x128xf32>
    %569 = arith.mulf %115, %319 : vector<8x128xf32>
    %570 = arith.addf %568, %569 : vector<8x128xf32>
    %571 = arith.mulf %149, %455 : vector<8x128xf32>
    %572 = arith.addf %570, %571 : vector<8x128xf32>
    %cst_344 = arith.constant 5.000000e-01 : f32
    %573 = vector.broadcast %cst_344 : f32 to vector<8x128xf32>
    %574 = arith.mulf %572, %573 : vector<8x128xf32>
    %575 = arith.mulf %47, %81 : vector<8x128xf32>
    %576 = arith.mulf %81, %217 : vector<8x128xf32>
    %577 = arith.addf %575, %576 : vector<8x128xf32>
    %578 = arith.mulf %115, %353 : vector<8x128xf32>
    %579 = arith.addf %577, %578 : vector<8x128xf32>
    %580 = arith.mulf %149, %489 : vector<8x128xf32>
    %581 = arith.addf %579, %580 : vector<8x128xf32>
    %cst_345 = arith.constant 5.000000e-01 : f32
    %582 = vector.broadcast %cst_345 : f32 to vector<8x128xf32>
    %583 = arith.mulf %581, %582 : vector<8x128xf32>
    %584 = arith.mulf %47, %115 : vector<8x128xf32>
    %585 = arith.mulf %81, %251 : vector<8x128xf32>
    %586 = arith.addf %584, %585 : vector<8x128xf32>
    %587 = arith.mulf %115, %387 : vector<8x128xf32>
    %588 = arith.addf %586, %587 : vector<8x128xf32>
    %589 = arith.mulf %149, %523 : vector<8x128xf32>
    %590 = arith.addf %588, %589 : vector<8x128xf32>
    %cst_346 = arith.constant 5.000000e-01 : f32
    %591 = vector.broadcast %cst_346 : f32 to vector<8x128xf32>
    %592 = arith.mulf %590, %591 : vector<8x128xf32>
    %593 = arith.mulf %47, %149 : vector<8x128xf32>
    %594 = arith.mulf %81, %285 : vector<8x128xf32>
    %595 = arith.addf %593, %594 : vector<8x128xf32>
    %596 = arith.mulf %115, %421 : vector<8x128xf32>
    %597 = arith.addf %595, %596 : vector<8x128xf32>
    %598 = arith.mulf %149, %557 : vector<8x128xf32>
    %599 = arith.addf %597, %598 : vector<8x128xf32>
    %cst_347 = arith.constant 5.000000e-01 : f32
    %600 = vector.broadcast %cst_347 : f32 to vector<8x128xf32>
    %601 = arith.mulf %599, %600 : vector<8x128xf32>
    %602 = arith.mulf %183, %47 : vector<8x128xf32>
    %603 = arith.mulf %217, %183 : vector<8x128xf32>
    %604 = arith.addf %602, %603 : vector<8x128xf32>
    %605 = arith.mulf %251, %319 : vector<8x128xf32>
    %606 = arith.addf %604, %605 : vector<8x128xf32>
    %607 = arith.mulf %285, %455 : vector<8x128xf32>
    %608 = arith.addf %606, %607 : vector<8x128xf32>
    %cst_348 = arith.constant 5.000000e-01 : f32
    %609 = vector.broadcast %cst_348 : f32 to vector<8x128xf32>
    %610 = arith.mulf %608, %609 : vector<8x128xf32>
    %611 = arith.mulf %183, %81 : vector<8x128xf32>
    %612 = arith.mulf %217, %217 : vector<8x128xf32>
    %613 = arith.addf %611, %612 : vector<8x128xf32>
    %614 = arith.mulf %251, %353 : vector<8x128xf32>
    %615 = arith.addf %613, %614 : vector<8x128xf32>
    %616 = arith.mulf %285, %489 : vector<8x128xf32>
    %617 = arith.addf %615, %616 : vector<8x128xf32>
    %cst_349 = arith.constant 5.000000e-01 : f32
    %618 = vector.broadcast %cst_349 : f32 to vector<8x128xf32>
    %619 = arith.mulf %617, %618 : vector<8x128xf32>
    %620 = arith.mulf %183, %115 : vector<8x128xf32>
    %621 = arith.mulf %217, %251 : vector<8x128xf32>
    %622 = arith.addf %620, %621 : vector<8x128xf32>
    %623 = arith.mulf %251, %387 : vector<8x128xf32>
    %624 = arith.addf %622, %623 : vector<8x128xf32>
    %625 = arith.mulf %285, %523 : vector<8x128xf32>
    %626 = arith.addf %624, %625 : vector<8x128xf32>
    %cst_350 = arith.constant 5.000000e-01 : f32
    %627 = vector.broadcast %cst_350 : f32 to vector<8x128xf32>
    %628 = arith.mulf %626, %627 : vector<8x128xf32>
    %629 = arith.mulf %183, %149 : vector<8x128xf32>
    %630 = arith.mulf %217, %285 : vector<8x128xf32>
    %631 = arith.addf %629, %630 : vector<8x128xf32>
    %632 = arith.mulf %251, %421 : vector<8x128xf32>
    %633 = arith.addf %631, %632 : vector<8x128xf32>
    %634 = arith.mulf %285, %557 : vector<8x128xf32>
    %635 = arith.addf %633, %634 : vector<8x128xf32>
    %cst_351 = arith.constant 5.000000e-01 : f32
    %636 = vector.broadcast %cst_351 : f32 to vector<8x128xf32>
    %637 = arith.mulf %635, %636 : vector<8x128xf32>
    %638 = arith.mulf %319, %47 : vector<8x128xf32>
    %639 = arith.mulf %353, %183 : vector<8x128xf32>
    %640 = arith.addf %638, %639 : vector<8x128xf32>
    %641 = arith.mulf %387, %319 : vector<8x128xf32>
    %642 = arith.addf %640, %641 : vector<8x128xf32>
    %643 = arith.mulf %421, %455 : vector<8x128xf32>
    %644 = arith.addf %642, %643 : vector<8x128xf32>
    %cst_352 = arith.constant 5.000000e-01 : f32
    %645 = vector.broadcast %cst_352 : f32 to vector<8x128xf32>
    %646 = arith.mulf %644, %645 : vector<8x128xf32>
    %647 = arith.mulf %319, %81 : vector<8x128xf32>
    %648 = arith.mulf %353, %217 : vector<8x128xf32>
    %649 = arith.addf %647, %648 : vector<8x128xf32>
    %650 = arith.mulf %387, %353 : vector<8x128xf32>
    %651 = arith.addf %649, %650 : vector<8x128xf32>
    %652 = arith.mulf %421, %489 : vector<8x128xf32>
    %653 = arith.addf %651, %652 : vector<8x128xf32>
    %cst_353 = arith.constant 5.000000e-01 : f32
    %654 = vector.broadcast %cst_353 : f32 to vector<8x128xf32>
    %655 = arith.mulf %653, %654 : vector<8x128xf32>
    %656 = arith.mulf %319, %115 : vector<8x128xf32>
    %657 = arith.mulf %353, %251 : vector<8x128xf32>
    %658 = arith.addf %656, %657 : vector<8x128xf32>
    %659 = arith.mulf %387, %387 : vector<8x128xf32>
    %660 = arith.addf %658, %659 : vector<8x128xf32>
    %661 = arith.mulf %421, %523 : vector<8x128xf32>
    %662 = arith.addf %660, %661 : vector<8x128xf32>
    %cst_354 = arith.constant 5.000000e-01 : f32
    %663 = vector.broadcast %cst_354 : f32 to vector<8x128xf32>
    %664 = arith.mulf %662, %663 : vector<8x128xf32>
    %665 = arith.mulf %319, %149 : vector<8x128xf32>
    %666 = arith.mulf %353, %285 : vector<8x128xf32>
    %667 = arith.addf %665, %666 : vector<8x128xf32>
    %668 = arith.mulf %387, %421 : vector<8x128xf32>
    %669 = arith.addf %667, %668 : vector<8x128xf32>
    %670 = arith.mulf %421, %557 : vector<8x128xf32>
    %671 = arith.addf %669, %670 : vector<8x128xf32>
    %cst_355 = arith.constant 5.000000e-01 : f32
    %672 = vector.broadcast %cst_355 : f32 to vector<8x128xf32>
    %673 = arith.mulf %671, %672 : vector<8x128xf32>
    %674 = arith.mulf %455, %47 : vector<8x128xf32>
    %675 = arith.mulf %489, %183 : vector<8x128xf32>
    %676 = arith.addf %674, %675 : vector<8x128xf32>
    %677 = arith.mulf %523, %319 : vector<8x128xf32>
    %678 = arith.addf %676, %677 : vector<8x128xf32>
    %679 = arith.mulf %557, %455 : vector<8x128xf32>
    %680 = arith.addf %678, %679 : vector<8x128xf32>
    %cst_356 = arith.constant 5.000000e-01 : f32
    %681 = vector.broadcast %cst_356 : f32 to vector<8x128xf32>
    %682 = arith.mulf %680, %681 : vector<8x128xf32>
    %683 = arith.mulf %455, %81 : vector<8x128xf32>
    %684 = arith.mulf %489, %217 : vector<8x128xf32>
    %685 = arith.addf %683, %684 : vector<8x128xf32>
    %686 = arith.mulf %523, %353 : vector<8x128xf32>
    %687 = arith.addf %685, %686 : vector<8x128xf32>
    %688 = arith.mulf %557, %489 : vector<8x128xf32>
    %689 = arith.addf %687, %688 : vector<8x128xf32>
    %cst_357 = arith.constant 5.000000e-01 : f32
    %690 = vector.broadcast %cst_357 : f32 to vector<8x128xf32>
    %691 = arith.mulf %689, %690 : vector<8x128xf32>
    %692 = arith.mulf %455, %115 : vector<8x128xf32>
    %693 = arith.mulf %489, %251 : vector<8x128xf32>
    %694 = arith.addf %692, %693 : vector<8x128xf32>
    %695 = arith.mulf %523, %387 : vector<8x128xf32>
    %696 = arith.addf %694, %695 : vector<8x128xf32>
    %697 = arith.mulf %557, %523 : vector<8x128xf32>
    %698 = arith.addf %696, %697 : vector<8x128xf32>
    %cst_358 = arith.constant 5.000000e-01 : f32
    %699 = vector.broadcast %cst_358 : f32 to vector<8x128xf32>
    %700 = arith.mulf %698, %699 : vector<8x128xf32>
    %701 = arith.mulf %455, %149 : vector<8x128xf32>
    %702 = arith.mulf %489, %285 : vector<8x128xf32>
    %703 = arith.addf %701, %702 : vector<8x128xf32>
    %704 = arith.mulf %523, %421 : vector<8x128xf32>
    %705 = arith.addf %703, %704 : vector<8x128xf32>
    %706 = arith.mulf %557, %557 : vector<8x128xf32>
    %707 = arith.addf %705, %706 : vector<8x128xf32>
    %cst_359 = arith.constant 5.000000e-01 : f32
    %708 = vector.broadcast %cst_359 : f32 to vector<8x128xf32>
    %709 = arith.mulf %707, %708 : vector<8x128xf32>
    %710 = arith.addf %559, %574 : vector<8x128xf32>
    %711 = arith.addf %81, %583 : vector<8x128xf32>
    %712 = arith.addf %115, %592 : vector<8x128xf32>
    %713 = arith.addf %149, %601 : vector<8x128xf32>
    %714 = arith.addf %183, %610 : vector<8x128xf32>
    %715 = arith.addf %561, %619 : vector<8x128xf32>
    %716 = arith.addf %251, %628 : vector<8x128xf32>
    %717 = arith.addf %285, %637 : vector<8x128xf32>
    %718 = arith.addf %319, %646 : vector<8x128xf32>
    %719 = arith.addf %353, %655 : vector<8x128xf32>
    %720 = arith.addf %563, %664 : vector<8x128xf32>
    %721 = arith.addf %421, %673 : vector<8x128xf32>
    %722 = arith.addf %455, %682 : vector<8x128xf32>
    %723 = arith.addf %489, %691 : vector<8x128xf32>
    %724 = arith.addf %523, %700 : vector<8x128xf32>
    %725 = arith.addf %565, %709 : vector<8x128xf32>
    %726 = arith.mulf %574, %47 : vector<8x128xf32>
    %727 = arith.mulf %583, %183 : vector<8x128xf32>
    %728 = arith.addf %726, %727 : vector<8x128xf32>
    %729 = arith.mulf %592, %319 : vector<8x128xf32>
    %730 = arith.addf %728, %729 : vector<8x128xf32>
    %731 = arith.mulf %601, %455 : vector<8x128xf32>
    %732 = arith.addf %730, %731 : vector<8x128xf32>
    %cst_360 = arith.constant 0.333333343 : f32
    %733 = vector.broadcast %cst_360 : f32 to vector<8x128xf32>
    %734 = arith.mulf %732, %733 : vector<8x128xf32>
    %735 = arith.mulf %574, %81 : vector<8x128xf32>
    %736 = arith.mulf %583, %217 : vector<8x128xf32>
    %737 = arith.addf %735, %736 : vector<8x128xf32>
    %738 = arith.mulf %592, %353 : vector<8x128xf32>
    %739 = arith.addf %737, %738 : vector<8x128xf32>
    %740 = arith.mulf %601, %489 : vector<8x128xf32>
    %741 = arith.addf %739, %740 : vector<8x128xf32>
    %cst_361 = arith.constant 0.333333343 : f32
    %742 = vector.broadcast %cst_361 : f32 to vector<8x128xf32>
    %743 = arith.mulf %741, %742 : vector<8x128xf32>
    %744 = arith.mulf %574, %115 : vector<8x128xf32>
    %745 = arith.mulf %583, %251 : vector<8x128xf32>
    %746 = arith.addf %744, %745 : vector<8x128xf32>
    %747 = arith.mulf %592, %387 : vector<8x128xf32>
    %748 = arith.addf %746, %747 : vector<8x128xf32>
    %749 = arith.mulf %601, %523 : vector<8x128xf32>
    %750 = arith.addf %748, %749 : vector<8x128xf32>
    %cst_362 = arith.constant 0.333333343 : f32
    %751 = vector.broadcast %cst_362 : f32 to vector<8x128xf32>
    %752 = arith.mulf %750, %751 : vector<8x128xf32>
    %753 = arith.mulf %574, %149 : vector<8x128xf32>
    %754 = arith.mulf %583, %285 : vector<8x128xf32>
    %755 = arith.addf %753, %754 : vector<8x128xf32>
    %756 = arith.mulf %592, %421 : vector<8x128xf32>
    %757 = arith.addf %755, %756 : vector<8x128xf32>
    %758 = arith.mulf %601, %557 : vector<8x128xf32>
    %759 = arith.addf %757, %758 : vector<8x128xf32>
    %cst_363 = arith.constant 0.333333343 : f32
    %760 = vector.broadcast %cst_363 : f32 to vector<8x128xf32>
    %761 = arith.mulf %759, %760 : vector<8x128xf32>
    %762 = arith.mulf %610, %47 : vector<8x128xf32>
    %763 = arith.mulf %619, %183 : vector<8x128xf32>
    %764 = arith.addf %762, %763 : vector<8x128xf32>
    %765 = arith.mulf %628, %319 : vector<8x128xf32>
    %766 = arith.addf %764, %765 : vector<8x128xf32>
    %767 = arith.mulf %637, %455 : vector<8x128xf32>
    %768 = arith.addf %766, %767 : vector<8x128xf32>
    %cst_364 = arith.constant 0.333333343 : f32
    %769 = vector.broadcast %cst_364 : f32 to vector<8x128xf32>
    %770 = arith.mulf %768, %769 : vector<8x128xf32>
    %771 = arith.mulf %610, %81 : vector<8x128xf32>
    %772 = arith.mulf %619, %217 : vector<8x128xf32>
    %773 = arith.addf %771, %772 : vector<8x128xf32>
    %774 = arith.mulf %628, %353 : vector<8x128xf32>
    %775 = arith.addf %773, %774 : vector<8x128xf32>
    %776 = arith.mulf %637, %489 : vector<8x128xf32>
    %777 = arith.addf %775, %776 : vector<8x128xf32>
    %cst_365 = arith.constant 0.333333343 : f32
    %778 = vector.broadcast %cst_365 : f32 to vector<8x128xf32>
    %779 = arith.mulf %777, %778 : vector<8x128xf32>
    %780 = arith.mulf %610, %115 : vector<8x128xf32>
    %781 = arith.mulf %619, %251 : vector<8x128xf32>
    %782 = arith.addf %780, %781 : vector<8x128xf32>
    %783 = arith.mulf %628, %387 : vector<8x128xf32>
    %784 = arith.addf %782, %783 : vector<8x128xf32>
    %785 = arith.mulf %637, %523 : vector<8x128xf32>
    %786 = arith.addf %784, %785 : vector<8x128xf32>
    %cst_366 = arith.constant 0.333333343 : f32
    %787 = vector.broadcast %cst_366 : f32 to vector<8x128xf32>
    %788 = arith.mulf %786, %787 : vector<8x128xf32>
    %789 = arith.mulf %610, %149 : vector<8x128xf32>
    %790 = arith.mulf %619, %285 : vector<8x128xf32>
    %791 = arith.addf %789, %790 : vector<8x128xf32>
    %792 = arith.mulf %628, %421 : vector<8x128xf32>
    %793 = arith.addf %791, %792 : vector<8x128xf32>
    %794 = arith.mulf %637, %557 : vector<8x128xf32>
    %795 = arith.addf %793, %794 : vector<8x128xf32>
    %cst_367 = arith.constant 0.333333343 : f32
    %796 = vector.broadcast %cst_367 : f32 to vector<8x128xf32>
    %797 = arith.mulf %795, %796 : vector<8x128xf32>
    %798 = arith.mulf %646, %47 : vector<8x128xf32>
    %799 = arith.mulf %655, %183 : vector<8x128xf32>
    %800 = arith.addf %798, %799 : vector<8x128xf32>
    %801 = arith.mulf %664, %319 : vector<8x128xf32>
    %802 = arith.addf %800, %801 : vector<8x128xf32>
    %803 = arith.mulf %673, %455 : vector<8x128xf32>
    %804 = arith.addf %802, %803 : vector<8x128xf32>
    %cst_368 = arith.constant 0.333333343 : f32
    %805 = vector.broadcast %cst_368 : f32 to vector<8x128xf32>
    %806 = arith.mulf %804, %805 : vector<8x128xf32>
    %807 = arith.mulf %646, %81 : vector<8x128xf32>
    %808 = arith.mulf %655, %217 : vector<8x128xf32>
    %809 = arith.addf %807, %808 : vector<8x128xf32>
    %810 = arith.mulf %664, %353 : vector<8x128xf32>
    %811 = arith.addf %809, %810 : vector<8x128xf32>
    %812 = arith.mulf %673, %489 : vector<8x128xf32>
    %813 = arith.addf %811, %812 : vector<8x128xf32>
    %cst_369 = arith.constant 0.333333343 : f32
    %814 = vector.broadcast %cst_369 : f32 to vector<8x128xf32>
    %815 = arith.mulf %813, %814 : vector<8x128xf32>
    %816 = arith.mulf %646, %115 : vector<8x128xf32>
    %817 = arith.mulf %655, %251 : vector<8x128xf32>
    %818 = arith.addf %816, %817 : vector<8x128xf32>
    %819 = arith.mulf %664, %387 : vector<8x128xf32>
    %820 = arith.addf %818, %819 : vector<8x128xf32>
    %821 = arith.mulf %673, %523 : vector<8x128xf32>
    %822 = arith.addf %820, %821 : vector<8x128xf32>
    %cst_370 = arith.constant 0.333333343 : f32
    %823 = vector.broadcast %cst_370 : f32 to vector<8x128xf32>
    %824 = arith.mulf %822, %823 : vector<8x128xf32>
    %825 = arith.mulf %646, %149 : vector<8x128xf32>
    %826 = arith.mulf %655, %285 : vector<8x128xf32>
    %827 = arith.addf %825, %826 : vector<8x128xf32>
    %828 = arith.mulf %664, %421 : vector<8x128xf32>
    %829 = arith.addf %827, %828 : vector<8x128xf32>
    %830 = arith.mulf %673, %557 : vector<8x128xf32>
    %831 = arith.addf %829, %830 : vector<8x128xf32>
    %cst_371 = arith.constant 0.333333343 : f32
    %832 = vector.broadcast %cst_371 : f32 to vector<8x128xf32>
    %833 = arith.mulf %831, %832 : vector<8x128xf32>
    %834 = arith.mulf %682, %47 : vector<8x128xf32>
    %835 = arith.mulf %691, %183 : vector<8x128xf32>
    %836 = arith.addf %834, %835 : vector<8x128xf32>
    %837 = arith.mulf %700, %319 : vector<8x128xf32>
    %838 = arith.addf %836, %837 : vector<8x128xf32>
    %839 = arith.mulf %709, %455 : vector<8x128xf32>
    %840 = arith.addf %838, %839 : vector<8x128xf32>
    %cst_372 = arith.constant 0.333333343 : f32
    %841 = vector.broadcast %cst_372 : f32 to vector<8x128xf32>
    %842 = arith.mulf %840, %841 : vector<8x128xf32>
    %843 = arith.mulf %682, %81 : vector<8x128xf32>
    %844 = arith.mulf %691, %217 : vector<8x128xf32>
    %845 = arith.addf %843, %844 : vector<8x128xf32>
    %846 = arith.mulf %700, %353 : vector<8x128xf32>
    %847 = arith.addf %845, %846 : vector<8x128xf32>
    %848 = arith.mulf %709, %489 : vector<8x128xf32>
    %849 = arith.addf %847, %848 : vector<8x128xf32>
    %cst_373 = arith.constant 0.333333343 : f32
    %850 = vector.broadcast %cst_373 : f32 to vector<8x128xf32>
    %851 = arith.mulf %849, %850 : vector<8x128xf32>
    %852 = arith.mulf %682, %115 : vector<8x128xf32>
    %853 = arith.mulf %691, %251 : vector<8x128xf32>
    %854 = arith.addf %852, %853 : vector<8x128xf32>
    %855 = arith.mulf %700, %387 : vector<8x128xf32>
    %856 = arith.addf %854, %855 : vector<8x128xf32>
    %857 = arith.mulf %709, %523 : vector<8x128xf32>
    %858 = arith.addf %856, %857 : vector<8x128xf32>
    %cst_374 = arith.constant 0.333333343 : f32
    %859 = vector.broadcast %cst_374 : f32 to vector<8x128xf32>
    %860 = arith.mulf %858, %859 : vector<8x128xf32>
    %861 = arith.mulf %682, %149 : vector<8x128xf32>
    %862 = arith.mulf %691, %285 : vector<8x128xf32>
    %863 = arith.addf %861, %862 : vector<8x128xf32>
    %864 = arith.mulf %700, %421 : vector<8x128xf32>
    %865 = arith.addf %863, %864 : vector<8x128xf32>
    %866 = arith.mulf %709, %557 : vector<8x128xf32>
    %867 = arith.addf %865, %866 : vector<8x128xf32>
    %cst_375 = arith.constant 0.333333343 : f32
    %868 = vector.broadcast %cst_375 : f32 to vector<8x128xf32>
    %869 = arith.mulf %867, %868 : vector<8x128xf32>
    %870 = arith.addf %710, %734 : vector<8x128xf32>
    %871 = arith.addf %711, %743 : vector<8x128xf32>
    %872 = arith.addf %712, %752 : vector<8x128xf32>
    %873 = arith.addf %713, %761 : vector<8x128xf32>
    %874 = arith.addf %714, %770 : vector<8x128xf32>
    %875 = arith.addf %715, %779 : vector<8x128xf32>
    %876 = arith.addf %716, %788 : vector<8x128xf32>
    %877 = arith.addf %717, %797 : vector<8x128xf32>
    %878 = arith.addf %718, %806 : vector<8x128xf32>
    %879 = arith.addf %719, %815 : vector<8x128xf32>
    %880 = arith.addf %720, %824 : vector<8x128xf32>
    %881 = arith.addf %721, %833 : vector<8x128xf32>
    %882 = arith.addf %722, %842 : vector<8x128xf32>
    %883 = arith.addf %723, %851 : vector<8x128xf32>
    %884 = arith.addf %724, %860 : vector<8x128xf32>
    %885 = arith.addf %725, %869 : vector<8x128xf32>
    %886 = arith.mulf %734, %47 : vector<8x128xf32>
    %887 = arith.mulf %743, %183 : vector<8x128xf32>
    %888 = arith.addf %886, %887 : vector<8x128xf32>
    %889 = arith.mulf %752, %319 : vector<8x128xf32>
    %890 = arith.addf %888, %889 : vector<8x128xf32>
    %891 = arith.mulf %761, %455 : vector<8x128xf32>
    %892 = arith.addf %890, %891 : vector<8x128xf32>
    %cst_376 = arith.constant 2.500000e-01 : f32
    %893 = vector.broadcast %cst_376 : f32 to vector<8x128xf32>
    %894 = arith.mulf %892, %893 : vector<8x128xf32>
    %895 = arith.mulf %734, %81 : vector<8x128xf32>
    %896 = arith.mulf %743, %217 : vector<8x128xf32>
    %897 = arith.addf %895, %896 : vector<8x128xf32>
    %898 = arith.mulf %752, %353 : vector<8x128xf32>
    %899 = arith.addf %897, %898 : vector<8x128xf32>
    %900 = arith.mulf %761, %489 : vector<8x128xf32>
    %901 = arith.addf %899, %900 : vector<8x128xf32>
    %cst_377 = arith.constant 2.500000e-01 : f32
    %902 = vector.broadcast %cst_377 : f32 to vector<8x128xf32>
    %903 = arith.mulf %901, %902 : vector<8x128xf32>
    %904 = arith.mulf %734, %115 : vector<8x128xf32>
    %905 = arith.mulf %743, %251 : vector<8x128xf32>
    %906 = arith.addf %904, %905 : vector<8x128xf32>
    %907 = arith.mulf %752, %387 : vector<8x128xf32>
    %908 = arith.addf %906, %907 : vector<8x128xf32>
    %909 = arith.mulf %761, %523 : vector<8x128xf32>
    %910 = arith.addf %908, %909 : vector<8x128xf32>
    %cst_378 = arith.constant 2.500000e-01 : f32
    %911 = vector.broadcast %cst_378 : f32 to vector<8x128xf32>
    %912 = arith.mulf %910, %911 : vector<8x128xf32>
    %913 = arith.mulf %734, %149 : vector<8x128xf32>
    %914 = arith.mulf %743, %285 : vector<8x128xf32>
    %915 = arith.addf %913, %914 : vector<8x128xf32>
    %916 = arith.mulf %752, %421 : vector<8x128xf32>
    %917 = arith.addf %915, %916 : vector<8x128xf32>
    %918 = arith.mulf %761, %557 : vector<8x128xf32>
    %919 = arith.addf %917, %918 : vector<8x128xf32>
    %cst_379 = arith.constant 2.500000e-01 : f32
    %920 = vector.broadcast %cst_379 : f32 to vector<8x128xf32>
    %921 = arith.mulf %919, %920 : vector<8x128xf32>
    %922 = arith.mulf %770, %47 : vector<8x128xf32>
    %923 = arith.mulf %779, %183 : vector<8x128xf32>
    %924 = arith.addf %922, %923 : vector<8x128xf32>
    %925 = arith.mulf %788, %319 : vector<8x128xf32>
    %926 = arith.addf %924, %925 : vector<8x128xf32>
    %927 = arith.mulf %797, %455 : vector<8x128xf32>
    %928 = arith.addf %926, %927 : vector<8x128xf32>
    %cst_380 = arith.constant 2.500000e-01 : f32
    %929 = vector.broadcast %cst_380 : f32 to vector<8x128xf32>
    %930 = arith.mulf %928, %929 : vector<8x128xf32>
    %931 = arith.mulf %770, %81 : vector<8x128xf32>
    %932 = arith.mulf %779, %217 : vector<8x128xf32>
    %933 = arith.addf %931, %932 : vector<8x128xf32>
    %934 = arith.mulf %788, %353 : vector<8x128xf32>
    %935 = arith.addf %933, %934 : vector<8x128xf32>
    %936 = arith.mulf %797, %489 : vector<8x128xf32>
    %937 = arith.addf %935, %936 : vector<8x128xf32>
    %cst_381 = arith.constant 2.500000e-01 : f32
    %938 = vector.broadcast %cst_381 : f32 to vector<8x128xf32>
    %939 = arith.mulf %937, %938 : vector<8x128xf32>
    %940 = arith.mulf %770, %115 : vector<8x128xf32>
    %941 = arith.mulf %779, %251 : vector<8x128xf32>
    %942 = arith.addf %940, %941 : vector<8x128xf32>
    %943 = arith.mulf %788, %387 : vector<8x128xf32>
    %944 = arith.addf %942, %943 : vector<8x128xf32>
    %945 = arith.mulf %797, %523 : vector<8x128xf32>
    %946 = arith.addf %944, %945 : vector<8x128xf32>
    %cst_382 = arith.constant 2.500000e-01 : f32
    %947 = vector.broadcast %cst_382 : f32 to vector<8x128xf32>
    %948 = arith.mulf %946, %947 : vector<8x128xf32>
    %949 = arith.mulf %770, %149 : vector<8x128xf32>
    %950 = arith.mulf %779, %285 : vector<8x128xf32>
    %951 = arith.addf %949, %950 : vector<8x128xf32>
    %952 = arith.mulf %788, %421 : vector<8x128xf32>
    %953 = arith.addf %951, %952 : vector<8x128xf32>
    %954 = arith.mulf %797, %557 : vector<8x128xf32>
    %955 = arith.addf %953, %954 : vector<8x128xf32>
    %cst_383 = arith.constant 2.500000e-01 : f32
    %956 = vector.broadcast %cst_383 : f32 to vector<8x128xf32>
    %957 = arith.mulf %955, %956 : vector<8x128xf32>
    %958 = arith.mulf %806, %47 : vector<8x128xf32>
    %959 = arith.mulf %815, %183 : vector<8x128xf32>
    %960 = arith.addf %958, %959 : vector<8x128xf32>
    %961 = arith.mulf %824, %319 : vector<8x128xf32>
    %962 = arith.addf %960, %961 : vector<8x128xf32>
    %963 = arith.mulf %833, %455 : vector<8x128xf32>
    %964 = arith.addf %962, %963 : vector<8x128xf32>
    %cst_384 = arith.constant 2.500000e-01 : f32
    %965 = vector.broadcast %cst_384 : f32 to vector<8x128xf32>
    %966 = arith.mulf %964, %965 : vector<8x128xf32>
    %967 = arith.mulf %806, %81 : vector<8x128xf32>
    %968 = arith.mulf %815, %217 : vector<8x128xf32>
    %969 = arith.addf %967, %968 : vector<8x128xf32>
    %970 = arith.mulf %824, %353 : vector<8x128xf32>
    %971 = arith.addf %969, %970 : vector<8x128xf32>
    %972 = arith.mulf %833, %489 : vector<8x128xf32>
    %973 = arith.addf %971, %972 : vector<8x128xf32>
    %cst_385 = arith.constant 2.500000e-01 : f32
    %974 = vector.broadcast %cst_385 : f32 to vector<8x128xf32>
    %975 = arith.mulf %973, %974 : vector<8x128xf32>
    %976 = arith.mulf %806, %115 : vector<8x128xf32>
    %977 = arith.mulf %815, %251 : vector<8x128xf32>
    %978 = arith.addf %976, %977 : vector<8x128xf32>
    %979 = arith.mulf %824, %387 : vector<8x128xf32>
    %980 = arith.addf %978, %979 : vector<8x128xf32>
    %981 = arith.mulf %833, %523 : vector<8x128xf32>
    %982 = arith.addf %980, %981 : vector<8x128xf32>
    %cst_386 = arith.constant 2.500000e-01 : f32
    %983 = vector.broadcast %cst_386 : f32 to vector<8x128xf32>
    %984 = arith.mulf %982, %983 : vector<8x128xf32>
    %985 = arith.mulf %806, %149 : vector<8x128xf32>
    %986 = arith.mulf %815, %285 : vector<8x128xf32>
    %987 = arith.addf %985, %986 : vector<8x128xf32>
    %988 = arith.mulf %824, %421 : vector<8x128xf32>
    %989 = arith.addf %987, %988 : vector<8x128xf32>
    %990 = arith.mulf %833, %557 : vector<8x128xf32>
    %991 = arith.addf %989, %990 : vector<8x128xf32>
    %cst_387 = arith.constant 2.500000e-01 : f32
    %992 = vector.broadcast %cst_387 : f32 to vector<8x128xf32>
    %993 = arith.mulf %991, %992 : vector<8x128xf32>
    %994 = arith.mulf %842, %47 : vector<8x128xf32>
    %995 = arith.mulf %851, %183 : vector<8x128xf32>
    %996 = arith.addf %994, %995 : vector<8x128xf32>
    %997 = arith.mulf %860, %319 : vector<8x128xf32>
    %998 = arith.addf %996, %997 : vector<8x128xf32>
    %999 = arith.mulf %869, %455 : vector<8x128xf32>
    %1000 = arith.addf %998, %999 : vector<8x128xf32>
    %cst_388 = arith.constant 2.500000e-01 : f32
    %1001 = vector.broadcast %cst_388 : f32 to vector<8x128xf32>
    %1002 = arith.mulf %1000, %1001 : vector<8x128xf32>
    %1003 = arith.mulf %842, %81 : vector<8x128xf32>
    %1004 = arith.mulf %851, %217 : vector<8x128xf32>
    %1005 = arith.addf %1003, %1004 : vector<8x128xf32>
    %1006 = arith.mulf %860, %353 : vector<8x128xf32>
    %1007 = arith.addf %1005, %1006 : vector<8x128xf32>
    %1008 = arith.mulf %869, %489 : vector<8x128xf32>
    %1009 = arith.addf %1007, %1008 : vector<8x128xf32>
    %cst_389 = arith.constant 2.500000e-01 : f32
    %1010 = vector.broadcast %cst_389 : f32 to vector<8x128xf32>
    %1011 = arith.mulf %1009, %1010 : vector<8x128xf32>
    %1012 = arith.mulf %842, %115 : vector<8x128xf32>
    %1013 = arith.mulf %851, %251 : vector<8x128xf32>
    %1014 = arith.addf %1012, %1013 : vector<8x128xf32>
    %1015 = arith.mulf %860, %387 : vector<8x128xf32>
    %1016 = arith.addf %1014, %1015 : vector<8x128xf32>
    %1017 = arith.mulf %869, %523 : vector<8x128xf32>
    %1018 = arith.addf %1016, %1017 : vector<8x128xf32>
    %cst_390 = arith.constant 2.500000e-01 : f32
    %1019 = vector.broadcast %cst_390 : f32 to vector<8x128xf32>
    %1020 = arith.mulf %1018, %1019 : vector<8x128xf32>
    %1021 = arith.mulf %842, %149 : vector<8x128xf32>
    %1022 = arith.mulf %851, %285 : vector<8x128xf32>
    %1023 = arith.addf %1021, %1022 : vector<8x128xf32>
    %1024 = arith.mulf %860, %421 : vector<8x128xf32>
    %1025 = arith.addf %1023, %1024 : vector<8x128xf32>
    %1026 = arith.mulf %869, %557 : vector<8x128xf32>
    %1027 = arith.addf %1025, %1026 : vector<8x128xf32>
    %cst_391 = arith.constant 2.500000e-01 : f32
    %1028 = vector.broadcast %cst_391 : f32 to vector<8x128xf32>
    %1029 = arith.mulf %1027, %1028 : vector<8x128xf32>
    %1030 = arith.addf %870, %894 : vector<8x128xf32>
    %1031 = arith.addf %871, %903 : vector<8x128xf32>
    %1032 = arith.addf %872, %912 : vector<8x128xf32>
    %1033 = arith.addf %873, %921 : vector<8x128xf32>
    %1034 = arith.addf %874, %930 : vector<8x128xf32>
    %1035 = arith.addf %875, %939 : vector<8x128xf32>
    %1036 = arith.addf %876, %948 : vector<8x128xf32>
    %1037 = arith.addf %877, %957 : vector<8x128xf32>
    %1038 = arith.addf %878, %966 : vector<8x128xf32>
    %1039 = arith.addf %879, %975 : vector<8x128xf32>
    %1040 = arith.addf %880, %984 : vector<8x128xf32>
    %1041 = arith.addf %881, %993 : vector<8x128xf32>
    %1042 = arith.addf %882, %1002 : vector<8x128xf32>
    %1043 = arith.addf %883, %1011 : vector<8x128xf32>
    %1044 = arith.addf %884, %1020 : vector<8x128xf32>
    %1045 = arith.addf %885, %1029 : vector<8x128xf32>
    %1046 = arith.mulf %894, %47 : vector<8x128xf32>
    %1047 = arith.mulf %903, %183 : vector<8x128xf32>
    %1048 = arith.addf %1046, %1047 : vector<8x128xf32>
    %1049 = arith.mulf %912, %319 : vector<8x128xf32>
    %1050 = arith.addf %1048, %1049 : vector<8x128xf32>
    %1051 = arith.mulf %921, %455 : vector<8x128xf32>
    %1052 = arith.addf %1050, %1051 : vector<8x128xf32>
    %cst_392 = arith.constant 2.000000e-01 : f32
    %1053 = vector.broadcast %cst_392 : f32 to vector<8x128xf32>
    %1054 = arith.mulf %1052, %1053 : vector<8x128xf32>
    %1055 = arith.mulf %894, %81 : vector<8x128xf32>
    %1056 = arith.mulf %903, %217 : vector<8x128xf32>
    %1057 = arith.addf %1055, %1056 : vector<8x128xf32>
    %1058 = arith.mulf %912, %353 : vector<8x128xf32>
    %1059 = arith.addf %1057, %1058 : vector<8x128xf32>
    %1060 = arith.mulf %921, %489 : vector<8x128xf32>
    %1061 = arith.addf %1059, %1060 : vector<8x128xf32>
    %cst_393 = arith.constant 2.000000e-01 : f32
    %1062 = vector.broadcast %cst_393 : f32 to vector<8x128xf32>
    %1063 = arith.mulf %1061, %1062 : vector<8x128xf32>
    %1064 = arith.mulf %894, %115 : vector<8x128xf32>
    %1065 = arith.mulf %903, %251 : vector<8x128xf32>
    %1066 = arith.addf %1064, %1065 : vector<8x128xf32>
    %1067 = arith.mulf %912, %387 : vector<8x128xf32>
    %1068 = arith.addf %1066, %1067 : vector<8x128xf32>
    %1069 = arith.mulf %921, %523 : vector<8x128xf32>
    %1070 = arith.addf %1068, %1069 : vector<8x128xf32>
    %cst_394 = arith.constant 2.000000e-01 : f32
    %1071 = vector.broadcast %cst_394 : f32 to vector<8x128xf32>
    %1072 = arith.mulf %1070, %1071 : vector<8x128xf32>
    %1073 = arith.mulf %894, %149 : vector<8x128xf32>
    %1074 = arith.mulf %903, %285 : vector<8x128xf32>
    %1075 = arith.addf %1073, %1074 : vector<8x128xf32>
    %1076 = arith.mulf %912, %421 : vector<8x128xf32>
    %1077 = arith.addf %1075, %1076 : vector<8x128xf32>
    %1078 = arith.mulf %921, %557 : vector<8x128xf32>
    %1079 = arith.addf %1077, %1078 : vector<8x128xf32>
    %cst_395 = arith.constant 2.000000e-01 : f32
    %1080 = vector.broadcast %cst_395 : f32 to vector<8x128xf32>
    %1081 = arith.mulf %1079, %1080 : vector<8x128xf32>
    %1082 = arith.mulf %930, %47 : vector<8x128xf32>
    %1083 = arith.mulf %939, %183 : vector<8x128xf32>
    %1084 = arith.addf %1082, %1083 : vector<8x128xf32>
    %1085 = arith.mulf %948, %319 : vector<8x128xf32>
    %1086 = arith.addf %1084, %1085 : vector<8x128xf32>
    %1087 = arith.mulf %957, %455 : vector<8x128xf32>
    %1088 = arith.addf %1086, %1087 : vector<8x128xf32>
    %cst_396 = arith.constant 2.000000e-01 : f32
    %1089 = vector.broadcast %cst_396 : f32 to vector<8x128xf32>
    %1090 = arith.mulf %1088, %1089 : vector<8x128xf32>
    %1091 = arith.mulf %930, %81 : vector<8x128xf32>
    %1092 = arith.mulf %939, %217 : vector<8x128xf32>
    %1093 = arith.addf %1091, %1092 : vector<8x128xf32>
    %1094 = arith.mulf %948, %353 : vector<8x128xf32>
    %1095 = arith.addf %1093, %1094 : vector<8x128xf32>
    %1096 = arith.mulf %957, %489 : vector<8x128xf32>
    %1097 = arith.addf %1095, %1096 : vector<8x128xf32>
    %cst_397 = arith.constant 2.000000e-01 : f32
    %1098 = vector.broadcast %cst_397 : f32 to vector<8x128xf32>
    %1099 = arith.mulf %1097, %1098 : vector<8x128xf32>
    %1100 = arith.mulf %930, %115 : vector<8x128xf32>
    %1101 = arith.mulf %939, %251 : vector<8x128xf32>
    %1102 = arith.addf %1100, %1101 : vector<8x128xf32>
    %1103 = arith.mulf %948, %387 : vector<8x128xf32>
    %1104 = arith.addf %1102, %1103 : vector<8x128xf32>
    %1105 = arith.mulf %957, %523 : vector<8x128xf32>
    %1106 = arith.addf %1104, %1105 : vector<8x128xf32>
    %cst_398 = arith.constant 2.000000e-01 : f32
    %1107 = vector.broadcast %cst_398 : f32 to vector<8x128xf32>
    %1108 = arith.mulf %1106, %1107 : vector<8x128xf32>
    %1109 = arith.mulf %930, %149 : vector<8x128xf32>
    %1110 = arith.mulf %939, %285 : vector<8x128xf32>
    %1111 = arith.addf %1109, %1110 : vector<8x128xf32>
    %1112 = arith.mulf %948, %421 : vector<8x128xf32>
    %1113 = arith.addf %1111, %1112 : vector<8x128xf32>
    %1114 = arith.mulf %957, %557 : vector<8x128xf32>
    %1115 = arith.addf %1113, %1114 : vector<8x128xf32>
    %cst_399 = arith.constant 2.000000e-01 : f32
    %1116 = vector.broadcast %cst_399 : f32 to vector<8x128xf32>
    %1117 = arith.mulf %1115, %1116 : vector<8x128xf32>
    %1118 = arith.mulf %966, %47 : vector<8x128xf32>
    %1119 = arith.mulf %975, %183 : vector<8x128xf32>
    %1120 = arith.addf %1118, %1119 : vector<8x128xf32>
    %1121 = arith.mulf %984, %319 : vector<8x128xf32>
    %1122 = arith.addf %1120, %1121 : vector<8x128xf32>
    %1123 = arith.mulf %993, %455 : vector<8x128xf32>
    %1124 = arith.addf %1122, %1123 : vector<8x128xf32>
    %cst_400 = arith.constant 2.000000e-01 : f32
    %1125 = vector.broadcast %cst_400 : f32 to vector<8x128xf32>
    %1126 = arith.mulf %1124, %1125 : vector<8x128xf32>
    %1127 = arith.mulf %966, %81 : vector<8x128xf32>
    %1128 = arith.mulf %975, %217 : vector<8x128xf32>
    %1129 = arith.addf %1127, %1128 : vector<8x128xf32>
    %1130 = arith.mulf %984, %353 : vector<8x128xf32>
    %1131 = arith.addf %1129, %1130 : vector<8x128xf32>
    %1132 = arith.mulf %993, %489 : vector<8x128xf32>
    %1133 = arith.addf %1131, %1132 : vector<8x128xf32>
    %cst_401 = arith.constant 2.000000e-01 : f32
    %1134 = vector.broadcast %cst_401 : f32 to vector<8x128xf32>
    %1135 = arith.mulf %1133, %1134 : vector<8x128xf32>
    %1136 = arith.mulf %966, %115 : vector<8x128xf32>
    %1137 = arith.mulf %975, %251 : vector<8x128xf32>
    %1138 = arith.addf %1136, %1137 : vector<8x128xf32>
    %1139 = arith.mulf %984, %387 : vector<8x128xf32>
    %1140 = arith.addf %1138, %1139 : vector<8x128xf32>
    %1141 = arith.mulf %993, %523 : vector<8x128xf32>
    %1142 = arith.addf %1140, %1141 : vector<8x128xf32>
    %cst_402 = arith.constant 2.000000e-01 : f32
    %1143 = vector.broadcast %cst_402 : f32 to vector<8x128xf32>
    %1144 = arith.mulf %1142, %1143 : vector<8x128xf32>
    %1145 = arith.mulf %966, %149 : vector<8x128xf32>
    %1146 = arith.mulf %975, %285 : vector<8x128xf32>
    %1147 = arith.addf %1145, %1146 : vector<8x128xf32>
    %1148 = arith.mulf %984, %421 : vector<8x128xf32>
    %1149 = arith.addf %1147, %1148 : vector<8x128xf32>
    %1150 = arith.mulf %993, %557 : vector<8x128xf32>
    %1151 = arith.addf %1149, %1150 : vector<8x128xf32>
    %cst_403 = arith.constant 2.000000e-01 : f32
    %1152 = vector.broadcast %cst_403 : f32 to vector<8x128xf32>
    %1153 = arith.mulf %1151, %1152 : vector<8x128xf32>
    %1154 = arith.mulf %1002, %47 : vector<8x128xf32>
    %1155 = arith.mulf %1011, %183 : vector<8x128xf32>
    %1156 = arith.addf %1154, %1155 : vector<8x128xf32>
    %1157 = arith.mulf %1020, %319 : vector<8x128xf32>
    %1158 = arith.addf %1156, %1157 : vector<8x128xf32>
    %1159 = arith.mulf %1029, %455 : vector<8x128xf32>
    %1160 = arith.addf %1158, %1159 : vector<8x128xf32>
    %cst_404 = arith.constant 2.000000e-01 : f32
    %1161 = vector.broadcast %cst_404 : f32 to vector<8x128xf32>
    %1162 = arith.mulf %1160, %1161 : vector<8x128xf32>
    %1163 = arith.mulf %1002, %81 : vector<8x128xf32>
    %1164 = arith.mulf %1011, %217 : vector<8x128xf32>
    %1165 = arith.addf %1163, %1164 : vector<8x128xf32>
    %1166 = arith.mulf %1020, %353 : vector<8x128xf32>
    %1167 = arith.addf %1165, %1166 : vector<8x128xf32>
    %1168 = arith.mulf %1029, %489 : vector<8x128xf32>
    %1169 = arith.addf %1167, %1168 : vector<8x128xf32>
    %cst_405 = arith.constant 2.000000e-01 : f32
    %1170 = vector.broadcast %cst_405 : f32 to vector<8x128xf32>
    %1171 = arith.mulf %1169, %1170 : vector<8x128xf32>
    %1172 = arith.mulf %1002, %115 : vector<8x128xf32>
    %1173 = arith.mulf %1011, %251 : vector<8x128xf32>
    %1174 = arith.addf %1172, %1173 : vector<8x128xf32>
    %1175 = arith.mulf %1020, %387 : vector<8x128xf32>
    %1176 = arith.addf %1174, %1175 : vector<8x128xf32>
    %1177 = arith.mulf %1029, %523 : vector<8x128xf32>
    %1178 = arith.addf %1176, %1177 : vector<8x128xf32>
    %cst_406 = arith.constant 2.000000e-01 : f32
    %1179 = vector.broadcast %cst_406 : f32 to vector<8x128xf32>
    %1180 = arith.mulf %1178, %1179 : vector<8x128xf32>
    %1181 = arith.mulf %1002, %149 : vector<8x128xf32>
    %1182 = arith.mulf %1011, %285 : vector<8x128xf32>
    %1183 = arith.addf %1181, %1182 : vector<8x128xf32>
    %1184 = arith.mulf %1020, %421 : vector<8x128xf32>
    %1185 = arith.addf %1183, %1184 : vector<8x128xf32>
    %1186 = arith.mulf %1029, %557 : vector<8x128xf32>
    %1187 = arith.addf %1185, %1186 : vector<8x128xf32>
    %cst_407 = arith.constant 2.000000e-01 : f32
    %1188 = vector.broadcast %cst_407 : f32 to vector<8x128xf32>
    %1189 = arith.mulf %1187, %1188 : vector<8x128xf32>
    %1190 = arith.addf %1030, %1054 : vector<8x128xf32>
    %1191 = arith.addf %1031, %1063 : vector<8x128xf32>
    %1192 = arith.addf %1032, %1072 : vector<8x128xf32>
    %1193 = arith.addf %1033, %1081 : vector<8x128xf32>
    %1194 = arith.addf %1034, %1090 : vector<8x128xf32>
    %1195 = arith.addf %1035, %1099 : vector<8x128xf32>
    %1196 = arith.addf %1036, %1108 : vector<8x128xf32>
    %1197 = arith.addf %1037, %1117 : vector<8x128xf32>
    %1198 = arith.addf %1038, %1126 : vector<8x128xf32>
    %1199 = arith.addf %1039, %1135 : vector<8x128xf32>
    %1200 = arith.addf %1040, %1144 : vector<8x128xf32>
    %1201 = arith.addf %1041, %1153 : vector<8x128xf32>
    %1202 = arith.addf %1042, %1162 : vector<8x128xf32>
    %1203 = arith.addf %1043, %1171 : vector<8x128xf32>
    %1204 = arith.addf %1044, %1180 : vector<8x128xf32>
    %1205 = arith.addf %1045, %1189 : vector<8x128xf32>
    %1206 = arith.mulf %1054, %47 : vector<8x128xf32>
    %1207 = arith.mulf %1063, %183 : vector<8x128xf32>
    %1208 = arith.addf %1206, %1207 : vector<8x128xf32>
    %1209 = arith.mulf %1072, %319 : vector<8x128xf32>
    %1210 = arith.addf %1208, %1209 : vector<8x128xf32>
    %1211 = arith.mulf %1081, %455 : vector<8x128xf32>
    %1212 = arith.addf %1210, %1211 : vector<8x128xf32>
    %cst_408 = arith.constant 0.166666672 : f32
    %1213 = vector.broadcast %cst_408 : f32 to vector<8x128xf32>
    %1214 = arith.mulf %1212, %1213 : vector<8x128xf32>
    %1215 = arith.mulf %1054, %81 : vector<8x128xf32>
    %1216 = arith.mulf %1063, %217 : vector<8x128xf32>
    %1217 = arith.addf %1215, %1216 : vector<8x128xf32>
    %1218 = arith.mulf %1072, %353 : vector<8x128xf32>
    %1219 = arith.addf %1217, %1218 : vector<8x128xf32>
    %1220 = arith.mulf %1081, %489 : vector<8x128xf32>
    %1221 = arith.addf %1219, %1220 : vector<8x128xf32>
    %cst_409 = arith.constant 0.166666672 : f32
    %1222 = vector.broadcast %cst_409 : f32 to vector<8x128xf32>
    %1223 = arith.mulf %1221, %1222 : vector<8x128xf32>
    %1224 = arith.mulf %1054, %115 : vector<8x128xf32>
    %1225 = arith.mulf %1063, %251 : vector<8x128xf32>
    %1226 = arith.addf %1224, %1225 : vector<8x128xf32>
    %1227 = arith.mulf %1072, %387 : vector<8x128xf32>
    %1228 = arith.addf %1226, %1227 : vector<8x128xf32>
    %1229 = arith.mulf %1081, %523 : vector<8x128xf32>
    %1230 = arith.addf %1228, %1229 : vector<8x128xf32>
    %cst_410 = arith.constant 0.166666672 : f32
    %1231 = vector.broadcast %cst_410 : f32 to vector<8x128xf32>
    %1232 = arith.mulf %1230, %1231 : vector<8x128xf32>
    %1233 = arith.mulf %1054, %149 : vector<8x128xf32>
    %1234 = arith.mulf %1063, %285 : vector<8x128xf32>
    %1235 = arith.addf %1233, %1234 : vector<8x128xf32>
    %1236 = arith.mulf %1072, %421 : vector<8x128xf32>
    %1237 = arith.addf %1235, %1236 : vector<8x128xf32>
    %1238 = arith.mulf %1081, %557 : vector<8x128xf32>
    %1239 = arith.addf %1237, %1238 : vector<8x128xf32>
    %cst_411 = arith.constant 0.166666672 : f32
    %1240 = vector.broadcast %cst_411 : f32 to vector<8x128xf32>
    %1241 = arith.mulf %1239, %1240 : vector<8x128xf32>
    %1242 = arith.mulf %1090, %47 : vector<8x128xf32>
    %1243 = arith.mulf %1099, %183 : vector<8x128xf32>
    %1244 = arith.addf %1242, %1243 : vector<8x128xf32>
    %1245 = arith.mulf %1108, %319 : vector<8x128xf32>
    %1246 = arith.addf %1244, %1245 : vector<8x128xf32>
    %1247 = arith.mulf %1117, %455 : vector<8x128xf32>
    %1248 = arith.addf %1246, %1247 : vector<8x128xf32>
    %cst_412 = arith.constant 0.166666672 : f32
    %1249 = vector.broadcast %cst_412 : f32 to vector<8x128xf32>
    %1250 = arith.mulf %1248, %1249 : vector<8x128xf32>
    %1251 = arith.mulf %1090, %81 : vector<8x128xf32>
    %1252 = arith.mulf %1099, %217 : vector<8x128xf32>
    %1253 = arith.addf %1251, %1252 : vector<8x128xf32>
    %1254 = arith.mulf %1108, %353 : vector<8x128xf32>
    %1255 = arith.addf %1253, %1254 : vector<8x128xf32>
    %1256 = arith.mulf %1117, %489 : vector<8x128xf32>
    %1257 = arith.addf %1255, %1256 : vector<8x128xf32>
    %cst_413 = arith.constant 0.166666672 : f32
    %1258 = vector.broadcast %cst_413 : f32 to vector<8x128xf32>
    %1259 = arith.mulf %1257, %1258 : vector<8x128xf32>
    %1260 = arith.mulf %1090, %115 : vector<8x128xf32>
    %1261 = arith.mulf %1099, %251 : vector<8x128xf32>
    %1262 = arith.addf %1260, %1261 : vector<8x128xf32>
    %1263 = arith.mulf %1108, %387 : vector<8x128xf32>
    %1264 = arith.addf %1262, %1263 : vector<8x128xf32>
    %1265 = arith.mulf %1117, %523 : vector<8x128xf32>
    %1266 = arith.addf %1264, %1265 : vector<8x128xf32>
    %cst_414 = arith.constant 0.166666672 : f32
    %1267 = vector.broadcast %cst_414 : f32 to vector<8x128xf32>
    %1268 = arith.mulf %1266, %1267 : vector<8x128xf32>
    %1269 = arith.mulf %1090, %149 : vector<8x128xf32>
    %1270 = arith.mulf %1099, %285 : vector<8x128xf32>
    %1271 = arith.addf %1269, %1270 : vector<8x128xf32>
    %1272 = arith.mulf %1108, %421 : vector<8x128xf32>
    %1273 = arith.addf %1271, %1272 : vector<8x128xf32>
    %1274 = arith.mulf %1117, %557 : vector<8x128xf32>
    %1275 = arith.addf %1273, %1274 : vector<8x128xf32>
    %cst_415 = arith.constant 0.166666672 : f32
    %1276 = vector.broadcast %cst_415 : f32 to vector<8x128xf32>
    %1277 = arith.mulf %1275, %1276 : vector<8x128xf32>
    %1278 = arith.mulf %1126, %47 : vector<8x128xf32>
    %1279 = arith.mulf %1135, %183 : vector<8x128xf32>
    %1280 = arith.addf %1278, %1279 : vector<8x128xf32>
    %1281 = arith.mulf %1144, %319 : vector<8x128xf32>
    %1282 = arith.addf %1280, %1281 : vector<8x128xf32>
    %1283 = arith.mulf %1153, %455 : vector<8x128xf32>
    %1284 = arith.addf %1282, %1283 : vector<8x128xf32>
    %cst_416 = arith.constant 0.166666672 : f32
    %1285 = vector.broadcast %cst_416 : f32 to vector<8x128xf32>
    %1286 = arith.mulf %1284, %1285 : vector<8x128xf32>
    %1287 = arith.mulf %1126, %81 : vector<8x128xf32>
    %1288 = arith.mulf %1135, %217 : vector<8x128xf32>
    %1289 = arith.addf %1287, %1288 : vector<8x128xf32>
    %1290 = arith.mulf %1144, %353 : vector<8x128xf32>
    %1291 = arith.addf %1289, %1290 : vector<8x128xf32>
    %1292 = arith.mulf %1153, %489 : vector<8x128xf32>
    %1293 = arith.addf %1291, %1292 : vector<8x128xf32>
    %cst_417 = arith.constant 0.166666672 : f32
    %1294 = vector.broadcast %cst_417 : f32 to vector<8x128xf32>
    %1295 = arith.mulf %1293, %1294 : vector<8x128xf32>
    %1296 = arith.mulf %1126, %115 : vector<8x128xf32>
    %1297 = arith.mulf %1135, %251 : vector<8x128xf32>
    %1298 = arith.addf %1296, %1297 : vector<8x128xf32>
    %1299 = arith.mulf %1144, %387 : vector<8x128xf32>
    %1300 = arith.addf %1298, %1299 : vector<8x128xf32>
    %1301 = arith.mulf %1153, %523 : vector<8x128xf32>
    %1302 = arith.addf %1300, %1301 : vector<8x128xf32>
    %cst_418 = arith.constant 0.166666672 : f32
    %1303 = vector.broadcast %cst_418 : f32 to vector<8x128xf32>
    %1304 = arith.mulf %1302, %1303 : vector<8x128xf32>
    %1305 = arith.mulf %1126, %149 : vector<8x128xf32>
    %1306 = arith.mulf %1135, %285 : vector<8x128xf32>
    %1307 = arith.addf %1305, %1306 : vector<8x128xf32>
    %1308 = arith.mulf %1144, %421 : vector<8x128xf32>
    %1309 = arith.addf %1307, %1308 : vector<8x128xf32>
    %1310 = arith.mulf %1153, %557 : vector<8x128xf32>
    %1311 = arith.addf %1309, %1310 : vector<8x128xf32>
    %cst_419 = arith.constant 0.166666672 : f32
    %1312 = vector.broadcast %cst_419 : f32 to vector<8x128xf32>
    %1313 = arith.mulf %1311, %1312 : vector<8x128xf32>
    %1314 = arith.mulf %1162, %47 : vector<8x128xf32>
    %1315 = arith.mulf %1171, %183 : vector<8x128xf32>
    %1316 = arith.addf %1314, %1315 : vector<8x128xf32>
    %1317 = arith.mulf %1180, %319 : vector<8x128xf32>
    %1318 = arith.addf %1316, %1317 : vector<8x128xf32>
    %1319 = arith.mulf %1189, %455 : vector<8x128xf32>
    %1320 = arith.addf %1318, %1319 : vector<8x128xf32>
    %cst_420 = arith.constant 0.166666672 : f32
    %1321 = vector.broadcast %cst_420 : f32 to vector<8x128xf32>
    %1322 = arith.mulf %1320, %1321 : vector<8x128xf32>
    %1323 = arith.mulf %1162, %81 : vector<8x128xf32>
    %1324 = arith.mulf %1171, %217 : vector<8x128xf32>
    %1325 = arith.addf %1323, %1324 : vector<8x128xf32>
    %1326 = arith.mulf %1180, %353 : vector<8x128xf32>
    %1327 = arith.addf %1325, %1326 : vector<8x128xf32>
    %1328 = arith.mulf %1189, %489 : vector<8x128xf32>
    %1329 = arith.addf %1327, %1328 : vector<8x128xf32>
    %cst_421 = arith.constant 0.166666672 : f32
    %1330 = vector.broadcast %cst_421 : f32 to vector<8x128xf32>
    %1331 = arith.mulf %1329, %1330 : vector<8x128xf32>
    %1332 = arith.mulf %1162, %115 : vector<8x128xf32>
    %1333 = arith.mulf %1171, %251 : vector<8x128xf32>
    %1334 = arith.addf %1332, %1333 : vector<8x128xf32>
    %1335 = arith.mulf %1180, %387 : vector<8x128xf32>
    %1336 = arith.addf %1334, %1335 : vector<8x128xf32>
    %1337 = arith.mulf %1189, %523 : vector<8x128xf32>
    %1338 = arith.addf %1336, %1337 : vector<8x128xf32>
    %cst_422 = arith.constant 0.166666672 : f32
    %1339 = vector.broadcast %cst_422 : f32 to vector<8x128xf32>
    %1340 = arith.mulf %1338, %1339 : vector<8x128xf32>
    %1341 = arith.mulf %1162, %149 : vector<8x128xf32>
    %1342 = arith.mulf %1171, %285 : vector<8x128xf32>
    %1343 = arith.addf %1341, %1342 : vector<8x128xf32>
    %1344 = arith.mulf %1180, %421 : vector<8x128xf32>
    %1345 = arith.addf %1343, %1344 : vector<8x128xf32>
    %1346 = arith.mulf %1189, %557 : vector<8x128xf32>
    %1347 = arith.addf %1345, %1346 : vector<8x128xf32>
    %cst_423 = arith.constant 0.166666672 : f32
    %1348 = vector.broadcast %cst_423 : f32 to vector<8x128xf32>
    %1349 = arith.mulf %1347, %1348 : vector<8x128xf32>
    %1350 = arith.addf %1190, %1214 : vector<8x128xf32>
    %1351 = arith.addf %1191, %1223 : vector<8x128xf32>
    %1352 = arith.addf %1192, %1232 : vector<8x128xf32>
    %1353 = arith.addf %1193, %1241 : vector<8x128xf32>
    %1354 = arith.addf %1194, %1250 : vector<8x128xf32>
    %1355 = arith.addf %1195, %1259 : vector<8x128xf32>
    %1356 = arith.addf %1196, %1268 : vector<8x128xf32>
    %1357 = arith.addf %1197, %1277 : vector<8x128xf32>
    %1358 = arith.addf %1198, %1286 : vector<8x128xf32>
    %1359 = arith.addf %1199, %1295 : vector<8x128xf32>
    %1360 = arith.addf %1200, %1304 : vector<8x128xf32>
    %1361 = arith.addf %1201, %1313 : vector<8x128xf32>
    %1362 = arith.addf %1202, %1322 : vector<8x128xf32>
    %1363 = arith.addf %1203, %1331 : vector<8x128xf32>
    %1364 = arith.addf %1204, %1340 : vector<8x128xf32>
    %1365 = arith.addf %1205, %1349 : vector<8x128xf32>
    %1366 = arith.mulf %1350, %1350 : vector<8x128xf32>
    %1367 = arith.mulf %1351, %1354 : vector<8x128xf32>
    %1368 = arith.addf %1366, %1367 : vector<8x128xf32>
    %1369 = arith.mulf %1352, %1358 : vector<8x128xf32>
    %1370 = arith.addf %1368, %1369 : vector<8x128xf32>
    %1371 = arith.mulf %1353, %1362 : vector<8x128xf32>
    %1372 = arith.addf %1370, %1371 : vector<8x128xf32>
    %1373 = arith.mulf %1350, %1351 : vector<8x128xf32>
    %1374 = arith.mulf %1351, %1355 : vector<8x128xf32>
    %1375 = arith.addf %1373, %1374 : vector<8x128xf32>
    %1376 = arith.mulf %1352, %1359 : vector<8x128xf32>
    %1377 = arith.addf %1375, %1376 : vector<8x128xf32>
    %1378 = arith.mulf %1353, %1363 : vector<8x128xf32>
    %1379 = arith.addf %1377, %1378 : vector<8x128xf32>
    %1380 = arith.mulf %1350, %1352 : vector<8x128xf32>
    %1381 = arith.mulf %1351, %1356 : vector<8x128xf32>
    %1382 = arith.addf %1380, %1381 : vector<8x128xf32>
    %1383 = arith.mulf %1352, %1360 : vector<8x128xf32>
    %1384 = arith.addf %1382, %1383 : vector<8x128xf32>
    %1385 = arith.mulf %1353, %1364 : vector<8x128xf32>
    %1386 = arith.addf %1384, %1385 : vector<8x128xf32>
    %1387 = arith.mulf %1350, %1353 : vector<8x128xf32>
    %1388 = arith.mulf %1351, %1357 : vector<8x128xf32>
    %1389 = arith.addf %1387, %1388 : vector<8x128xf32>
    %1390 = arith.mulf %1352, %1361 : vector<8x128xf32>
    %1391 = arith.addf %1389, %1390 : vector<8x128xf32>
    %1392 = arith.mulf %1353, %1365 : vector<8x128xf32>
    %1393 = arith.addf %1391, %1392 : vector<8x128xf32>
    %1394 = arith.mulf %1354, %1350 : vector<8x128xf32>
    %1395 = arith.mulf %1355, %1354 : vector<8x128xf32>
    %1396 = arith.addf %1394, %1395 : vector<8x128xf32>
    %1397 = arith.mulf %1356, %1358 : vector<8x128xf32>
    %1398 = arith.addf %1396, %1397 : vector<8x128xf32>
    %1399 = arith.mulf %1357, %1362 : vector<8x128xf32>
    %1400 = arith.addf %1398, %1399 : vector<8x128xf32>
    %1401 = arith.mulf %1354, %1351 : vector<8x128xf32>
    %1402 = arith.mulf %1355, %1355 : vector<8x128xf32>
    %1403 = arith.addf %1401, %1402 : vector<8x128xf32>
    %1404 = arith.mulf %1356, %1359 : vector<8x128xf32>
    %1405 = arith.addf %1403, %1404 : vector<8x128xf32>
    %1406 = arith.mulf %1357, %1363 : vector<8x128xf32>
    %1407 = arith.addf %1405, %1406 : vector<8x128xf32>
    %1408 = arith.mulf %1354, %1352 : vector<8x128xf32>
    %1409 = arith.mulf %1355, %1356 : vector<8x128xf32>
    %1410 = arith.addf %1408, %1409 : vector<8x128xf32>
    %1411 = arith.mulf %1356, %1360 : vector<8x128xf32>
    %1412 = arith.addf %1410, %1411 : vector<8x128xf32>
    %1413 = arith.mulf %1357, %1364 : vector<8x128xf32>
    %1414 = arith.addf %1412, %1413 : vector<8x128xf32>
    %1415 = arith.mulf %1354, %1353 : vector<8x128xf32>
    %1416 = arith.mulf %1355, %1357 : vector<8x128xf32>
    %1417 = arith.addf %1415, %1416 : vector<8x128xf32>
    %1418 = arith.mulf %1356, %1361 : vector<8x128xf32>
    %1419 = arith.addf %1417, %1418 : vector<8x128xf32>
    %1420 = arith.mulf %1357, %1365 : vector<8x128xf32>
    %1421 = arith.addf %1419, %1420 : vector<8x128xf32>
    %1422 = arith.mulf %1358, %1350 : vector<8x128xf32>
    %1423 = arith.mulf %1359, %1354 : vector<8x128xf32>
    %1424 = arith.addf %1422, %1423 : vector<8x128xf32>
    %1425 = arith.mulf %1360, %1358 : vector<8x128xf32>
    %1426 = arith.addf %1424, %1425 : vector<8x128xf32>
    %1427 = arith.mulf %1361, %1362 : vector<8x128xf32>
    %1428 = arith.addf %1426, %1427 : vector<8x128xf32>
    %1429 = arith.mulf %1358, %1351 : vector<8x128xf32>
    %1430 = arith.mulf %1359, %1355 : vector<8x128xf32>
    %1431 = arith.addf %1429, %1430 : vector<8x128xf32>
    %1432 = arith.mulf %1360, %1359 : vector<8x128xf32>
    %1433 = arith.addf %1431, %1432 : vector<8x128xf32>
    %1434 = arith.mulf %1361, %1363 : vector<8x128xf32>
    %1435 = arith.addf %1433, %1434 : vector<8x128xf32>
    %1436 = arith.mulf %1358, %1352 : vector<8x128xf32>
    %1437 = arith.mulf %1359, %1356 : vector<8x128xf32>
    %1438 = arith.addf %1436, %1437 : vector<8x128xf32>
    %1439 = arith.mulf %1360, %1360 : vector<8x128xf32>
    %1440 = arith.addf %1438, %1439 : vector<8x128xf32>
    %1441 = arith.mulf %1361, %1364 : vector<8x128xf32>
    %1442 = arith.addf %1440, %1441 : vector<8x128xf32>
    %1443 = arith.mulf %1358, %1353 : vector<8x128xf32>
    %1444 = arith.mulf %1359, %1357 : vector<8x128xf32>
    %1445 = arith.addf %1443, %1444 : vector<8x128xf32>
    %1446 = arith.mulf %1360, %1361 : vector<8x128xf32>
    %1447 = arith.addf %1445, %1446 : vector<8x128xf32>
    %1448 = arith.mulf %1361, %1365 : vector<8x128xf32>
    %1449 = arith.addf %1447, %1448 : vector<8x128xf32>
    %1450 = arith.mulf %1362, %1350 : vector<8x128xf32>
    %1451 = arith.mulf %1363, %1354 : vector<8x128xf32>
    %1452 = arith.addf %1450, %1451 : vector<8x128xf32>
    %1453 = arith.mulf %1364, %1358 : vector<8x128xf32>
    %1454 = arith.addf %1452, %1453 : vector<8x128xf32>
    %1455 = arith.mulf %1365, %1362 : vector<8x128xf32>
    %1456 = arith.addf %1454, %1455 : vector<8x128xf32>
    %1457 = arith.mulf %1362, %1351 : vector<8x128xf32>
    %1458 = arith.mulf %1363, %1355 : vector<8x128xf32>
    %1459 = arith.addf %1457, %1458 : vector<8x128xf32>
    %1460 = arith.mulf %1364, %1359 : vector<8x128xf32>
    %1461 = arith.addf %1459, %1460 : vector<8x128xf32>
    %1462 = arith.mulf %1365, %1363 : vector<8x128xf32>
    %1463 = arith.addf %1461, %1462 : vector<8x128xf32>
    %1464 = arith.mulf %1362, %1352 : vector<8x128xf32>
    %1465 = arith.mulf %1363, %1356 : vector<8x128xf32>
    %1466 = arith.addf %1464, %1465 : vector<8x128xf32>
    %1467 = arith.mulf %1364, %1360 : vector<8x128xf32>
    %1468 = arith.addf %1466, %1467 : vector<8x128xf32>
    %1469 = arith.mulf %1365, %1364 : vector<8x128xf32>
    %1470 = arith.addf %1468, %1469 : vector<8x128xf32>
    %1471 = arith.mulf %1362, %1353 : vector<8x128xf32>
    %1472 = arith.mulf %1363, %1357 : vector<8x128xf32>
    %1473 = arith.addf %1471, %1472 : vector<8x128xf32>
    %1474 = arith.mulf %1364, %1361 : vector<8x128xf32>
    %1475 = arith.addf %1473, %1474 : vector<8x128xf32>
    %1476 = arith.mulf %1365, %1365 : vector<8x128xf32>
    %1477 = arith.addf %1475, %1476 : vector<8x128xf32>
    %1478 = arith.mulf %1372, %1372 : vector<8x128xf32>
    %1479 = arith.mulf %1379, %1400 : vector<8x128xf32>
    %1480 = arith.addf %1478, %1479 : vector<8x128xf32>
    %1481 = arith.mulf %1386, %1428 : vector<8x128xf32>
    %1482 = arith.addf %1480, %1481 : vector<8x128xf32>
    %1483 = arith.mulf %1393, %1456 : vector<8x128xf32>
    %1484 = arith.addf %1482, %1483 : vector<8x128xf32>
    %1485 = arith.mulf %1372, %1379 : vector<8x128xf32>
    %1486 = arith.mulf %1379, %1407 : vector<8x128xf32>
    %1487 = arith.addf %1485, %1486 : vector<8x128xf32>
    %1488 = arith.mulf %1386, %1435 : vector<8x128xf32>
    %1489 = arith.addf %1487, %1488 : vector<8x128xf32>
    %1490 = arith.mulf %1393, %1463 : vector<8x128xf32>
    %1491 = arith.addf %1489, %1490 : vector<8x128xf32>
    %1492 = arith.mulf %1372, %1386 : vector<8x128xf32>
    %1493 = arith.mulf %1379, %1414 : vector<8x128xf32>
    %1494 = arith.addf %1492, %1493 : vector<8x128xf32>
    %1495 = arith.mulf %1386, %1442 : vector<8x128xf32>
    %1496 = arith.addf %1494, %1495 : vector<8x128xf32>
    %1497 = arith.mulf %1393, %1470 : vector<8x128xf32>
    %1498 = arith.addf %1496, %1497 : vector<8x128xf32>
    %1499 = arith.mulf %1372, %1393 : vector<8x128xf32>
    %1500 = arith.mulf %1379, %1421 : vector<8x128xf32>
    %1501 = arith.addf %1499, %1500 : vector<8x128xf32>
    %1502 = arith.mulf %1386, %1449 : vector<8x128xf32>
    %1503 = arith.addf %1501, %1502 : vector<8x128xf32>
    %1504 = arith.mulf %1393, %1477 : vector<8x128xf32>
    %1505 = arith.addf %1503, %1504 : vector<8x128xf32>
    %1506 = arith.mulf %1400, %1372 : vector<8x128xf32>
    %1507 = arith.mulf %1407, %1400 : vector<8x128xf32>
    %1508 = arith.addf %1506, %1507 : vector<8x128xf32>
    %1509 = arith.mulf %1414, %1428 : vector<8x128xf32>
    %1510 = arith.addf %1508, %1509 : vector<8x128xf32>
    %1511 = arith.mulf %1421, %1456 : vector<8x128xf32>
    %1512 = arith.addf %1510, %1511 : vector<8x128xf32>
    %1513 = arith.mulf %1400, %1379 : vector<8x128xf32>
    %1514 = arith.mulf %1407, %1407 : vector<8x128xf32>
    %1515 = arith.addf %1513, %1514 : vector<8x128xf32>
    %1516 = arith.mulf %1414, %1435 : vector<8x128xf32>
    %1517 = arith.addf %1515, %1516 : vector<8x128xf32>
    %1518 = arith.mulf %1421, %1463 : vector<8x128xf32>
    %1519 = arith.addf %1517, %1518 : vector<8x128xf32>
    %1520 = arith.mulf %1400, %1386 : vector<8x128xf32>
    %1521 = arith.mulf %1407, %1414 : vector<8x128xf32>
    %1522 = arith.addf %1520, %1521 : vector<8x128xf32>
    %1523 = arith.mulf %1414, %1442 : vector<8x128xf32>
    %1524 = arith.addf %1522, %1523 : vector<8x128xf32>
    %1525 = arith.mulf %1421, %1470 : vector<8x128xf32>
    %1526 = arith.addf %1524, %1525 : vector<8x128xf32>
    %1527 = arith.mulf %1400, %1393 : vector<8x128xf32>
    %1528 = arith.mulf %1407, %1421 : vector<8x128xf32>
    %1529 = arith.addf %1527, %1528 : vector<8x128xf32>
    %1530 = arith.mulf %1414, %1449 : vector<8x128xf32>
    %1531 = arith.addf %1529, %1530 : vector<8x128xf32>
    %1532 = arith.mulf %1421, %1477 : vector<8x128xf32>
    %1533 = arith.addf %1531, %1532 : vector<8x128xf32>
    %1534 = arith.mulf %1428, %1372 : vector<8x128xf32>
    %1535 = arith.mulf %1435, %1400 : vector<8x128xf32>
    %1536 = arith.addf %1534, %1535 : vector<8x128xf32>
    %1537 = arith.mulf %1442, %1428 : vector<8x128xf32>
    %1538 = arith.addf %1536, %1537 : vector<8x128xf32>
    %1539 = arith.mulf %1449, %1456 : vector<8x128xf32>
    %1540 = arith.addf %1538, %1539 : vector<8x128xf32>
    %1541 = arith.mulf %1428, %1379 : vector<8x128xf32>
    %1542 = arith.mulf %1435, %1407 : vector<8x128xf32>
    %1543 = arith.addf %1541, %1542 : vector<8x128xf32>
    %1544 = arith.mulf %1442, %1435 : vector<8x128xf32>
    %1545 = arith.addf %1543, %1544 : vector<8x128xf32>
    %1546 = arith.mulf %1449, %1463 : vector<8x128xf32>
    %1547 = arith.addf %1545, %1546 : vector<8x128xf32>
    %1548 = arith.mulf %1428, %1386 : vector<8x128xf32>
    %1549 = arith.mulf %1435, %1414 : vector<8x128xf32>
    %1550 = arith.addf %1548, %1549 : vector<8x128xf32>
    %1551 = arith.mulf %1442, %1442 : vector<8x128xf32>
    %1552 = arith.addf %1550, %1551 : vector<8x128xf32>
    %1553 = arith.mulf %1449, %1470 : vector<8x128xf32>
    %1554 = arith.addf %1552, %1553 : vector<8x128xf32>
    %1555 = arith.mulf %1428, %1393 : vector<8x128xf32>
    %1556 = arith.mulf %1435, %1421 : vector<8x128xf32>
    %1557 = arith.addf %1555, %1556 : vector<8x128xf32>
    %1558 = arith.mulf %1442, %1449 : vector<8x128xf32>
    %1559 = arith.addf %1557, %1558 : vector<8x128xf32>
    %1560 = arith.mulf %1449, %1477 : vector<8x128xf32>
    %1561 = arith.addf %1559, %1560 : vector<8x128xf32>
    %1562 = arith.mulf %1456, %1372 : vector<8x128xf32>
    %1563 = arith.mulf %1463, %1400 : vector<8x128xf32>
    %1564 = arith.addf %1562, %1563 : vector<8x128xf32>
    %1565 = arith.mulf %1470, %1428 : vector<8x128xf32>
    %1566 = arith.addf %1564, %1565 : vector<8x128xf32>
    %1567 = arith.mulf %1477, %1456 : vector<8x128xf32>
    %1568 = arith.addf %1566, %1567 : vector<8x128xf32>
    %1569 = arith.mulf %1456, %1379 : vector<8x128xf32>
    %1570 = arith.mulf %1463, %1407 : vector<8x128xf32>
    %1571 = arith.addf %1569, %1570 : vector<8x128xf32>
    %1572 = arith.mulf %1470, %1435 : vector<8x128xf32>
    %1573 = arith.addf %1571, %1572 : vector<8x128xf32>
    %1574 = arith.mulf %1477, %1463 : vector<8x128xf32>
    %1575 = arith.addf %1573, %1574 : vector<8x128xf32>
    %1576 = arith.mulf %1456, %1386 : vector<8x128xf32>
    %1577 = arith.mulf %1463, %1414 : vector<8x128xf32>
    %1578 = arith.addf %1576, %1577 : vector<8x128xf32>
    %1579 = arith.mulf %1470, %1442 : vector<8x128xf32>
    %1580 = arith.addf %1578, %1579 : vector<8x128xf32>
    %1581 = arith.mulf %1477, %1470 : vector<8x128xf32>
    %1582 = arith.addf %1580, %1581 : vector<8x128xf32>
    %1583 = arith.mulf %1456, %1393 : vector<8x128xf32>
    %1584 = arith.mulf %1463, %1421 : vector<8x128xf32>
    %1585 = arith.addf %1583, %1584 : vector<8x128xf32>
    %1586 = arith.mulf %1470, %1449 : vector<8x128xf32>
    %1587 = arith.addf %1585, %1586 : vector<8x128xf32>
    %1588 = arith.mulf %1477, %1477 : vector<8x128xf32>
    %1589 = arith.addf %1587, %1588 : vector<8x128xf32>
    %1590 = arith.mulf %1484, %1484 : vector<8x128xf32>
    %1591 = arith.mulf %1491, %1512 : vector<8x128xf32>
    %1592 = arith.addf %1590, %1591 : vector<8x128xf32>
    %1593 = arith.mulf %1498, %1540 : vector<8x128xf32>
    %1594 = arith.addf %1592, %1593 : vector<8x128xf32>
    %1595 = arith.mulf %1505, %1568 : vector<8x128xf32>
    %1596 = arith.addf %1594, %1595 : vector<8x128xf32>
    %1597 = arith.mulf %1484, %1491 : vector<8x128xf32>
    %1598 = arith.mulf %1491, %1519 : vector<8x128xf32>
    %1599 = arith.addf %1597, %1598 : vector<8x128xf32>
    %1600 = arith.mulf %1498, %1547 : vector<8x128xf32>
    %1601 = arith.addf %1599, %1600 : vector<8x128xf32>
    %1602 = arith.mulf %1505, %1575 : vector<8x128xf32>
    %1603 = arith.addf %1601, %1602 : vector<8x128xf32>
    %1604 = arith.mulf %1484, %1498 : vector<8x128xf32>
    %1605 = arith.mulf %1491, %1526 : vector<8x128xf32>
    %1606 = arith.addf %1604, %1605 : vector<8x128xf32>
    %1607 = arith.mulf %1498, %1554 : vector<8x128xf32>
    %1608 = arith.addf %1606, %1607 : vector<8x128xf32>
    %1609 = arith.mulf %1505, %1582 : vector<8x128xf32>
    %1610 = arith.addf %1608, %1609 : vector<8x128xf32>
    %1611 = arith.mulf %1484, %1505 : vector<8x128xf32>
    %1612 = arith.mulf %1491, %1533 : vector<8x128xf32>
    %1613 = arith.addf %1611, %1612 : vector<8x128xf32>
    %1614 = arith.mulf %1498, %1561 : vector<8x128xf32>
    %1615 = arith.addf %1613, %1614 : vector<8x128xf32>
    %1616 = arith.mulf %1505, %1589 : vector<8x128xf32>
    %1617 = arith.addf %1615, %1616 : vector<8x128xf32>
    %1618 = arith.mulf %1512, %1484 : vector<8x128xf32>
    %1619 = arith.mulf %1519, %1512 : vector<8x128xf32>
    %1620 = arith.addf %1618, %1619 : vector<8x128xf32>
    %1621 = arith.mulf %1526, %1540 : vector<8x128xf32>
    %1622 = arith.addf %1620, %1621 : vector<8x128xf32>
    %1623 = arith.mulf %1533, %1568 : vector<8x128xf32>
    %1624 = arith.addf %1622, %1623 : vector<8x128xf32>
    %1625 = arith.mulf %1512, %1491 : vector<8x128xf32>
    %1626 = arith.mulf %1519, %1519 : vector<8x128xf32>
    %1627 = arith.addf %1625, %1626 : vector<8x128xf32>
    %1628 = arith.mulf %1526, %1547 : vector<8x128xf32>
    %1629 = arith.addf %1627, %1628 : vector<8x128xf32>
    %1630 = arith.mulf %1533, %1575 : vector<8x128xf32>
    %1631 = arith.addf %1629, %1630 : vector<8x128xf32>
    %1632 = arith.mulf %1512, %1498 : vector<8x128xf32>
    %1633 = arith.mulf %1519, %1526 : vector<8x128xf32>
    %1634 = arith.addf %1632, %1633 : vector<8x128xf32>
    %1635 = arith.mulf %1526, %1554 : vector<8x128xf32>
    %1636 = arith.addf %1634, %1635 : vector<8x128xf32>
    %1637 = arith.mulf %1533, %1582 : vector<8x128xf32>
    %1638 = arith.addf %1636, %1637 : vector<8x128xf32>
    %1639 = arith.mulf %1512, %1505 : vector<8x128xf32>
    %1640 = arith.mulf %1519, %1533 : vector<8x128xf32>
    %1641 = arith.addf %1639, %1640 : vector<8x128xf32>
    %1642 = arith.mulf %1526, %1561 : vector<8x128xf32>
    %1643 = arith.addf %1641, %1642 : vector<8x128xf32>
    %1644 = arith.mulf %1533, %1589 : vector<8x128xf32>
    %1645 = arith.addf %1643, %1644 : vector<8x128xf32>
    %1646 = arith.mulf %1540, %1484 : vector<8x128xf32>
    %1647 = arith.mulf %1547, %1512 : vector<8x128xf32>
    %1648 = arith.addf %1646, %1647 : vector<8x128xf32>
    %1649 = arith.mulf %1554, %1540 : vector<8x128xf32>
    %1650 = arith.addf %1648, %1649 : vector<8x128xf32>
    %1651 = arith.mulf %1561, %1568 : vector<8x128xf32>
    %1652 = arith.addf %1650, %1651 : vector<8x128xf32>
    %1653 = arith.mulf %1540, %1491 : vector<8x128xf32>
    %1654 = arith.mulf %1547, %1519 : vector<8x128xf32>
    %1655 = arith.addf %1653, %1654 : vector<8x128xf32>
    %1656 = arith.mulf %1554, %1547 : vector<8x128xf32>
    %1657 = arith.addf %1655, %1656 : vector<8x128xf32>
    %1658 = arith.mulf %1561, %1575 : vector<8x128xf32>
    %1659 = arith.addf %1657, %1658 : vector<8x128xf32>
    %1660 = arith.mulf %1540, %1498 : vector<8x128xf32>
    %1661 = arith.mulf %1547, %1526 : vector<8x128xf32>
    %1662 = arith.addf %1660, %1661 : vector<8x128xf32>
    %1663 = arith.mulf %1554, %1554 : vector<8x128xf32>
    %1664 = arith.addf %1662, %1663 : vector<8x128xf32>
    %1665 = arith.mulf %1561, %1582 : vector<8x128xf32>
    %1666 = arith.addf %1664, %1665 : vector<8x128xf32>
    %1667 = arith.mulf %1540, %1505 : vector<8x128xf32>
    %1668 = arith.mulf %1547, %1533 : vector<8x128xf32>
    %1669 = arith.addf %1667, %1668 : vector<8x128xf32>
    %1670 = arith.mulf %1554, %1561 : vector<8x128xf32>
    %1671 = arith.addf %1669, %1670 : vector<8x128xf32>
    %1672 = arith.mulf %1561, %1589 : vector<8x128xf32>
    %1673 = arith.addf %1671, %1672 : vector<8x128xf32>
    %1674 = arith.mulf %1568, %1484 : vector<8x128xf32>
    %1675 = arith.mulf %1575, %1512 : vector<8x128xf32>
    %1676 = arith.addf %1674, %1675 : vector<8x128xf32>
    %1677 = arith.mulf %1582, %1540 : vector<8x128xf32>
    %1678 = arith.addf %1676, %1677 : vector<8x128xf32>
    %1679 = arith.mulf %1589, %1568 : vector<8x128xf32>
    %1680 = arith.addf %1678, %1679 : vector<8x128xf32>
    %1681 = arith.mulf %1568, %1491 : vector<8x128xf32>
    %1682 = arith.mulf %1575, %1519 : vector<8x128xf32>
    %1683 = arith.addf %1681, %1682 : vector<8x128xf32>
    %1684 = arith.mulf %1582, %1547 : vector<8x128xf32>
    %1685 = arith.addf %1683, %1684 : vector<8x128xf32>
    %1686 = arith.mulf %1589, %1575 : vector<8x128xf32>
    %1687 = arith.addf %1685, %1686 : vector<8x128xf32>
    %1688 = arith.mulf %1568, %1498 : vector<8x128xf32>
    %1689 = arith.mulf %1575, %1526 : vector<8x128xf32>
    %1690 = arith.addf %1688, %1689 : vector<8x128xf32>
    %1691 = arith.mulf %1582, %1554 : vector<8x128xf32>
    %1692 = arith.addf %1690, %1691 : vector<8x128xf32>
    %1693 = arith.mulf %1589, %1582 : vector<8x128xf32>
    %1694 = arith.addf %1692, %1693 : vector<8x128xf32>
    %1695 = arith.mulf %1568, %1505 : vector<8x128xf32>
    %1696 = arith.mulf %1575, %1533 : vector<8x128xf32>
    %1697 = arith.addf %1695, %1696 : vector<8x128xf32>
    %1698 = arith.mulf %1582, %1561 : vector<8x128xf32>
    %1699 = arith.addf %1697, %1698 : vector<8x128xf32>
    %1700 = arith.mulf %1589, %1589 : vector<8x128xf32>
    %1701 = arith.addf %1699, %1700 : vector<8x128xf32>
    %1702 = arith.mulf %1596, %1596 : vector<8x128xf32>
    %1703 = arith.mulf %1603, %1624 : vector<8x128xf32>
    %1704 = arith.addf %1702, %1703 : vector<8x128xf32>
    %1705 = arith.mulf %1610, %1652 : vector<8x128xf32>
    %1706 = arith.addf %1704, %1705 : vector<8x128xf32>
    %1707 = arith.mulf %1617, %1680 : vector<8x128xf32>
    %1708 = arith.addf %1706, %1707 : vector<8x128xf32>
    %1709 = arith.mulf %1596, %1603 : vector<8x128xf32>
    %1710 = arith.mulf %1603, %1631 : vector<8x128xf32>
    %1711 = arith.addf %1709, %1710 : vector<8x128xf32>
    %1712 = arith.mulf %1610, %1659 : vector<8x128xf32>
    %1713 = arith.addf %1711, %1712 : vector<8x128xf32>
    %1714 = arith.mulf %1617, %1687 : vector<8x128xf32>
    %1715 = arith.addf %1713, %1714 : vector<8x128xf32>
    %1716 = arith.mulf %1596, %1610 : vector<8x128xf32>
    %1717 = arith.mulf %1603, %1638 : vector<8x128xf32>
    %1718 = arith.addf %1716, %1717 : vector<8x128xf32>
    %1719 = arith.mulf %1610, %1666 : vector<8x128xf32>
    %1720 = arith.addf %1718, %1719 : vector<8x128xf32>
    %1721 = arith.mulf %1617, %1694 : vector<8x128xf32>
    %1722 = arith.addf %1720, %1721 : vector<8x128xf32>
    %1723 = arith.mulf %1596, %1617 : vector<8x128xf32>
    %1724 = arith.mulf %1603, %1645 : vector<8x128xf32>
    %1725 = arith.addf %1723, %1724 : vector<8x128xf32>
    %1726 = arith.mulf %1610, %1673 : vector<8x128xf32>
    %1727 = arith.addf %1725, %1726 : vector<8x128xf32>
    %1728 = arith.mulf %1617, %1701 : vector<8x128xf32>
    %1729 = arith.addf %1727, %1728 : vector<8x128xf32>
    %1730 = arith.mulf %1624, %1596 : vector<8x128xf32>
    %1731 = arith.mulf %1631, %1624 : vector<8x128xf32>
    %1732 = arith.addf %1730, %1731 : vector<8x128xf32>
    %1733 = arith.mulf %1638, %1652 : vector<8x128xf32>
    %1734 = arith.addf %1732, %1733 : vector<8x128xf32>
    %1735 = arith.mulf %1645, %1680 : vector<8x128xf32>
    %1736 = arith.addf %1734, %1735 : vector<8x128xf32>
    %1737 = arith.mulf %1624, %1603 : vector<8x128xf32>
    %1738 = arith.mulf %1631, %1631 : vector<8x128xf32>
    %1739 = arith.addf %1737, %1738 : vector<8x128xf32>
    %1740 = arith.mulf %1638, %1659 : vector<8x128xf32>
    %1741 = arith.addf %1739, %1740 : vector<8x128xf32>
    %1742 = arith.mulf %1645, %1687 : vector<8x128xf32>
    %1743 = arith.addf %1741, %1742 : vector<8x128xf32>
    %1744 = arith.mulf %1624, %1610 : vector<8x128xf32>
    %1745 = arith.mulf %1631, %1638 : vector<8x128xf32>
    %1746 = arith.addf %1744, %1745 : vector<8x128xf32>
    %1747 = arith.mulf %1638, %1666 : vector<8x128xf32>
    %1748 = arith.addf %1746, %1747 : vector<8x128xf32>
    %1749 = arith.mulf %1645, %1694 : vector<8x128xf32>
    %1750 = arith.addf %1748, %1749 : vector<8x128xf32>
    %1751 = arith.mulf %1624, %1617 : vector<8x128xf32>
    %1752 = arith.mulf %1631, %1645 : vector<8x128xf32>
    %1753 = arith.addf %1751, %1752 : vector<8x128xf32>
    %1754 = arith.mulf %1638, %1673 : vector<8x128xf32>
    %1755 = arith.addf %1753, %1754 : vector<8x128xf32>
    %1756 = arith.mulf %1645, %1701 : vector<8x128xf32>
    %1757 = arith.addf %1755, %1756 : vector<8x128xf32>
    %1758 = arith.mulf %1652, %1596 : vector<8x128xf32>
    %1759 = arith.mulf %1659, %1624 : vector<8x128xf32>
    %1760 = arith.addf %1758, %1759 : vector<8x128xf32>
    %1761 = arith.mulf %1666, %1652 : vector<8x128xf32>
    %1762 = arith.addf %1760, %1761 : vector<8x128xf32>
    %1763 = arith.mulf %1673, %1680 : vector<8x128xf32>
    %1764 = arith.addf %1762, %1763 : vector<8x128xf32>
    %1765 = arith.mulf %1652, %1603 : vector<8x128xf32>
    %1766 = arith.mulf %1659, %1631 : vector<8x128xf32>
    %1767 = arith.addf %1765, %1766 : vector<8x128xf32>
    %1768 = arith.mulf %1666, %1659 : vector<8x128xf32>
    %1769 = arith.addf %1767, %1768 : vector<8x128xf32>
    %1770 = arith.mulf %1673, %1687 : vector<8x128xf32>
    %1771 = arith.addf %1769, %1770 : vector<8x128xf32>
    %1772 = arith.mulf %1652, %1610 : vector<8x128xf32>
    %1773 = arith.mulf %1659, %1638 : vector<8x128xf32>
    %1774 = arith.addf %1772, %1773 : vector<8x128xf32>
    %1775 = arith.mulf %1666, %1666 : vector<8x128xf32>
    %1776 = arith.addf %1774, %1775 : vector<8x128xf32>
    %1777 = arith.mulf %1673, %1694 : vector<8x128xf32>
    %1778 = arith.addf %1776, %1777 : vector<8x128xf32>
    %1779 = arith.mulf %1652, %1617 : vector<8x128xf32>
    %1780 = arith.mulf %1659, %1645 : vector<8x128xf32>
    %1781 = arith.addf %1779, %1780 : vector<8x128xf32>
    %1782 = arith.mulf %1666, %1673 : vector<8x128xf32>
    %1783 = arith.addf %1781, %1782 : vector<8x128xf32>
    %1784 = arith.mulf %1673, %1701 : vector<8x128xf32>
    %1785 = arith.addf %1783, %1784 : vector<8x128xf32>
    %1786 = arith.mulf %1680, %1596 : vector<8x128xf32>
    %1787 = arith.mulf %1687, %1624 : vector<8x128xf32>
    %1788 = arith.addf %1786, %1787 : vector<8x128xf32>
    %1789 = arith.mulf %1694, %1652 : vector<8x128xf32>
    %1790 = arith.addf %1788, %1789 : vector<8x128xf32>
    %1791 = arith.mulf %1701, %1680 : vector<8x128xf32>
    %1792 = arith.addf %1790, %1791 : vector<8x128xf32>
    %1793 = arith.mulf %1680, %1603 : vector<8x128xf32>
    %1794 = arith.mulf %1687, %1631 : vector<8x128xf32>
    %1795 = arith.addf %1793, %1794 : vector<8x128xf32>
    %1796 = arith.mulf %1694, %1659 : vector<8x128xf32>
    %1797 = arith.addf %1795, %1796 : vector<8x128xf32>
    %1798 = arith.mulf %1701, %1687 : vector<8x128xf32>
    %1799 = arith.addf %1797, %1798 : vector<8x128xf32>
    %1800 = arith.mulf %1680, %1610 : vector<8x128xf32>
    %1801 = arith.mulf %1687, %1638 : vector<8x128xf32>
    %1802 = arith.addf %1800, %1801 : vector<8x128xf32>
    %1803 = arith.mulf %1694, %1666 : vector<8x128xf32>
    %1804 = arith.addf %1802, %1803 : vector<8x128xf32>
    %1805 = arith.mulf %1701, %1694 : vector<8x128xf32>
    %1806 = arith.addf %1804, %1805 : vector<8x128xf32>
    %1807 = arith.mulf %1680, %1617 : vector<8x128xf32>
    %1808 = arith.mulf %1687, %1645 : vector<8x128xf32>
    %1809 = arith.addf %1807, %1808 : vector<8x128xf32>
    %1810 = arith.mulf %1694, %1673 : vector<8x128xf32>
    %1811 = arith.addf %1809, %1810 : vector<8x128xf32>
    %1812 = arith.mulf %1701, %1701 : vector<8x128xf32>
    %1813 = arith.addf %1811, %1812 : vector<8x128xf32>
    %1814 = arith.mulf %1708, %1708 : vector<8x128xf32>
    %1815 = arith.mulf %1715, %1736 : vector<8x128xf32>
    %1816 = arith.addf %1814, %1815 : vector<8x128xf32>
    %1817 = arith.mulf %1722, %1764 : vector<8x128xf32>
    %1818 = arith.addf %1816, %1817 : vector<8x128xf32>
    %1819 = arith.mulf %1729, %1792 : vector<8x128xf32>
    %1820 = arith.addf %1818, %1819 : vector<8x128xf32>
    %1821 = arith.mulf %1708, %1715 : vector<8x128xf32>
    %1822 = arith.mulf %1715, %1743 : vector<8x128xf32>
    %1823 = arith.addf %1821, %1822 : vector<8x128xf32>
    %1824 = arith.mulf %1722, %1771 : vector<8x128xf32>
    %1825 = arith.addf %1823, %1824 : vector<8x128xf32>
    %1826 = arith.mulf %1729, %1799 : vector<8x128xf32>
    %1827 = arith.addf %1825, %1826 : vector<8x128xf32>
    %1828 = arith.mulf %1708, %1722 : vector<8x128xf32>
    %1829 = arith.mulf %1715, %1750 : vector<8x128xf32>
    %1830 = arith.addf %1828, %1829 : vector<8x128xf32>
    %1831 = arith.mulf %1722, %1778 : vector<8x128xf32>
    %1832 = arith.addf %1830, %1831 : vector<8x128xf32>
    %1833 = arith.mulf %1729, %1806 : vector<8x128xf32>
    %1834 = arith.addf %1832, %1833 : vector<8x128xf32>
    %1835 = arith.mulf %1708, %1729 : vector<8x128xf32>
    %1836 = arith.mulf %1715, %1757 : vector<8x128xf32>
    %1837 = arith.addf %1835, %1836 : vector<8x128xf32>
    %1838 = arith.mulf %1722, %1785 : vector<8x128xf32>
    %1839 = arith.addf %1837, %1838 : vector<8x128xf32>
    %1840 = arith.mulf %1729, %1813 : vector<8x128xf32>
    %1841 = arith.addf %1839, %1840 : vector<8x128xf32>
    %1842 = arith.mulf %1736, %1708 : vector<8x128xf32>
    %1843 = arith.mulf %1743, %1736 : vector<8x128xf32>
    %1844 = arith.addf %1842, %1843 : vector<8x128xf32>
    %1845 = arith.mulf %1750, %1764 : vector<8x128xf32>
    %1846 = arith.addf %1844, %1845 : vector<8x128xf32>
    %1847 = arith.mulf %1757, %1792 : vector<8x128xf32>
    %1848 = arith.addf %1846, %1847 : vector<8x128xf32>
    %1849 = arith.mulf %1736, %1715 : vector<8x128xf32>
    %1850 = arith.mulf %1743, %1743 : vector<8x128xf32>
    %1851 = arith.addf %1849, %1850 : vector<8x128xf32>
    %1852 = arith.mulf %1750, %1771 : vector<8x128xf32>
    %1853 = arith.addf %1851, %1852 : vector<8x128xf32>
    %1854 = arith.mulf %1757, %1799 : vector<8x128xf32>
    %1855 = arith.addf %1853, %1854 : vector<8x128xf32>
    %1856 = arith.mulf %1736, %1722 : vector<8x128xf32>
    %1857 = arith.mulf %1743, %1750 : vector<8x128xf32>
    %1858 = arith.addf %1856, %1857 : vector<8x128xf32>
    %1859 = arith.mulf %1750, %1778 : vector<8x128xf32>
    %1860 = arith.addf %1858, %1859 : vector<8x128xf32>
    %1861 = arith.mulf %1757, %1806 : vector<8x128xf32>
    %1862 = arith.addf %1860, %1861 : vector<8x128xf32>
    %1863 = arith.mulf %1736, %1729 : vector<8x128xf32>
    %1864 = arith.mulf %1743, %1757 : vector<8x128xf32>
    %1865 = arith.addf %1863, %1864 : vector<8x128xf32>
    %1866 = arith.mulf %1750, %1785 : vector<8x128xf32>
    %1867 = arith.addf %1865, %1866 : vector<8x128xf32>
    %1868 = arith.mulf %1757, %1813 : vector<8x128xf32>
    %1869 = arith.addf %1867, %1868 : vector<8x128xf32>
    %1870 = arith.mulf %1764, %1708 : vector<8x128xf32>
    %1871 = arith.mulf %1771, %1736 : vector<8x128xf32>
    %1872 = arith.addf %1870, %1871 : vector<8x128xf32>
    %1873 = arith.mulf %1778, %1764 : vector<8x128xf32>
    %1874 = arith.addf %1872, %1873 : vector<8x128xf32>
    %1875 = arith.mulf %1785, %1792 : vector<8x128xf32>
    %1876 = arith.addf %1874, %1875 : vector<8x128xf32>
    %1877 = arith.mulf %1764, %1715 : vector<8x128xf32>
    %1878 = arith.mulf %1771, %1743 : vector<8x128xf32>
    %1879 = arith.addf %1877, %1878 : vector<8x128xf32>
    %1880 = arith.mulf %1778, %1771 : vector<8x128xf32>
    %1881 = arith.addf %1879, %1880 : vector<8x128xf32>
    %1882 = arith.mulf %1785, %1799 : vector<8x128xf32>
    %1883 = arith.addf %1881, %1882 : vector<8x128xf32>
    %1884 = arith.mulf %1764, %1722 : vector<8x128xf32>
    %1885 = arith.mulf %1771, %1750 : vector<8x128xf32>
    %1886 = arith.addf %1884, %1885 : vector<8x128xf32>
    %1887 = arith.mulf %1778, %1778 : vector<8x128xf32>
    %1888 = arith.addf %1886, %1887 : vector<8x128xf32>
    %1889 = arith.mulf %1785, %1806 : vector<8x128xf32>
    %1890 = arith.addf %1888, %1889 : vector<8x128xf32>
    %1891 = arith.mulf %1764, %1729 : vector<8x128xf32>
    %1892 = arith.mulf %1771, %1757 : vector<8x128xf32>
    %1893 = arith.addf %1891, %1892 : vector<8x128xf32>
    %1894 = arith.mulf %1778, %1785 : vector<8x128xf32>
    %1895 = arith.addf %1893, %1894 : vector<8x128xf32>
    %1896 = arith.mulf %1785, %1813 : vector<8x128xf32>
    %1897 = arith.addf %1895, %1896 : vector<8x128xf32>
    %1898 = arith.mulf %1792, %1708 : vector<8x128xf32>
    %1899 = arith.mulf %1799, %1736 : vector<8x128xf32>
    %1900 = arith.addf %1898, %1899 : vector<8x128xf32>
    %1901 = arith.mulf %1806, %1764 : vector<8x128xf32>
    %1902 = arith.addf %1900, %1901 : vector<8x128xf32>
    %1903 = arith.mulf %1813, %1792 : vector<8x128xf32>
    %1904 = arith.addf %1902, %1903 : vector<8x128xf32>
    %1905 = arith.mulf %1792, %1715 : vector<8x128xf32>
    %1906 = arith.mulf %1799, %1743 : vector<8x128xf32>
    %1907 = arith.addf %1905, %1906 : vector<8x128xf32>
    %1908 = arith.mulf %1806, %1771 : vector<8x128xf32>
    %1909 = arith.addf %1907, %1908 : vector<8x128xf32>
    %1910 = arith.mulf %1813, %1799 : vector<8x128xf32>
    %1911 = arith.addf %1909, %1910 : vector<8x128xf32>
    %1912 = arith.mulf %1792, %1722 : vector<8x128xf32>
    %1913 = arith.mulf %1799, %1750 : vector<8x128xf32>
    %1914 = arith.addf %1912, %1913 : vector<8x128xf32>
    %1915 = arith.mulf %1806, %1778 : vector<8x128xf32>
    %1916 = arith.addf %1914, %1915 : vector<8x128xf32>
    %1917 = arith.mulf %1813, %1806 : vector<8x128xf32>
    %1918 = arith.addf %1916, %1917 : vector<8x128xf32>
    %1919 = arith.mulf %1792, %1729 : vector<8x128xf32>
    %1920 = arith.mulf %1799, %1757 : vector<8x128xf32>
    %1921 = arith.addf %1919, %1920 : vector<8x128xf32>
    %1922 = arith.mulf %1806, %1785 : vector<8x128xf32>
    %1923 = arith.addf %1921, %1922 : vector<8x128xf32>
    %1924 = arith.mulf %1813, %1813 : vector<8x128xf32>
    %1925 = arith.addf %1923, %1924 : vector<8x128xf32>
    %1926 = arith.mulf %1820, %1820 : vector<8x128xf32>
    %1927 = arith.mulf %1827, %1848 : vector<8x128xf32>
    %1928 = arith.addf %1926, %1927 : vector<8x128xf32>
    %1929 = arith.mulf %1834, %1876 : vector<8x128xf32>
    %1930 = arith.addf %1928, %1929 : vector<8x128xf32>
    %1931 = arith.mulf %1841, %1904 : vector<8x128xf32>
    %1932 = arith.addf %1930, %1931 : vector<8x128xf32>
    %1933 = arith.mulf %1820, %1827 : vector<8x128xf32>
    %1934 = arith.mulf %1827, %1855 : vector<8x128xf32>
    %1935 = arith.addf %1933, %1934 : vector<8x128xf32>
    %1936 = arith.mulf %1834, %1883 : vector<8x128xf32>
    %1937 = arith.addf %1935, %1936 : vector<8x128xf32>
    %1938 = arith.mulf %1841, %1911 : vector<8x128xf32>
    %1939 = arith.addf %1937, %1938 : vector<8x128xf32>
    %1940 = arith.mulf %1820, %1834 : vector<8x128xf32>
    %1941 = arith.mulf %1827, %1862 : vector<8x128xf32>
    %1942 = arith.addf %1940, %1941 : vector<8x128xf32>
    %1943 = arith.mulf %1834, %1890 : vector<8x128xf32>
    %1944 = arith.addf %1942, %1943 : vector<8x128xf32>
    %1945 = arith.mulf %1841, %1918 : vector<8x128xf32>
    %1946 = arith.addf %1944, %1945 : vector<8x128xf32>
    %1947 = arith.mulf %1820, %1841 : vector<8x128xf32>
    %1948 = arith.mulf %1827, %1869 : vector<8x128xf32>
    %1949 = arith.addf %1947, %1948 : vector<8x128xf32>
    %1950 = arith.mulf %1834, %1897 : vector<8x128xf32>
    %1951 = arith.addf %1949, %1950 : vector<8x128xf32>
    %1952 = arith.mulf %1841, %1925 : vector<8x128xf32>
    %1953 = arith.addf %1951, %1952 : vector<8x128xf32>
    %1954 = arith.mulf %1848, %1820 : vector<8x128xf32>
    %1955 = arith.mulf %1855, %1848 : vector<8x128xf32>
    %1956 = arith.addf %1954, %1955 : vector<8x128xf32>
    %1957 = arith.mulf %1862, %1876 : vector<8x128xf32>
    %1958 = arith.addf %1956, %1957 : vector<8x128xf32>
    %1959 = arith.mulf %1869, %1904 : vector<8x128xf32>
    %1960 = arith.addf %1958, %1959 : vector<8x128xf32>
    %1961 = arith.mulf %1848, %1827 : vector<8x128xf32>
    %1962 = arith.mulf %1855, %1855 : vector<8x128xf32>
    %1963 = arith.addf %1961, %1962 : vector<8x128xf32>
    %1964 = arith.mulf %1862, %1883 : vector<8x128xf32>
    %1965 = arith.addf %1963, %1964 : vector<8x128xf32>
    %1966 = arith.mulf %1869, %1911 : vector<8x128xf32>
    %1967 = arith.addf %1965, %1966 : vector<8x128xf32>
    %1968 = arith.mulf %1848, %1834 : vector<8x128xf32>
    %1969 = arith.mulf %1855, %1862 : vector<8x128xf32>
    %1970 = arith.addf %1968, %1969 : vector<8x128xf32>
    %1971 = arith.mulf %1862, %1890 : vector<8x128xf32>
    %1972 = arith.addf %1970, %1971 : vector<8x128xf32>
    %1973 = arith.mulf %1869, %1918 : vector<8x128xf32>
    %1974 = arith.addf %1972, %1973 : vector<8x128xf32>
    %1975 = arith.mulf %1848, %1841 : vector<8x128xf32>
    %1976 = arith.mulf %1855, %1869 : vector<8x128xf32>
    %1977 = arith.addf %1975, %1976 : vector<8x128xf32>
    %1978 = arith.mulf %1862, %1897 : vector<8x128xf32>
    %1979 = arith.addf %1977, %1978 : vector<8x128xf32>
    %1980 = arith.mulf %1869, %1925 : vector<8x128xf32>
    %1981 = arith.addf %1979, %1980 : vector<8x128xf32>
    %1982 = arith.mulf %1876, %1820 : vector<8x128xf32>
    %1983 = arith.mulf %1883, %1848 : vector<8x128xf32>
    %1984 = arith.addf %1982, %1983 : vector<8x128xf32>
    %1985 = arith.mulf %1890, %1876 : vector<8x128xf32>
    %1986 = arith.addf %1984, %1985 : vector<8x128xf32>
    %1987 = arith.mulf %1897, %1904 : vector<8x128xf32>
    %1988 = arith.addf %1986, %1987 : vector<8x128xf32>
    %1989 = arith.mulf %1876, %1827 : vector<8x128xf32>
    %1990 = arith.mulf %1883, %1855 : vector<8x128xf32>
    %1991 = arith.addf %1989, %1990 : vector<8x128xf32>
    %1992 = arith.mulf %1890, %1883 : vector<8x128xf32>
    %1993 = arith.addf %1991, %1992 : vector<8x128xf32>
    %1994 = arith.mulf %1897, %1911 : vector<8x128xf32>
    %1995 = arith.addf %1993, %1994 : vector<8x128xf32>
    %1996 = arith.mulf %1876, %1834 : vector<8x128xf32>
    %1997 = arith.mulf %1883, %1862 : vector<8x128xf32>
    %1998 = arith.addf %1996, %1997 : vector<8x128xf32>
    %1999 = arith.mulf %1890, %1890 : vector<8x128xf32>
    %2000 = arith.addf %1998, %1999 : vector<8x128xf32>
    %2001 = arith.mulf %1897, %1918 : vector<8x128xf32>
    %2002 = arith.addf %2000, %2001 : vector<8x128xf32>
    %2003 = arith.mulf %1876, %1841 : vector<8x128xf32>
    %2004 = arith.mulf %1883, %1869 : vector<8x128xf32>
    %2005 = arith.addf %2003, %2004 : vector<8x128xf32>
    %2006 = arith.mulf %1890, %1897 : vector<8x128xf32>
    %2007 = arith.addf %2005, %2006 : vector<8x128xf32>
    %2008 = arith.mulf %1897, %1925 : vector<8x128xf32>
    %2009 = arith.addf %2007, %2008 : vector<8x128xf32>
    %2010 = arith.mulf %1904, %1820 : vector<8x128xf32>
    %2011 = arith.mulf %1911, %1848 : vector<8x128xf32>
    %2012 = arith.addf %2010, %2011 : vector<8x128xf32>
    %2013 = arith.mulf %1918, %1876 : vector<8x128xf32>
    %2014 = arith.addf %2012, %2013 : vector<8x128xf32>
    %2015 = arith.mulf %1925, %1904 : vector<8x128xf32>
    %2016 = arith.addf %2014, %2015 : vector<8x128xf32>
    %2017 = arith.mulf %1904, %1827 : vector<8x128xf32>
    %2018 = arith.mulf %1911, %1855 : vector<8x128xf32>
    %2019 = arith.addf %2017, %2018 : vector<8x128xf32>
    %2020 = arith.mulf %1918, %1883 : vector<8x128xf32>
    %2021 = arith.addf %2019, %2020 : vector<8x128xf32>
    %2022 = arith.mulf %1925, %1911 : vector<8x128xf32>
    %2023 = arith.addf %2021, %2022 : vector<8x128xf32>
    %2024 = arith.mulf %1904, %1834 : vector<8x128xf32>
    %2025 = arith.mulf %1911, %1862 : vector<8x128xf32>
    %2026 = arith.addf %2024, %2025 : vector<8x128xf32>
    %2027 = arith.mulf %1918, %1890 : vector<8x128xf32>
    %2028 = arith.addf %2026, %2027 : vector<8x128xf32>
    %2029 = arith.mulf %1925, %1918 : vector<8x128xf32>
    %2030 = arith.addf %2028, %2029 : vector<8x128xf32>
    %2031 = arith.mulf %1904, %1841 : vector<8x128xf32>
    %2032 = arith.mulf %1911, %1869 : vector<8x128xf32>
    %2033 = arith.addf %2031, %2032 : vector<8x128xf32>
    %2034 = arith.mulf %1918, %1897 : vector<8x128xf32>
    %2035 = arith.addf %2033, %2034 : vector<8x128xf32>
    %2036 = arith.mulf %1925, %1925 : vector<8x128xf32>
    %2037 = arith.addf %2035, %2036 : vector<8x128xf32>
    %2038 = arith.mulf %1932, %1932 : vector<8x128xf32>
    %2039 = arith.mulf %1939, %1960 : vector<8x128xf32>
    %2040 = arith.addf %2038, %2039 : vector<8x128xf32>
    %2041 = arith.mulf %1946, %1988 : vector<8x128xf32>
    %2042 = arith.addf %2040, %2041 : vector<8x128xf32>
    %2043 = arith.mulf %1953, %2016 : vector<8x128xf32>
    %2044 = arith.addf %2042, %2043 : vector<8x128xf32>
    %2045 = arith.mulf %1932, %1939 : vector<8x128xf32>
    %2046 = arith.mulf %1939, %1967 : vector<8x128xf32>
    %2047 = arith.addf %2045, %2046 : vector<8x128xf32>
    %2048 = arith.mulf %1946, %1995 : vector<8x128xf32>
    %2049 = arith.addf %2047, %2048 : vector<8x128xf32>
    %2050 = arith.mulf %1953, %2023 : vector<8x128xf32>
    %2051 = arith.addf %2049, %2050 : vector<8x128xf32>
    %2052 = arith.mulf %1932, %1946 : vector<8x128xf32>
    %2053 = arith.mulf %1939, %1974 : vector<8x128xf32>
    %2054 = arith.addf %2052, %2053 : vector<8x128xf32>
    %2055 = arith.mulf %1946, %2002 : vector<8x128xf32>
    %2056 = arith.addf %2054, %2055 : vector<8x128xf32>
    %2057 = arith.mulf %1953, %2030 : vector<8x128xf32>
    %2058 = arith.addf %2056, %2057 : vector<8x128xf32>
    %2059 = arith.mulf %1932, %1953 : vector<8x128xf32>
    %2060 = arith.mulf %1939, %1981 : vector<8x128xf32>
    %2061 = arith.addf %2059, %2060 : vector<8x128xf32>
    %2062 = arith.mulf %1946, %2009 : vector<8x128xf32>
    %2063 = arith.addf %2061, %2062 : vector<8x128xf32>
    %2064 = arith.mulf %1953, %2037 : vector<8x128xf32>
    %2065 = arith.addf %2063, %2064 : vector<8x128xf32>
    %2066 = arith.mulf %1960, %1932 : vector<8x128xf32>
    %2067 = arith.mulf %1967, %1960 : vector<8x128xf32>
    %2068 = arith.addf %2066, %2067 : vector<8x128xf32>
    %2069 = arith.mulf %1974, %1988 : vector<8x128xf32>
    %2070 = arith.addf %2068, %2069 : vector<8x128xf32>
    %2071 = arith.mulf %1981, %2016 : vector<8x128xf32>
    %2072 = arith.addf %2070, %2071 : vector<8x128xf32>
    %2073 = arith.mulf %1960, %1939 : vector<8x128xf32>
    %2074 = arith.mulf %1967, %1967 : vector<8x128xf32>
    %2075 = arith.addf %2073, %2074 : vector<8x128xf32>
    %2076 = arith.mulf %1974, %1995 : vector<8x128xf32>
    %2077 = arith.addf %2075, %2076 : vector<8x128xf32>
    %2078 = arith.mulf %1981, %2023 : vector<8x128xf32>
    %2079 = arith.addf %2077, %2078 : vector<8x128xf32>
    %2080 = arith.mulf %1960, %1946 : vector<8x128xf32>
    %2081 = arith.mulf %1967, %1974 : vector<8x128xf32>
    %2082 = arith.addf %2080, %2081 : vector<8x128xf32>
    %2083 = arith.mulf %1974, %2002 : vector<8x128xf32>
    %2084 = arith.addf %2082, %2083 : vector<8x128xf32>
    %2085 = arith.mulf %1981, %2030 : vector<8x128xf32>
    %2086 = arith.addf %2084, %2085 : vector<8x128xf32>
    %2087 = arith.mulf %1960, %1953 : vector<8x128xf32>
    %2088 = arith.mulf %1967, %1981 : vector<8x128xf32>
    %2089 = arith.addf %2087, %2088 : vector<8x128xf32>
    %2090 = arith.mulf %1974, %2009 : vector<8x128xf32>
    %2091 = arith.addf %2089, %2090 : vector<8x128xf32>
    %2092 = arith.mulf %1981, %2037 : vector<8x128xf32>
    %2093 = arith.addf %2091, %2092 : vector<8x128xf32>
    %2094 = arith.mulf %1988, %1932 : vector<8x128xf32>
    %2095 = arith.mulf %1995, %1960 : vector<8x128xf32>
    %2096 = arith.addf %2094, %2095 : vector<8x128xf32>
    %2097 = arith.mulf %2002, %1988 : vector<8x128xf32>
    %2098 = arith.addf %2096, %2097 : vector<8x128xf32>
    %2099 = arith.mulf %2009, %2016 : vector<8x128xf32>
    %2100 = arith.addf %2098, %2099 : vector<8x128xf32>
    %2101 = arith.mulf %1988, %1939 : vector<8x128xf32>
    %2102 = arith.mulf %1995, %1967 : vector<8x128xf32>
    %2103 = arith.addf %2101, %2102 : vector<8x128xf32>
    %2104 = arith.mulf %2002, %1995 : vector<8x128xf32>
    %2105 = arith.addf %2103, %2104 : vector<8x128xf32>
    %2106 = arith.mulf %2009, %2023 : vector<8x128xf32>
    %2107 = arith.addf %2105, %2106 : vector<8x128xf32>
    %2108 = arith.mulf %1988, %1946 : vector<8x128xf32>
    %2109 = arith.mulf %1995, %1974 : vector<8x128xf32>
    %2110 = arith.addf %2108, %2109 : vector<8x128xf32>
    %2111 = arith.mulf %2002, %2002 : vector<8x128xf32>
    %2112 = arith.addf %2110, %2111 : vector<8x128xf32>
    %2113 = arith.mulf %2009, %2030 : vector<8x128xf32>
    %2114 = arith.addf %2112, %2113 : vector<8x128xf32>
    %2115 = arith.mulf %1988, %1953 : vector<8x128xf32>
    %2116 = arith.mulf %1995, %1981 : vector<8x128xf32>
    %2117 = arith.addf %2115, %2116 : vector<8x128xf32>
    %2118 = arith.mulf %2002, %2009 : vector<8x128xf32>
    %2119 = arith.addf %2117, %2118 : vector<8x128xf32>
    %2120 = arith.mulf %2009, %2037 : vector<8x128xf32>
    %2121 = arith.addf %2119, %2120 : vector<8x128xf32>
    %2122 = arith.mulf %2016, %1932 : vector<8x128xf32>
    %2123 = arith.mulf %2023, %1960 : vector<8x128xf32>
    %2124 = arith.addf %2122, %2123 : vector<8x128xf32>
    %2125 = arith.mulf %2030, %1988 : vector<8x128xf32>
    %2126 = arith.addf %2124, %2125 : vector<8x128xf32>
    %2127 = arith.mulf %2037, %2016 : vector<8x128xf32>
    %2128 = arith.addf %2126, %2127 : vector<8x128xf32>
    %2129 = arith.mulf %2016, %1939 : vector<8x128xf32>
    %2130 = arith.mulf %2023, %1967 : vector<8x128xf32>
    %2131 = arith.addf %2129, %2130 : vector<8x128xf32>
    %2132 = arith.mulf %2030, %1995 : vector<8x128xf32>
    %2133 = arith.addf %2131, %2132 : vector<8x128xf32>
    %2134 = arith.mulf %2037, %2023 : vector<8x128xf32>
    %2135 = arith.addf %2133, %2134 : vector<8x128xf32>
    %2136 = arith.mulf %2016, %1946 : vector<8x128xf32>
    %2137 = arith.mulf %2023, %1974 : vector<8x128xf32>
    %2138 = arith.addf %2136, %2137 : vector<8x128xf32>
    %2139 = arith.mulf %2030, %2002 : vector<8x128xf32>
    %2140 = arith.addf %2138, %2139 : vector<8x128xf32>
    %2141 = arith.mulf %2037, %2030 : vector<8x128xf32>
    %2142 = arith.addf %2140, %2141 : vector<8x128xf32>
    %2143 = arith.mulf %2016, %1953 : vector<8x128xf32>
    %2144 = arith.mulf %2023, %1981 : vector<8x128xf32>
    %2145 = arith.addf %2143, %2144 : vector<8x128xf32>
    %2146 = arith.mulf %2030, %2009 : vector<8x128xf32>
    %2147 = arith.addf %2145, %2146 : vector<8x128xf32>
    %2148 = arith.mulf %2037, %2037 : vector<8x128xf32>
    %2149 = arith.addf %2147, %2148 : vector<8x128xf32>
    %2150 = arith.mulf %2044, %2044 : vector<8x128xf32>
    %2151 = arith.mulf %2051, %2072 : vector<8x128xf32>
    %2152 = arith.addf %2150, %2151 : vector<8x128xf32>
    %2153 = arith.mulf %2058, %2100 : vector<8x128xf32>
    %2154 = arith.addf %2152, %2153 : vector<8x128xf32>
    %2155 = arith.mulf %2065, %2128 : vector<8x128xf32>
    %2156 = arith.addf %2154, %2155 : vector<8x128xf32>
    %2157 = arith.mulf %2044, %2051 : vector<8x128xf32>
    %2158 = arith.mulf %2051, %2079 : vector<8x128xf32>
    %2159 = arith.addf %2157, %2158 : vector<8x128xf32>
    %2160 = arith.mulf %2058, %2107 : vector<8x128xf32>
    %2161 = arith.addf %2159, %2160 : vector<8x128xf32>
    %2162 = arith.mulf %2065, %2135 : vector<8x128xf32>
    %2163 = arith.addf %2161, %2162 : vector<8x128xf32>
    %2164 = arith.mulf %2044, %2058 : vector<8x128xf32>
    %2165 = arith.mulf %2051, %2086 : vector<8x128xf32>
    %2166 = arith.addf %2164, %2165 : vector<8x128xf32>
    %2167 = arith.mulf %2058, %2114 : vector<8x128xf32>
    %2168 = arith.addf %2166, %2167 : vector<8x128xf32>
    %2169 = arith.mulf %2065, %2142 : vector<8x128xf32>
    %2170 = arith.addf %2168, %2169 : vector<8x128xf32>
    %2171 = arith.mulf %2044, %2065 : vector<8x128xf32>
    %2172 = arith.mulf %2051, %2093 : vector<8x128xf32>
    %2173 = arith.addf %2171, %2172 : vector<8x128xf32>
    %2174 = arith.mulf %2058, %2121 : vector<8x128xf32>
    %2175 = arith.addf %2173, %2174 : vector<8x128xf32>
    %2176 = arith.mulf %2065, %2149 : vector<8x128xf32>
    %2177 = arith.addf %2175, %2176 : vector<8x128xf32>
    %2178 = arith.mulf %2072, %2044 : vector<8x128xf32>
    %2179 = arith.mulf %2079, %2072 : vector<8x128xf32>
    %2180 = arith.addf %2178, %2179 : vector<8x128xf32>
    %2181 = arith.mulf %2086, %2100 : vector<8x128xf32>
    %2182 = arith.addf %2180, %2181 : vector<8x128xf32>
    %2183 = arith.mulf %2093, %2128 : vector<8x128xf32>
    %2184 = arith.addf %2182, %2183 : vector<8x128xf32>
    %2185 = arith.mulf %2072, %2051 : vector<8x128xf32>
    %2186 = arith.mulf %2079, %2079 : vector<8x128xf32>
    %2187 = arith.addf %2185, %2186 : vector<8x128xf32>
    %2188 = arith.mulf %2086, %2107 : vector<8x128xf32>
    %2189 = arith.addf %2187, %2188 : vector<8x128xf32>
    %2190 = arith.mulf %2093, %2135 : vector<8x128xf32>
    %2191 = arith.addf %2189, %2190 : vector<8x128xf32>
    %2192 = arith.mulf %2072, %2058 : vector<8x128xf32>
    %2193 = arith.mulf %2079, %2086 : vector<8x128xf32>
    %2194 = arith.addf %2192, %2193 : vector<8x128xf32>
    %2195 = arith.mulf %2086, %2114 : vector<8x128xf32>
    %2196 = arith.addf %2194, %2195 : vector<8x128xf32>
    %2197 = arith.mulf %2093, %2142 : vector<8x128xf32>
    %2198 = arith.addf %2196, %2197 : vector<8x128xf32>
    %2199 = arith.mulf %2072, %2065 : vector<8x128xf32>
    %2200 = arith.mulf %2079, %2093 : vector<8x128xf32>
    %2201 = arith.addf %2199, %2200 : vector<8x128xf32>
    %2202 = arith.mulf %2086, %2121 : vector<8x128xf32>
    %2203 = arith.addf %2201, %2202 : vector<8x128xf32>
    %2204 = arith.mulf %2093, %2149 : vector<8x128xf32>
    %2205 = arith.addf %2203, %2204 : vector<8x128xf32>
    %2206 = arith.mulf %2100, %2044 : vector<8x128xf32>
    %2207 = arith.mulf %2107, %2072 : vector<8x128xf32>
    %2208 = arith.addf %2206, %2207 : vector<8x128xf32>
    %2209 = arith.mulf %2114, %2100 : vector<8x128xf32>
    %2210 = arith.addf %2208, %2209 : vector<8x128xf32>
    %2211 = arith.mulf %2121, %2128 : vector<8x128xf32>
    %2212 = arith.addf %2210, %2211 : vector<8x128xf32>
    %2213 = arith.mulf %2100, %2051 : vector<8x128xf32>
    %2214 = arith.mulf %2107, %2079 : vector<8x128xf32>
    %2215 = arith.addf %2213, %2214 : vector<8x128xf32>
    %2216 = arith.mulf %2114, %2107 : vector<8x128xf32>
    %2217 = arith.addf %2215, %2216 : vector<8x128xf32>
    %2218 = arith.mulf %2121, %2135 : vector<8x128xf32>
    %2219 = arith.addf %2217, %2218 : vector<8x128xf32>
    %2220 = arith.mulf %2100, %2058 : vector<8x128xf32>
    %2221 = arith.mulf %2107, %2086 : vector<8x128xf32>
    %2222 = arith.addf %2220, %2221 : vector<8x128xf32>
    %2223 = arith.mulf %2114, %2114 : vector<8x128xf32>
    %2224 = arith.addf %2222, %2223 : vector<8x128xf32>
    %2225 = arith.mulf %2121, %2142 : vector<8x128xf32>
    %2226 = arith.addf %2224, %2225 : vector<8x128xf32>
    %2227 = arith.mulf %2100, %2065 : vector<8x128xf32>
    %2228 = arith.mulf %2107, %2093 : vector<8x128xf32>
    %2229 = arith.addf %2227, %2228 : vector<8x128xf32>
    %2230 = arith.mulf %2114, %2121 : vector<8x128xf32>
    %2231 = arith.addf %2229, %2230 : vector<8x128xf32>
    %2232 = arith.mulf %2121, %2149 : vector<8x128xf32>
    %2233 = arith.addf %2231, %2232 : vector<8x128xf32>
    %2234 = arith.mulf %2128, %2044 : vector<8x128xf32>
    %2235 = arith.mulf %2135, %2072 : vector<8x128xf32>
    %2236 = arith.addf %2234, %2235 : vector<8x128xf32>
    %2237 = arith.mulf %2142, %2100 : vector<8x128xf32>
    %2238 = arith.addf %2236, %2237 : vector<8x128xf32>
    %2239 = arith.mulf %2149, %2128 : vector<8x128xf32>
    %2240 = arith.addf %2238, %2239 : vector<8x128xf32>
    %2241 = arith.mulf %2128, %2051 : vector<8x128xf32>
    %2242 = arith.mulf %2135, %2079 : vector<8x128xf32>
    %2243 = arith.addf %2241, %2242 : vector<8x128xf32>
    %2244 = arith.mulf %2142, %2107 : vector<8x128xf32>
    %2245 = arith.addf %2243, %2244 : vector<8x128xf32>
    %2246 = arith.mulf %2149, %2135 : vector<8x128xf32>
    %2247 = arith.addf %2245, %2246 : vector<8x128xf32>
    %2248 = arith.mulf %2128, %2058 : vector<8x128xf32>
    %2249 = arith.mulf %2135, %2086 : vector<8x128xf32>
    %2250 = arith.addf %2248, %2249 : vector<8x128xf32>
    %2251 = arith.mulf %2142, %2114 : vector<8x128xf32>
    %2252 = arith.addf %2250, %2251 : vector<8x128xf32>
    %2253 = arith.mulf %2149, %2142 : vector<8x128xf32>
    %2254 = arith.addf %2252, %2253 : vector<8x128xf32>
    %2255 = arith.mulf %2128, %2065 : vector<8x128xf32>
    %2256 = arith.mulf %2135, %2093 : vector<8x128xf32>
    %2257 = arith.addf %2255, %2256 : vector<8x128xf32>
    %2258 = arith.mulf %2142, %2121 : vector<8x128xf32>
    %2259 = arith.addf %2257, %2258 : vector<8x128xf32>
    %2260 = arith.mulf %2149, %2149 : vector<8x128xf32>
    %2261 = arith.addf %2259, %2260 : vector<8x128xf32>
    %2262 = tpu.reciprocal %2261 : vector<8x128xf32> -> vector<8x128xf32>
    %2263 = arith.mulf %2156, %2262 : vector<8x128xf32>
    %c0_424 = arith.constant 0 : index
    %c0_425 = arith.constant 0 : index
    %c0_426 = arith.constant 0 : index
    %2264 = vector.load %arg3[%c0_424, %c0_425, %c0_426] : memref<16x8x128xf32, #tpu.memory_space<vmem>>, vector<1x8x128xf32>
    %2265 = vector.shape_cast %2264 : vector<1x8x128xf32> to vector<8x128xf32>
    %2266 = vector.shape_cast %2263 : vector<8x128xf32> to vector<1x8x128xf32>
    tpu.vector_store %arg3[%c0_424, %c0_425, %c0_426], %2266 {strides = array<i32>} : memref<16x8x128xf32, #tpu.memory_space<vmem>>, vector<1x8x128xf32>,
    %2267 = arith.mulf %2163, %2262 : vector<8x128xf32>
    %c1_427 = arith.constant 1 : index
    %c0_428 = arith.constant 0 : index
    %c0_429 = arith.constant 0 : index
    %2268 = vector.load %arg3[%c1_427, %c0_428, %c0_429] : memref<16x8x128xf32, #tpu.memory_space<vmem>>, vector<1x8x128xf32>
    %2269 = vector.shape_cast %2268 : vector<1x8x128xf32> to vector<8x128xf32>
    %2270 = vector.shape_cast %2267 : vector<8x128xf32> to vector<1x8x128xf32>
    tpu.vector_store %arg3[%c1_427, %c0_428, %c0_429], %2270 {strides = array<i32>} : memref<16x8x128xf32, #tpu.memory_space<vmem>>, vector<1x8x128xf32>,
    %2271 = arith.mulf %2170, %2262 : vector<8x128xf32>
    %c2_430 = arith.constant 2 : index
    %c0_431 = arith.constant 0 : index
    %c0_432 = arith.constant 0 : index
    %2272 = vector.load %arg3[%c2_430, %c0_431, %c0_432] : memref<16x8x128xf32, #tpu.memory_space<vmem>>, vector<1x8x128xf32>
    %2273 = vector.shape_cast %2272 : vector<1x8x128xf32> to vector<8x128xf32>
    %2274 = vector.shape_cast %2271 : vector<8x128xf32> to vector<1x8x128xf32>
    tpu.vector_store %arg3[%c2_430, %c0_431, %c0_432], %2274 {strides = array<i32>} : memref<16x8x128xf32, #tpu.memory_space<vmem>>, vector<1x8x128xf32>,
    %2275 = arith.mulf %2177, %2262 : vector<8x128xf32>
    %c3_433 = arith.constant 3 : index
    %c0_434 = arith.constant 0 : index
    %c0_435 = arith.constant 0 : index
    %2276 = vector.load %arg3[%c3_433, %c0_434, %c0_435] : memref<16x8x128xf32, #tpu.memory_space<vmem>>, vector<1x8x128xf32>
    %2277 = vector.shape_cast %2276 : vector<1x8x128xf32> to vector<8x128xf32>
    %2278 = vector.shape_cast %2275 : vector<8x128xf32> to vector<1x8x128xf32>
    tpu.vector_store %arg3[%c3_433, %c0_434, %c0_435], %2278 {strides = array<i32>} : memref<16x8x128xf32, #tpu.memory_space<vmem>>, vector<1x8x128xf32>,
    %2279 = arith.mulf %2184, %2262 : vector<8x128xf32>
    %c4_436 = arith.constant 4 : index
    %c0_437 = arith.constant 0 : index
    %c0_438 = arith.constant 0 : index
    %2280 = vector.load %arg3[%c4_436, %c0_437, %c0_438] : memref<16x8x128xf32, #tpu.memory_space<vmem>>, vector<1x8x128xf32>
    %2281 = vector.shape_cast %2280 : vector<1x8x128xf32> to vector<8x128xf32>
    %2282 = vector.shape_cast %2279 : vector<8x128xf32> to vector<1x8x128xf32>
    tpu.vector_store %arg3[%c4_436, %c0_437, %c0_438], %2282 {strides = array<i32>} : memref<16x8x128xf32, #tpu.memory_space<vmem>>, vector<1x8x128xf32>,
    %2283 = arith.mulf %2191, %2262 : vector<8x128xf32>
    %c5_439 = arith.constant 5 : index
    %c0_440 = arith.constant 0 : index
    %c0_441 = arith.constant 0 : index
    %2284 = vector.load %arg3[%c5_439, %c0_440, %c0_441] : memref<16x8x128xf32, #tpu.memory_space<vmem>>, vector<1x8x128xf32>
    %2285 = vector.shape_cast %2284 : vector<1x8x128xf32> to vector<8x128xf32>
    %2286 = vector.shape_cast %2283 : vector<8x128xf32> to vector<1x8x128xf32>
    tpu.vector_store %arg3[%c5_439, %c0_440, %c0_441], %2286 {strides = array<i32>} : memref<16x8x128xf32, #tpu.memory_space<vmem>>, vector<1x8x128xf32>,
    %2287 = arith.mulf %2198, %2262 : vector<8x128xf32>
    %c6_442 = arith.constant 6 : index
    %c0_443 = arith.constant 0 : index
    %c0_444 = arith.constant 0 : index
    %2288 = vector.load %arg3[%c6_442, %c0_443, %c0_444] : memref<16x8x128xf32, #tpu.memory_space<vmem>>, vector<1x8x128xf32>
    %2289 = vector.shape_cast %2288 : vector<1x8x128xf32> to vector<8x128xf32>
    %2290 = vector.shape_cast %2287 : vector<8x128xf32> to vector<1x8x128xf32>
    tpu.vector_store %arg3[%c6_442, %c0_443, %c0_444], %2290 {strides = array<i32>} : memref<16x8x128xf32, #tpu.memory_space<vmem>>, vector<1x8x128xf32>,
    %2291 = arith.mulf %2205, %2262 : vector<8x128xf32>
    %c7_445 = arith.constant 7 : index
    %c0_446 = arith.constant 0 : index
    %c0_447 = arith.constant 0 : index
    %2292 = vector.load %arg3[%c7_445, %c0_446, %c0_447] : memref<16x8x128xf32, #tpu.memory_space<vmem>>, vector<1x8x128xf32>
    %2293 = vector.shape_cast %2292 : vector<1x8x128xf32> to vector<8x128xf32>
    %2294 = vector.shape_cast %2291 : vector<8x128xf32> to vector<1x8x128xf32>
    tpu.vector_store %arg3[%c7_445, %c0_446, %c0_447], %2294 {strides = array<i32>} : memref<16x8x128xf32, #tpu.memory_space<vmem>>, vector<1x8x128xf32>,
    %2295 = arith.mulf %2212, %2262 : vector<8x128xf32>
    %c8_448 = arith.constant 8 : index
    %c0_449 = arith.constant 0 : index
    %c0_450 = arith.constant 0 : index
    %2296 = vector.load %arg3[%c8_448, %c0_449, %c0_450] : memref<16x8x128xf32, #tpu.memory_space<vmem>>, vector<1x8x128xf32>
    %2297 = vector.shape_cast %2296 : vector<1x8x128xf32> to vector<8x128xf32>
    %2298 = vector.shape_cast %2295 : vector<8x128xf32> to vector<1x8x128xf32>
    tpu.vector_store %arg3[%c8_448, %c0_449, %c0_450], %2298 {strides = array<i32>} : memref<16x8x128xf32, #tpu.memory_space<vmem>>, vector<1x8x128xf32>,
    %2299 = arith.mulf %2219, %2262 : vector<8x128xf32>
    %c9_451 = arith.constant 9 : index
    %c0_452 = arith.constant 0 : index
    %c0_453 = arith.constant 0 : index
    %2300 = vector.load %arg3[%c9_451, %c0_452, %c0_453] : memref<16x8x128xf32, #tpu.memory_space<vmem>>, vector<1x8x128xf32>
    %2301 = vector.shape_cast %2300 : vector<1x8x128xf32> to vector<8x128xf32>
    %2302 = vector.shape_cast %2299 : vector<8x128xf32> to vector<1x8x128xf32>
    tpu.vector_store %arg3[%c9_451, %c0_452, %c0_453], %2302 {strides = array<i32>} : memref<16x8x128xf32, #tpu.memory_space<vmem>>, vector<1x8x128xf32>,
    %2303 = arith.mulf %2226, %2262 : vector<8x128xf32>
    %c10_454 = arith.constant 10 : index
    %c0_455 = arith.constant 0 : index
    %c0_456 = arith.constant 0 : index
    %2304 = vector.load %arg3[%c10_454, %c0_455, %c0_456] : memref<16x8x128xf32, #tpu.memory_space<vmem>>, vector<1x8x128xf32>
    %2305 = vector.shape_cast %2304 : vector<1x8x128xf32> to vector<8x128xf32>
    %2306 = vector.shape_cast %2303 : vector<8x128xf32> to vector<1x8x128xf32>
    tpu.vector_store %arg3[%c10_454, %c0_455, %c0_456], %2306 {strides = array<i32>} : memref<16x8x128xf32, #tpu.memory_space<vmem>>, vector<1x8x128xf32>,
    %2307 = arith.mulf %2233, %2262 : vector<8x128xf32>
    %c11_457 = arith.constant 11 : index
    %c0_458 = arith.constant 0 : index
    %c0_459 = arith.constant 0 : index
    %2308 = vector.load %arg3[%c11_457, %c0_458, %c0_459] : memref<16x8x128xf32, #tpu.memory_space<vmem>>, vector<1x8x128xf32>
    %2309 = vector.shape_cast %2308 : vector<1x8x128xf32> to vector<8x128xf32>
    %2310 = vector.shape_cast %2307 : vector<8x128xf32> to vector<1x8x128xf32>
    tpu.vector_store %arg3[%c11_457, %c0_458, %c0_459], %2310 {strides = array<i32>} : memref<16x8x128xf32, #tpu.memory_space<vmem>>, vector<1x8x128xf32>,
    %2311 = arith.mulf %2240, %2262 : vector<8x128xf32>
    %c12_460 = arith.constant 12 : index
    %c0_461 = arith.constant 0 : index
    %c0_462 = arith.constant 0 : index
    %2312 = vector.load %arg3[%c12_460, %c0_461, %c0_462] : memref<16x8x128xf32, #tpu.memory_space<vmem>>, vector<1x8x128xf32>
    %2313 = vector.shape_cast %2312 : vector<1x8x128xf32> to vector<8x128xf32>
    %2314 = vector.shape_cast %2311 : vector<8x128xf32> to vector<1x8x128xf32>
    tpu.vector_store %arg3[%c12_460, %c0_461, %c0_462], %2314 {strides = array<i32>} : memref<16x8x128xf32, #tpu.memory_space<vmem>>, vector<1x8x128xf32>,
    %2315 = arith.mulf %2247, %2262 : vector<8x128xf32>
    %c13_463 = arith.constant 13 : index
    %c0_464 = arith.constant 0 : index
    %c0_465 = arith.constant 0 : index
    %2316 = vector.load %arg3[%c13_463, %c0_464, %c0_465] : memref<16x8x128xf32, #tpu.memory_space<vmem>>, vector<1x8x128xf32>
    %2317 = vector.shape_cast %2316 : vector<1x8x128xf32> to vector<8x128xf32>
    %2318 = vector.shape_cast %2315 : vector<8x128xf32> to vector<1x8x128xf32>
    tpu.vector_store %arg3[%c13_463, %c0_464, %c0_465], %2318 {strides = array<i32>} : memref<16x8x128xf32, #tpu.memory_space<vmem>>, vector<1x8x128xf32>,
    %2319 = arith.mulf %2254, %2262 : vector<8x128xf32>
    %c14_466 = arith.constant 14 : index
    %c0_467 = arith.constant 0 : index
    %c0_468 = arith.constant 0 : index
    %2320 = vector.load %arg3[%c14_466, %c0_467, %c0_468] : memref<16x8x128xf32, #tpu.memory_space<vmem>>, vector<1x8x128xf32>
    %2321 = vector.shape_cast %2320 : vector<1x8x128xf32> to vector<8x128xf32>
    %2322 = vector.shape_cast %2319 : vector<8x128xf32> to vector<1x8x128xf32>
    tpu.vector_store %arg3[%c14_466, %c0_467, %c0_468], %2322 {strides = array<i32>} : memref<16x8x128xf32, #tpu.memory_space<vmem>>, vector<1x8x128xf32>,
    %2323 = arith.mulf %2261, %2262 : vector<8x128xf32>
    %c15_469 = arith.constant 15 : index
    %c0_470 = arith.constant 0 : index
    %c0_471 = arith.constant 0 : index
    %2324 = vector.load %arg3[%c15_469, %c0_470, %c0_471] : memref<16x8x128xf32, #tpu.memory_space<vmem>>, vector<1x8x128xf32>
    %2325 = vector.shape_cast %2324 : vector<1x8x128xf32> to vector<8x128xf32>
    %2326 = vector.shape_cast %2323 : vector<8x128xf32> to vector<1x8x128xf32>
    tpu.vector_store %arg3[%c15_469, %c0_470, %c0_471], %2326 {strides = array<i32>} : memref<16x8x128xf32, #tpu.memory_space<vmem>>, vector<1x8x128xf32>,
    return
  }
  func.func @transform_0(%arg0: i32) -> (i32, i32) {
    %c0_i32 = arith.constant 0 : i32
    %c0_i32_0 = arith.constant 0 : i32
    %c0_i32_1 = arith.constant 0 : i32
    return %c0_i32, %c0_i32_0 : i32, i32
  }
  func.func @transform_1(%arg0: i32) -> (i32, i32, i32) {
    %c0_i32 = arith.constant 0 : i32
    %c0_i32_0 = arith.constant 0 : i32
    %c0_i32_1 = arith.constant 0 : i32
    return %c0_i32, %arg0, %c0_i32_0 : i32, i32, i32
  }
  func.func @transform_2(%arg0: i32) -> (i32, i32, i32) {
    %c0_i32 = arith.constant 0 : i32
    %c0_i32_0 = arith.constant 0 : i32
    %c0_i32_1 = arith.constant 0 : i32
    return %c0_i32, %arg0, %c0_i32_0 : i32, i32, i32
  }
}

</mosaic_0001>

<bundles_post_ra>
// kernel: tpu_custom_call.1
= control target key start
LH: loop header
LB: loop body
LE: loop exit
PB: predicated region body
PF: predicated region fallthrough
CT: control target
= control target key end

     0   :  { %s5409_s0 = inlined_call_operand.hbm [shape: f32[7,16], index: 0, kind: input, shape index: {}]   ;;  %s5410_s1 = inlined_call_operand.hbm [shape: f32[7,8,128], index: 1, kind: input, shape index: {}]   ;;  %s5411_s2 = inlined_call_operand.hbm [shape: f32[16,8,128], index: 2, kind: output, shape index: {}]  }
   0x1   :  { %5416 = sst [smem:[#allocation22_spill]] %s5411_s2 }
   0x2   :  { %7 = vsyncpa [#allocation5], 0 }
   0x3   :  { %8 = vsyncpa [#allocation3], 0 }
   0x4   :  { %9 = vsyncpa [#allocation4], 0  ;;  %s2405_s9 = smov [#allocation2]   ;;  %s2406_s12 = smov [#allocation6]  }
   0x5   :  { %17 = dma.hbm_to_smem %s5409_s0, 128, %s2405_s9, [#allocation5]  }
   0x6   :  { %s23_s13 = sshll.u32 %s2406_s12, 4  ;;  %s24_s13 = int_to_ptr.vmem [resolvable:$true] %s23_s13 }
   0x7   :  { %s2367_s14 = scalar_lea.vmem %s24_s13, 896  ;;  %p2372_p1 = scmp.lt.s32.totalorder %s24_s13, %s24_s13 }
   0x8   :  { %p2368_p0 = scmp.ne.s32.totalorder %s24_s13, %s2367_s14  ;;  %p2373_p2 = scmp.lt.s32.totalorder %s2367_s14, %s2367_s14 }
   0xa   :  { %p2374_p3 = por %p2373_p2, %p2372_p1 }
   0xc   :  { %p2375_p4 = pnand %p2374_p3, %p2368_p0 }
   0xe   :  { %2378 = shalt.err (!%p2375_p4)
}
   0xf   :  { %s5412_s15 = smov 128   ;;  %s5413_s16 = smov 8  }
  0x10   :  { %29 = dma.hbm_to_vmem [thread:$0]  %s5410_s1, 896, %s24_s13, [#allocation3], %s5412_s15, %s5412_s15, %s5413_s16  }
  0x11   :  { %2399 = dma.done.wait [#allocation5], 128  }
  0x12   :  { %2400 = vsyncadd [#allocation5], 4294967168 }
  0x13   :  { %2401 = dma.done.wait [#allocation3], 896  }
  0x14   :  { %2402 = vsyncadd [#allocation3], 4294966400 }
  0x15   :  { %36 = sfence }
  0x16   :  { %s2434_s0 = sld [smem:[#allocation2]]  ;;  %v2481_v0 = vld [vmem:[#allocation6] sm:$0xff]  ;;  %v2483_v1 = vld [vmem:[#allocation6 + $0x8] sm:$0xff]  ;;  %v2499_v6 = vld [vmem:[#allocation6 + $0x10] sm:$0xff] }
  0x17   :  { %s2436_s19 = sld [smem:[#allocation2 + $0x80]]  ;;  %v2512_v8 = vld [vmem:[#allocation6 + $0x18] sm:$0xff]  ;;  %v2534_v15 = vld [vmem:[#allocation6 + $0x20] sm:$0xff]  ;;  %v2559_v24 = vld [vmem:[#allocation6 + $0x28] sm:$0xff] }
  0x18   :  { %s2438_s20 = sld [smem:[#allocation2 + $0x100]]  ;;  %v2583_v34 = vld [vmem:[#allocation6 + $0x30] sm:$0xff] }
  0x19   :  { %s2440_s21 = sld [smem:[#allocation2 + $0x180]] }
  0x1a   :  { %s2442_s22 = sld [smem:[#allocation2 + $0x200]] }
  0x1b   :  { %s2444_s1 = sld [smem:[#allocation2 + $0x280]] }
  0x1c   :  { %s2446_s23 = sld [smem:[#allocation2 + $0x300]]  ;;  %s51_s24 = smul.f32 0.00390625, %s2434_s0 }
  0x1d   :  { %s2449_s25 = sld [smem:[#allocation2 + $0x1]]  ;;  %s55_s26 = smul.f32 0.00390625, %s2436_s19 }
  0x1e   :  { %s2452_s27 = sld [smem:[#allocation2 + $0x81]]  ;;  %s60_s28 = smul.f32 0.00390625, %s2438_s20  ;;  %v52_v2 = vstv %s51_s24 }
  0x1f   :  { %s2455_s29 = sld [smem:[#allocation2 + $0x101]]  ;;  %s65_s30 = smul.f32 0.00390625, %s2440_s21  ;;  %v56_v3 = vstv %s55_s26  ;;  %v53_v4 = vmul.f32 %v52_v2, %v2481_v0 }
  0x20   :  { %s2458_s3 = sld [smem:[#allocation2 + $0x181]]  ;;  %v57_v5 = vmul.f32 %v56_v3, %v2483_v1  ;;  %v61_v7 = vstv %s60_s28 }
  0x21   :  { %s2461_s5 = sld [smem:[#allocation2 + $0x201]]  ;;  %v62_v10 = vmul.f32 %v61_v7, %v2499_v6  ;;  %v66_v11 = vstv %s65_s30 }
  0x22   :  { %s2464_s7 = sld [smem:[#allocation2 + $0x281]]  ;;  %v58_v9 = vadd.f32 %v57_v5, %v53_v4  ;;  %v67_v14 = vmul.f32 %v66_v11, %v2512_v8 }
  0x23   :  { %s2467_s9 = sld [smem:[#allocation2 + $0x301]]  ;;  %s85_s10 = smul.f32 0.00390625, %s2449_s25 }
  0x24   :  { %s2470_s11 = sld [smem:[#allocation2 + $0x2]]  ;;  %s5417_s16 = smul.f32 0.00390625, %s2452_s27  ;;  %v63_v16 = vadd.f32 %v62_v10, %v58_v9 }
  0x25   :  { %s2473_s13 = sld [smem:[#allocation2 + $0x82]]  ;;  %v86_v12 = vstv %s85_s10  ;;  %s5419_s10 = smul.f32 0.00390625, %s2455_s29 }
  0x26   :  { %s2476_s17 = sld [smem:[#allocation2 + $0x102]]  ;;  %v90_v13 = vstv %s5417_s16  ;;  %s5418_s16 = smul.f32 0.00390625, %s2442_s22  ;;  %v87_v18 = vmul.f32 %v86_v12, %v2481_v0  ;;  %v68_v25 = vadd.f32 %v67_v14, %v63_v16 }
  0x27   :  { %s2479_s0 = sld [smem:[#allocation2 + $0x182]]  ;;  %v91_v19 = vmul.f32 %v90_v13, %v2483_v1  ;;  %v95_v20 = vstv %s5419_s10  ;;  %s5422_s10 = smul.f32 0.00390625, %s2444_s1 }
  0x28   :  { %s2486_s15 = sld [smem:[#allocation2 + $0x202]]  ;;  %v71_v17 = vstv %s5418_s16  ;;  %v96_v28 = vmul.f32 %v95_v20, %v2499_v6 }
  0x29   :  { %s2489_s8 = sld [smem:[#allocation2 + $0x282]]  ;;  %v72_v23 = vmul.f32 %v71_v17, %v2534_v15  ;;  %v76_v26 = vstv %s5422_s10  ;;  %v92_v27 = vadd.f32 %v91_v19, %v87_v18 }
  0x2a   :  { %s2492_s18 = sld [smem:[#allocation2 + $0x302]]  ;;  %s5420_s21 = smul.f32 0.00390625, %s2470_s11  ;;  %v77_v33 = vmul.f32 %v76_v26, %v2559_v24 }
  0x2b   :  { %s2497_s24 = sld [smem:[#allocation2 + $0x3]]  ;;  %s5421_s20 = smul.f32 0.00390625, %s2473_s13  ;;  %v73_v35 = vadd.f32 %v72_v23, %v68_v25  ;;  %v97_v37 = vadd.f32 %v96_v28, %v92_v27 }
  0x2c   :  { %s2504_s6 = sld [smem:[#allocation2 + $0x83]]  ;;  %v120_v21 = vstv %s5420_s21  ;;  %s5424_s1 = smul.f32 0.00390625, %s2476_s17 }
  0x2d   :  { %s2507_s19 = sld [smem:[#allocation2 + $0x103]]  ;;  %v124_v22 = vstv %s5421_s20  ;;  %s5423_s20 = smul.f32 0.00390625, %s2458_s3  ;;  %v121_v30 = vmul.f32 %v120_v21, %v2481_v0  ;;  %v78_v46 = vadd.f32 %v77_v33, %v73_v35 }
  0x2e   :  { %s2510_s12 = sld [smem:[#allocation2 + $0x183]]  ;;  %v125_v31 = vmul.f32 %v124_v22, %v2483_v1  ;;  %v129_v32 = vstv %s5424_s1  ;;  %s5425_s11 = smul.f32 0.00390625, %s2446_s23 }
  0x2f   :  { %s2518_s28 = sld [smem:[#allocation2 + $0x203]]  ;;  %v100_v29 = vstv %s5423_s20  ;;  %s5426_s1 = smul.f32 0.00390625, %s2461_s5  ;;  %v130_v41 = vmul.f32 %v129_v32, %v2499_v6 }
  0x30   :  { %s2525_s26 = sld [smem:[#allocation2 + $0x283]]  ;;  %v81_v36 = vstv %s5425_s11  ;;  %v101_v38 = vmul.f32 %v100_v29, %v2512_v8  ;;  %v126_v40 = vadd.f32 %v125_v31, %v121_v30  ;;  %s5427_s14 = smul.f32 0.00390625, %s2479_s0 }
  0x31   :  { %s2528_s2 = sld [smem:[#allocation2 + $0x303]]  ;;  %v105_v39 = vstv %s5426_s1  ;;  %v82_v43 = vmul.f32 %v81_v36, %v2583_v34 }
  0x32   :  { %s2532_s30 = sld [smem:[#allocation2 + $0x4]]  ;;  %v134_v42 = vstv %s5427_s14  ;;  %v102_v47 = vadd.f32 %v101_v38, %v97_v37  ;;  %v106_v48 = vmul.f32 %v105_v39, %v2534_v15  ;;  %s5428_s14 = smul.f32 0.00390625, %s2464_s7  ;;  %v131_v50 = vadd.f32 %v130_v41, %v126_v40 }
  0x33   :  { %s2541_s27 = sld [smem:[#allocation2 + $0x84]]  ;;  %v135_v51 = vmul.f32 %v134_v42, %v2512_v8  ;;  %s5431_s17 = smul.f32 0.00390625, %s2504_s6  ;;  %v2635_v60 = vadd.f32 %v82_v43, %v78_v46 }
  0x34   :  { %s2546_s4 = sld [smem:[#allocation2 + $0x104]]  ;;  %v110_v49 = vstv %s5428_s14  ;;  %v107_v61 = vadd.f32 %v106_v48, %v102_v47  ;;  %s5435_s14 = smul.f32 0.00390625, %s2507_s19 }
  0x35   :  { %s2553_s16 = sld [smem:[#allocation2 + $0x184]]  ;;  %v158_v54 = vstv %s5431_s17  ;;  %v111_v57 = vmul.f32 %v110_v49, %v2559_v24  ;;  %v136_v7 = vadd.f32 %v135_v51, %v131_v50  ;;  %v2666_v19 = vadd.f32 1.0, %v2635_v60 }
  0x36   :  { %s2557_s29 = sld [smem:[#allocation2 + $0x204]]  ;;  %v159_v5 = vmul.f32 %v158_v54, %v2483_v1  ;;  %v163_v9 = vstv %s5435_s14  ;;  %v2701_v37 = vmul.f32 %v2635_v60, %v2635_v60 }
  0x37   :  { %s2565_s13 = sld [smem:[#allocation2 + $0x284]]  ;;  %v112_v16 = vadd.f32 %v111_v57, %v107_v61  ;;  %v164_v23 = vmul.f32 %v163_v9, %v2499_v6 }
  0x38   :  { %s2572_s25 = sld [smem:[#allocation2 + $0x304]]  ;;  %s187_s10 = smul.f32 0.00390625, %s2532_s30 }
  0x39   :  { %s2577_s22 = sld [smem:[#allocation2 + $0x5]]  ;;  %s191_s3 = smul.f32 0.00390625, %s2541_s27 }
  0x3a   :  { %s2581_s20 = sld [smem:[#allocation2 + $0x85]]  ;;  %v188_v44 = vstv %s187_s10  ;;  %s5429_s10 = smul.f32 0.00390625, %s2486_s15 }
  0x3b   :  { %s2589_s30 = sld [smem:[#allocation2 + $0x105]]  ;;  %v192_v45 = vstv %s191_s3  ;;  %s5430_s27 = smul.f32 0.00390625, %s2497_s24  ;;  %v189_v55 = vmul.f32 %v188_v44, %v2481_v0 }
  0x3c   :  { %s2595_s21 = sld [smem:[#allocation2 + $0x185]]  ;;  %v139_v52 = vstv %s5429_s10  ;;  %v193_v56 = vmul.f32 %v192_v45, %v2483_v1  ;;  %s5432_s15 = smul.f32 0.00390625, %s2467_s9 }
  0x3d   :  { %s2600_s11 = sld [smem:[#allocation2 + $0x205]]  ;;  %v154_v53 = vstv %s5430_s27  ;;  %v140_v2 = vmul.f32 %v139_v52, %v2534_v15  ;;  %s5434_s9 = smul.f32 0.00390625, %s2489_s8 }
  0x3e   :  { %s2604_s1 = sld [smem:[#allocation2 + $0x285]]  ;;  %s216_s7 = smul.f32 0.00390625, %s2572_s25  ;;  %v115_v58 = vstv %s5432_s15  ;;  %v155_v4 = vmul.f32 %v154_v53, %v2481_v0  ;;  %v194_v10 = vadd.f32 %v193_v56, %v189_v55 }
  0x3f   :  { %s221_s0 = smul.f32 0.00390625, %s2577_s22  ;;  %s2610_s23 = sld [smem:[#allocation2 + $0x305]]  ;;  %v144_v3 = vstv %s5434_s9  ;;  %v116_v17 = vmul.f32 %v115_v58, %v2583_v34  ;;  %v141_v25 = vadd.f32 %v140_v2, %v136_v7 }
  0x40   :  { %s225_s3 = smul.f32 0.00390625, %s2581_s20  ;;  %s2616_s5 = sld [smem:[#allocation2 + $0x6]]  ;;  %v145_v20 = vmul.f32 %v144_v3, %v2559_v24  ;;  %v160_v22 = vadd.f32 %v159_v5, %v155_v4 }
  0x41   :  { %s2625_s22 = sld [smem:[#allocation2 + $0x86]]  ;;  %s5433_s20 = smul.f32 0.00390625, %s2546_s4  ;;  %v222_v62 = vstv %s221_s0  ;;  %v2689_v33 = vadd.f32 %v116_v17, %v112_v16 }
  0x42   :  { %s230_s24 = smul.f32 0.00390625, %s2589_s30  ;;  %s2633_s27 = sld [smem:[#allocation2 + $0x106]]  ;;  %v226_v63 = vstv %s225_s3  ;;  %v223_v13 = vmul.f32 %v222_v62, %v2481_v0  ;;  %v165_v38 = vadd.f32 %v164_v23, %v160_v22  ;;  %v2707_v42 = vadd.f32 %v145_v20, %v141_v25 }
  0x43   :  { %v197_v59 = vstv %s5433_s20  ;;  %s235_s6 = smul.f32 0.00390625, %s2595_s21  ;;  %s2638_s17 = sld [smem:[#allocation2 + $0x186]]  ;;  %v227_v14 = vmul.f32 %v226_v63, %v2483_v1  ;;  %v217_v63 = vstv %s216_s7 }
  0x44   :  { %s240_s4 = smul.f32 0.00390625, %s2600_s11  ;;  %s2646_s30 = sld [smem:[#allocation2 + $0x206]]  ;;  %v198_v11 = vmul.f32 %v197_v59, %v2499_v6  ;;  %v231_v18 = vstv %s230_s24  ;;  %v218_v17 = vmul.f32 %v217_v63, %v2583_v34 }
  0x45   :  { %s245_s0 = smul.f32 0.00390625, %s2604_s1  ;;  %s2652_s10 = sld [smem:[#allocation2 + $0x286]]  ;;  %v228_v31 = vadd.f32 %v227_v14, %v223_v13  ;;  %v232_v32 = vmul.f32 %v231_v18, %v2499_v6  ;;  %v236_v36 = vstv %s235_s6 }
  0x46   :  { %s5436_s8 = smul.f32 0.00390625, %s2553_s16  ;;  %s2659_s15 = sld [smem:[#allocation2 + $0x306]]  ;;  %v199_v27 = vadd.f32 %v198_v11, %v194_v10  ;;  %v237_v49 = vmul.f32 %v236_v36, %v2512_v8  ;;  %v241_v50 = vstv %s240_s4 }
  0x47   :  { %s255_s19 = smul.f32 0.00390625, %s2616_s5  ;;  %s2663_s20 = sld [smem:[#allocation2 + $0x7]]  ;;  %v233_v48 = vadd.f32 %v232_v32, %v228_v31  ;;  %v242_v3 = vmul.f32 %v241_v50, %v2534_v15  ;;  %v246_v4 = vstv %s245_s0 }
  0x48   :  { %v202_v12 = vstv %s5436_s8  ;;  %s5437_s16 = smul.f32 0.00390625, %s2492_s18  ;;  %s2673_s14 = sld [smem:[#allocation2 + $0x87]]  ;;  %v247_v18 = vmul.f32 %v246_v4, %v2559_v24 }
  0x49   :  { %s259_s9 = smul.f32 0.00390625, %s2625_s22  ;;  %v203_v28 = vmul.f32 %v202_v12, %v2512_v8  ;;  %s2679_s8 = sld [smem:[#allocation2 + $0x107]]  ;;  %v256_v40 = vstv %s255_s19  ;;  %v238_v2 = vadd.f32 %v237_v49, %v233_v48 }
  0x4a   :  { %v149_v21 = vstv %s5437_s16  ;;  %s5438_s5 = smul.f32 0.00390625, %s2510_s12  ;;  %s2687_s3 = sld [smem:[#allocation2 + $0x187]]  ;;  %v257_v51 = vmul.f32 %v256_v40, %v2481_v0 }
  0x4b   :  { %s264_s24 = smul.f32 0.00390625, %s2633_s27  ;;  %v2692_v35 = vmul.f32 %v149_v21, %v2583_v34  ;;  %v260_v41 = vstv %s259_s9  ;;  %v204_v44 = vadd.f32 %v203_v28, %v199_v27  ;;  %s2712_s6 = sld [smem:[#allocation2 + $0x307]]  ;;  %v243_v21 = vadd.f32 %v242_v3, %v238_v2 }
  0x4c   :  { %v168_v26 = vstv %s5438_s5  ;;  %s5439_s18 = smul.f32 0.00390625, %s2518_s28  ;;  %s2697_s28 = sld [smem:[#allocation2 + $0x207]]  ;;  %v261_v52 = vmul.f32 %v260_v41, %v2483_v1  ;;  %v2795_v41 = vmul.f32 %v2689_v33, %v2635_v60 }
  0x4d   :  { %s5440_s16 = smul.f32 0.00390625, %s2557_s29  ;;  %v169_v39 = vmul.f32 %v168_v26, %v2512_v8  ;;  %s2705_s5 = sld [smem:[#allocation2 + $0x287]]  ;;  %v265_v55 = vstv %s264_s24  ;;  %v248_v49 = vadd.f32 %v247_v18, %v243_v21 }
  0x4e   :  { %v173_v29 = vstv %s5439_s18  ;;  %s269_s22 = smul.f32 0.00390625, %s2638_s17  ;;  %s2733_s11 = sld [smem:[#allocation2 + $0x108]]  ;;  %v262_v7 = vadd.f32 %v261_v52, %v257_v51  ;;  %v266_v9 = vmul.f32 %v265_v55, %v2499_v6 }
  0x4f   :  { %v207_v30 = vstv %s5440_s16  ;;  %s274_s12 = smul.f32 0.00390625, %s2646_s30  ;;  %v174_v43 = vmul.f32 %v173_v29, %v2534_v15  ;;  %s2720_s16 = sld [smem:[#allocation2 + $0x8]]  ;;  %v170_v54 = vadd.f32 %v169_v39, %v165_v38  ;;  %v2785_v38 = vadd.f32 %v2692_v35, %v2707_v42 }
  0x50   :  { %s279_s29 = smul.f32 0.00390625, %s2652_s10  ;;  %v208_v45 = vmul.f32 %v207_v30, %v2534_v15  ;;  %s2746_s24 = sld [smem:[#allocation2 + $0x208]]  ;;  %v270_v10 = vstv %s269_s22  ;;  %v267_v26 = vadd.f32 %v266_v9, %v262_v7 }
  0x51   :  { %s289_s21 = smul.f32 0.00390625, %s2663_s20  ;;  %s2753_s7 = sld [smem:[#allocation2 + $0x288]]  ;;  %v175_v11 = vadd.f32 %v174_v43, %v170_v54  ;;  %v271_v23 = vmul.f32 %v270_v10, %v2512_v8  ;;  %v275_v27 = vstv %s274_s12  ;;  %v2857_v18 = vmul.f32 %v2785_v38, %v2635_v60 }
  0x52   :  { %s5441_s18 = smul.f32 0.00390625, %s2525_s26  ;;  %s2727_s26 = sld [smem:[#allocation2 + $0x88]]  ;;  %v209_v58 = vadd.f32 %v208_v45, %v204_v44  ;;  %v276_v48 = vmul.f32 %v275_v27, %v2534_v15  ;;  %v280_v50 = vstv %s279_s29 }
  0x53   :  { %s5442_s19 = smul.f32 0.00390625, %s2565_s13  ;;  %v290_v53 = vstv %s289_s21  ;;  %s2759_s0 = sld [smem:[#allocation2 + $0x308]]  ;;  %v281_v63 = vmul.f32 %v280_v50, %v2559_v24 }
  0x54   :  { %v178_v46 = vstv %s5441_s18  ;;  %s293_s9 = smul.f32 0.00390625, %s2673_s14  ;;  %v291_v56 = vmul.f32 %v290_v53, %v2481_v0  ;;  %s2738_s14 = sld [smem:[#allocation2 + $0x188]] }
  0x55   :  { %v212_v47 = vstv %s5442_s19  ;;  %s298_s20 = smul.f32 0.00390625, %s2679_s8  ;;  %v179_v5 = vmul.f32 %v178_v46, %v2559_v24  ;;  %s2764_s8 = sld [smem:[#allocation2 + $0x9]] }
  0x56   :  { %s284_s13 = smul.f32 0.00390625, %s2659_s15  ;;  %v294_v57 = vstv %s293_s9  ;;  %v213_v59 = vmul.f32 %v212_v47, %v2559_v24  ;;  %s2770_s21 = sld [smem:[#allocation2 + $0x89]]  ;;  %v272_v47 = vadd.f32 %v271_v23, %v267_v26 }
  0x57   :  { %v295_v61 = vmul.f32 %v294_v57, %v2483_v1  ;;  %v299_v62 = vstv %s298_s20  ;;  %s303_s4 = smul.f32 0.00390625, %s2687_s3  ;;  %s2776_s19 = sld [smem:[#allocation2 + $0x109]]  ;;  %v180_v43 = vadd.f32 %v179_v5, %v175_v11 }
  0x58   :  { %s308_s27 = smul.f32 0.00390625, %s2697_s28  ;;  %v300_v14 = vmul.f32 %v299_v62, %v2499_v6  ;;  %v214_v16 = vadd.f32 %v213_v59, %v209_v58  ;;  %s2781_s9 = sld [smem:[#allocation2 + $0x189]]  ;;  %v277_v62 = vadd.f32 %v276_v48, %v272_v47  ;;  %v285_v5 = vstv %s284_s13 }
  0x59   :  { %s313_s25 = smul.f32 0.00390625, %s2705_s5  ;;  %v296_v13 = vadd.f32 %v295_v61, %v291_v56  ;;  %v304_v20 = vstv %s303_s4  ;;  %s2791_s12 = sld [smem:[#allocation2 + $0x209]]  ;;  %v286_v21 = vmul.f32 %v285_v5, %v2583_v34 }
  0x5a   :  { %s5443_s3 = smul.f32 0.00390625, %s2528_s2  ;;  %v305_v31 = vmul.f32 %v304_v20, %v2512_v8  ;;  %v309_v39 = vstv %s308_s27  ;;  %v2801_v42 = vadd.f32 %v218_v17, %v214_v16  ;;  %s2812_s4 = sld [smem:[#allocation2 + $0xa]]  ;;  %v282_v20 = vadd.f32 %v281_v63, %v277_v62 }
  0x5b   :  { %s323_s1 = smul.f32 0.00390625, %s2720_s16  ;;  %v301_v30 = vadd.f32 %v300_v14, %v296_v13  ;;  %s2799_s16 = sld [smem:[#allocation2 + $0x289]]  ;;  %v310_v52 = vmul.f32 %v309_v39, %v2534_v15  ;;  %v314_v53 = vstv %s313_s25 }
  0x5c   :  { %v183_v12 = vstv %s5443_s3  ;;  %s327_s17 = smul.f32 0.00390625, %s2727_s26  ;;  %s2806_s26 = sld [smem:[#allocation2 + $0x309]]  ;;  %v315_v9 = vmul.f32 %v314_v53, %v2559_v24  ;;  %v2847_v13 = vmul.f32 %v2801_v42, %v2689_v33 }
  0x5d   :  { %s5444_s2 = smul.f32 0.00390625, %s2610_s23  ;;  %v324_v25 = vstv %s323_s1  ;;  %v184_v44 = vmul.f32 %v183_v12, %v2583_v34  ;;  %v306_v51 = vadd.f32 %v305_v31, %v301_v30  ;;  %s2818_s27 = sld [smem:[#allocation2 + $0x8a]] }
  0x5e   :  { %s332_s22 = smul.f32 0.00390625, %s2733_s11  ;;  %v325_v28 = vmul.f32 %v324_v25, %v2481_v0  ;;  %v328_v29 = vstv %s327_s17  ;;  %s2824_s29 = sld [smem:[#allocation2 + $0x10a]]  ;;  %v2881_v31 = vadd.f32 %v2847_v13, %v2701_v37 }
  0x5f   :  { %v251_v22 = vstv %s5444_s2  ;;  %s337_s18 = smul.f32 0.00390625, %s2738_s14  ;;  %v329_v32 = vmul.f32 %v328_v29, %v2483_v1  ;;  %v2820_v57 = vadd.f32 %v184_v44, %v180_v43  ;;  %v311_v7 = vadd.f32 %v310_v52, %v306_v51  ;;  %s2837_s3 = sld [smem:[#allocation2 + $0x20a]] }
  0x60   :  { %s318_s23 = smul.f32 0.00390625, %s2712_s6  ;;  %v333_v36 = vstv %s332_s22  ;;  %v252_v46 = vmul.f32 %v251_v22, %v2583_v34  ;;  %s2843_s17 = sld [smem:[#allocation2 + $0x28a]]  ;;  %v2893_v44 = vadd.f32 %v286_v21, %v282_v20 }
  0x61   :  { %v334_v40 = vmul.f32 %v333_v36, %v2499_v6  ;;  %s342_s30 = smul.f32 0.00390625, %s2746_s24  ;;  %v330_v45 = vadd.f32 %v329_v32, %v325_v28  ;;  %v338_v35 = vstv %s337_s18  ;;  %s2829_s24 = sld [smem:[#allocation2 + $0x18a]]  ;;  %v2865_v23 = vmul.f32 %v2820_v57, %v2635_v60 }
  0x62   :  { %s347_s28 = smul.f32 0.00390625, %s2753_s7  ;;  %v339_v55 = vmul.f32 %v338_v35, %v2512_v8  ;;  %v2831_v4 = vadd.f32 %v252_v46, %v248_v49  ;;  %v319_v10 = vstv %s318_s23  ;;  %s2853_s6 = sld [smem:[#allocation2 + $0x30a]]  ;;  %v316_v25 = vadd.f32 %v315_v9, %v311_v7 }
  0x63   :  { %s357_s20 = smul.f32 0.00390625, %s2764_s8  ;;  %v335_v54 = vadd.f32 %v334_v40, %v330_v45  ;;  %v343_v58 = vstv %s342_s30  ;;  %s2861_s8 = sld [smem:[#allocation2 + $0xb]]  ;;  %v320_v26 = vmul.f32 %v319_v10, %v2583_v34  ;;  %v630_v28 = vmul.f32 %v2801_v42, %v2635_v60 }
  0x64   :  { %s361_s11 = smul.f32 0.00390625, %s2770_s21  ;;  %v344_v12 = vmul.f32 %v343_v58, %v2534_v15  ;;  %v348_v14 = vstv %s347_s28  ;;  %s2869_s2 = sld [smem:[#allocation2 + $0x8b]]  ;;  %v607_v27 = vmul.f32 %v2831_v4, %v2689_v33  ;;  %v645_v32 = vmul.f32 %v2801_v42, %v2785_v38 }
  0x65   :  { %v358_v56 = vstv %s357_s20  ;;  %s366_s14 = smul.f32 0.00390625, %s2776_s19  ;;  %v340_v11 = vadd.f32 %v339_v55, %v335_v54  ;;  %v349_v30 = vmul.f32 %v348_v14, %v2559_v24  ;;  %s2877_s21 = sld [smem:[#allocation2 + $0x10b]]  ;;  %v631_v37 = vmul.f32 %v2831_v4, %v2801_v42 }
  0x66   :  { %s352_s10 = smul.f32 0.00390625, %s2759_s0  ;;  %v359_v59 = vmul.f32 %v358_v56, %v2481_v0  ;;  %v362_v61 = vstv %s361_s11  ;;  %s2891_s19 = sld [smem:[#allocation2 + $0x18b]]  ;;  %v2900_v46 = vadd.f32 %v320_v26, %v316_v25  ;;  %v2906_v47 = vadd.f32 1.0, %v2831_v4 }
  0x67   :  { %v363_v2 = vmul.f32 %v362_v61, %v2483_v1  ;;  %v367_v3 = vstv %s366_s14  ;;  %s371_s5 = smul.f32 0.00390625, %s2781_s9  ;;  %v345_v29 = vadd.f32 %v344_v12, %v340_v11  ;;  %s2896_s9 = sld [smem:[#allocation2 + $0x20b]]  ;;  %v2909_v48 = vadd.f32 %v607_v27, %v2795_v41 }
  0x68   :  { %s376_s25 = smul.f32 0.00390625, %s2791_s12  ;;  %v368_v17 = vmul.f32 %v367_v3, %v2499_v6  ;;  %v353_v36 = vstv %s352_s10  ;;  %s2903_s30 = sld [smem:[#allocation2 + $0x28b]]  ;;  %v653_v49 = vmul.f32 %v2801_v42, %v2820_v57  ;;  %v638_v53 = vmul.f32 %v2831_v4, %v2831_v4 }
  0x69   :  { %s381_s1 = smul.f32 0.00390625, %s2799_s16  ;;  %v364_v16 = vadd.f32 %v363_v2, %v359_v59  ;;  %v372_v22 = vstv %s371_s5  ;;  %v350_v50 = vadd.f32 %v349_v30, %v345_v29  ;;  %v354_v51 = vmul.f32 %v353_v36, %v2583_v34  ;;  %s2916_s28 = sld [smem:[#allocation2 + $0x30b]] }
  0x6a   :  { %s391_s15 = smul.f32 0.00390625, %s2812_s4  ;;  %v373_v40 = vmul.f32 %v372_v22, %v2512_v8  ;;  %v377_v43 = vstv %s376_s25  ;;  %s2925_s11 = sld [smem:[#allocation2 + $0xc]]  ;;  %v615_v59 = vmul.f32 %v2893_v44, %v2689_v33  ;;  %v2934_v61 = vadd.f32 %v631_v37, %v630_v28 }
  0x6b   :  { %s395_s13 = smul.f32 0.00390625, %s2818_s27  ;;  %v369_v39 = vadd.f32 %v368_v17, %v364_v16  ;;  %v378_v52 = vmul.f32 %v377_v43, %v2534_v15  ;;  %v382_v55 = vstv %s381_s1  ;;  %s2930_s14 = sld [smem:[#allocation2 + $0x8c]]  ;;  %v646_v62 = vmul.f32 %v2893_v44, %v2831_v4 }
  0x6c   :  { %s386_s7 = smul.f32 0.00390625, %s2806_s26  ;;  %v392_v45 = vstv %s391_s15  ;;  %s2939_s27 = sld [smem:[#allocation2 + $0x10c]]  ;;  %v623_v3 = vmul.f32 %v2900_v46, %v2689_v33  ;;  %v654_v5 = vmul.f32 %v2900_v46, %v2831_v4  ;;  %v2945_v7 = vadd.f32 %v354_v51, %v350_v50 }
  0x6d   :  { %s400_s22 = smul.f32 0.00390625, %s2824_s29  ;;  %v396_v35 = vstv %s395_s13  ;;  %v374_v54 = vadd.f32 %v373_v40, %v369_v39  ;;  %v393_v41 = vmul.f32 %v392_v45, %v2481_v0  ;;  %v383_v9 = vmul.f32 %v382_v55, %v2559_v24  ;;  %s2951_s29 = sld [smem:[#allocation2 + $0x18c]] }
  0x6e   :  { %s405_s18 = smul.f32 0.00390625, %s2829_s24  ;;  %v397_v56 = vmul.f32 %v396_v35, %v2483_v1  ;;  %v387_v10 = vstv %s386_s7  ;;  %v2954_v11 = vadd.f32 %v638_v53, %v2847_v13  ;;  %s2960_s25 = sld [smem:[#allocation2 + $0x20c]]  ;;  %v2968_v13 = vadd.f32 %v615_v59, %v2857_v18 }
  0x6f   :  { %s410_s23 = smul.f32 0.00390625, %s2837_s3  ;;  %v401_v58 = vstv %s400_s22  ;;  %v379_v12 = vadd.f32 %v378_v52, %v374_v54  ;;  %s2965_s1 = sld [smem:[#allocation2 + $0x28c]]  ;;  %v2970_v22 = vadd.f32 %v646_v62, %v645_v32  ;;  %v388_v25 = vmul.f32 %v387_v10, %v2583_v34 }
  0x70   :  { %s415_s0 = smul.f32 0.00390625, %s2843_s17  ;;  %v398_v14 = vadd.f32 %v397_v56, %v393_v41  ;;  %v402_v16 = vmul.f32 %v401_v58, %v2499_v6  ;;  %v406_v17 = vstv %s405_s18  ;;  %s2974_s15 = sld [smem:[#allocation2 + $0x30c]]  ;;  %v2977_v27 = vadd.f32 %v623_v3, %v2865_v23 }
  0x71   :  { %s425_s12 = smul.f32 0.00390625, %s2861_s8  ;;  %v2979_v28 = vadd.f32 %v654_v5, %v653_v49  ;;  %v407_v29 = vmul.f32 %v406_v17, %v2512_v8  ;;  %s2983_s8 = sld [smem:[#allocation2 + $0xd]]  ;;  %v2987_v18 = vmul.f32 %v2945_v7, %v2785_v38  ;;  %v633_v30 = vmul.f32 %v2945_v7, %v2893_v44 }
  0x72   :  { %s429_s20 = smul.f32 0.00390625, %s2869_s2  ;;  %v2993_v23 = vmul.f32 %v2945_v7, %v2635_v60  ;;  %v384_v32 = vadd.f32 %v383_v9, %v379_v12  ;;  %v403_v36 = vadd.f32 %v402_v16, %v398_v14  ;;  %v411_v39 = vstv %s410_s23  ;;  %s2998_s2 = sld [smem:[#allocation2 + $0x8d]] }
  0x73   :  { %s420_s4 = smul.f32 0.00390625, %s2853_s6  ;;  %v426_v63 = vstv %s425_s12  ;;  %v416_v49 = vstv %s415_s0  ;;  %s3011_s18 = sld [smem:[#allocation2 + $0x18d]]  ;;  %v412_v53 = vmul.f32 %v411_v39, %v2534_v15  ;;  %v3020_v41 = vadd.f32 %v2987_v18, %v2881_v31 }
  0x74   :  { %v430_v2 = vstv %s429_s20  ;;  %s434_s16 = smul.f32 0.00390625, %s2877_s21  ;;  %v427_v20 = vmul.f32 %v426_v63, %v2481_v0  ;;  %s3003_s21 = sld [smem:[#allocation2 + $0x10d]]  ;;  %v408_v56 = vadd.f32 %v407_v29, %v403_v36  ;;  %v3028_v62 = vadd.f32 %v633_v30, %v2934_v61 }
  0x75   :  { %s439_s10 = smul.f32 0.00390625, %s2891_s19  ;;  %v431_v21 = vmul.f32 %v430_v2, %v2483_v1  ;;  %s3016_s12 = sld [smem:[#allocation2 + $0x20d]]  ;;  %v421_v58 = vstv %s420_s4  ;;  %v417_v63 = vmul.f32 %v416_v49, %v2559_v24  ;;  %v3037_v5 = vadd.f32 %v388_v25, %v384_v32 }
  0x76   :  { %s444_s5 = smul.f32 0.00390625, %s2896_s9  ;;  %v435_v26 = vstv %s434_s16  ;;  %s3025_s19 = sld [smem:[#allocation2 + $0x28d]]  ;;  %v3045_v61 = vmul.f32 %v2945_v7, %v2689_v33  ;;  %v3048_v12 = vmul.f32 %v421_v58, %v2583_v34  ;;  %v3055_v17 = vmul.f32 %v2945_v7, %v2820_v57 }
  0x77   :  { %s449_s26 = smul.f32 0.00390625, %s2903_s30  ;;  %v432_v43 = vadd.f32 %v431_v21, %v427_v20  ;;  %v436_v45 = vmul.f32 %v435_v26, %v2499_v6  ;;  %v440_v50 = vstv %s439_s10  ;;  %s3035_s20 = sld [smem:[#allocation2 + $0x30d]]  ;;  %5445 = vst [vmem:[#allocation11_spill] sm:$0xff] %v3037_v5  ;;  %v413_v20 = vadd.f32 %v412_v53, %v408_v56 }
  0x78   :  { %s459_s24 = smul.f32 0.00390625, %s2925_s11  ;;  %v441_v3 = vmul.f32 %v440_v50, %v2512_v8  ;;  %v445_v31 = vstv %s444_s5  ;;  %s3041_s11 = sld [smem:[#allocation2 + $0xe]]  ;;  %v609_v50 = vmul.f32 %v3037_v5, %v2785_v38  ;;  %v640_v53 = vmul.f32 %v3037_v5, %v2893_v44 }
  0x79   :  { %s463_s13 = smul.f32 0.00390625, %s2930_s14  ;;  %v437_v2 = vadd.f32 %v436_v45, %v432_v43  ;;  %s3051_s4 = sld [smem:[#allocation2 + $0x8e]]  ;;  %v446_v21 = vmul.f32 %v445_v31, %v2534_v15  ;;  %v450_v30 = vstv %s449_s26 }
  0x7a   :  { %v460_v40 = vstv %s459_s24  ;;  %s468_s7 = smul.f32 0.00390625, %s2939_s27  ;;  %s3060_s16 = sld [smem:[#allocation2 + $0x10e]]  ;;  %v451_v56 = vmul.f32 %v450_v30, %v2559_v24 }
  0x7b   :  { %v461_v35 = vmul.f32 %v460_v40, %v2481_v0  ;;  %v464_v37 = vstv %s463_s13  ;;  %s473_s22 = smul.f32 0.00390625, %s2951_s29  ;;  %v442_v29 = vadd.f32 %v441_v3, %v437_v2  ;;  %s3066_s10 = sld [smem:[#allocation2 + $0x18e]] }
  0x7c   :  { %s454_s3 = smul.f32 0.00390625, %s2916_s28  ;;  %v465_v51 = vmul.f32 %v464_v37, %v2483_v1  ;;  %v469_v52 = vstv %s468_s7  ;;  %s3071_s5 = sld [smem:[#allocation2 + $0x20e]] }
  0x7d   :  { %v470_v54 = vmul.f32 %v469_v52, %v2499_v6  ;;  %v474_v55 = vstv %s473_s22  ;;  %s478_s23 = smul.f32 0.00390625, %s2960_s25  ;;  %s3077_s25 = sld [smem:[#allocation2 + $0x28e]] }
  0x7e   :  { %v466_v59 = vadd.f32 %v465_v51, %v461_v35  ;;  %s483_s17 = smul.f32 0.00390625, %s2965_s1  ;;  %v475_v10 = vmul.f32 %v474_v55, %v2512_v8  ;;  %v418_v51 = vadd.f32 %v417_v63, %v413_v20  ;;  %s3082_s24 = sld [smem:[#allocation2 + $0x30e]]  ;;  %v447_v55 = vadd.f32 %v446_v21, %v442_v29 }
  0x7f   :  { %s493_s0 = smul.f32 0.00390625, %s2983_s8  ;;  %v479_v14 = vstv %s478_s23  ;;  %v455_v58 = vstv %s454_s3  ;;  %s3096_s8 = sld [smem:[#allocation2 + $0x8f]] }
  0x80   :  { %v471_v9 = vadd.f32 %v470_v54, %v466_v59  ;;  %s497_s6 = smul.f32 0.00390625, %s2998_s2  ;;  %v480_v40 = vmul.f32 %v479_v14, %v2534_v15  ;;  %v484_v35 = vstv %s483_s17  ;;  %v662_v54 = vmul.f32 %v3037_v5, %v2801_v42  ;;  %s3101_s7 = sld [smem:[#allocation2 + $0x10f]] }
  0x81   :  { %v494_v16 = vstv %s493_s0  ;;  %s502_s9 = smul.f32 0.00390625, %s3003_s21  ;;  %v485_v2 = vmul.f32 %v484_v35, %v2559_v24  ;;  %s3105_s22 = sld [smem:[#allocation2 + $0x18f]]  ;;  %v456_v29 = vmul.f32 %v455_v58, %v2583_v34 }
  0x82   :  { %v495_v25 = vmul.f32 %v494_v16, %v2481_v0  ;;  %v498_v26 = vstv %s497_s6  ;;  %s507_s14 = smul.f32 0.00390625, %s3011_s18  ;;  %v476_v39 = vadd.f32 %v475_v10, %v471_v9  ;;  %s3113_s3 = sld [smem:[#allocation2 + $0x20f]] }
  0x83   :  { %v499_v32 = vmul.f32 %v498_v26, %v2483_v1  ;;  %v503_v36 = vstv %s502_s9  ;;  %s512_s27 = smul.f32 0.00390625, %s3016_s12  ;;  %v3108_v26 = vadd.f32 %v609_v50, %v2909_v48  ;;  %s3120_s23 = sld [smem:[#allocation2 + $0x28f]] }
  0x84   :  { %s488_s29 = smul.f32 0.00390625, %s2974_s15  ;;  %v504_v43 = vmul.f32 %v503_v36, %v2499_v6  ;;  %v508_v45 = vstv %s507_s14  ;;  %s3092_s15 = sld [smem:[#allocation2 + $0xf]]  ;;  %v481_v63 = vadd.f32 %v480_v40, %v476_v39  ;;  %v3123_v40 = vadd.f32 %v3048_v12, %v418_v51 }
  0x85   :  { %v500_v37 = vadd.f32 %v499_v32, %v495_v25  ;;  %v509_v49 = vmul.f32 %v508_v45, %v2512_v8  ;;  %s517_s30 = smul.f32 0.00390625, %s3025_s19  ;;  %v513_v52 = vstv %s512_s27  ;;  %v3116_v32 = vadd.f32 %v640_v53, %v2954_v11  ;;  %s3133_s0 = sld [smem:[#allocation2 + $0x30f]] }
  0x86   :  { %s527_s26 = smul.f32 0.00390625, %s3041_s11  ;;  %v489_v3 = vstv %s488_s29  ;;  %v514_v10 = vmul.f32 %v513_v52, %v2534_v15  ;;  %v486_v36 = vadd.f32 %v485_v2, %v481_v63  ;;  %v663_v45 = vadd.f32 %v662_v54, %v2993_v23  ;;  %v2344_v54 = vld [vmem:[#allocation6] sm:$0xff]  ;;  %v2345_v63 = vld [vmem:[#allocation6 + $0x8] sm:$0xff]  ;;  %s2409_s14 = smov [#allocation7]  }
  0x87   :  { %v505_v59 = vadd.f32 %v504_v43, %v500_v37  ;;  %s531_s1 = smul.f32 0.00390625, %s3051_s4  ;;  %v518_v20 = vstv %s517_s30  ;;  %v490_v39 = vmul.f32 %v489_v3, %v2583_v34  ;;  %v3136_v12 = vadd.f32 1.0, %v3123_v40 }
  0x88   :  { %v528_v31 = vstv %s527_s26  ;;  %s536_s13 = smul.f32 0.00390625, %s3060_s16  ;;  %v519_v43 = vmul.f32 %v518_v20, %v2559_v24  ;;  %v3139_v23 = vadd.f32 %v640_v53, %v2987_v18  ;;  %v2346_v53 = vld [vmem:[#allocation6 + $0x10] sm:$0xff]  ;;  %v2347_v20 = vld [vmem:[#allocation6 + $0x18] sm:$0xff]  ;;  %s2213_s16 = sshll.u32 %s2409_s14, 4  ;;  %s2214_s16 = int_to_ptr.vmem [resolvable:$true] %s2213_s16 }
  0x89   :  { %v510_v9 = vadd.f32 %v509_v49, %v505_v59  ;;  %v529_v14 = vmul.f32 %v528_v31, %v2481_v0  ;;  %v532_v16 = vstv %s531_s1  ;;  %s541_s28 = smul.f32 0.00390625, %s3066_s10  ;;  %v670_v49 = vmul.f32 %v3037_v5, %v2831_v4  ;;  %s2379_s27 = scalar_lea.vmem %s2214_s16, 2048 }
  0x8a   :  { %s522_s2 = smul.f32 0.00390625, %s3035_s20  ;;  %v533_v21 = vmul.f32 %v532_v16, %v2483_v1  ;;  %v537_v25 = vstv %s536_s13  ;;  %v452_v1 = vadd.f32 %v451_v56, %v447_v55  ;;  %p2380_p5 = scmp.ne.s32.totalorder %s2214_s16, %s2379_s27 }
  0x8b   :  { %v538_v0 = vmul.f32 %v537_v25, %v2499_v6  ;;  %v542_v30 = vstv %s541_s28  ;;  %s546_s21 = smul.f32 0.00390625, %s3071_s5  ;;  %v515_v6 = vadd.f32 %v514_v10, %v510_v9  ;;  %p2384_p6 = scmp.lt.s32.totalorder %s2214_s16, %s2214_s16 }
  0x8c   :  { %v534_v48 = vadd.f32 %v533_v21, %v529_v14  ;;  %s551_s18 = smul.f32 0.00390625, %s3077_s25  ;;  %v523_v11 = vstv %s522_s2  ;;  %v543_v37 = vmul.f32 %v542_v30, %v2512_v8  ;;  %v3141_v51 = vadd.f32 %v456_v29, %v452_v1  ;;  %p2385_p7 = scmp.lt.s32.totalorder %s2379_s27, %s2379_s27 }
  0x8d   :  { %s561_s12 = smul.f32 0.00390625, %s3092_s15  ;;  %v547_v50 = vstv %s546_s21  ;;  %v3143_v8 = vadd.f32 %v490_v39, %v486_v36  ;;  %v520_v58 = vadd.f32 %v519_v43, %v515_v6  ;;  %v524_v59 = vmul.f32 %v523_v11, %v2583_v34 }
  0x8e   :  { %v539_v35 = vadd.f32 %v538_v0, %v534_v48  ;;  %s565_s17 = smul.f32 0.00390625, %s3096_s8  ;;  %v548_v18 = vmul.f32 %v547_v50, %v2534_v15  ;;  %v552_v14 = vstv %s551_s18  ;;  %v617_v29 = vmul.f32 %v3123_v40, %v2785_v38  ;;  %p2386_p8 = por %p2385_p7, %p2384_p6 }
  0x8f   :  { %v562_v52 = vstv %s561_s12  ;;  %s570_s19 = smul.f32 0.00390625, %s3101_s7  ;;  %v648_v0 = vmul.f32 %v3123_v40, %v2893_v44  ;;  %v664_v15 = vmul.f32 %v3123_v40, %v2945_v7  ;;  %v671_v30 = vadd.f32 %v670_v49, %v3045_v61 }
  0x90   :  { %v563_v55 = vmul.f32 %v2344_v54, %v562_v52  ;;  %v566_v56 = vstv %s565_s17  ;;  %s575_s20 = smul.f32 0.00390625, %s3105_s22  ;;  %v544_v31 = vadd.f32 %v543_v37, %v539_v35  ;;  %v3162_v36 = vmul.f32 %v3143_v8, %v2820_v57  ;;  %v2348_v35 = vld [vmem:[#allocation6 + $0x20] sm:$0xff]  ;;  %p2387_p9 = pnand %p2386_p8, %p2380_p5 }
  0x91   :  { %v567_v2 = vmul.f32 %v2345_v63, %v566_v56  ;;  %v571_v3 = vstv %s570_s19  ;;  %s580_s6 = smul.f32 0.00390625, %s3113_s3  ;;  %v625_v39 = vmul.f32 %v3141_v51, %v2785_v38  ;;  %v656_v48 = vmul.f32 %v3141_v51, %v2893_v44 }
  0x92   :  { %s556_s11 = smul.f32 0.00390625, %s3082_s24  ;;  %v572_v9 = vmul.f32 %v2346_v53, %v571_v3  ;;  %v576_v10 = vstv %s575_s20  ;;  %v3168_v6 = vadd.f32 %v524_v59, %v520_v58  ;;  %v549_v43 = vadd.f32 %v548_v18, %v544_v31 }
  0x93   :  { %v568_v16 = vadd.f32 %v567_v2, %v563_v55  ;;  %v577_v21 = vmul.f32 %v2347_v20, %v576_v10  ;;  %v581_v25 = vstv %s580_s6  ;;  %s585_s9 = smul.f32 0.00390625, %s3120_s23  ;;  %v553_v11 = vmul.f32 %v552_v14, %v2559_v24 }
  0x94   :  { %v582_v37 = vmul.f32 %v2348_v35, %v581_v25  ;;  %v557_v50 = vstv %s556_s11  ;;  %s590_s4 = smul.f32 0.00390625, %s3133_s0  ;;  %v635_v52 = vmul.f32 %v3143_v8, %v2900_v46  ;;  %v611_v54 = vmul.f32 %v3168_v6, %v2820_v57  ;;  %v2350_v25 = vld [vmem:[#allocation6 + $0x30] sm:$0xff] }
  0x95   :  { %v573_v1 = vadd.f32 %v572_v9, %v568_v16  ;;  %v586_v49 = vstv %s585_s9  ;;  %v665_v55 = vadd.f32 %v664_v15, %v663_v45  ;;  %v666_v56 = vmul.f32 %v3143_v8, %v3141_v51  ;;  %v2349_v45 = vld [vmem:[#allocation6 + $0x28] sm:$0xff] }
  0x96   :  { %v672_v58 = vmul.f32 %v3123_v40, %v3037_v5  ;;  %v604_v24 = vadd.f32 %v3162_v36, %v3020_v41  ;;  %v618_v59 = vadd.f32 %v617_v29, %v2968_v13  ;;  %v626_v63 = vadd.f32 %v625_v39, %v2977_v27 }
  0x97   :  { %v578_v61 = vadd.f32 %v577_v21, %v573_v1  ;;  %v649_v2 = vadd.f32 %v648_v0, %v2970_v22  ;;  %v554_v3 = vadd.f32 %v553_v11, %v549_v43  ;;  %v558_v31 = vmul.f32 %v557_v50, %v2583_v34 }
  0x98   :  { %v587_v53 = vmul.f32 %v2349_v45, %v586_v49  ;;  %v591_v9 = vstv %s590_s4  ;;  %v636_v10 = vadd.f32 %v635_v52, %v3028_v62  ;;  %v642_v14 = vmul.f32 %v3168_v6, %v2900_v46 }
  0x99   :  { %v583_v18 = vadd.f32 %v582_v37, %v578_v61  ;;  %v657_v41 = vadd.f32 %v656_v48, %v2979_v28  ;;  %v612_v13 = vadd.f32 %v611_v54, %v3108_v26  ;;  %v667_v16 = vadd.f32 %v666_v56, %v665_v55 }
  0x9a   :  { %v673_v27 = vadd.f32 %v672_v58, %v671_v30  ;;  %v678_v22 = vmul.f32 %v3123_v40, %v3123_v40  ;;  %v674_v34 = vmul.f32 %v3168_v6, %v3141_v51  ;;  %v684_v20 = vmul.f32 %v3037_v5, %v2900_v46 }
  0x9b   :  { %v691_v62 = vmul.f32 %v3143_v8, %v2635_v60  ;;  %v692_v21 = vmul.f32 %v3168_v6, %v2801_v42  ;;  %v3201_v28 = vadd.f32 %v558_v31, %v554_v3  ;;  %v588_v26 = vadd.f32 %v587_v53, %v583_v18 }
  0x9c   :  { %v592_v29 = vmul.f32 %v2350_v25, %v591_v9  ;;  %v3203_v0 = vmul.f32 0.5, %v604_v24  ;;  %v3205_v15 = vmul.f32 0.5, %v636_v10  ;;  %v643_v30 = vadd.f32 %v642_v14, %v3116_v32 }
  0x9d   :  { %v699_v1 = vmul.f32 %v3143_v8, %v2689_v33  ;;  %v700_v39 = vmul.f32 %v3168_v6, %v2831_v4  ;;  %v3212_v48 = vmul.f32 0.5, %v612_v13  ;;  %v619_v43 = vmul.f32 %v3201_v28, %v2820_v57 }
  0x9e   :  { %v650_v11 = vmul.f32 %v3201_v28, %v2900_v46  ;;  %v3218_v35 = vmul.f32 0.5, %v667_v16  ;;  %v675_v37 = vadd.f32 %v674_v34, %v673_v27  ;;  %v685_v50 = vadd.f32 %v684_v20, %v3055_v17 }
  0x9f   :  { %v686_v32 = vmul.f32 %v3141_v51, %v3123_v40  ;;  %v693_v61 = vadd.f32 %v692_v21, %v691_v62  ;;  %v3223_v49 = vadd.f32 %v592_v29, %v588_v26  ;;  %v694_v52 = vmul.f32 %v3201_v28, %v2945_v7 }
  0xa0   :  { %v707_v54 = vmul.f32 %v3143_v8, %v2785_v38  ;;  %v708_v55 = vmul.f32 %v3168_v6, %v2893_v44  ;;  %v3231_v56 = vmul.f32 0.5, %v643_v30  ;;  %v679_v58 = vadd.f32 %v678_v22, %v3139_v23 }
  0xa1   :  { %v701_v17 = vadd.f32 %v700_v39, %v699_v1  ;;  %v702_v24 = vmul.f32 %v3201_v28, %v3037_v5  ;;  %v620_v3 = vadd.f32 %v619_v43, %v618_v59  ;;  %v627_v31 = vmul.f32 %v3223_v49, %v2820_v57 }
  0xa2   :  { %v651_v18 = vadd.f32 %v650_v11, %v649_v2  ;;  %v658_v45 = vmul.f32 %v3223_v49, %v2900_v46  ;;  %v3240_v53 = vmul.f32 0.5, %v675_v37  ;;  %v680_v9 = vmul.f32 %v3201_v28, %v3141_v51 }
  0xa3   :  { %v687_v10 = vadd.f32 %v686_v32, %v685_v50  ;;  %v688_v23 = vmul.f32 %v3223_v49, %v3141_v51  ;;  %v695_v13 = vadd.f32 %v694_v52, %v693_v61  ;;  %v696_v59 = vmul.f32 %v3223_v49, %v3143_v8 }
  0xa4   :  { %v709_v16 = vadd.f32 %v708_v55, %v707_v54  ;;  %v710_v2 = vmul.f32 %v3201_v28, %v3123_v40  ;;  %v681_v27 = vadd.f32 %v680_v9, %v679_v58  ;;  %v703_v22 = vadd.f32 %v702_v24, %v701_v17 }
  0xa5   :  { %v704_v34 = vmul.f32 %v3223_v49, %v3168_v6  ;;  %v715_v20 = vadd.f32 %v642_v14, %v3162_v36  ;;  %v621_v62 = vmul.f32 0.5, %v620_v3  ;;  %v628_v21 = vadd.f32 %v627_v31, %v626_v63 }
  0xa6   :  { %v3253_v26 = vmul.f32 0.5, %v651_v18  ;;  %v659_v25 = vadd.f32 %v658_v45, %v657_v41  ;;  %v689_v29 = vadd.f32 %v688_v23, %v687_v10  ;;  %v712_v30 = vmul.f32 %v3223_v49, %v3201_v28 }
  0xa7   :  { %v736_v1 = vmul.f32 %v3203_v0, %v2635_v60  ;;  %v737_v39 = vmul.f32 %v3212_v48, %v2801_v42  ;;  %v697_v43 = vadd.f32 %v696_v59, %v695_v13  ;;  %v711_v11 = vadd.f32 %v710_v2, %v709_v16 }
  0xa8   :  { %v744_v36 = vmul.f32 %v3203_v0, %v2689_v33  ;;  %v745_v63 = vmul.f32 %v3212_v48, %v2831_v4  ;;  %v3265_v14 = vmul.f32 0.5, %v681_v27  ;;  %v705_v41 = vadd.f32 %v704_v34, %v703_v22 }
  0xa9   :  { %v716_v37 = vadd.f32 %v715_v20, %v680_v9  ;;  %v717_v50 = vmul.f32 %v3223_v49, %v3223_v49  ;;  %v3270_v32 = vadd.f32 1.0, %v3223_v49  ;;  %v629_v61 = vmul.f32 0.5, %v628_v21 }
  0xaa   :  { %v738_v52 = vadd.f32 %v737_v39, %v736_v1  ;;  %v739_v54 = vmul.f32 %v621_v62, %v2945_v7  ;;  %v746_v55 = vadd.f32 %v745_v63, %v744_v36  ;;  %v747_v58 = vmul.f32 %v621_v62, %v3037_v5 }
  0xab   :  { %v752_v17 = vmul.f32 %v3203_v0, %v2785_v38  ;;  %v753_v24 = vmul.f32 %v3212_v48, %v2893_v44  ;;  %v3278_v3 = vmul.f32 0.5, %v659_v25  ;;  %v3280_v31 = vmul.f32 0.5, %v689_v29 }
  0xac   :  { %v3282_v18 = vmul.f32 0.5, %v697_v43  ;;  %v713_v45 = vadd.f32 %v712_v30, %v711_v11  ;;  %v3284_v9 = vmul.f32 0.5, %v705_v41  ;;  %v718_v10 = vadd.f32 %v717_v50, %v716_v37 }
  0xad   :  { %v3288_v23 = vadd.f32 %v3203_v0, %v2666_v19  ;;  %v3292_v13 = vadd.f32 %v3212_v48, %v2689_v33  ;;  %v740_v59 = vadd.f32 %v739_v54, %v738_v52  ;;  %v741_v16 = vmul.f32 %v629_v61, %v3143_v8 }
  0xae   :  { %v760_v2 = vmul.f32 %v3203_v0, %v2820_v57  ;;  %v761_v27 = vmul.f32 %v3212_v48, %v2900_v46  ;;  %v748_v22 = vadd.f32 %v747_v58, %v746_v55  ;;  %v749_v34 = vmul.f32 %v629_v61, %v3168_v6 }
  0xaf   :  { %v754_v20 = vadd.f32 %v753_v24, %v752_v17  ;;  %v755_v19 = vmul.f32 %v621_v62, %v3123_v40  ;;  %v3301_v21 = vmul.f32 0.5, %v713_v45  ;;  %v3304_v25 = vadd.f32 %v621_v62, %v2785_v38 }
  0xb0   :  { %v3307_v29 = vadd.f32 %v629_v61, %v2820_v57  ;;  %v3311_v0 = vadd.f32 %v3205_v15, %v2801_v42  ;;  %v3313_v30 = vmul.f32 0.5, %v718_v10  ;;  %v3317_v48 = vadd.f32 %v3231_v56, %v2906_v47 }
  0xb1   :  { %v3321_v1 = vadd.f32 %v3253_v26, %v2893_v44  ;;  %v3325_v39 = vadd.f32 %v3278_v3, %v2900_v46  ;;  %v742_v43 = vadd.f32 %v741_v16, %v740_v59  ;;  %v757_v11 = vmul.f32 %v629_v61, %v3201_v28 }
  0xb2   :  { %5446 = vst [vmem:[#allocation12_spill] sm:$0xff] %v3311_v0  ;;  %5447 = vst [vmem:[#allocation13_spill] sm:$0xff] %v3317_v48  ;;  %v762_v36 = vadd.f32 %v761_v27, %v760_v2  ;;  %v763_v63 = vmul.f32 %v621_v62, %v3141_v51  ;;  %v750_v41 = vadd.f32 %v749_v34, %v748_v22 }
  0xb3   :  { %5448 = vst [vmem:[#allocation14_spill] sm:$0xff] %v3321_v1  ;;  %5449 = vst [vmem:[#allocation15_spill] sm:$0xff] %v3325_v39  ;;  %v756_v37 = vadd.f32 %v755_v19, %v754_v20  ;;  %v768_v47 = vmul.f32 %v3205_v15, %v2635_v60  ;;  %v769_v50 = vmul.f32 %v3231_v56, %v2801_v42  ;;  %v3360_v10 = vmul.f32 0.33333334, %v742_v43 }
  0xb4   :  { %v3335_v52 = vadd.f32 %v3218_v35, %v2945_v7  ;;  %v3339_v54 = vadd.f32 %v3240_v53, %v3037_v5  ;;  %v3343_v55 = vadd.f32 %v3265_v14, %v3136_v12  ;;  %v3347_v62 = vadd.f32 %v3280_v31, %v3141_v51 }
  0xb5   :  { %v3351_v58 = vadd.f32 %v3282_v18, %v3143_v8  ;;  %v3355_v17 = vadd.f32 %v3284_v9, %v3168_v6  ;;  %v765_v24 = vmul.f32 %v629_v61, %v3223_v49  ;;  %v771_v45 = vmul.f32 %v3253_v26, %v2945_v7 }
  0xb6   :  { %5450 = vst [vmem:[#allocation16_spill] sm:$0xff] %v3335_v52  ;;  %5451 = vst [vmem:[#allocation17_spill] sm:$0xff] %v3339_v54  ;;  %v764_v12 = vadd.f32 %v763_v63, %v762_v36  ;;  %v773_v59 = vmul.f32 %v3278_v3, %v3143_v8  ;;  %v776_v16 = vmul.f32 %v3205_v15, %v2689_v33  ;;  %v3366_v2 = vmul.f32 0.33333334, %v750_v41 }
  0xb7   :  { %5452 = vst [vmem:[#allocation18_spill] sm:$0xff] %v3343_v55  ;;  %5453 = vst [vmem:[#allocation19_spill] sm:$0xff] %v3347_v62  ;;  %v758_v27 = vadd.f32 %v757_v11, %v756_v37  ;;  %v770_v22 = vadd.f32 %v769_v50, %v768_v47  ;;  %v777_v34 = vmul.f32 %v3231_v56, %v2831_v4 }
  0xb8   :  { %5454 = vst [vmem:[#allocation20_spill] sm:$0xff] %v3351_v58  ;;  %5455 = vst [vmem:[#allocation21_spill] sm:$0xff] %v3355_v17  ;;  %v779_v61 = vmul.f32 %v3253_v26, %v3037_v5  ;;  %v781_v20 = vmul.f32 %v3278_v3, %v3168_v6  ;;  %v784_v19 = vmul.f32 %v3205_v15, %v2785_v38 }
  0xb9   :  { %v785_v43 = vmul.f32 %v3231_v56, %v2893_v44  ;;  %v792_v36 = vmul.f32 %v3205_v15, %v2820_v57  ;;  %v793_v11 = vmul.f32 %v3231_v56, %v2900_v46  ;;  %v800_v63 = vmul.f32 %v3218_v35, %v2635_v60 }
  0xba   :  { %v801_v41 = vmul.f32 %v3240_v53, %v2801_v42  ;;  %v808_v37 = vmul.f32 %v3218_v35, %v2689_v33  ;;  %v809_v47 = vmul.f32 %v3240_v53, %v2831_v4  ;;  %v816_v50 = vmul.f32 %v3218_v35, %v2785_v38 }
  0xbb   :  { %v817_v15 = vmul.f32 %v3240_v53, %v2893_v44  ;;  %v766_v17 = vadd.f32 %v765_v24, %v764_v12  ;;  %v772_v56 = vadd.f32 %v771_v45, %v770_v22  ;;  %v778_v58 = vadd.f32 %v777_v34, %v776_v16 }
  0xbc   :  { %v824_v62 = vmul.f32 %v3218_v35, %v2820_v57  ;;  %v786_v55 = vadd.f32 %v785_v43, %v784_v19  ;;  %v787_v54 = vmul.f32 %v3253_v26, %v3123_v40  ;;  %v789_v52 = vmul.f32 %v3278_v3, %v3201_v28 }
  0xbd   :  { %v825_v39 = vmul.f32 %v3240_v53, %v2900_v46  ;;  %v794_v1 = vadd.f32 %v793_v11, %v792_v36  ;;  %v795_v48 = vmul.f32 %v3253_v26, %v3141_v51  ;;  %v802_v24 = vadd.f32 %v801_v41, %v800_v63 }
  0xbe   :  { %v803_v45 = vmul.f32 %v3265_v14, %v2945_v7  ;;  %v810_v12 = vadd.f32 %v809_v47, %v808_v37  ;;  %v811_v35 = vmul.f32 %v3265_v14, %v3037_v5  ;;  %v818_v16 = vadd.f32 %v817_v15, %v816_v50 }
  0xbf   :  { %v819_v22 = vmul.f32 %v3265_v14, %v3123_v40  ;;  %v826_v34 = vadd.f32 %v825_v39, %v824_v62  ;;  %v827_v53 = vmul.f32 %v3265_v14, %v3141_v51  ;;  %v832_v19 = vmul.f32 %v3282_v18, %v2635_v60 }
  0xc0   :  { %v833_v26 = vmul.f32 %v3284_v9, %v2801_v42  ;;  %v780_v43 = vadd.f32 %v779_v61, %v778_v58  ;;  %v797_v36 = vmul.f32 %v3278_v3, %v3223_v49  ;;  %v840_v11 = vmul.f32 %v3282_v18, %v2689_v33 }
  0xc1   :  { %v841_v63 = vmul.f32 %v3284_v9, %v2831_v4  ;;  %v788_v39 = vadd.f32 %v787_v54, %v786_v55  ;;  %v796_v62 = vadd.f32 %v795_v48, %v794_v1  ;;  %v805_v14 = vmul.f32 %v3280_v31, %v3143_v8 }
  0xc2   :  { %v813_v41 = vmul.f32 %v3280_v31, %v3168_v6  ;;  %v804_v37 = vadd.f32 %v803_v45, %v802_v24  ;;  %v812_v47 = vadd.f32 %v811_v35, %v810_v12  ;;  %v821_v58 = vmul.f32 %v3280_v31, %v3201_v28 }
  0xc3   :  { %v829_v3 = vmul.f32 %v3280_v31, %v3223_v49  ;;  %v820_v61 = vadd.f32 %v819_v22, %v818_v16  ;;  %v828_v50 = vadd.f32 %v827_v53, %v826_v34  ;;  %v834_v15 = vadd.f32 %v833_v26, %v832_v19 }
  0xc4   :  { %v835_v48 = vmul.f32 %v3301_v21, %v2945_v7  ;;  %v842_v1 = vadd.f32 %v841_v63, %v840_v11  ;;  %v843_v54 = vmul.f32 %v3301_v21, %v3037_v5  ;;  %v848_v55 = vmul.f32 %v3282_v18, %v2785_v38 }
  0xc5   :  { %v849_v24 = vmul.f32 %v3284_v9, %v2893_v44  ;;  %v3438_v45 = vmul.f32 0.33333334, %v758_v27  ;;  %v774_v12 = vadd.f32 %v773_v59, %v772_v56  ;;  %v782_v31 = vadd.f32 %v781_v20, %v780_v43 }
  0xc6   :  { %v790_v35 = vadd.f32 %v789_v52, %v788_v39  ;;  %v3440_v16 = vmul.f32 0.33333334, %v766_v17  ;;  %v798_v22 = vadd.f32 %v797_v36, %v796_v62  ;;  %v806_v34 = vadd.f32 %v805_v14, %v804_v37 }
  0xc7   :  { %v814_v53 = vadd.f32 %v813_v41, %v812_v47  ;;  %v822_v19 = vadd.f32 %v821_v58, %v820_v61  ;;  %v836_v26 = vadd.f32 %v835_v48, %v834_v15  ;;  %v837_v11 = vmul.f32 %v3313_v30, %v3143_v8 }
  0xc8   :  { %v845_v63 = vmul.f32 %v3313_v30, %v3168_v6  ;;  %v830_v0 = vadd.f32 %v829_v3, %v828_v50  ;;  %v844_v5 = vadd.f32 %v843_v54, %v842_v1  ;;  %v850_v27 = vadd.f32 %v849_v24, %v848_v55 }
  0xc9   :  { %v851_v59 = vmul.f32 %v3301_v21, %v3123_v40  ;;  %v3450_v52 = vadd.f32 %v3301_v21, %v3201_v28  ;;  %v3452_v17 = vmul.f32 0.33333334, %v774_v12  ;;  %v3454_v20 = vmul.f32 0.33333334, %v782_v31 }
  0xca   :  { %v3456_v56 = vmul.f32 0.33333334, %v790_v35  ;;  %v3460_v43 = vadd.f32 %v3313_v30, %v3270_v32  ;;  %v3462_v36 = vmul.f32 0.33333334, %v798_v22  ;;  %v3464_v39 = vmul.f32 0.33333334, %v806_v34 }
  0xcb   :  { %v3466_v62 = vmul.f32 0.33333334, %v814_v53  ;;  %v3468_v14 = vmul.f32 0.33333334, %v822_v19  ;;  %v838_v41 = vadd.f32 %v837_v11, %v836_v26  ;;  %v856_v37 = vmul.f32 %v3282_v18, %v2820_v57 }
  0xcc   :  { %v857_v47 = vmul.f32 %v3284_v9, %v2900_v46  ;;  %v3474_v58 = vmul.f32 0.33333334, %v830_v0  ;;  %v846_v3 = vadd.f32 %v845_v63, %v844_v5  ;;  %v852_v32 = vadd.f32 %v851_v59, %v850_v27  ;;  %v5457_v63 = vld [vmem:[#allocation12_spill] sm:$0xff]  ;;  %v5458_v59 = vld [vmem:[#allocation13_spill] sm:$0xff] }
  0xcd   :  { %v853_v61 = vmul.f32 %v3313_v30, %v3201_v28  ;;  %v859_v50 = vmul.f32 %v3301_v21, %v3141_v51  ;;  %v861_v15 = vmul.f32 %v3313_v30, %v3223_v49  ;;  %v880_v48 = vmul.f32 %v3360_v10, %v2635_v60 }
  0xce   :  { %v881_v18 = vmul.f32 %v3366_v2, %v2801_v42  ;;  %v888_v9 = vmul.f32 %v3360_v10, %v2689_v33  ;;  %v889_v5 = vmul.f32 %v3366_v2, %v2831_v4  ;;  %v896_v0 = vmul.f32 %v3360_v10, %v2785_v38 }
  0xcf   :  { %v897_v21 = vmul.f32 %v3366_v2, %v2893_v44  ;;  %v3494_v1 = vmul.f32 0.33333334, %v838_v41  ;;  %v858_v30 = vadd.f32 %v857_v47, %v856_v37  ;;  %v3498_v54 = vadd.f32 %v3360_v10, %v3288_v23  ;;  %v5456_v23 = vld [vmem:[#allocation11_spill] sm:$0xff]  ;;  %v5459_v37 = vld [vmem:[#allocation14_spill] sm:$0xff] }
  0xd0   :  { %v3502_v55 = vadd.f32 %v3366_v2, %v3292_v13  ;;  %v3504_v24 = vmul.f32 0.33333334, %v846_v3  ;;  %v854_v12 = vadd.f32 %v853_v61, %v852_v32  ;;  %v3508_v31 = vadd.f32 %v3438_v45, %v3304_v25  ;;  %v5461_v3 = vld [vmem:[#allocation16_spill] sm:$0xff] }
  0xd1   :  { %v3512_v35 = vadd.f32 %v3440_v16, %v3307_v29  ;;  %v883_v22 = vmul.f32 %v3438_v45, %v2945_v7  ;;  %v891_v34 = vmul.f32 %v3438_v45, %v5456_v23  ;;  %v904_v13 = vmul.f32 %v3360_v10, %v2820_v57 }
  0xd2   :  { %v905_v53 = vmul.f32 %v3366_v2, %v2900_v46  ;;  %v882_v19 = vadd.f32 %v881_v18, %v880_v48  ;;  %v890_v26 = vadd.f32 %v889_v5, %v888_v9  ;;  %v898_v25 = vadd.f32 %v897_v21, %v896_v0  ;;  %v5460_v2 = vld [vmem:[#allocation15_spill] sm:$0xff] }
  0xd3   :  { %v899_v11 = vmul.f32 %v3438_v45, %v3123_v40  ;;  %v860_v29 = vadd.f32 %v859_v50, %v858_v30  ;;  %v3526_v27 = vadd.f32 %v3452_v17, %v5457_v63  ;;  %v3530_v41 = vadd.f32 %v3454_v20, %v5458_v59 }
  0xd4   :  { %v3534_v10 = vadd.f32 %v3456_v56, %v5459_v37  ;;  %v3538_v47 = vadd.f32 %v3462_v36, %v5460_v2  ;;  %v3542_v32 = vadd.f32 %v3464_v39, %v5461_v3  ;;  %v885_v61 = vmul.f32 %v3440_v16, %v3143_v8  ;;  %v5465_v3 = vld [vmem:[#allocation18_spill] sm:$0xff] }
  0xd5   :  { %v893_v50 = vmul.f32 %v3440_v16, %v3168_v6  ;;  %v906_v48 = vadd.f32 %v905_v53, %v904_v13  ;;  %v907_v18 = vmul.f32 %v3438_v45, %v3141_v51  ;;  %v912_v9 = vmul.f32 %v3452_v17, %v2635_v60  ;;  %v5463_v53 = vld [vmem:[#allocation17_spill] sm:$0xff] }
  0xd6   :  { %5462 = vst [vmem:[#allocation11_spill] sm:$0xff] %v3542_v32  ;;  %v913_v5 = vmul.f32 %v3454_v20, %v2801_v42  ;;  %v884_v0 = vadd.f32 %v883_v22, %v882_v19  ;;  %v892_v21 = vadd.f32 %v891_v34, %v890_v26  ;;  %v900_v30 = vadd.f32 %v899_v11, %v898_v25  ;;  %v5467_v34 = vld [vmem:[#allocation19_spill] sm:$0xff] }
  0xd7   :  { %v901_v63 = vmul.f32 %v3440_v16, %v3201_v28  ;;  %v3556_v59 = vmul.f32 0.33333334, %v854_v12  ;;  %v862_v37 = vadd.f32 %v861_v15, %v860_v29  ;;  %v920_v13 = vmul.f32 %v3452_v17, %v2689_v33  ;;  %v5469_v12 = vld [vmem:[#allocation20_spill] sm:$0xff] }
  0xd8   :  { %v921_v45 = vmul.f32 %v3454_v20, %v2831_v4  ;;  %v3564_v2 = vadd.f32 %v3466_v62, %v5463_v53  ;;  %v3568_v22 = vadd.f32 %v3468_v14, %v5465_v3  ;;  %v3572_v19 = vadd.f32 %v3474_v58, %v5467_v34  ;;  %v5471_v53 = vld [vmem:[#allocation21_spill] sm:$0xff] }
  0xd9   :  { %v3576_v15 = vadd.f32 %v3494_v1, %v5469_v12  ;;  %v908_v26 = vadd.f32 %v907_v18, %v906_v48  ;;  %v909_v25 = vmul.f32 %v3440_v16, %v3223_v49  ;;  %v914_v11 = vadd.f32 %v913_v5, %v912_v9 }
  0xda   :  { %5464 = vst [vmem:[#allocation12_spill] sm:$0xff] %v3564_v2  ;;  %5466 = vst [vmem:[#allocation13_spill] sm:$0xff] %v3568_v22  ;;  %v915_v29 = vmul.f32 %v3456_v56, %v2945_v7  ;;  %v3584_v3 = vadd.f32 %v3504_v24, %v5471_v53  ;;  %v886_v22 = vadd.f32 %v885_v61, %v884_v0 }
  0xdb   :  { %5468 = vst [vmem:[#allocation14_spill] sm:$0xff] %v3572_v19  ;;  %5470 = vst [vmem:[#allocation15_spill] sm:$0xff] %v3576_v15  ;;  %v894_v2 = vadd.f32 %v893_v50, %v892_v21  ;;  %v902_v34 = vadd.f32 %v901_v63, %v900_v30  ;;  %v3586_v19 = vmul.f32 0.33333334, %v862_v37  ;;  %v3590_v12 = vadd.f32 %v3556_v59, %v3450_v52 }
  0xdc   :  { %5472 = vst [vmem:[#allocation16_spill] sm:$0xff] %v3584_v3  ;;  %v922_v48 = vadd.f32 %v921_v45, %v920_v13  ;;  %v923_v16 = vmul.f32 %v3456_v56, %v5456_v23  ;;  %v928_v18 = vmul.f32 %v3452_v17, %v2785_v38  ;;  %v929_v9 = vmul.f32 %v3454_v20, %v2893_v44 }
  0xdd   :  { %5473 = vst [vmem:[#allocation17_spill] sm:$0xff] %v3590_v12  ;;  %v936_v61 = vmul.f32 %v3452_v17, %v2820_v57  ;;  %v937_v50 = vmul.f32 %v3454_v20, %v2900_v46  ;;  %v3604_v52 = vadd.f32 %v3586_v19, %v3460_v43  ;;  %v910_v5 = vadd.f32 %v909_v25, %v908_v26 }
  0xde   :  { %v916_v0 = vadd.f32 %v915_v29, %v914_v11  ;;  %v917_v21 = vmul.f32 %v3462_v36, %v3143_v8  ;;  %v3608_v30 = vmul.f32 0.25, %v886_v22  ;;  %v3610_v63 = vmul.f32 0.25, %v894_v2 }
  0xdf   :  { %5474 = vst [vmem:[#allocation18_spill] sm:$0xff] %v3604_v52  ;;  %v3612_v37 = vmul.f32 0.25, %v902_v34  ;;  %v925_v17 = vmul.f32 %v3462_v36, %v3168_v6  ;;  %v931_v20 = vmul.f32 %v3456_v56, %v3123_v40  ;;  %v933_v43 = vmul.f32 %v3462_v36, %v3201_v28 }
  0xe0   :  { %v944_v13 = vmul.f32 %v3464_v39, %v2635_v60  ;;  %v945_v45 = vmul.f32 %v3466_v62, %v2801_v42  ;;  %v924_v22 = vadd.f32 %v923_v16, %v922_v48  ;;  %v930_v2 = vadd.f32 %v929_v9, %v928_v18 }
  0xe1   :  { %v938_v26 = vadd.f32 %v937_v50, %v936_v61  ;;  %v939_v25 = vmul.f32 %v3456_v56, %v3141_v51  ;;  %v3626_v11 = vmul.f32 0.25, %v910_v5  ;;  %v918_v29 = vadd.f32 %v917_v21, %v916_v0 }
  0xe2   :  { %v952_v53 = vmul.f32 %v3464_v39, %v2689_v33  ;;  %v953_v34 = vmul.f32 %v3466_v62, %v2831_v4  ;;  %v960_v52 = vmul.f32 %v3464_v39, %v2785_v38  ;;  %v961_v48 = vmul.f32 %v3466_v62, %v2893_v44 }
  0xe3   :  { %v968_v16 = vmul.f32 %v3464_v39, %v2820_v57  ;;  %v969_v56 = vmul.f32 %v3466_v62, %v2900_v46  ;;  %v946_v18 = vadd.f32 %v945_v45, %v944_v13  ;;  %v947_v9 = vmul.f32 %v3468_v14, %v2945_v7 }
  0xe4   :  { %v976_v61 = vmul.f32 %v3494_v1, %v2635_v60  ;;  %v977_v50 = vmul.f32 %v3504_v24, %v2801_v42  ;;  %v926_v5 = vadd.f32 %v925_v17, %v924_v22  ;;  %v932_v0 = vadd.f32 %v931_v20, %v930_v2 }
  0xe5   :  { %v940_v21 = vadd.f32 %v939_v25, %v938_v26  ;;  %v941_v12 = vmul.f32 %v3462_v36, %v3223_v49  ;;  %v954_v39 = vadd.f32 %v953_v34, %v952_v53  ;;  %v955_v62 = vmul.f32 %v3468_v14, %v5456_v23 }
  0xe6   :  { %v984_v13 = vmul.f32 %v3494_v1, %v2689_v33  ;;  %v985_v45 = vmul.f32 %v3504_v24, %v2831_v4  ;;  %v962_v3 = vadd.f32 %v961_v48, %v960_v52  ;;  %v963_v15 = vmul.f32 %v3468_v14, %v3123_v40 }
  0xe7   :  { %v970_v17 = vadd.f32 %v969_v56, %v968_v16  ;;  %v971_v20 = vmul.f32 %v3468_v14, %v3141_v51  ;;  %v948_v22 = vadd.f32 %v947_v9, %v946_v18  ;;  %v949_v36 = vmul.f32 %v3474_v58, %v3143_v8 }
  0xe8   :  { %v978_v2 = vadd.f32 %v977_v50, %v976_v61  ;;  %v979_v26 = vmul.f32 %v3556_v59, %v2945_v7  ;;  %v934_v25 = vadd.f32 %v933_v43, %v932_v0  ;;  %v957_v53 = vmul.f32 %v3474_v58, %v3168_v6 }
  0xe9   :  { %v992_v52 = vmul.f32 %v3494_v1, %v2785_v38  ;;  %v993_v34 = vmul.f32 %v3504_v24, %v2893_v44  ;;  %v942_v48 = vadd.f32 %v941_v12, %v940_v21  ;;  %v956_v14 = vadd.f32 %v955_v62, %v954_v39 }
  0xea   :  { %v986_v16 = vadd.f32 %v985_v45, %v984_v13  ;;  %v987_v56 = vmul.f32 %v3556_v59, %v5456_v23  ;;  %v964_v18 = vadd.f32 %v963_v15, %v962_v3  ;;  %v965_v9 = vmul.f32 %v3474_v58, %v3201_v28 }
  0xeb   :  { %v972_v43 = vadd.f32 %v971_v20, %v970_v17  ;;  %v973_v61 = vmul.f32 %v3474_v58, %v3223_v49  ;;  %v3674_v50 = vmul.f32 0.25, %v918_v29  ;;  %v950_v0 = vadd.f32 %v949_v36, %v948_v22 }
  0xec   :  { %v980_v32 = vadd.f32 %v979_v26, %v978_v2  ;;  %v981_v12 = vmul.f32 %v3586_v19, %v3143_v8  ;;  %v994_v21 = vadd.f32 %v993_v34, %v992_v52  ;;  %v995_v39 = vmul.f32 %v3556_v59, %v3123_v40 }
  0xed   :  { %v1000_v15 = vmul.f32 %v3494_v1, %v2820_v57  ;;  %v1001_v3 = vmul.f32 %v3504_v24, %v2900_v46  ;;  %v3684_v62 = vmul.f32 0.25, %v926_v5  ;;  %v958_v58 = vadd.f32 %v957_v53, %v956_v14 }
  0xee   :  { %v988_v29 = vadd.f32 %v987_v56, %v986_v16  ;;  %v989_v13 = vmul.f32 %v3586_v19, %v3168_v6  ;;  %v3688_v45 = vmul.f32 0.25, %v934_v25  ;;  %v3690_v17 = vmul.f32 0.25, %v942_v48 }
  0xef   :  { %v966_v20 = vadd.f32 %v965_v9, %v964_v18  ;;  %v974_v22 = vadd.f32 %v973_v61, %v972_v43  ;;  %v3692_v36 = vmul.f32 0.25, %v950_v0  ;;  %v982_v2 = vadd.f32 %v981_v12, %v980_v32 }
  0xf0   :  { %v1024_v1 = vmul.f32 %v3608_v30, %v2635_v60  ;;  %v1025_v24 = vmul.f32 %v3610_v63, %v2801_v42  ;;  %v996_v5 = vadd.f32 %v995_v39, %v994_v21  ;;  %v997_v26 = vmul.f32 %v3586_v19, %v3201_v28 }
  0xf1   :  { %v1002_v53 = vadd.f32 %v1001_v3, %v1000_v15  ;;  %v1003_v25 = vmul.f32 %v3556_v59, %v3141_v51  ;;  %v3702_v52 = vmul.f32 0.25, %v958_v58  ;;  %v990_v34 = vadd.f32 %v989_v13, %v988_v29 }
  0xf2   :  { %v1032_v32 = vmul.f32 %v3608_v30, %v2689_v33  ;;  %v1033_v48 = vmul.f32 %v3610_v63, %v2831_v4  ;;  %v3708_v14 = vmul.f32 0.25, %v966_v20  ;;  %v3710_v16 = vmul.f32 0.25, %v974_v22 }
  0xf3   :  { %v1005_v56 = vmul.f32 %v3586_v19, %v3223_v49  ;;  %v3716_v18 = vadd.f32 %v3608_v30, %v3498_v54  ;;  %v3718_v59 = vmul.f32 0.25, %v982_v2  ;;  %v3722_v9 = vadd.f32 %v3610_v63, %v3502_v55  ;;  %v5477_v2 = vld [vmem:[#allocation11_spill] sm:$0xff] }
  0xf4   :  { %v1026_v43 = vadd.f32 %v1025_v24, %v1024_v1  ;;  %v1027_v61 = vmul.f32 %v3612_v37, %v2945_v7  ;;  %v998_v0 = vadd.f32 %v997_v26, %v996_v5  ;;  %v1004_v12 = vadd.f32 %v1003_v25, %v1002_v53  ;;  %v5479_v24 = vld [vmem:[#allocation12_spill] sm:$0xff]  ;;  %v5481_v26 = vld [vmem:[#allocation13_spill] sm:$0xff]  ;;  %v5483_v25 = vld [vmem:[#allocation14_spill] sm:$0xff] }
  0xf5   :  { %v3728_v21 = vadd.f32 %v3612_v37, %v3508_v31  ;;  %v3732_v54 = vadd.f32 %v3626_v11, %v3512_v35  ;;  %v3734_v19 = vmul.f32 0.25, %v990_v34  ;;  %v3738_v55 = vadd.f32 %v3674_v50, %v3526_v27  ;;  %v5485_v34 = vld [vmem:[#allocation15_spill] sm:$0xff] }
  0xf6   :  { %v1034_v39 = vadd.f32 %v1033_v48, %v1032_v32  ;;  %v1035_v15 = vmul.f32 %v3612_v37, %v5456_v23  ;;  %v3744_v3 = vadd.f32 %v3684_v62, %v3530_v41  ;;  %v3748_v31 = vadd.f32 %v3688_v45, %v3534_v10 }
  0xf7   :  { %v1040_v35 = vmul.f32 %v3608_v30, %v2785_v38  ;;  %v1041_v58 = vmul.f32 %v3610_v63, %v2893_v44  ;;  %v1028_v27 = vadd.f32 %v1027_v61, %v1026_v43  ;;  %v1029_v29 = vmul.f32 %v3626_v11, %v3143_v8  ;;  %v5487_v43 = vld [vmem:[#allocation16_spill] sm:$0xff] }
  0xf8   :  { %5475 = vst [vmem:[#allocation19_spill] sm:$0xff] %v3748_v31  ;;  %v1048_v13 = vmul.f32 %v3608_v30, %v2820_v57  ;;  %v1049_v41 = vmul.f32 %v3610_v63, %v2900_v46  ;;  %v3760_v20 = vmul.f32 0.25, %v998_v0  ;;  %v1006_v10 = vadd.f32 %v1005_v56, %v1004_v12 }
  0xf9   :  { %v3764_v22 = vadd.f32 %v3690_v17, %v3538_v47  ;;  %v3768_v1 = vadd.f32 %v3692_v36, %v5477_v2  ;;  %v3772_v5 = vadd.f32 %v3702_v52, %v5479_v24  ;;  %v3776_v30 = vadd.f32 %v3708_v14, %v5481_v26  ;;  %v5489_v2 = vld [vmem:[#allocation17_spill] sm:$0xff] }
  0xfa   :  { %v1036_v63 = vadd.f32 %v1035_v15, %v1034_v39  ;;  %v1037_v53 = vmul.f32 %v3626_v11, %v3168_v6  ;;  %v3782_v47 = vadd.f32 %v3710_v16, %v5483_v25  ;;  %v3786_v32 = vadd.f32 %v3718_v59, %v5485_v34 }
  0xfb   :  { %5476 = vst [vmem:[#allocation20_spill] sm:$0xff] %v3764_v22  ;;  %5478 = vst [vmem:[#allocation21_spill] sm:$0xff] %v3768_v1  ;;  %v1042_v48 = vadd.f32 %v1041_v58, %v1040_v35  ;;  %v1043_v56 = vmul.f32 %v3612_v37, %v3123_v40  ;;  %v3792_v61 = vadd.f32 %v3734_v19, %v5487_v43  ;;  %v3796_v15 = vmul.f32 0.25, %v1006_v10 }
  0xfc   :  { %5480 = vst [vmem:[#allocation11_spill] sm:$0xff] %v3772_v5  ;;  %5482 = vst [vmem:[#allocation12_spill] sm:$0xff] %v3776_v30  ;;  %v1030_v0 = vadd.f32 %v1029_v29, %v1028_v27  ;;  %v1050_v12 = vadd.f32 %v1049_v41, %v1048_v13  ;;  %v1051_v39 = vmul.f32 %v3612_v37, %v3141_v51 }
  0xfd   :  { %5484 = vst [vmem:[#allocation13_spill] sm:$0xff] %v3782_v47  ;;  %5486 = vst [vmem:[#allocation14_spill] sm:$0xff] %v3786_v32  ;;  %v3800_v24 = vadd.f32 %v3760_v20, %v5489_v2  ;;  %v1045_v35 = vmul.f32 %v3626_v11, %v3201_v28  ;;  %v1053_v58 = vmul.f32 %v3626_v11, %v3223_v49 }
  0xfe   :  { %5488 = vst [vmem:[#allocation15_spill] sm:$0xff] %v3792_v61  ;;  %v1038_v26 = vadd.f32 %v1037_v53, %v1036_v63  ;;  %v1056_v27 = vmul.f32 %v3674_v50, %v2635_v60  ;;  %v1057_v29 = vmul.f32 %v3684_v62, %v2801_v42  ;;  %v1059_v37 = vmul.f32 %v3688_v45, %v2945_v7 }
  0xff   :  { %5490 = vst [vmem:[#allocation16_spill] sm:$0xff] %v3800_v24  ;;  %v1044_v13 = vadd.f32 %v1043_v56, %v1042_v48  ;;  %v1061_v41 = vmul.f32 %v3690_v17, %v3143_v8  ;;  %v1064_v10 = vmul.f32 %v3674_v50, %v2689_v33  ;;  %v1065_v11 = vmul.f32 %v3684_v62, %v2831_v4 }
 0x100   :  { %v3818_v63 = vmul.f32 0.2, %v1030_v0  ;;  %v1052_v53 = vadd.f32 %v1051_v39, %v1050_v12  ;;  %v1072_v25 = vmul.f32 %v3674_v50, %v2785_v38  ;;  %v1073_v34 = vmul.f32 %v3684_v62, %v2893_v44 }
 0x101   :  { %v1080_v48 = vmul.f32 %v3674_v50, %v2820_v57  ;;  %v1081_v56 = vmul.f32 %v3684_v62, %v2900_v46  ;;  %v1088_v43 = vmul.f32 %v3692_v36, %v2635_v60  ;;  %v1089_v0 = vmul.f32 %v3702_v52, %v2801_v42 }
 0x102   :  { %v3832_v2 = vmul.f32 0.2, %v1038_v26  ;;  %v1058_v12 = vadd.f32 %v1057_v29, %v1056_v27  ;;  %v1096_v39 = vmul.f32 %v3692_v36, %v2689_v33  ;;  %v1097_v24 = vmul.f32 %v3702_v52, %v2831_v4 }
 0x103   :  { %v1046_v61 = vadd.f32 %v1045_v35, %v1044_v13  ;;  %v1066_v50 = vadd.f32 %v1065_v11, %v1064_v10  ;;  %v1067_v62 = vmul.f32 %v3688_v45, %v5456_v23  ;;  %v1069_v32 = vmul.f32 %v3690_v17, %v3168_v6 }
 0x104   :  { %v1074_v47 = vadd.f32 %v1073_v34, %v1072_v25  ;;  %v1075_v26 = vmul.f32 %v3688_v45, %v3123_v40  ;;  %v1104_v27 = vmul.f32 %v3692_v36, %v2785_v38  ;;  %v1105_v29 = vmul.f32 %v3702_v52, %v2893_v44 }
 0x105   :  { %v1082_v30 = vadd.f32 %v1081_v56, %v1080_v48  ;;  %v1083_v35 = vmul.f32 %v3688_v45, %v3141_v51  ;;  %v1090_v13 = vadd.f32 %v1089_v0, %v1088_v43  ;;  %v1091_v10 = vmul.f32 %v3708_v14, %v2945_v7 }
 0x106   :  { %v1098_v11 = vadd.f32 %v1097_v24, %v1096_v39  ;;  %v1099_v25 = vmul.f32 %v3708_v14, %v5456_v23  ;;  %v1112_v34 = vmul.f32 %v3692_v36, %v2820_v57  ;;  %v1113_v5 = vmul.f32 %v3702_v52, %v2900_v46 }
 0x107   :  { %v1060_v1 = vadd.f32 %v1059_v37, %v1058_v12  ;;  %v1068_v22 = vadd.f32 %v1067_v62, %v1066_v50  ;;  %v1077_v48 = vmul.f32 %v3690_v17, %v3201_v28  ;;  %v1085_v45 = vmul.f32 %v3690_v17, %v3223_v49 }
 0x108   :  { %v1106_v56 = vadd.f32 %v1105_v29, %v1104_v27  ;;  %v1107_v24 = vmul.f32 %v3708_v14, %v3123_v40  ;;  %v1120_v43 = vmul.f32 %v3718_v59, %v2635_v60  ;;  %v1121_v36 = vmul.f32 %v3734_v19, %v2801_v42 }
 0x109   :  { %v1076_v0 = vadd.f32 %v1075_v26, %v1074_v47  ;;  %v1084_v52 = vadd.f32 %v1083_v35, %v1082_v30  ;;  %v1093_v37 = vmul.f32 %v3710_v16, %v3143_v8  ;;  %v1101_v12 = vmul.f32 %v3710_v16, %v3168_v6 }
 0x10a   :  { %v1092_v39 = vadd.f32 %v1091_v10, %v1090_v13  ;;  %v1100_v17 = vadd.f32 %v1099_v25, %v1098_v11  ;;  %v1114_v50 = vadd.f32 %v1113_v5, %v1112_v34  ;;  %v1115_v62 = vmul.f32 %v3708_v14, %v3141_v51 }
 0x10b   :  { %v3874_v27 = vmul.f32 0.2, %v1046_v61  ;;  %v1054_v29 = vadd.f32 %v1053_v58, %v1052_v53  ;;  %v1128_v31 = vmul.f32 %v3718_v59, %v2689_v33  ;;  %v1129_v30 = vmul.f32 %v3734_v19, %v2831_v4 }
 0x10c   :  { %v1108_v47 = vadd.f32 %v1107_v24, %v1106_v56  ;;  %v1109_v26 = vmul.f32 %v3710_v16, %v3201_v28  ;;  %v1122_v35 = vadd.f32 %v1121_v36, %v1120_v43  ;;  %v1123_v5 = vmul.f32 %v3760_v20, %v2945_v7 }
 0x10d   :  { %v1062_v13 = vadd.f32 %v1061_v41, %v1060_v1  ;;  %v1070_v10 = vadd.f32 %v1069_v32, %v1068_v22  ;;  %v1078_v14 = vadd.f32 %v1077_v48, %v1076_v0  ;;  %v1086_v61 = vadd.f32 %v1085_v45, %v1084_v52  ;;  %v5491_v48 = vld [vmem:[#allocation18_spill] sm:$0xff] }
 0x10e   :  { %v1094_v11 = vadd.f32 %v1093_v37, %v1092_v39  ;;  %v1102_v58 = vadd.f32 %v1101_v12, %v1100_v17  ;;  %v1116_v53 = vadd.f32 %v1115_v62, %v1114_v50  ;;  %v1117_v25 = vmul.f32 %v3710_v16, %v3223_v49 }
 0x10f   :  { %v1130_v34 = vadd.f32 %v1129_v30, %v1128_v31  ;;  %v1131_v56 = vmul.f32 %v3760_v20, %v5456_v23  ;;  %v1136_v24 = vmul.f32 %v3718_v59, %v2785_v38  ;;  %v1137_v43 = vmul.f32 %v3734_v19, %v2893_v44 }
 0x110   :  { %v3892_v1 = vmul.f32 0.2, %v1054_v29  ;;  %v1110_v22 = vadd.f32 %v1109_v26, %v1108_v47  ;;  %v1124_v32 = vadd.f32 %v1123_v5, %v1122_v35  ;;  %v1125_v41 = vmul.f32 %v3796_v15, %v3143_v8 }
 0x111   :  { %v3898_v16 = vadd.f32 %v3796_v15, %v5491_v48  ;;  %v3900_v31 = vmul.f32 0.2, %v1062_v13  ;;  %v3902_v45 = vmul.f32 0.2, %v1070_v10  ;;  %v3904_v36 = vmul.f32 0.2, %v1078_v14 }
 0x112   :  { %v3906_v0 = vmul.f32 0.2, %v1086_v61  ;;  %v3908_v52 = vmul.f32 0.2, %v1094_v11  ;;  %v3910_v37 = vmul.f32 0.2, %v1102_v58  ;;  %v1118_v12 = vadd.f32 %v1117_v25, %v1116_v53 }
 0x113   :  { %v1132_v39 = vadd.f32 %v1131_v56, %v1130_v34  ;;  %v1133_v17 = vmul.f32 %v3796_v15, %v3168_v6  ;;  %v1138_v50 = vadd.f32 %v1137_v43, %v1136_v24  ;;  %v1139_v62 = vmul.f32 %v3760_v20, %v3123_v40 }
 0x114   :  { %v3916_v29 = vmul.f32 0.2, %v1110_v22  ;;  %v1126_v30 = vadd.f32 %v1125_v41, %v1124_v32  ;;  %v1144_v47 = vmul.f32 %v3718_v59, %v2820_v57  ;;  %v1145_v26 = vmul.f32 %v3734_v19, %v2900_v46 }
 0x115   :  { %v1168_v35 = vmul.f32 %v3818_v63, %v2635_v60  ;;  %v1169_v5 = vmul.f32 %v3832_v2, %v2801_v42  ;;  %v1176_v13 = vmul.f32 %v3818_v63, %v2689_v33  ;;  %v1177_v10 = vmul.f32 %v3832_v2, %v2831_v4 }
 0x116   :  { %v3930_v14 = vmul.f32 0.2, %v1118_v12  ;;  %v1141_v59 = vmul.f32 %v3796_v15, %v3201_v28  ;;  %v1147_v19 = vmul.f32 %v3760_v20, %v3141_v51  ;;  %v1184_v61 = vmul.f32 %v3818_v63, %v2785_v38 }
 0x117   :  { %v1134_v11 = vadd.f32 %v1133_v17, %v1132_v39  ;;  %v1140_v58 = vadd.f32 %v1139_v62, %v1138_v50  ;;  %v1149_v53 = vmul.f32 %v3796_v15, %v3223_v49  ;;  %v1185_v25 = vmul.f32 %v3832_v2, %v2893_v44 }
 0x118   :  { %v3942_v34 = vmul.f32 0.2, %v1126_v30  ;;  %v1146_v56 = vadd.f32 %v1145_v26, %v1144_v47  ;;  %v3946_v24 = vadd.f32 %v3818_v63, %v3716_v18  ;;  %v3950_v20 = vadd.f32 %v3832_v2, %v3722_v9 }
 0x119   :  { %v1170_v43 = vadd.f32 %v1169_v5, %v1168_v35  ;;  %v1171_v22 = vmul.f32 %v3874_v27, %v2945_v7  ;;  %v1178_v32 = vadd.f32 %v1177_v10, %v1176_v13  ;;  %v1179_v15 = vmul.f32 %v3874_v27, %v5456_v23 }
 0x11a   :  { %v1186_v41 = vadd.f32 %v1185_v25, %v1184_v61  ;;  %v1187_v48 = vmul.f32 %v3874_v27, %v3123_v40  ;;  %v1192_v18 = vmul.f32 %v3818_v63, %v2820_v57  ;;  %v1193_v12 = vmul.f32 %v3832_v2, %v2900_v46  ;;  %v5493_v25 = vld [vmem:[#allocation20_spill] sm:$0xff] }
 0x11b   :  { %v3962_v9 = vmul.f32 0.2, %v1134_v11  ;;  %v1142_v39 = vadd.f32 %v1141_v59, %v1140_v58  ;;  %v3966_v17 = vadd.f32 %v3874_v27, %v3728_v21  ;;  %v3970_v50 = vadd.f32 %v3892_v1, %v3732_v54  ;;  %v5492_v59 = vld [vmem:[#allocation19_spill] sm:$0xff] }
 0x11c   :  { %v1148_v62 = vadd.f32 %v1147_v19, %v1146_v56  ;;  %v3974_v30 = vadd.f32 %v3900_v31, %v3738_v55  ;;  %v1173_v63 = vmul.f32 %v3892_v1, %v3143_v8  ;;  %v1181_v2 = vmul.f32 %v3892_v1, %v3168_v6 }
 0x11d   :  { %v1172_v47 = vadd.f32 %v1171_v22, %v1170_v43  ;;  %v1180_v26 = vadd.f32 %v1179_v15, %v1178_v32  ;;  %v1189_v21 = vmul.f32 %v3892_v1, %v3201_v28  ;;  %v1195_v54 = vmul.f32 %v3874_v27, %v3141_v51  ;;  %v5494_v43 = vld [vmem:[#allocation21_spill] sm:$0xff]  ;;  %v5496_v22 = vld [vmem:[#allocation11_spill] sm:$0xff] }
 0x11e   :  { %v1188_v35 = vadd.f32 %v1187_v48, %v1186_v41  ;;  %v1194_v5 = vadd.f32 %v1193_v12, %v1192_v18  ;;  %v1200_v55 = vmul.f32 %v3900_v31, %v2635_v60  ;;  %v1201_v13 = vmul.f32 %v3902_v45, %v2801_v42 }
 0x11f   :  { %v3990_v10 = vadd.f32 %v3902_v45, %v3744_v3  ;;  %v3994_v19 = vadd.f32 %v3904_v36, %v5492_v59  ;;  %v1208_v61 = vmul.f32 %v3900_v31, %v2689_v33  ;;  %v1209_v27 = vmul.f32 %v3902_v45, %v2831_v4 }
 0x120   :  { %v4000_v11 = vmul.f32 0.2, %v1142_v39  ;;  %v1150_v58 = vadd.f32 %v1149_v53, %v1148_v62  ;;  %v4004_v56 = vadd.f32 %v3906_v0, %v5493_v25  ;;  %v4008_v3 = vadd.f32 %v3908_v52, %v5494_v43  ;;  %v5498_v62 = vld [vmem:[#allocation12_spill] sm:$0xff]  ;;  %v5500_v25 = vld [vmem:[#allocation13_spill] sm:$0xff] }
 0x121   :  { %v4012_v32 = vadd.f32 %v3910_v37, %v5496_v22  ;;  %v1174_v15 = vadd.f32 %v1173_v63, %v1172_v47  ;;  %v1182_v41 = vadd.f32 %v1181_v2, %v1180_v26  ;;  %v1197_v48 = vmul.f32 %v3892_v1, %v3223_v49  ;;  %v5502_v2 = vld [vmem:[#allocation14_spill] sm:$0xff]  ;;  %v5504_v47 = vld [vmem:[#allocation15_spill] sm:$0xff] }
 0x122   :  { %5495 = vst [vmem:[#allocation17_spill] sm:$0xff] %v4008_v3  ;;  %v1190_v18 = vadd.f32 %v1189_v21, %v1188_v35  ;;  %v1196_v12 = vadd.f32 %v1195_v54, %v1194_v5  ;;  %v1202_v53 = vadd.f32 %v1201_v13, %v1200_v55  ;;  %v1203_v39 = vmul.f32 %v3904_v36, %v2945_v7 }
 0x123   :  { %5497 = vst [vmem:[#allocation18_spill] sm:$0xff] %v4012_v32  ;;  %v4020_v59 = vadd.f32 %v3916_v29, %v5498_v62  ;;  %v4024_v43 = vadd.f32 %v3930_v14, %v5500_v25  ;;  %v1210_v22 = vadd.f32 %v1209_v27, %v1208_v61  ;;  %v1211_v63 = vmul.f32 %v3904_v36, %v5456_v23 }
 0x124   :  { %v4030_v1 = vadd.f32 %v3942_v34, %v5502_v2  ;;  %v4034_v26 = vadd.f32 %v3962_v9, %v5504_v47  ;;  %v1216_v21 = vmul.f32 %v3900_v31, %v2785_v38  ;;  %v1217_v54 = vmul.f32 %v3902_v45, %v2893_v44 }
 0x125   :  { %5499 = vst [vmem:[#allocation19_spill] sm:$0xff] %v4020_v59  ;;  %5501 = vst [vmem:[#allocation20_spill] sm:$0xff] %v4024_v43  ;;  %v4040_v35 = vmul.f32 0.2, %v1150_v58  ;;  %v4042_v5 = vmul.f32 0.16666667, %v1174_v15  ;;  %v1205_v13 = vmul.f32 %v3906_v0, %v3143_v8  ;;  %v1198_v27 = vadd.f32 %v1197_v48, %v1196_v12 }
 0x126   :  { %5503 = vst [vmem:[#allocation21_spill] sm:$0xff] %v4030_v1  ;;  %5505 = vst [vmem:[#allocation11_spill] sm:$0xff] %v4034_v26  ;;  %v4044_v55 = vmul.f32 0.16666667, %v1182_v41  ;;  %v4048_v61 = vmul.f32 0.16666667, %v1190_v18  ;;  %v1204_v62 = vadd.f32 %v1203_v39, %v1202_v53  ;;  %v1213_v25 = vmul.f32 %v3906_v0, %v3168_v6 }
 0x127   :  { %v1212_v2 = vadd.f32 %v1211_v63, %v1210_v22  ;;  %v1219_v47 = vmul.f32 %v3904_v36, %v3123_v40  ;;  %v1224_v58 = vmul.f32 %v3900_v31, %v2820_v57  ;;  %v1225_v15 = vmul.f32 %v3902_v45, %v2900_v46 }
 0x128   :  { %v1218_v41 = vadd.f32 %v1217_v54, %v1216_v21  ;;  %v1221_v18 = vmul.f32 %v3906_v0, %v3201_v28  ;;  %v1232_v48 = vmul.f32 %v3908_v52, %v2635_v60  ;;  %v1233_v12 = vmul.f32 %v3910_v37, %v2801_v42 }
 0x129   :  { %v1240_v53 = vmul.f32 %v3908_v52, %v2689_v33  ;;  %v1241_v39 = vmul.f32 %v3910_v37, %v2831_v4  ;;  %v1248_v31 = vmul.f32 %v3908_v52, %v2785_v38  ;;  %v1249_v45 = vmul.f32 %v3910_v37, %v2893_v44 }
 0x12a   :  { %v4072_v22 = vmul.f32 0.16666667, %v1198_v27  ;;  %v1206_v63 = vadd.f32 %v1205_v13, %v1204_v62  ;;  %v1256_v21 = vmul.f32 %v3908_v52, %v2820_v57  ;;  %v1257_v54 = vmul.f32 %v3910_v37, %v2900_v46 }
 0x12b   :  { %v1214_v26 = vadd.f32 %v1213_v25, %v1212_v2  ;;  %v1226_v1 = vadd.f32 %v1225_v15, %v1224_v58  ;;  %v1227_v43 = vmul.f32 %v3904_v36, %v3141_v51  ;;  %v1229_v59 = vmul.f32 %v3906_v0, %v3223_v49 }
 0x12c   :  { %v1220_v32 = vadd.f32 %v1219_v47, %v1218_v41  ;;  %v1234_v3 = vadd.f32 %v1233_v12, %v1232_v48  ;;  %v1235_v27 = vmul.f32 %v3916_v29, %v2945_v7  ;;  %v1237_v13 = vmul.f32 %v3930_v14, %v3143_v8 }
 0x12d   :  { %v1242_v52 = vadd.f32 %v1241_v39, %v1240_v53  ;;  %v1243_v37 = vmul.f32 %v3916_v29, %v5456_v23  ;;  %v1250_v62 = vadd.f32 %v1249_v45, %v1248_v31  ;;  %v1251_v25 = vmul.f32 %v3916_v29, %v3123_v40 }
 0x12e   :  { %v1258_v36 = vadd.f32 %v1257_v54, %v1256_v21  ;;  %v1259_v0 = vmul.f32 %v3916_v29, %v3141_v51  ;;  %v1264_v2 = vmul.f32 %v3942_v34, %v2635_v60  ;;  %v1265_v47 = vmul.f32 %v3962_v9, %v2801_v42 }
 0x12f   :  { %v1228_v58 = vadd.f32 %v1227_v43, %v1226_v1  ;;  %v1245_v15 = vmul.f32 %v3930_v14, %v3168_v6  ;;  %v1272_v41 = vmul.f32 %v3942_v34, %v2689_v33  ;;  %v1273_v48 = vmul.f32 %v3962_v9, %v2831_v4 }
 0x130   :  { %v1236_v12 = vadd.f32 %v1235_v27, %v1234_v3  ;;  %v1253_v29 = vmul.f32 %v3930_v14, %v3201_v28  ;;  %v1288_v60 = vmul.f32 %v3942_v34, %v2820_v57  ;;  %v1289_v42 = vmul.f32 %v3962_v9, %v2900_v46 }
 0x131   :  { %v1244_v43 = vadd.f32 %v1243_v37, %v1242_v52  ;;  %v1261_v1 = vmul.f32 %v3930_v14, %v3223_v49  ;;  %v1280_v33 = vmul.f32 %v3942_v34, %v2785_v38  ;;  %v1281_v4 = vmul.f32 %v3962_v9, %v2893_v44 }
 0x132   :  { %v1252_v3 = vadd.f32 %v1251_v25, %v1250_v62  ;;  %v1260_v53 = vadd.f32 %v1259_v0, %v1258_v36  ;;  %v1266_v39 = vadd.f32 %v1265_v47, %v1264_v2  ;;  %v1267_v31 = vmul.f32 %v4000_v11, %v2945_v7 }
 0x133   :  { %v1274_v57 = vadd.f32 %v1273_v48, %v1272_v41  ;;  %v1275_v46 = vmul.f32 %v4000_v11, %v5456_v23  ;;  %v1290_v45 = vadd.f32 %v1289_v42, %v1288_v60  ;;  %v1291_v14 = vmul.f32 %v4000_v11, %v3141_v51  ;;  %v5507_v48 = vld [vmem:[#allocation18_spill] sm:$0xff]  ;;  %v5509_v42 = vld [vmem:[#allocation20_spill] sm:$0xff] }
 0x134   :  { %v1207_v21 = vmul.f32 0.16666667, %v1206_v63  ;;  %v1222_v54 = vadd.f32 %v1221_v18, %v1220_v32  ;;  %v1230_v38 = vadd.f32 %v1229_v59, %v1228_v58  ;;  %v1238_v34 = vadd.f32 %v1237_v13, %v1236_v12 }
 0x135   :  { %v1215_v27 = vmul.f32 0.16666667, %v1214_v26  ;;  %v1246_v44 = vadd.f32 %v1245_v15, %v1244_v43  ;;  %v1282_v9 = vadd.f32 %v1281_v4, %v1280_v33  ;;  %v1283_v52 = vmul.f32 %v4000_v11, %v3123_v40 }
 0x136   :  { %v1254_v37 = vadd.f32 %v1253_v29, %v1252_v3  ;;  %v1268_v7 = vadd.f32 %v1267_v31, %v1266_v39  ;;  %v1269_v62 = vmul.f32 %v4040_v35, %v3143_v8  ;;  %v1277_v23 = vmul.f32 %v4040_v35, %v3168_v6  ;;  %v5508_v29 = vld [vmem:[#allocation19_spill] sm:$0xff] }
 0x137   :  { %v1262_v25 = vadd.f32 %v1261_v1, %v1260_v53  ;;  %v1276_v51 = vadd.f32 %v1275_v46, %v1274_v57  ;;  %v1292_v63 = vadd.f32 %v1291_v14, %v1290_v45  ;;  %v1293_v32 = vmul.f32 %v4040_v35, %v3223_v49  ;;  %v5510_v53 = vld [vmem:[#allocation16_spill] sm:$0xff] }
 0x138   :  { %v1223_v59 = vmul.f32 0.16666667, %v1222_v54  ;;  %v1231_v26 = vmul.f32 0.16666667, %v1230_v38  ;;  %v1239_v18 = vmul.f32 0.16666667, %v1238_v34  ;;  %v1285_v40 = vmul.f32 %v4040_v35, %v3201_v28 }
 0x139   :  { %v1284_v13 = vadd.f32 %v1283_v52, %v1282_v9  ;;  %v4132_v36 = vadd.f32 %v4042_v5, %v3946_v24  ;;  %v4136_v8 = vadd.f32 %v4044_v55, %v3950_v20  ;;  %v4139_v6 = vadd.f32 %v1207_v21, %v3974_v30  ;;  %v5511_v21 = vld [vmem:[#allocation21_spill] sm:$0xff]  ;;  %v5512_v38 = vld [vmem:[#allocation11_spill] sm:$0xff] }
 0x13a   :  { %v1167_v49 = vadd.f32 %v4040_v35, %v3898_v16  ;;  %v1247_v0 = vmul.f32 0.16666667, %v1246_v44  ;;  %v1270_v2 = vadd.f32 %v1269_v62, %v1268_v7  ;;  %v4144_v47 = vadd.f32 %v1215_v27, %v3990_v10  ;;  %v5506_v35 = vld [vmem:[#allocation17_spill] sm:$0xff] }
 0x13b   :  { %v1255_v28 = vmul.f32 0.16666667, %v1254_v37  ;;  %v1263_v58 = vmul.f32 0.16666667, %v1262_v25  ;;  %v1278_v15 = vadd.f32 %v1277_v23, %v1276_v51  ;;  %v1294_v24 = vadd.f32 %v1293_v32, %v1292_v63 }
 0x13c   :  { %v4148_v5 = vadd.f32 %v4048_v61, %v3966_v17  ;;  %v4152_v20 = vadd.f32 %v4072_v22, %v3970_v50  ;;  %v4155_v30 = vadd.f32 %v1223_v59, %v3994_v19  ;;  %v4158_v16 = vadd.f32 %v1231_v26, %v4004_v56 }
 0x13d   :  { %v1286_v10 = vadd.f32 %v1285_v40, %v1284_v13  ;;  %v4161_v55 = vadd.f32 %v1239_v18, %v5506_v35  ;;  %v1312_v41 = vmul.f32 %v4132_v36, %v4132_v36  ;;  %v1313_v17 = vmul.f32 %v4139_v6, %v4136_v8 }
 0x13e   :  { %v1271_v61 = vmul.f32 0.16666667, %v1270_v2  ;;  %v4168_v50 = vadd.f32 %v1247_v0, %v5507_v48  ;;  %v1319_v19 = vmul.f32 %v4136_v8, %v4132_v36  ;;  %v1320_v56 = vmul.f32 %v4144_v47, %v4136_v8 }
 0x13f   :  { %v1279_v22 = vmul.f32 0.16666667, %v1278_v15  ;;  %v1295_v12 = vmul.f32 0.16666667, %v1294_v24  ;;  %v4175_v60 = vadd.f32 %v1255_v28, %v5508_v29  ;;  %v4178_v43 = vadd.f32 %v1263_v58, %v5509_v42 }
 0x140   :  { %v1326_v1 = vmul.f32 %v4148_v5, %v4132_v36  ;;  %v1327_v33 = vmul.f32 %v4155_v30, %v4136_v8  ;;  %v1333_v4 = vmul.f32 %v4152_v20, %v4132_v36  ;;  %v1334_v3 = vmul.f32 %v4158_v16, %v4136_v8 }
 0x141   :  { %v1166_v39 = vadd.f32 %v4000_v11, %v5510_v53  ;;  %v1287_v31 = vmul.f32 0.16666667, %v1286_v10  ;;  %v1314_v57 = vadd.f32 %v1313_v17, %v1312_v41  ;;  %v1315_v46 = vmul.f32 %v4161_v55, %v4148_v5 }
 0x142   :  { %v1321_v45 = vadd.f32 %v1320_v56, %v1319_v19  ;;  %v1322_v14 = vmul.f32 %v4168_v50, %v4148_v5  ;;  %v4195_v54 = vadd.f32 %v1271_v61, %v5511_v21  ;;  %v4198_v34 = vadd.f32 %v1279_v22, %v5512_v38 }
 0x143   :  { %v4200_v27 = vadd.f32 %v1295_v12, %v1167_v49  ;;  %v1328_v44 = vadd.f32 %v1327_v33, %v1326_v1  ;;  %v1329_v11 = vmul.f32 %v4175_v60, %v4148_v5  ;;  %v1335_v9 = vadd.f32 %v1334_v3, %v1333_v4 }
 0x144   :  { %v1336_v52 = vmul.f32 %v4178_v43, %v4148_v5  ;;  %v4206_v37 = vadd.f32 %v1287_v31, %v1166_v39  ;;  %v1316_v7 = vadd.f32 %v1315_v46, %v1314_v57  ;;  %v4210_v62 = vmul.f32 %v4195_v54, %v4152_v20 }
 0x145   :  { %v1324_v23 = vmul.f32 %v4198_v34, %v4152_v20  ;;  %v1323_v25 = vadd.f32 %v1322_v14, %v1321_v45  ;;  %v1340_v51 = vmul.f32 %v4139_v6, %v4132_v36  ;;  %v1341_v63 = vmul.f32 %v4144_v47, %v4139_v6 }
 0x146   :  { %v1347_v32 = vmul.f32 %v4144_v47, %v4144_v47  ;;  %v1331_v59 = vmul.f32 %v4206_v37, %v4152_v20  ;;  %v1338_v26 = vmul.f32 %v4200_v27, %v4152_v20  ;;  %v1353_v18 = vmul.f32 %v4139_v6, %v4148_v5 }
 0x147   :  { %v1354_v40 = vmul.f32 %v4155_v30, %v4144_v47  ;;  %v1330_v13 = vadd.f32 %v1329_v11, %v1328_v44  ;;  %v1337_v49 = vadd.f32 %v1336_v52, %v1335_v9  ;;  %v1360_v0 = vmul.f32 %v4139_v6, %v4152_v20 }
 0x148   :  { %v1361_v2 = vmul.f32 %v4158_v16, %v4144_v47  ;;  %v4233_v28 = vadd.f32 %v4210_v62, %v1316_v7  ;;  %v1343_v58 = vmul.f32 %v4161_v55, %v4155_v30  ;;  %v1367_v15 = vmul.f32 %v4161_v55, %v4132_v36 }
 0x149   :  { %v1368_v24 = vmul.f32 %v4168_v50, %v4139_v6  ;;  %v4241_v10 = vadd.f32 %v1324_v23, %v1323_v25  ;;  %v1342_v35 = vadd.f32 %v1341_v63, %v1340_v51  ;;  %v1348_v41 = vadd.f32 %v1347_v32, %v1313_v17 }
 0x14a   :  { %v1349_v61 = vmul.f32 %v4168_v50, %v4155_v30  ;;  %v1345_v48 = vmul.f32 %v4195_v54, %v4158_v16  ;;  %v1351_v19 = vmul.f32 %v4198_v34, %v4158_v16  ;;  %v1355_v56 = vadd.f32 %v1354_v40, %v1353_v18 }
 0x14b   :  { %v1356_v22 = vmul.f32 %v4175_v60, %v4155_v30  ;;  %v4251_v12 = vadd.f32 %v1331_v59, %v1330_v13  ;;  %v4253_v29 = vadd.f32 %v1338_v26, %v1337_v49  ;;  %v1362_v42 = vadd.f32 %v1361_v2, %v1360_v0 }
 0x14c   :  { %v1363_v17 = vmul.f32 %v4178_v43, %v4155_v30  ;;  %v1369_v1 = vadd.f32 %v1368_v24, %v1367_v15  ;;  %v1370_v33 = vmul.f32 %v4175_v60, %v4161_v55  ;;  %v1374_v4 = vmul.f32 %v4161_v55, %v4136_v8 }
 0x14d   :  { %v1375_v3 = vmul.f32 %v4168_v50, %v4144_v47  ;;  %v1344_v53 = vadd.f32 %v1343_v58, %v1342_v35  ;;  %v1350_v39 = vadd.f32 %v1349_v61, %v1348_v41  ;;  %v1358_v31 = vmul.f32 %v4206_v37, %v4158_v16 }
 0x14e   :  { %v1365_v57 = vmul.f32 %v4200_v27, %v4158_v16  ;;  %v1357_v45 = vadd.f32 %v1356_v22, %v1355_v56  ;;  %v1372_v14 = vmul.f32 %v4195_v54, %v4178_v43  ;;  %v1386_v21 = vmul.f32 %v4161_v55, %v4152_v20 }
 0x14f   :  { %v1387_v38 = vmul.f32 %v4168_v50, %v4158_v16  ;;  %v1364_v44 = vadd.f32 %v1363_v17, %v1362_v42  ;;  %v1377_v11 = vmul.f32 %v4175_v60, %v4168_v50  ;;  %v1393_v9 = vmul.f32 %v4195_v54, %v4132_v36 }
 0x150   :  { %v1394_v52 = vmul.f32 %v4198_v34, %v4139_v6  ;;  %v1371_v7 = vadd.f32 %v1370_v33, %v1369_v1  ;;  %v1376_v23 = vadd.f32 %v1375_v3, %v1374_v4  ;;  %v1381_v25 = vadd.f32 %v1349_v61, %v1315_v46 }
 0x151   :  { %v1382_v51 = vmul.f32 %v4175_v60, %v4175_v60  ;;  %v4281_v20 = vadd.f32 %v1345_v48, %v1344_v53  ;;  %v4283_v63 = vadd.f32 %v1351_v19, %v1350_v39  ;;  %v1400_v16 = vmul.f32 %v4195_v54, %v4136_v8 }
 0x152   :  { %v1401_v32 = vmul.f32 %v4198_v34, %v4144_v47  ;;  %v4289_v36 = vadd.f32 %v1358_v31, %v1357_v45  ;;  %v1379_v6 = vmul.f32 %v4198_v34, %v4178_v43  ;;  %v1388_v59 = vadd.f32 %v1387_v38, %v1386_v21 }
 0x153   :  { %v1389_v46 = vmul.f32 %v4178_v43, %v4175_v60  ;;  %v1395_v26 = vadd.f32 %v1394_v52, %v1393_v9  ;;  %v1396_v18 = vmul.f32 %v4206_v37, %v4161_v55  ;;  %v1407_v40 = vmul.f32 %v4195_v54, %v4148_v5 }
 0x154   :  { %v1408_v8 = vmul.f32 %v4198_v34, %v4155_v30  ;;  %v4301_v47 = vadd.f32 %v1365_v57, %v1364_v44  ;;  %v4303_v13 = vadd.f32 %v1372_v14, %v1371_v7  ;;  %v1378_v49 = vadd.f32 %v1377_v11, %v1376_v23 }
 0x155   :  { %v1383_v0 = vadd.f32 %v1382_v51, %v1381_v25  ;;  %v1402_v2 = vadd.f32 %v1401_v32, %v1400_v16  ;;  %v1403_v58 = vmul.f32 %v4206_v37, %v4168_v50  ;;  %v1418_v15 = vmul.f32 %v4233_v28, %v4233_v28 }
 0x156   :  { %v1419_v55 = vmul.f32 %v4281_v20, %v4241_v10  ;;  %v1384_v5 = vmul.f32 %v4206_v37, %v4178_v43  ;;  %v1390_v30 = vadd.f32 %v1389_v46, %v1388_v59  ;;  %v1391_v24 = vmul.f32 %v4200_v27, %v4178_v43 }
 0x157   :  { %v1398_v35 = vmul.f32 %v4200_v27, %v4195_v54  ;;  %v1397_v41 = vadd.f32 %v1396_v18, %v1395_v26  ;;  %v1409_v61 = vadd.f32 %v1408_v8, %v1407_v40  ;;  %v1410_v50 = vmul.f32 %v4206_v37, %v4175_v60 }
 0x158   :  { %v1414_v48 = vadd.f32 %v1351_v19, %v4210_v62  ;;  %v4320_v56 = vadd.f32 %v1379_v6, %v1378_v49  ;;  %v4322_v22 = vadd.f32 %v1384_v5, %v1383_v0  ;;  %v1425_v42 = vmul.f32 %v4241_v10, %v4233_v28 }
 0x159   :  { %v1426_v43 = vmul.f32 %v4283_v63, %v4241_v10  ;;  %v1404_v17 = vadd.f32 %v1403_v58, %v1402_v2  ;;  %v1405_v54 = vmul.f32 %v4200_v27, %v4198_v34  ;;  %v1420_v1 = vadd.f32 %v1419_v55, %v1418_v15 }
 0x15a   :  { %v4332_v60 = vmul.f32 %v4303_v13, %v4251_v12  ;;  %v4334_v62 = vadd.f32 %v1391_v24, %v1390_v30  ;;  %v1412_v19 = vmul.f32 %v4200_v27, %v4206_v37  ;;  %v1432_v33 = vmul.f32 %v4251_v12, %v4233_v28 }
 0x15b   :  { %v1433_v4 = vmul.f32 %v4289_v36, %v4241_v10  ;;  %v4342_v3 = vadd.f32 %v1398_v35, %v1397_v41  ;;  %v1411_v53 = vadd.f32 %v1410_v50, %v1409_v61  ;;  %v1415_v34 = vadd.f32 %v1414_v48, %v1384_v5 }
 0x15c   :  { %v1416_v39 = vmul.f32 %v4200_v27, %v4200_v27  ;;  %v1427_v31 = vadd.f32 %v1426_v43, %v1425_v42  ;;  %v1428_v57 = vmul.f32 %v4320_v56, %v4251_v12  ;;  %v1439_v37 = vmul.f32 %v4253_v29, %v4233_v28 }
 0x15d   :  { %v1440_v45 = vmul.f32 %v4301_v47, %v4241_v10  ;;  %v4352_v14 = vadd.f32 %v1405_v54, %v1404_v17  ;;  %v1422_v21 = vadd.f32 %v4332_v60, %v1420_v1  ;;  %v4357_v38 = vmul.f32 %v4342_v3, %v4253_v29 }
 0x15e   :  { %v1434_v44 = vadd.f32 %v1433_v4, %v1432_v33  ;;  %v1435_v27 = vmul.f32 %v4322_v22, %v4251_v12  ;;  %v1446_v11 = vmul.f32 %v4281_v20, %v4233_v28  ;;  %v1447_v9 = vmul.f32 %v4283_v63, %v4281_v20 }
 0x15f   :  { %v4365_v52 = vadd.f32 %v1412_v19, %v1411_v53  ;;  %v4367_v7 = vadd.f32 %v1416_v39, %v1415_v34  ;;  %v1429_v23 = vadd.f32 %v1428_v57, %v1427_v31  ;;  %v1430_v25 = vmul.f32 %v4352_v14, %v4253_v29 }
 0x160   :  { %v1441_v51 = vadd.f32 %v1440_v45, %v1439_v37  ;;  %v1442_v16 = vmul.f32 %v4334_v62, %v4251_v12  ;;  %v4374_v32 = vadd.f32 %v4357_v38, %v1422_v21  ;;  %v1436_v59 = vadd.f32 %v1435_v27, %v1434_v44 }
 0x161   :  { %v1437_v6 = vmul.f32 %v4365_v52, %v4253_v29  ;;  %v1448_v46 = vadd.f32 %v1447_v9, %v1446_v11  ;;  %v1449_v26 = vmul.f32 %v4303_v13, %v4289_v36  ;;  %v1453_v18 = vmul.f32 %v4283_v63, %v4283_v63 }
 0x162   :  { %v1459_v40 = vmul.f32 %v4281_v20, %v4251_v12  ;;  %v1460_v8 = vmul.f32 %v4289_v36, %v4283_v63  ;;  %v1466_v49 = vmul.f32 %v4281_v20, %v4253_v29  ;;  %v1467_v0 = vmul.f32 %v4301_v47, %v4283_v63 }
 0x163   :  { %v4390_v2 = vadd.f32 %v1430_v25, %v1429_v23  ;;  %v1443_v58 = vadd.f32 %v1442_v16, %v1441_v51  ;;  %v1444_v15 = vmul.f32 %v4367_v7, %v4253_v29  ;;  %v1451_v5 = vmul.f32 %v4342_v3, %v4301_v47 }
 0x164   :  { %v1473_v30 = vmul.f32 %v4303_v13, %v4233_v28  ;;  %v1474_v24 = vmul.f32 %v4320_v56, %v4281_v20  ;;  %v1480_v35 = vmul.f32 %v4303_v13, %v4241_v10  ;;  %v1481_v41 = vmul.f32 %v4320_v56, %v4283_v63 }
 0x165   :  { %v4404_v61 = vadd.f32 %v1437_v6, %v1436_v59  ;;  %v1450_v50 = vadd.f32 %v1449_v26, %v1448_v46  ;;  %v1454_v48 = vadd.f32 %v1453_v18, %v1419_v55  ;;  %v1455_v42 = vmul.f32 %v4320_v56, %v4289_v36 }
 0x166   :  { %v1461_v43 = vadd.f32 %v1460_v8, %v1459_v40  ;;  %v1462_v17 = vmul.f32 %v4322_v22, %v4289_v36  ;;  %v1468_v54 = vadd.f32 %v1467_v0, %v1466_v49  ;;  %v1469_v1 = vmul.f32 %v4334_v62, %v4289_v36 }
 0x167   :  { %v4412_v19 = vadd.f32 %v1444_v15, %v1443_v58  ;;  %v1457_v33 = vmul.f32 %v4352_v14, %v4301_v47  ;;  %v1492_v4 = vmul.f32 %v4303_v13, %v4253_v29  ;;  %v1493_v55 = vmul.f32 %v4320_v56, %v4301_v47 }
 0x168   :  { %v1475_v53 = vadd.f32 %v1474_v24, %v1473_v30  ;;  %v1476_v34 = vmul.f32 %v4322_v22, %v4303_v13  ;;  %v1482_v39 = vadd.f32 %v1481_v41, %v1480_v35  ;;  %v1483_v31 = vmul.f32 %v4322_v22, %v4320_v56 }
 0x169   :  { %v4424_v57 = vadd.f32 %v1451_v5, %v1450_v50  ;;  %v1456_v37 = vadd.f32 %v1455_v42, %v1454_v48  ;;  %v1464_v45 = vmul.f32 %v4365_v52, %v4301_v47  ;;  %v1471_v29 = vmul.f32 %v4367_v7, %v4301_v47 }
 0x16a   :  { %v1463_v21 = vadd.f32 %v1462_v17, %v1461_v43  ;;  %v1470_v44 = vadd.f32 %v1469_v1, %v1468_v54  ;;  %v1487_v27 = vadd.f32 %v1455_v42, %v4332_v60  ;;  %v1488_v11 = vmul.f32 %v4322_v22, %v4322_v22 }
 0x16b   :  { %v1494_v9 = vadd.f32 %v1493_v55, %v1492_v4  ;;  %v1495_v23 = vmul.f32 %v4334_v62, %v4322_v22  ;;  %v1499_v25 = vmul.f32 %v4342_v3, %v4233_v28  ;;  %v1500_v51 = vmul.f32 %v4352_v14, %v4281_v20 }
 0x16c   :  { %v1477_v16 = vadd.f32 %v1476_v34, %v1475_v53  ;;  %v1478_v47 = vmul.f32 %v4342_v3, %v4334_v62  ;;  %v1484_v6 = vadd.f32 %v1483_v31, %v1482_v39  ;;  %v1485_v60 = vmul.f32 %v4352_v14, %v4334_v62 }
 0x16d   :  { %v1506_v59 = vmul.f32 %v4342_v3, %v4241_v10  ;;  %v1507_v46 = vmul.f32 %v4352_v14, %v4283_v63  ;;  %v1513_v28 = vmul.f32 %v4342_v3, %v4251_v12  ;;  %v1514_v20 = vmul.f32 %v4352_v14, %v4289_v36 }
 0x16e   :  { %v4451_v26 = vadd.f32 %v1457_v33, %v1456_v37  ;;  %v4453_v18 = vadd.f32 %v1464_v45, %v1463_v21  ;;  %v4455_v40 = vadd.f32 %v1471_v29, %v1470_v44  ;;  %v1489_v8 = vadd.f32 %v1488_v11, %v1487_v27 }
 0x16f   :  { %v1496_v49 = vadd.f32 %v1495_v23, %v1494_v9  ;;  %v1497_v10 = vmul.f32 %v4367_v7, %v4334_v62  ;;  %v1501_v0 = vadd.f32 %v1500_v51, %v1499_v25  ;;  %v1502_v63 = vmul.f32 %v4365_v52, %v4303_v13 }
 0x170   :  { %v4461_v58 = vadd.f32 %v1478_v47, %v1477_v16  ;;  %v4463_v12 = vadd.f32 %v1485_v60, %v1484_v6  ;;  %v1490_v36 = vmul.f32 %v4365_v52, %v4334_v62  ;;  %v1509_v15 = vmul.f32 %v4365_v52, %v4320_v56 }
 0x171   :  { %v1508_v5 = vadd.f32 %v1507_v46, %v1506_v59  ;;  %v1515_v30 = vadd.f32 %v1514_v20, %v1513_v28  ;;  %v1516_v24 = vmul.f32 %v4365_v52, %v4322_v22  ;;  %v1520_v35 = vadd.f32 %v1457_v33, %v4357_v38 }
 0x172   :  { %v4472_v41 = vadd.f32 %v1490_v36, %v1489_v8  ;;  %v1504_v13 = vmul.f32 %v4367_v7, %v4342_v3  ;;  %v1524_v50 = vmul.f32 %v4374_v32, %v4374_v32  ;;  %v1525_v62 = vmul.f32 %v4424_v57, %v4390_v2 }
 0x173   :  { %v4480_v48 = vadd.f32 %v1497_v10, %v1496_v49  ;;  %v1503_v56 = vadd.f32 %v1502_v63, %v1501_v0  ;;  %v1511_v42 = vmul.f32 %v4367_v7, %v4352_v14  ;;  %v1518_v22 = vmul.f32 %v4367_v7, %v4365_v52 }
 0x174   :  { %v1531_v38 = vmul.f32 %v4390_v2, %v4374_v32  ;;  %v1532_v3 = vmul.f32 %v4451_v26, %v4390_v2  ;;  %v1538_v43 = vmul.f32 %v4404_v61, %v4374_v32  ;;  %v1539_v17 = vmul.f32 %v4453_v18, %v4390_v2 }
 0x175   :  { %v1510_v54 = vadd.f32 %v1509_v15, %v1508_v5  ;;  %v1517_v1 = vadd.f32 %v1516_v24, %v1515_v30  ;;  %v1521_v33 = vadd.f32 %v1520_v35, %v1490_v36  ;;  %v1522_v14 = vmul.f32 %v4367_v7, %v4367_v7 }
 0x176   :  { %v1526_v4 = vadd.f32 %v1525_v62, %v1524_v50  ;;  %v1527_v52 = vmul.f32 %v4461_v58, %v4404_v61  ;;  %v1545_v55 = vmul.f32 %v4412_v19, %v4374_v32  ;;  %v1546_v53 = vmul.f32 %v4455_v40, %v4390_v2 }
 0x177   :  { %v4502_v34 = vadd.f32 %v1504_v13, %v1503_v56  ;;  %v1552_v39 = vmul.f32 %v4424_v57, %v4374_v32  ;;  %v1553_v31 = vmul.f32 %v4451_v26, %v4424_v57  ;;  %v1533_v37 = vadd.f32 %v1532_v3, %v1531_v38 }
 0x178   :  { %v1534_v7 = vmul.f32 %v4463_v12, %v4404_v61  ;;  %v1540_v45 = vadd.f32 %v1539_v17, %v1538_v43  ;;  %v1541_v29 = vmul.f32 %v4472_v41, %v4404_v61  ;;  %v4512_v21 = vadd.f32 %v1511_v42, %v1510_v54 }
 0x179   :  { %v4514_v44 = vadd.f32 %v1518_v22, %v1517_v1  ;;  %v4516_v27 = vadd.f32 %v1522_v14, %v1521_v33  ;;  %v4520_v11 = vmul.f32 %v4502_v34, %v4412_v19  ;;  %v1528_v9 = vadd.f32 %v1527_v52, %v1526_v4 }
 0x17a   :  { %v1547_v23 = vadd.f32 %v1546_v53, %v1545_v55  ;;  %v1548_v25 = vmul.f32 %v4480_v48, %v4404_v61  ;;  %v1555_v51 = vmul.f32 %v4461_v58, %v4453_v18  ;;  %v1554_v16 = vadd.f32 %v1553_v31, %v1552_v39 }
 0x17b   :  { %v1559_v47 = vmul.f32 %v4451_v26, %v4451_v26  ;;  %v1565_v6 = vmul.f32 %v4424_v57, %v4404_v61  ;;  %v1566_v60 = vmul.f32 %v4453_v18, %v4451_v26  ;;  %v1535_v59 = vadd.f32 %v1534_v7, %v1533_v37 }
 0x17c   :  { %v1536_v46 = vmul.f32 %v4512_v21, %v4412_v19  ;;  %v1542_v28 = vadd.f32 %v1541_v29, %v1540_v45  ;;  %v1543_v20 = vmul.f32 %v4514_v44, %v4412_v19  ;;  %v1549_v8 = vadd.f32 %v1548_v25, %v1547_v23 }
 0x17d   :  { %v1550_v49 = vmul.f32 %v4516_v27, %v4412_v19  ;;  %v1557_v10 = vmul.f32 %v4502_v34, %v4455_v40  ;;  %v1561_v0 = vmul.f32 %v4463_v12, %v4453_v18  ;;  %v1556_v63 = vadd.f32 %v1555_v51, %v1554_v16 }
 0x17e   :  { %v1560_v36 = vadd.f32 %v1559_v47, %v1525_v62  ;;  %v1567_v15 = vadd.f32 %v1566_v60, %v1565_v6  ;;  %v1568_v5 = vmul.f32 %v4472_v41, %v4453_v18  ;;  %v4545_v30 = vadd.f32 %v4520_v11, %v1528_v9 }
 0x17f   :  { %v4547_v24 = vadd.f32 %v1536_v46, %v1535_v59  ;;  %v4549_v35 = vadd.f32 %v1543_v20, %v1542_v28  ;;  %v1563_v13 = vmul.f32 %v4512_v21, %v4455_v40  ;;  %v1579_v50 = vmul.f32 %v4461_v58, %v4374_v32 }
 0x180   :  { %v1580_v62 = vmul.f32 %v4463_v12, %v4424_v57  ;;  %v1586_v56 = vmul.f32 %v4461_v58, %v4390_v2  ;;  %v1587_v42 = vmul.f32 %v4463_v12, %v4451_v26  ;;  %v4561_v22 = vadd.f32 %v1550_v49, %v1549_v8 }
 0x181   :  { %v1570_v38 = vmul.f32 %v4514_v44, %v4455_v40  ;;  %v1572_v3 = vmul.f32 %v4424_v57, %v4412_v19  ;;  %v1573_v43 = vmul.f32 %v4455_v40, %v4451_v26  ;;  %v4569_v17 = vadd.f32 %v1557_v10, %v1556_v63 }
 0x182   :  { %v1562_v54 = vadd.f32 %v1561_v0, %v1560_v36  ;;  %v1569_v1 = vadd.f32 %v1568_v5, %v1567_v15  ;;  %v1575_v33 = vmul.f32 %v4480_v48, %v4453_v18  ;;  %v1598_v14 = vmul.f32 %v4461_v58, %v4412_v19 }
 0x183   :  { %v1599_v4 = vmul.f32 %v4463_v12, %v4455_v40  ;;  %v1605_v55 = vmul.f32 %v4502_v34, %v4374_v32  ;;  %v1606_v53 = vmul.f32 %v4512_v21, %v4424_v57  ;;  %v1581_v39 = vadd.f32 %v1580_v62, %v1579_v50 }
 0x184   :  { %v1582_v31 = vmul.f32 %v4472_v41, %v4461_v58  ;;  %v1588_v37 = vadd.f32 %v1587_v42, %v1586_v56  ;;  %v1589_v7 = vmul.f32 %v4472_v41, %v4463_v12  ;;  %v1574_v45 = vadd.f32 %v1573_v43, %v1572_v3 }
 0x185   :  { %v1577_v19 = vmul.f32 %v4516_v27, %v4455_v40  ;;  %v1593_v29 = vadd.f32 %v1561_v0, %v1527_v52  ;;  %v1594_v9 = vmul.f32 %v4472_v41, %v4472_v41  ;;  %v4589_v32 = vadd.f32 %v1563_v13, %v1562_v54 }
 0x186   :  { %v1584_v57 = vmul.f32 %v4502_v34, %v4480_v48  ;;  %v1612_v23 = vmul.f32 %v4502_v34, %v4390_v2  ;;  %v1613_v25 = vmul.f32 %v4512_v21, %v4451_v26  ;;  %v1600_v51 = vadd.f32 %v1599_v4, %v1598_v14 }
 0x187   :  { %v1601_v16 = vmul.f32 %v4480_v48, %v4472_v41  ;;  %v1607_v40 = vadd.f32 %v1606_v53, %v1605_v55  ;;  %v1608_v52 = vmul.f32 %v4514_v44, %v4461_v58  ;;  %v4601_v47 = vadd.f32 %v1570_v38, %v1569_v1 }
 0x188   :  { %v1583_v6 = vadd.f32 %v1582_v31, %v1581_v39  ;;  %v1590_v60 = vadd.f32 %v1589_v7, %v1588_v37  ;;  %v1591_v59 = vmul.f32 %v4512_v21, %v4480_v48  ;;  %v1576_v46 = vadd.f32 %v1575_v33, %v1574_v45 }
 0x189   :  { %v1595_v2 = vadd.f32 %v1594_v9, %v1593_v29  ;;  %v1596_v26 = vmul.f32 %v4514_v44, %v4480_v48  ;;  %v1603_v28 = vmul.f32 %v4516_v27, %v4480_v48  ;;  %v1614_v20 = vadd.f32 %v1613_v25, %v1612_v23 }
 0x18a   :  { %v1615_v8 = vmul.f32 %v4514_v44, %v4463_v12  ;;  %v1619_v58 = vmul.f32 %v4502_v34, %v4404_v61  ;;  %v1620_v49 = vmul.f32 %v4512_v21, %v4453_v18  ;;  %v1602_v10 = vadd.f32 %v1601_v16, %v1600_v51 }
 0x18b   :  { %v1609_v0 = vadd.f32 %v1608_v52, %v1607_v40  ;;  %v1610_v63 = vmul.f32 %v4516_v27, %v4502_v34  ;;  %v1626_v36 = vadd.f32 %v1563_v13, %v4520_v11  ;;  %v4618_v15 = vadd.f32 %v1584_v57, %v1583_v6 }
 0x18c   :  { %v4620_v48 = vadd.f32 %v1591_v59, %v1590_v60  ;;  %v1630_v12 = vmul.f32 %v4545_v30, %v4545_v30  ;;  %v1631_v61 = vmul.f32 %v4569_v17, %v4547_v24  ;;  %v4626_v5 = vadd.f32 %v1577_v19, %v1576_v46 }
 0x18d   :  { %v4628_v18 = vadd.f32 %v1596_v26, %v1595_v2  ;;  %v1637_v50 = vmul.f32 %v4547_v24, %v4545_v30  ;;  %v1638_v34 = vmul.f32 %v4589_v32, %v4547_v24  ;;  %v1616_v11 = vadd.f32 %v1615_v8, %v1614_v20 }
 0x18e   :  { %v1617_v13 = vmul.f32 %v4516_v27, %v4512_v21  ;;  %v1621_v62 = vadd.f32 %v1620_v49, %v1619_v58  ;;  %v1622_v56 = vmul.f32 %v4514_v44, %v4472_v41  ;;  %v4638_v42 = vadd.f32 %v1603_v28, %v1602_v10 }
 0x18f   :  { %v4640_v38 = vadd.f32 %v1610_v63, %v1609_v0  ;;  %v1627_v3 = vadd.f32 %v1626_v36, %v1596_v26  ;;  %v1628_v43 = vmul.f32 %v4516_v27, %v4516_v27  ;;  %v1632_v54 = vadd.f32 %v1631_v61, %v1630_v12 }
 0x190   :  { %v1633_v1 = vmul.f32 %v4618_v15, %v4549_v35  ;;  %v1640_v33 = vmul.f32 %v4620_v48, %v4549_v35  ;;  %v1644_v21 = vmul.f32 %v4549_v35, %v4545_v30  ;;  %v1639_v14 = vadd.f32 %v1638_v34, %v1637_v50 }
 0x191   :  { %v1645_v41 = vmul.f32 %v4601_v47, %v4547_v24  ;;  %v1651_v4 = vmul.f32 %v4561_v22, %v4545_v30  ;;  %v1652_v55 = vmul.f32 %v4626_v5, %v4547_v24  ;;  %v4656_v53 = vadd.f32 %v1617_v13, %v1616_v11 }
 0x192   :  { %v1623_v39 = vadd.f32 %v1622_v56, %v1621_v62  ;;  %v1624_v31 = vmul.f32 %v4516_v27, %v4514_v44  ;;  %v4662_v37 = vmul.f32 %v4640_v38, %v4561_v22  ;;  %v4664_v7 = vadd.f32 %v1628_v43, %v1627_v3 }
 0x193   :  { %v1634_v45 = vadd.f32 %v1633_v1, %v1632_v54  ;;  %v1642_v19 = vmul.f32 %v4656_v53, %v4561_v22  ;;  %v1647_v29 = vmul.f32 %v4628_v18, %v4549_v35  ;;  %v1641_v9 = vadd.f32 %v1640_v33, %v1639_v14 }
 0x194   :  { %v1646_v57 = vadd.f32 %v1645_v41, %v1644_v21  ;;  %v1653_v23 = vadd.f32 %v1652_v55, %v1651_v4  ;;  %v1654_v25 = vmul.f32 %v4638_v42, %v4549_v35  ;;  %v4672_v44 = vadd.f32 %v1624_v31, %v1623_v39 }
 0x195   :  { %v1658_v27 = vmul.f32 %v4569_v17, %v4545_v30  ;;  %v1659_v51 = vmul.f32 %v4589_v32, %v4569_v17  ;;  %v1665_v16 = vmul.f32 %v4589_v32, %v4589_v32  ;;  %v4681_v40 = vadd.f32 %v4662_v37, %v1634_v45 }
 0x196   :  { %v1649_v52 = vmul.f32 %v4672_v44, %v4561_v22  ;;  %v1671_v6 = vmul.f32 %v4569_v17, %v4549_v35  ;;  %v1672_v60 = vmul.f32 %v4601_v47, %v4589_v32  ;;  %v4689_v59 = vadd.f32 %v1642_v19, %v1641_v9 }
 0x197   :  { %v1648_v46 = vadd.f32 %v1647_v29, %v1646_v57  ;;  %v1655_v2 = vadd.f32 %v1654_v25, %v1653_v23  ;;  %v1656_v26 = vmul.f32 %v4664_v7, %v4561_v22  ;;  %v1660_v28 = vadd.f32 %v1659_v51, %v1658_v27 }
 0x198   :  { %v1661_v20 = vmul.f32 %v4618_v15, %v4601_v47  ;;  %v1666_v8 = vadd.f32 %v1665_v16, %v1631_v61  ;;  %v1667_v58 = vmul.f32 %v4620_v48, %v4601_v47  ;;  %v1674_v49 = vmul.f32 %v4628_v18, %v4601_v47 }
 0x199   :  { %v1678_v10 = vmul.f32 %v4569_v17, %v4561_v22  ;;  %v1685_v0 = vmul.f32 %v4618_v15, %v4545_v30  ;;  %v1686_v63 = vmul.f32 %v4620_v48, %v4569_v17  ;;  %v1673_v36 = vadd.f32 %v1672_v60, %v1671_v6 }
 0x19a   :  { %v1679_v12 = vmul.f32 %v4626_v5, %v4589_v32  ;;  %v1692_v61 = vmul.f32 %v4618_v15, %v4547_v24  ;;  %v1693_v50 = vmul.f32 %v4620_v48, %v4589_v32  ;;  %v4711_v34 = vadd.f32 %v1649_v52, %v1648_v46 }
 0x19b   :  { %v4713_v11 = vadd.f32 %v1656_v26, %v1655_v2  ;;  %v1663_v13 = vmul.f32 %v4640_v38, %v4626_v5  ;;  %v1669_v62 = vmul.f32 %v4656_v53, %v4626_v5  ;;  %v1662_v56 = vadd.f32 %v1661_v20, %v1660_v28 }
 0x19c   :  { %v1676_v3 = vmul.f32 %v4672_v44, %v4626_v5  ;;  %v1704_v43 = vmul.f32 %v4618_v15, %v4561_v22  ;;  %v1705_v54 = vmul.f32 %v4620_v48, %v4626_v5  ;;  %v1668_v33 = vadd.f32 %v1667_v58, %v1666_v8 }
 0x19d   :  { %v1681_v21 = vmul.f32 %v4638_v42, %v4601_v47  ;;  %v1687_v14 = vadd.f32 %v1686_v63, %v1685_v0  ;;  %v1688_v41 = vmul.f32 %v4628_v18, %v4618_v15  ;;  %v1675_v4 = vadd.f32 %v1674_v49, %v1673_v36 }
 0x19e   :  { %v1680_v55 = vadd.f32 %v1679_v12, %v1678_v10  ;;  %v1694_v39 = vadd.f32 %v1693_v50, %v1692_v61  ;;  %v1695_v31 = vmul.f32 %v4628_v18, %v4620_v48  ;;  %v1699_v45 = vadd.f32 %v1667_v58, %v1633_v1 }
 0x19f   :  { %v1700_v22 = vmul.f32 %v4628_v18, %v4628_v18  ;;  %v1711_v19 = vmul.f32 %v4640_v38, %v4545_v30  ;;  %v1712_v29 = vmul.f32 %v4656_v53, %v4569_v17  ;;  %v4737_v9 = vadd.f32 %v1663_v13, %v1662_v56 }
 0x1a0   :  { %v1683_v57 = vmul.f32 %v4664_v7, %v4626_v5  ;;  %v1706_v23 = vadd.f32 %v1705_v54, %v1704_v43  ;;  %v1707_v25 = vmul.f32 %v4638_v42, %v4628_v18  ;;  %v1689_v27 = vadd.f32 %v1688_v41, %v1687_v14 }
 0x1a1   :  { %v1690_v1 = vmul.f32 %v4640_v38, %v4638_v42  ;;  %v1718_v51 = vmul.f32 %v4640_v38, %v4547_v24  ;;  %v1719_v30 = vmul.f32 %v4656_v53, %v4589_v32  ;;  %v4749_v17 = vadd.f32 %v1669_v62, %v1668_v33 }
 0x1a2   :  { %v1682_v16 = vadd.f32 %v1681_v21, %v1680_v55  ;;  %v1696_v52 = vadd.f32 %v1695_v31, %v1694_v39  ;;  %v1697_v5 = vmul.f32 %v4656_v53, %v4638_v42  ;;  %v4753_v6 = vadd.f32 %v1676_v3, %v1675_v4 }
 0x1a3   :  { %v1701_v60 = vadd.f32 %v1700_v22, %v1699_v45  ;;  %v1713_v46 = vadd.f32 %v1712_v29, %v1711_v19  ;;  %v1714_v2 = vmul.f32 %v4672_v44, %v4618_v15  ;;  %v1708_v26 = vadd.f32 %v1707_v25, %v1706_v23 }
 0x1a4   :  { %v1709_v24 = vmul.f32 %v4664_v7, %v4638_v42  ;;  %v1725_v32 = vmul.f32 %v4640_v38, %v4549_v35  ;;  %v1726_v28 = vmul.f32 %v4656_v53, %v4601_v47  ;;  %v4763_v20 = vadd.f32 %v1690_v1, %v1689_v27 }
 0x1a5   :  { %v1702_v8 = vmul.f32 %v4672_v44, %v4638_v42  ;;  %v1720_v58 = vadd.f32 %v1719_v30, %v1718_v51  ;;  %v1721_v49 = vmul.f32 %v4672_v44, %v4620_v48  ;;  %v4769_v15 = vadd.f32 %v1683_v57, %v1682_v16 }
 0x1a6   :  { %v4771_v10 = vadd.f32 %v1697_v5, %v1696_v52  ;;  %v1736_v0 = vmul.f32 %v4681_v40, %v4681_v40  ;;  %v1737_v35 = vmul.f32 %v4737_v9, %v4689_v59  ;;  %v1715_v63 = vadd.f32 %v1714_v2, %v1713_v46 }
 0x1a7   :  { %v4777_v47 = vadd.f32 %v1702_v8, %v1701_v60  ;;  %v1716_v42 = vmul.f32 %v4664_v7, %v4640_v38  ;;  %v1732_v36 = vadd.f32 %v1669_v62, %v4662_v37  ;;  %v4782_v12 = vadd.f32 %v1709_v24, %v1708_v26 }
 0x1a8   :  { %v1723_v48 = vmul.f32 %v4664_v7, %v4656_v53  ;;  %v1727_v61 = vadd.f32 %v1726_v28, %v1725_v32  ;;  %v1728_v50 = vmul.f32 %v4672_v44, %v4628_v18  ;;  %v1722_v13 = vadd.f32 %v1721_v49, %v1720_v58 }
 0x1a9   :  { %v1734_v56 = vmul.f32 %v4664_v7, %v4664_v7  ;;  %v4792_v3 = vmul.f32 %v4763_v20, %v4711_v34  ;;  %v1743_v38 = vmul.f32 %v4689_v59, %v4681_v40  ;;  %v1738_v37 = vadd.f32 %v1737_v35, %v1736_v0 }
 0x1aa   :  { %v1744_v62 = vmul.f32 %v4749_v17, %v4689_v59  ;;  %v1750_v53 = vmul.f32 %v4711_v34, %v4681_v40  ;;  %v1751_v18 = vmul.f32 %v4753_v6, %v4689_v59  ;;  %v4802_v43 = vadd.f32 %v1716_v42, %v1715_v63 }
 0x1ab   :  { %v1733_v54 = vadd.f32 %v1732_v36, %v1702_v8  ;;  %v1757_v33 = vmul.f32 %v4713_v11, %v4681_v40  ;;  %v1758_v21 = vmul.f32 %v4769_v15, %v4689_v59  ;;  %v1729_v14 = vadd.f32 %v1728_v50, %v1727_v61 }
 0x1ac   :  { %v1730_v41 = vmul.f32 %v4664_v7, %v4672_v44  ;;  %v1764_v4 = vmul.f32 %v4737_v9, %v4681_v40  ;;  %v1765_v55 = vmul.f32 %v4749_v17, %v4737_v9  ;;  %v4814_v39 = vadd.f32 %v1723_v48, %v1722_v13 }
 0x1ad   :  { %v4818_v31 = vmul.f32 %v4802_v43, %v4713_v11  ;;  %v1746_v45 = vmul.f32 %v4771_v10, %v4711_v34  ;;  %v1771_v22 = vmul.f32 %v4749_v17, %v4749_v17  ;;  %v1740_v7 = vadd.f32 %v4792_v3, %v1738_v37 }
 0x1ae   :  { %v1745_v44 = vadd.f32 %v1744_v62, %v1743_v38  ;;  %v1752_v19 = vadd.f32 %v1751_v18, %v1750_v53  ;;  %v1753_v29 = vmul.f32 %v4777_v47, %v4711_v34  ;;  %v4827_v57 = vadd.f32 %v1734_v56, %v1733_v54 }
 0x1af   :  { %v1759_v23 = vadd.f32 %v1758_v21, %v1757_v33  ;;  %v1760_v25 = vmul.f32 %v4782_v12, %v4711_v34  ;;  %v4831_v27 = vadd.f32 %v1730_v41, %v1729_v14  ;;  %v1748_v1 = vmul.f32 %v4814_v39, %v4713_v11 }
 0x1b0   :  { %v1766_v51 = vadd.f32 %v1765_v55, %v1764_v4  ;;  %v1767_v30 = vmul.f32 %v4763_v20, %v4753_v6  ;;  %v1772_v16 = vadd.f32 %v1771_v22, %v1737_v35  ;;  %v1773_v52 = vmul.f32 %v4771_v10, %v4753_v6 }
 0x1b1   :  { %v1777_v5 = vmul.f32 %v4737_v9, %v4711_v34  ;;  %v1778_v60 = vmul.f32 %v4753_v6, %v4749_v17  ;;  %v4844_v46 = vadd.f32 %v4818_v31, %v1740_v7  ;;  %v1747_v2 = vadd.f32 %v1746_v45, %v1745_v44 }
 0x1b2   :  { %v1754_v26 = vadd.f32 %v1753_v29, %v1752_v19  ;;  %v1755_v24 = vmul.f32 %v4831_v27, %v4713_v11  ;;  %v1761_v32 = vadd.f32 %v1760_v25, %v1759_v23  ;;  %v1762_v28 = vmul.f32 %v4827_v57, %v4713_v11 }
 0x1b3   :  { %v1791_v8 = vmul.f32 %v4763_v20, %v4681_v40  ;;  %v1792_v58 = vmul.f32 %v4771_v10, %v4737_v9  ;;  %v1768_v49 = vadd.f32 %v1767_v30, %v1766_v51  ;;  %v1769_v0 = vmul.f32 %v4802_v43, %v4769_v15 }
 0x1b4   :  { %v1775_v35 = vmul.f32 %v4814_v39, %v4769_v15  ;;  %v1780_v63 = vmul.f32 %v4777_v47, %v4753_v6  ;;  %v1774_v42 = vadd.f32 %v1773_v52, %v1772_v16  ;;  %v1779_v36 = vadd.f32 %v1778_v60, %v1777_v5 }
 0x1b5   :  { %v1784_v48 = vmul.f32 %v4737_v9, %v4713_v11  ;;  %v1785_v61 = vmul.f32 %v4769_v15, %v4749_v17  ;;  %v4864_v50 = vadd.f32 %v1748_v1, %v1747_v2  ;;  %v4866_v13 = vadd.f32 %v1755_v24, %v1754_v26 }
 0x1b6   :  { %v1798_v56 = vmul.f32 %v4763_v20, %v4689_v59  ;;  %v1799_v38 = vmul.f32 %v4771_v10, %v4749_v17  ;;  %v4872_v37 = vadd.f32 %v1762_v28, %v1761_v32  ;;  %v1782_v62 = vmul.f32 %v4831_v27, %v4769_v15 }
 0x1b7   :  { %v1793_v53 = vadd.f32 %v1792_v58, %v1791_v8  ;;  %v1794_v18 = vmul.f32 %v4777_v47, %v4763_v20  ;;  %v4878_v54 = vadd.f32 %v1769_v0, %v1768_v49  ;;  %v1787_v33 = vmul.f32 %v4782_v12, %v4753_v6 }
 0x1b8   :  { %v1817_v21 = vmul.f32 %v4802_v43, %v4681_v40  ;;  %v1818_v14 = vmul.f32 %v4814_v39, %v4737_v9  ;;  %v4886_v41 = vadd.f32 %v1775_v35, %v1774_v42  ;;  %v1781_v4 = vadd.f32 %v1780_v63, %v1779_v36 }
 0x1b9   :  { %v1786_v55 = vadd.f32 %v1785_v61, %v1784_v48  ;;  %v1789_v45 = vmul.f32 %v4827_v57, %v4769_v15  ;;  %v1800_v22 = vadd.f32 %v1799_v38, %v1798_v56  ;;  %v1801_v7 = vmul.f32 %v4777_v47, %v4771_v10 }
 0x1ba   :  { %v1805_v44 = vadd.f32 %v1773_v52, %v4792_v3  ;;  %v1806_v19 = vmul.f32 %v4777_v47, %v4777_v47  ;;  %v1795_v40 = vadd.f32 %v1794_v18, %v1793_v53  ;;  %v1796_v9 = vmul.f32 %v4802_v43, %v4782_v12 }
 0x1bb   :  { %v1810_v29 = vmul.f32 %v4763_v20, %v4713_v11  ;;  %v1811_v23 = vmul.f32 %v4771_v10, %v4769_v15  ;;  %v1819_v25 = vadd.f32 %v1818_v14, %v1817_v21  ;;  %v1820_v1 = vmul.f32 %v4831_v27, %v4763_v20 }
 0x1bc   :  { %v1824_v3 = vmul.f32 %v4802_v43, %v4689_v59  ;;  %v1825_v51 = vmul.f32 %v4814_v39, %v4749_v17  ;;  %v4907_v30 = vadd.f32 %v1782_v62, %v1781_v4  ;;  %v1788_v16 = vadd.f32 %v1787_v33, %v1786_v55 }
 0x1bd   :  { %v1831_v52 = vmul.f32 %v4802_v43, %v4711_v34  ;;  %v1832_v11 = vmul.f32 %v4814_v39, %v4753_v6  ;;  %v1802_v15 = vadd.f32 %v1801_v7, %v1800_v22  ;;  %v1803_v5 = vmul.f32 %v4814_v39, %v4782_v12 }
 0x1be   :  { %v1807_v20 = vadd.f32 %v1806_v19, %v1805_v44  ;;  %v1808_v59 = vmul.f32 %v4831_v27, %v4782_v12  ;;  %v4917_v60 = vadd.f32 %v1796_v9, %v1795_v40  ;;  %v1812_v17 = vadd.f32 %v1811_v23, %v1810_v29 }
 0x1bf   :  { %v1813_v2 = vmul.f32 %v4782_v12, %v4777_v47  ;;  %v1822_v34 = vmul.f32 %v4827_v57, %v4802_v43  ;;  %v1821_v26 = vadd.f32 %v1820_v1, %v1819_v25  ;;  %v1826_v24 = vadd.f32 %v1825_v51, %v1824_v3 }
 0x1c0   :  { %v1827_v6 = vmul.f32 %v4831_v27, %v4771_v10  ;;  %v1838_v32 = vadd.f32 %v1775_v35, %v4818_v31  ;;  %v1833_v28 = vadd.f32 %v1832_v11, %v1831_v52  ;;  %v1834_v8 = vmul.f32 %v4831_v27, %v4777_v47 }
 0x1c1   :  { %v1842_v58 = vmul.f32 %v4844_v46, %v4844_v46  ;;  %v1843_v49 = vmul.f32 %v4878_v54, %v4864_v50  ;;  %v4932_v0 = vadd.f32 %v1789_v45, %v1788_v16  ;;  %v4934_v43 = vadd.f32 %v1803_v5, %v1802_v15 }
 0x1c2   :  { %v1849_v63 = vmul.f32 %v4864_v50, %v4844_v46  ;;  %v1850_v10 = vmul.f32 %v4886_v41, %v4864_v50  ;;  %v4940_v31 = vadd.f32 %v1808_v59, %v1807_v20  ;;  %v1814_v35 = vadd.f32 %v1813_v2, %v1812_v17 }
 0x1c3   :  { %v1815_v47 = vmul.f32 %v4827_v57, %v4782_v12  ;;  %v1829_v42 = vmul.f32 %v4827_v57, %v4814_v39  ;;  %v1828_v36 = vadd.f32 %v1827_v6, %v1826_v24  ;;  %v1836_v48 = vmul.f32 %v4827_v57, %v4831_v27 }
 0x1c4   :  { %v1839_v61 = vadd.f32 %v1838_v32, %v1808_v59  ;;  %v1840_v56 = vmul.f32 %v4827_v57, %v4827_v57  ;;  %v4950_v38 = vadd.f32 %v1822_v34, %v1821_v26  ;;  %v1835_v62 = vadd.f32 %v1834_v8, %v1833_v28 }
 0x1c5   :  { %v1844_v53 = vadd.f32 %v1843_v49, %v1842_v58  ;;  %v1845_v18 = vmul.f32 %v4917_v60, %v4866_v13  ;;  %v1851_v33 = vadd.f32 %v1850_v10, %v1849_v63  ;;  %v1852_v12 = vmul.f32 %v4934_v43, %v4866_v13 }
 0x1c6   :  { %v1856_v39 = vmul.f32 %v4866_v13, %v4844_v46  ;;  %v1857_v27 = vmul.f32 %v4907_v30, %v4864_v50  ;;  %v4960_v21 = vadd.f32 %v1815_v47, %v1814_v35  ;;  %v4962_v57 = vadd.f32 %v1829_v42, %v1828_v36 }
 0x1c7   :  { %v4964_v14 = vadd.f32 %v1840_v56, %v1839_v61  ;;  %v4968_v4 = vmul.f32 %v4950_v38, %v4872_v37  ;;  %v4970_v55 = vadd.f32 %v1836_v48, %v1835_v62  ;;  %v1846_v45 = vadd.f32 %v1845_v18, %v1844_v53 }
 0x1c8   :  { %v1863_v22 = vmul.f32 %v4872_v37, %v4844_v46  ;;  %v1864_v7 = vmul.f32 %v4932_v0, %v4864_v50  ;;  %v1853_v44 = vadd.f32 %v1852_v12, %v1851_v33  ;;  %v1854_v19 = vmul.f32 %v4962_v57, %v4872_v37 }
 0x1c9   :  { %v1858_v40 = vadd.f32 %v1857_v27, %v1856_v39  ;;  %v1859_v9 = vmul.f32 %v4940_v31, %v4866_v13  ;;  %v1870_v29 = vmul.f32 %v4878_v54, %v4844_v46  ;;  %v1871_v23 = vmul.f32 %v4886_v41, %v4878_v54 }
 0x1ca   :  { %v1877_v25 = vmul.f32 %v4886_v41, %v4886_v41  ;;  %v1861_v1 = vmul.f32 %v4970_v55, %v4872_v37  ;;  %v4989_v3 = vadd.f32 %v4968_v4, %v1846_v45  ;;  %v1865_v51 = vadd.f32 %v1864_v7, %v1863_v22 }
 0x1cb   :  { %v1866_v16 = vmul.f32 %v4960_v21, %v4866_v13  ;;  %v1868_v52 = vmul.f32 %v4964_v14, %v4872_v37  ;;  %v4995_v11 = vadd.f32 %v1854_v19, %v1853_v44  ;;  %v1860_v15 = vadd.f32 %v1859_v9, %v1858_v40 }
 0x1cc   :  { %v1883_v5 = vmul.f32 %v4878_v54, %v4866_v13  ;;  %v1884_v20 = vmul.f32 %v4907_v30, %v4886_v41  ;;  %v1872_v59 = vadd.f32 %v1871_v23, %v1870_v29  ;;  %v1873_v17 = vmul.f32 %v4917_v60, %v4907_v30 }
 0x1cd   :  { %v1878_v2 = vadd.f32 %v1877_v25, %v1843_v49  ;;  %v1879_v34 = vmul.f32 %v4934_v43, %v4907_v30  ;;  %v1890_v26 = vmul.f32 %v4878_v54, %v4872_v37  ;;  %v1891_v24 = vmul.f32 %v4932_v0, %v4886_v41 }
 0x1ce   :  { %v1897_v6 = vmul.f32 %v4917_v60, %v4844_v46  ;;  %v1898_v32 = vmul.f32 %v4934_v43, %v4878_v54  ;;  %v1867_v28 = vadd.f32 %v1866_v16, %v1865_v51  ;;  %v1875_v8 = vmul.f32 %v4950_v38, %v4932_v0 }
 0x1cf   :  { %v1904_v58 = vmul.f32 %v4917_v60, %v4864_v50  ;;  %v1905_v49 = vmul.f32 %v4934_v43, %v4886_v41  ;;  %v5019_v63 = vadd.f32 %v1861_v1, %v1860_v15  ;;  %v1881_v10 = vmul.f32 %v4962_v57, %v4932_v0 }
 0x1d0   :  { %v1885_v35 = vadd.f32 %v1884_v20, %v1883_v5  ;;  %v1886_v47 = vmul.f32 %v4940_v31, %v4907_v30  ;;  %v1874_v42 = vadd.f32 %v1873_v17, %v1872_v59  ;;  %v1880_v36 = vadd.f32 %v1879_v34, %v1878_v2 }
 0x1d1   :  { %v1916_v48 = vmul.f32 %v4917_v60, %v4872_v37  ;;  %v1917_v61 = vmul.f32 %v4934_v43, %v4932_v0  ;;  %v1892_v56 = vadd.f32 %v1891_v24, %v1890_v26  ;;  %v1893_v62 = vmul.f32 %v4960_v21, %v4907_v30 }
 0x1d2   :  { %v1899_v53 = vadd.f32 %v1898_v32, %v1897_v6  ;;  %v1900_v33 = vmul.f32 %v4940_v31, %v4917_v60  ;;  %v1906_v12 = vadd.f32 %v1905_v49, %v1904_v58  ;;  %v1907_v39 = vmul.f32 %v4940_v31, %v4934_v43 }
 0x1d3   :  { %v1911_v27 = vadd.f32 %v1879_v34, %v1845_v18  ;;  %v1912_v45 = vmul.f32 %v4940_v31, %v4940_v31  ;;  %v5037_v37 = vadd.f32 %v1868_v52, %v1867_v28  ;;  %v1887_v22 = vadd.f32 %v1886_v47, %v1885_v35 }
 0x1d4   :  { %v1888_v7 = vmul.f32 %v4970_v55, %v4932_v0  ;;  %v1895_v44 = vmul.f32 %v4964_v14, %v4932_v0  ;;  %v5043_v19 = vadd.f32 %v1875_v8, %v1874_v42  ;;  %v5045_v40 = vadd.f32 %v1881_v10, %v1880_v36 }
 0x1d5   :  { %v1918_v9 = vadd.f32 %v1917_v61, %v1916_v48  ;;  %v1919_v18 = vmul.f32 %v4960_v21, %v4940_v31  ;;  %v1894_v29 = vadd.f32 %v1893_v62, %v1892_v56  ;;  %v1901_v23 = vadd.f32 %v1900_v33, %v1899_v53 }
 0x1d6   :  { %v1902_v25 = vmul.f32 %v4950_v38, %v4960_v21  ;;  %v1909_v1 = vmul.f32 %v4962_v57, %v4960_v21  ;;  %v1908_v51 = vadd.f32 %v1907_v39, %v1906_v12  ;;  %v1913_v16 = vadd.f32 %v1912_v45, %v1911_v27 }
 0x1d7   :  { %v1923_v0 = vmul.f32 %v4950_v38, %v4844_v46  ;;  %v1924_v52 = vmul.f32 %v4962_v57, %v4878_v54  ;;  %v5057_v15 = vadd.f32 %v1888_v7, %v1887_v22  ;;  %v1914_v5 = vmul.f32 %v4970_v55, %v4960_v21 }
 0x1d8   :  { %v1930_v20 = vmul.f32 %v4950_v38, %v4864_v50  ;;  %v1931_v59 = vmul.f32 %v4962_v57, %v4886_v41  ;;  %v1920_v17 = vadd.f32 %v1919_v18, %v1918_v9  ;;  %v1921_v2 = vmul.f32 %v4964_v14, %v4960_v21 }
 0x1d9   :  { %v1937_v46 = vmul.f32 %v4950_v38, %v4866_v13  ;;  %v1938_v54 = vmul.f32 %v4962_v57, %v4907_v30  ;;  %v5071_v34 = vadd.f32 %v1895_v44, %v1894_v29  ;;  %v5073_v26 = vadd.f32 %v1902_v25, %v1901_v23 }
 0x1da   :  { %v1926_v50 = vmul.f32 %v4970_v55, %v4917_v60  ;;  %v1944_v24 = vadd.f32 %v1881_v10, %v4968_v4  ;;  %v5078_v41 = vadd.f32 %v1909_v1, %v1908_v51  ;;  %v5080_v6 = vadd.f32 %v1914_v5, %v1913_v16 }
 0x1db   :  { %v1925_v21 = vadd.f32 %v1924_v52, %v1923_v0  ;;  %v1928_v13 = vmul.f32 %v4964_v14, %v4950_v38  ;;  %v1932_v32 = vadd.f32 %v1931_v59, %v1930_v20  ;;  %v1933_v30 = vmul.f32 %v4970_v55, %v4934_v43 }
 0x1dc   :  { %v1935_v28 = vmul.f32 %v4964_v14, %v4962_v57  ;;  %v1940_v60 = vmul.f32 %v4970_v55, %v4940_v31  ;;  %v5090_v8 = vadd.f32 %v1921_v2, %v1920_v17  ;;  %v1939_v4 = vadd.f32 %v1938_v54, %v1937_v46 }
 0x1dd   :  { %v1948_v58 = vmul.f32 %v4989_v3, %v4989_v3  ;;  %v1949_v49 = vmul.f32 %v5043_v19, %v4995_v11  ;;  %v1945_v38 = vadd.f32 %v1944_v24, %v1914_v5  ;;  %v1946_v10 = vmul.f32 %v4964_v14, %v4964_v14 }
 0x1de   :  { %v1955_v43 = vmul.f32 %v4995_v11, %v4989_v3  ;;  %v1956_v57 = vmul.f32 %v5045_v40, %v4995_v11  ;;  %v1962_v31 = vmul.f32 %v5019_v63, %v4989_v3  ;;  %v1963_v35 = vmul.f32 %v5057_v15, %v4995_v11 }
 0x1df   :  { %v1969_v47 = vmul.f32 %v5037_v37, %v4989_v3  ;;  %v1970_v42 = vmul.f32 %v5071_v34, %v4995_v11  ;;  %v1927_v36 = vadd.f32 %v1926_v50, %v1925_v21  ;;  %v1934_v48 = vadd.f32 %v1933_v30, %v1932_v32 }
 0x1e0   :  { %v1942_v61 = vmul.f32 %v4964_v14, %v4970_v55  ;;  %v5114_v56 = vmul.f32 %v5073_v26, %v5019_v63  ;;  %v1941_v62 = vadd.f32 %v1940_v60, %v1939_v4  ;;  %v1950_v53 = vadd.f32 %v1949_v49, %v1948_v58 }
 0x1e1   :  { %v1976_v33 = vmul.f32 %v5043_v19, %v4989_v3  ;;  %v1977_v12 = vmul.f32 %v5045_v40, %v5043_v19  ;;  %v5120_v39 = vadd.f32 %v1946_v10, %v1945_v38  ;;  %v1957_v27 = vadd.f32 %v1956_v57, %v1955_v43 }
 0x1e2   :  { %v1958_v45 = vmul.f32 %v5078_v41, %v5019_v63  ;;  %v1983_v14 = vmul.f32 %v5045_v40, %v5045_v40  ;;  %v1964_v55 = vadd.f32 %v1963_v35, %v1962_v31  ;;  %v1965_v22 = vmul.f32 %v5080_v6, %v5019_v63 }
 0x1e3   :  { %v1971_v7 = vadd.f32 %v1970_v42, %v1969_v47  ;;  %v1972_v44 = vmul.f32 %v5090_v8, %v5019_v63  ;;  %v5130_v9 = vadd.f32 %v1928_v13, %v1927_v36  ;;  %v5132_v18 = vadd.f32 %v1935_v28, %v1934_v48 }
 0x1e4   :  { %v5134_v29 = vadd.f32 %v1942_v61, %v1941_v62  ;;  %v1952_v23 = vadd.f32 %v5114_v56, %v1950_v53  ;;  %v1978_v25 = vadd.f32 %v1977_v12, %v1976_v33  ;;  %v1979_v1 = vmul.f32 %v5073_v26, %v5057_v15 }
 0x1e5   :  { %v1959_v51 = vadd.f32 %v1958_v45, %v1957_v27  ;;  %v1960_v16 = vmul.f32 %v5132_v18, %v5037_v37  ;;  %v1984_v0 = vadd.f32 %v1983_v14, %v1949_v49  ;;  %v1985_v52 = vmul.f32 %v5078_v41, %v5057_v15 }
 0x1e6   :  { %v1966_v5 = vadd.f32 %v1965_v22, %v1964_v55  ;;  %v1967_v20 = vmul.f32 %v5134_v29, %v5037_v37  ;;  %v1973_v59 = vadd.f32 %v1972_v44, %v1971_v7  ;;  %v1974_v17 = vmul.f32 %v5120_v39, %v5037_v37 }
 0x1e7   :  { %v1953_v2 = vmul.f32 %v5130_v9, %v5037_v37  ;;  %v1980_v46 = vadd.f32 %v1979_v1, %v1978_v25  ;;  %v1981_v54 = vmul.f32 %v5130_v9, %v5071_v34  ;;  %v1989_v50 = vmul.f32 %v5043_v19, %v5019_v63 }
 0x1e8   :  { %v1990_v24 = vmul.f32 %v5057_v15, %v5045_v40  ;;  %v1986_v13 = vadd.f32 %v1985_v52, %v1984_v0  ;;  %v1996_v32 = vmul.f32 %v5043_v19, %v5037_v37  ;;  %v1997_v30 = vmul.f32 %v5071_v34, %v5045_v40 }
 0x1e9   :  { %v5155_v21 = vadd.f32 %v1953_v2, %v1952_v23  ;;  %v5161_v28 = vadd.f32 %v1960_v16, %v1959_v51  ;;  %v5163_v60 = vadd.f32 %v1967_v20, %v1966_v5  ;;  %v5165_v4 = vadd.f32 %v1974_v17, %v1973_v59 }
 0x1ea   :  { %v1987_v58 = vmul.f32 %v5132_v18, %v5071_v34  ;;  %v1992_v49 = vmul.f32 %v5080_v6, %v5057_v15  ;;  %v1994_v38 = vmul.f32 %v5134_v29, %v5071_v34  ;;  %v2003_v10 = vmul.f32 %v5073_v26, %v4989_v3 }
 0x1eb   :  { %v2004_v43 = vmul.f32 %v5078_v41, %v5043_v19  ;;  %v5177_v57 = vadd.f32 %v1981_v54, %v1980_v46  ;;  %v1991_v31 = vadd.f32 %v1990_v24, %v1989_v50  ;;  %v1999_v35 = vmul.f32 %v5090_v8, %v5057_v15 }
 0x1ec   :  { %v2001_v47 = vmul.f32 %v5120_v39, %v5071_v34  ;;  %v5183_v42 = vadd.f32 %v1987_v58, %v1986_v13  ;;  %v1998_v36 = vadd.f32 %v1997_v30, %v1996_v32  ;;  %v2010_v48 = vmul.f32 %v5073_v26, %v4995_v11 }
 0x1ed   :  { %v2011_v61 = vmul.f32 %v5078_v41, %v5045_v40  ;;  %v2029_v62 = vmul.f32 %v5130_v9, %v4989_v3  ;;  %v2030_v53 = vmul.f32 %v5132_v18, %v5043_v19  ;;  %v2036_v33 = vmul.f32 %v5130_v9, %v4995_v11 }
 0x1ee   :  { %v2037_v12 = vmul.f32 %v5132_v18, %v5045_v40  ;;  %v2005_v27 = vadd.f32 %v2004_v43, %v2003_v10  ;;  %v2006_v45 = vmul.f32 %v5080_v6, %v5073_v26  ;;  %v2022_v14 = vmul.f32 %v5073_v26, %v5037_v37 }
 0x1ef   :  { %v2023_v55 = vmul.f32 %v5078_v41, %v5071_v34  ;;  %v1993_v3 = vadd.f32 %v1992_v49, %v1991_v31  ;;  %v2008_v19 = vmul.f32 %v5130_v9, %v5090_v8  ;;  %v2043_v11 = vmul.f32 %v5130_v9, %v5019_v63 }
 0x1f0   :  { %v2044_v40 = vmul.f32 %v5132_v18, %v5057_v15  ;;  %v2012_v22 = vadd.f32 %v2011_v61, %v2010_v48  ;;  %v2013_v7 = vmul.f32 %v5080_v6, %v5078_v41  ;;  %v2017_v44 = vadd.f32 %v1985_v52, %v5114_v56 }
 0x1f1   :  { %v2018_v37 = vmul.f32 %v5080_v6, %v5080_v6  ;;  %v2031_v34 = vadd.f32 %v2030_v53, %v2029_v62  ;;  %v2032_v23 = vmul.f32 %v5134_v29, %v5073_v26  ;;  %v2038_v25 = vadd.f32 %v2037_v12, %v2036_v33 }
 0x1f2   :  { %v2039_v63 = vmul.f32 %v5134_v29, %v5078_v41  ;;  %v2000_v1 = vadd.f32 %v1999_v35, %v1998_v36  ;;  %v2007_v51 = vadd.f32 %v2006_v45, %v2005_v27  ;;  %v2024_v15 = vadd.f32 %v2023_v55, %v2022_v14 }
 0x1f3   :  { %v2025_v16 = vmul.f32 %v5090_v8, %v5080_v6  ;;  %v5220_v0 = vadd.f32 %v1994_v38, %v1993_v3  ;;  %v2015_v56 = vmul.f32 %v5132_v18, %v5090_v8  ;;  %v2045_v52 = vadd.f32 %v2044_v40, %v2043_v11 }
 0x1f4   :  { %v2046_v5 = vmul.f32 %v5134_v29, %v5080_v6  ;;  %v2014_v26 = vadd.f32 %v2013_v7, %v2012_v22  ;;  %v2019_v20 = vadd.f32 %v2018_v37, %v2017_v44  ;;  %v2020_v41 = vmul.f32 %v5134_v29, %v5090_v8 }
 0x1f5   :  { %v2034_v59 = vmul.f32 %v5120_v39, %v5130_v9  ;;  %v2033_v17 = vadd.f32 %v2032_v23, %v2031_v34  ;;  %v2040_v46 = vadd.f32 %v2039_v63, %v2038_v25  ;;  %v2041_v54 = vmul.f32 %v5120_v39, %v5132_v18 }
 0x1f6   :  { %v2050_v50 = vadd.f32 %v1987_v58, %v1953_v2  ;;  %v5232_v24 = vadd.f32 %v2001_v47, %v2000_v1  ;;  %v5234_v13 = vadd.f32 %v2008_v19, %v2007_v51  ;;  %v2026_v32 = vadd.f32 %v2025_v16, %v2024_v15 }
 0x1f7   :  { %v2027_v6 = vmul.f32 %v5120_v39, %v5090_v8  ;;  %v2047_v30 = vadd.f32 %v2046_v5, %v2045_v52  ;;  %v2048_v49 = vmul.f32 %v5120_v39, %v5134_v29  ;;  %v2054_v9 = vmul.f32 %v5155_v21, %v5155_v21 }
 0x1f8   :  { %v2055_v38 = vmul.f32 %v5177_v57, %v5161_v28  ;;  %v5244_v18 = vadd.f32 %v2015_v56, %v2014_v26  ;;  %v5246_v2 = vadd.f32 %v2020_v41, %v2019_v20  ;;  %v2061_v58 = vmul.f32 %v5161_v28, %v5155_v21 }
 0x1f9   :  { %v2062_v8 = vmul.f32 %v5183_v42, %v5161_v28  ;;  %v5252_v10 = vadd.f32 %v2034_v59, %v2033_v17  ;;  %v5254_v43 = vadd.f32 %v2041_v54, %v2040_v46  ;;  %v2051_v29 = vadd.f32 %v2050_v50, %v2020_v41 }
 0x1fa   :  { %v2052_v31 = vmul.f32 %v5120_v39, %v5120_v39  ;;  %v2068_v35 = vmul.f32 %v5163_v60, %v5155_v21  ;;  %v2069_v47 = vmul.f32 %v5220_v0, %v5161_v28  ;;  %v2075_v36 = vmul.f32 %v5165_v4, %v5155_v21 }
 0x1fb   :  { %v2076_v48 = vmul.f32 %v5232_v24, %v5161_v28  ;;  %v5266_v61 = vadd.f32 %v2027_v6, %v2026_v32  ;;  %v5268_v62 = vadd.f32 %v2048_v49, %v2047_v30  ;;  %v2056_v53 = vadd.f32 %v2055_v38, %v2054_v9 }
 0x1fc   :  { %v2057_v39 = vmul.f32 %v5234_v13, %v5163_v60  ;;  %v2063_v33 = vadd.f32 %v2062_v8, %v2061_v58  ;;  %v2064_v12 = vmul.f32 %v5244_v18, %v5163_v60  ;;  %v2082_v27 = vmul.f32 %v5177_v57, %v5155_v21 }
 0x1fd   :  { %v2083_v45 = vmul.f32 %v5183_v42, %v5177_v57  ;;  %v5278_v14 = vadd.f32 %v2052_v31, %v2051_v29  ;;  %v5282_v55 = vmul.f32 %v5252_v10, %v5165_v4  ;;  %v2089_v3 = vmul.f32 %v5183_v42, %v5183_v42 }
 0x1fe   :  { %v5288_v19 = vmul.f32 %v5254_v43, %v5232_v24  ;;  %v2070_v11 = vadd.f32 %v2069_v47, %v2068_v35  ;;  %v2071_v40 = vmul.f32 %v5246_v2, %v5163_v60  ;;  %v2077_v22 = vadd.f32 %v2076_v48, %v2075_v36 }
 0x1ff   :  { %v2078_v7 = vmul.f32 %v5266_v61, %v5163_v60  ;;  %v5294_v44 = vadd.f32 %v2057_v39, %v2056_v53  ;;  %v5298_v37 = vmul.f32 %v5254_v43, %v5165_v4  ;;  %v5302_v34 = vmul.f32 %v5268_v62, %v5266_v61 }
 0x200   :  { %v5304_v23 = vadd.f32 %v2064_v12, %v2063_v33  ;;  %v5308_v25 = vmul.f32 %v5268_v62, %v5165_v4  ;;  %v2084_v63 = vadd.f32 %v2083_v45, %v2082_v27  ;;  %v2085_v1 = vmul.f32 %v5234_v13, %v5220_v0 }
 0x201   :  { %v5314_v51 = vmul.f32 %v5278_v14, %v5165_v4  ;;  %v2090_v15 = vadd.f32 %v2089_v3, %v2055_v38  ;;  %v2156_v16 = vadd.f32 %v5288_v19, %v5282_v55  ;;  %v2158_v56 = vmul.f32 %v5278_v14, %v5278_v14 }
 0x202   :  { %v2072_v52 = vadd.f32 %v2071_v40, %v2070_v11  ;;  %v2079_v5 = vadd.f32 %v2078_v7, %v2077_v22  ;;  %v2095_v26 = vmul.f32 %v5177_v57, %v5163_v60  ;;  %v2096_v20 = vmul.f32 %v5220_v0, %v5183_v42 }
 0x203   :  { %v2087_v41 = vmul.f32 %v5252_v10, %v5232_v24  ;;  %v2091_v59 = vmul.f32 %v5244_v18, %v5220_v0  ;;  %v2098_v17 = vmul.f32 %v5246_v2, %v5220_v0  ;;  %v2157_v46 = vadd.f32 %v2156_v16, %v5302_v34 }
 0x204   :  { %v2086_v54 = vadd.f32 %v2085_v1, %v2084_v63  ;;  %v2100_v50 = vmul.f32 %v5268_v62, %v5232_v24  ;;  %v2102_v32 = vmul.f32 %v5177_v57, %v5165_v4  ;;  %v2103_v6 = vmul.f32 %v5232_v24, %v5183_v42 }
 0x205   :  { %v2092_v30 = vadd.f32 %v2091_v59, %v2090_v15  ;;  %v2109_v49 = vmul.f32 %v5234_v13, %v5155_v21  ;;  %v2110_v9 = vmul.f32 %v5244_v18, %v5177_v57  ;;  %v5341_v38 = vadd.f32 %v2158_v56, %v2157_v46 }
 0x206   :  { %v2097_v58 = vadd.f32 %v2096_v20, %v2095_v26  ;;  %v2116_v8 = vmul.f32 %v5234_v13, %v5161_v28  ;;  %v2117_v29 = vmul.f32 %v5244_v18, %v5183_v42  ;;  %v2128_v31 = vmul.f32 %v5234_v13, %v5165_v4 }
 0x207   :  { %v2129_v35 = vmul.f32 %v5244_v18, %v5232_v24  ;;  %v2135_v47 = vmul.f32 %v5252_v10, %v5155_v21  ;;  %v2136_v36 = vmul.f32 %v5254_v43, %v5177_v57  ;;  %2342 = vrcp.f32 %v5341_v38 }
 0x208   :  { %v2142_v48 = vmul.f32 %v5252_v10, %v5161_v28  ;;  %v2143_v53 = vmul.f32 %v5254_v43, %v5183_v42  ;;  %v2149_v4 = vmul.f32 %v5252_v10, %v5163_v60  ;;  %v2150_v33 = vmul.f32 %v5254_v43, %v5220_v0 }
 0x209   :  { %v2104_v12 = vadd.f32 %v2103_v6, %v2102_v32  ;;  %v2105_v21 = vmul.f32 %v5266_v61, %v5220_v0  ;;  %v2111_v27 = vadd.f32 %v2110_v9, %v2109_v49  ;;  %v2112_v57 = vmul.f32 %v5246_v2, %v5234_v13 }
 0x20a   :  { %v2118_v45 = vadd.f32 %v2117_v29, %v2116_v8  ;;  %v2119_v28 = vmul.f32 %v5246_v2, %v5244_v18  ;;  %v2123_v3 = vadd.f32 %v2091_v59, %v2057_v39  ;;  %v2124_v42 = vmul.f32 %v5246_v2, %v5246_v2 }
 0x20b   :  { %v2130_v60 = vadd.f32 %v2129_v35, %v2128_v31  ;;  %v2131_v11 = vmul.f32 %v5266_v61, %v5246_v2  ;;  %v2137_v40 = vadd.f32 %v2136_v36, %v2135_v47  ;;  %v2138_v0 = vmul.f32 %v5268_v62, %v5234_v13 }
 0x20c   :  { %v2144_v22 = vadd.f32 %v2143_v53, %v2142_v48  ;;  %v2145_v7 = vmul.f32 %v5268_v62, %v5244_v18  ;;  %v2151_v63 = vadd.f32 %v2150_v33, %v2149_v4  ;;  %v2152_v1 = vmul.f32 %v5268_v62, %v5246_v2 }
 0x20d   :  { %v2099_v39 = vadd.f32 %v2098_v17, %v2097_v58  ;;  %v2106_v15 = vadd.f32 %v2105_v21, %v2104_v12  ;;  %v2107_v16 = vmul.f32 %v5278_v14, %v5232_v24  ;;  %v2114_v56 = vmul.f32 %v5252_v10, %v5266_v61 }
 0x20e   :  { %v2113_v26 = vadd.f32 %v2112_v57, %v2111_v27  ;;  %v2120_v20 = vadd.f32 %v2119_v28, %v2118_v45  ;;  %v2121_v13 = vmul.f32 %v5254_v43, %v5266_v61  ;;  %v2125_v59 = vadd.f32 %v2124_v42, %v2123_v3 }
 0x20f   :  { %v2132_v46 = vadd.f32 %v2131_v11, %v2130_v60  ;;  %v2133_v18 = vmul.f32 %v5278_v14, %v5266_v61  ;;  %v2140_v2 = vmul.f32 %v5278_v14, %v5252_v10  ;;  %v2147_v17 = vmul.f32 %v5278_v14, %v5254_v43 }
 0x210   :  { %v2139_v24 = vadd.f32 %v2138_v0, %v2137_v40  ;;  %v2146_v32 = vadd.f32 %v2145_v7, %v2144_v22  ;;  %v2153_v6 = vadd.f32 %v2152_v1, %v2151_v63  ;;  %v2154_v49 = vmul.f32 %v5278_v14, %v5268_v62 }
 0x211   :  { %v2060_v9 = vadd.f32 %v5282_v55, %v5294_v44  ;;  %v2067_v58 = vadd.f32 %v5298_v37, %v5304_v23  ;;  %v2074_v61 = vadd.f32 %v5308_v25, %v2072_v52  ;;  %v2081_v8 = vadd.f32 %v5314_v51, %v2079_v5 }
 0x212   :  { %v2088_v10 = vadd.f32 %v2087_v41, %v2086_v54  ;;  %v2094_v29 = vadd.f32 %v5288_v19, %v2092_v30  ;;  %v2101_v43 = vadd.f32 %v2100_v50, %v2099_v39  ;;  %v2108_v31 = vadd.f32 %v2107_v16, %v2106_v15 }
 0x213   :  { %v2115_v35 = vadd.f32 %v2114_v56, %v2113_v26  ;;  %v2122_v47 = vadd.f32 %v2121_v13, %v2120_v20  ;;  %v2127_v36 = vadd.f32 %v5302_v34, %v2125_v59  ;;  %v2134_v62 = vadd.f32 %v2133_v18, %v2132_v46 }
 0x214   :  { %v2343_v14 = vpop.eup %2342  ;;  %v2141_v48 = vadd.f32 %v2140_v2, %v2139_v24  ;;  %v2148_v55 = vadd.f32 %v2147_v17, %v2146_v32  ;;  %v2155_v44 = vadd.f32 %v2154_v49, %v2153_v6 }
 0x215   :  { %v2161_v53 = vmul.f32 %v2343_v14, %v2060_v9  ;;  %v2163_v37 = vmul.f32 %v2343_v14, %v2067_v58  ;;  %v2166_v23 = vmul.f32 %v2343_v14, %v2074_v61  ;;  %v2169_v25 = vmul.f32 %v2343_v14, %v2081_v8 }
 0x216   :  { %v2172_v51 = vmul.f32 %v2343_v14, %v2088_v10  ;;  %v2175_v52 = vmul.f32 %v2343_v14, %v2094_v29  ;;  %v2178_v19 = vmul.f32 %v2343_v14, %v2101_v43  ;;  %v2181_v5 = vmul.f32 %v2343_v14, %v2108_v31 }
 0x217   :  { %2162 = vst [vmem:[#allocation7] sm:$0xff] %v2161_v53  ;;  %2165 = vst [vmem:[#allocation7 + $0x8] sm:$0xff] %v2163_v37  ;;  %v2184_v34 = vmul.f32 %v2343_v14, %v2115_v35  ;;  %v2187_v41 = vmul.f32 %v2343_v14, %v2122_v47  ;;  %v2190_v54 = vmul.f32 %v2343_v14, %v2127_v36 }
 0x218   :  { %2168 = vst [vmem:[#allocation7 + $0x10] sm:$0xff] %v2166_v23  ;;  %2171 = vst [vmem:[#allocation7 + $0x18] sm:$0xff] %v2169_v25  ;;  %v2193_v50 = vmul.f32 %v2343_v14, %v2134_v62  ;;  %v2196_v30 = vmul.f32 %v2343_v14, %v2141_v48  ;;  %v2199_v4 = vmul.f32 %v2343_v14, %v2148_v55 }
 0x219   :  { %2174 = vst [vmem:[#allocation7 + $0x20] sm:$0xff] %v2172_v51  ;;  %2177 = vst [vmem:[#allocation7 + $0x28] sm:$0xff] %v2175_v52  ;;  %v2202_v33 = vmul.f32 %v2343_v14, %v2155_v44  ;;  %v2205_v12 = vmul.f32 %v2343_v14, %v5341_v38 }
 0x21a   :  { %2180 = vst [vmem:[#allocation7 + $0x30] sm:$0xff] %v2178_v19  ;;  %2183 = vst [vmem:[#allocation7 + $0x38] sm:$0xff] %v2181_v5 }
 0x21b   :  { %2186 = vst [vmem:[#allocation7 + $0x40] sm:$0xff] %v2184_v34  ;;  %2189 = vst [vmem:[#allocation7 + $0x48] sm:$0xff] %v2187_v41 }
 0x21c   :  { %2192 = vst [vmem:[#allocation7 + $0x50] sm:$0xff] %v2190_v54  ;;  %2195 = vst [vmem:[#allocation7 + $0x58] sm:$0xff] %v2193_v50 }
 0x21d   :  { %2198 = vst [vmem:[#allocation7 + $0x60] sm:$0xff] %v2196_v30  ;;  %2201 = vst [vmem:[#allocation7 + $0x68] sm:$0xff] %v2199_v4 }
 0x21e   :  { %2204 = vst [vmem:[#allocation7 + $0x70] sm:$0xff] %v2202_v33  ;;  %2207 = vst [vmem:[#allocation7 + $0x78] sm:$0xff] %v2205_v12 }
 0x21f   :  { %2390 = shalt.err (!%p2387_p9)
}
 0x220   :  { %s5513_s10 = smov 8   ;;  %s5514_s29 = smov 128  }
 0x221   :  { %s5515_s25 = sld [smem:[#allocation22_spill]] }
 0x227   :  { %2219 = dma.vmem_to_hbm [thread:$0]  %s2214_s16, 2048, %s5515_s25, [#allocation4], %s5514_s29, %s5514_s29, %s5513_s10  }
 0x228   :  { %2403 = dma.done.wait [#allocation4], 2048  }
 0x229   :  { %2404 = vsyncadd [#allocation4], 4294965248 }
 0x22a   :  { %2223 = vsyncpa [#allocation3], 1 }
 0x22b   :  { %2224 = vsyncpa [#allocation4], 1 }
 0x22c   :  { %2225 = vsyncpa [#allocation5], 1 }

</bundles_post_ra>
